<compile_context>
chip_gen: v7x
topology: tpu7x:2x2x1
jax: 0.10.0
libtpu: 0.0.40
codegen_flags: <defaults>
</compile_context>

<pallas_src>
import functools

import jax
import jax.numpy as jnp
from jax.experimental import pallas as pl
from jax.experimental.pallas import tpu as pltpu

EPS = 1e-5


@functools.lru_cache(maxsize=None)
def _vmem_limit_bytes():
    """Generation-aware scoped-VMEM limit (128 MiB parts get a bigger budget)."""
    try:
        cap = int(pltpu.get_tpu_info().vmem_capacity_bytes)
    except Exception:  # interpret mode / older runtimes: assume the v7x floor.
        cap = 64 * 1024 * 1024
    return max(32 * 1024 * 1024, (cap * 3) // 4)


def _pick_rows(r, cap=4096):
    """Largest row tile (multiple of 8, <= cap) dividing r; None if there is none."""
    for c in (4096, 2048, 1024, 512, 256, 128, 64, 32, 16, 8):
        if c <= cap and r % c == 0:
            return c
    return None


# --------------------------- pass 1: conv + stats -----------------------------
def _conv_stats_kernel(x_ref, w_ref, y_ref, s1_ref, s2_ref, *scratch,
                       KH, KW, H, W, ph, pw):
    """One sample per grid step.

    x_ref:  (1, H, W, Cin)            input block (f32 or bf16)
    w_ref:  (KH*KW*Cin, Cout)  bf16   weights (grid-resident)
    y_ref:  (1, H*W, Cout)     bf16   conv output (pre-BN)
    s1_ref: (1, 1, Cout)       f32    per-sample channel sum
    s2_ref: (1, 1, Cout)       f32    per-sample channel sum of squares
    scratch (3x3 path): xp_ref (Hp, Wp, Cin) bf16, patch_ref (H*W, KH*KW*Cin) bf16
    """
    Cin = x_ref.shape[-1]
    cdt = w_ref.dtype

    if KH == 1 and KW == 1:
        # 1x1 conv: no padding / im2col needed.
        patch = x_ref[0].reshape(H * W, Cin).astype(cdt)
    else:
        xp_ref, patch_ref = scratch
        # In-kernel zero pad (replaces the per-layer jnp.pad+cast HBM round trip).
        # Zeroed every step (not only step 0) so a megacore-split grid stays correct.
        xp_ref[...] = jnp.zeros_like(xp_ref)
        xp_ref[ph:ph + H, pw:pw + W, :] = x_ref[0].astype(cdt)
        # In-VMEM im2col: each tap written once into its column slab (no RMW).
        for dy in range(KH):
            for dx in range(KW):
                col = (dy * KW + dx) * Cin
                patch_ref[:, col:col + Cin] = (
                    xp_ref[dy:dy + H, dx:dx + W, :].reshape(H * W, Cin))
        patch = patch_ref[...]

    # ONE MXU matmul, contraction depth KH*KW*Cin; result held in vregs (f32).
    acc = jnp.dot(patch, w_ref[...], preferred_element_type=jnp.float32)

    y_ref[...] = acc.astype(y_ref.dtype)[None]
    s1_ref[...] = jnp.sum(acc, axis=0, keepdims=True)[None]
    s2_ref[...] = jnp.sum(acc * acc, axis=0, keepdims=True)[None]


def _conv_pass(x, w):
    """x: (N,H,W,Cin) f32/bf16, w: (KH,KW,Cin,Cout) f32.
    Returns (conv_out (N,H*W,Cout) bf16, sum (N,1,Cout) f32, sumsq (N,1,Cout) f32)."""
    N, H, W, Cin = x.shape
    KH, KW, _, Cout = w.shape
    assert KH % 2 == 1 and KW % 2 == 1, "odd kernels give PyTorch 'same' output here"
    ph, pw = KH // 2, KW // 2
    Hp, Wp = H + 2 * ph, W + 2 * pw

    # Weights flattened so one matmul covers all taps; tiny, cast in glue.
    wk = w.reshape(KH * KW * Cin, Cout).astype(jnp.bfloat16)

    scratch_shapes = []
    if not (KH == 1 and KW == 1):
        scratch_shapes = [
            pltpu.VMEM((Hp, Wp, Cin), jnp.bfloat16),              # padded sample
            pltpu.VMEM((H * W, KH * KW * Cin), jnp.bfloat16),     # im2col patch
        ]

    kernel = functools.partial(_conv_stats_kernel,
                               KH=KH, KW=KW, H=H, W=W, ph=ph, pw=pw)
    y, s1, s2 = pl.pallas_call(
        kernel,
        grid=(N,),
        in_specs=[
            pl.BlockSpec((1, H, W, Cin), lambda n: (n, 0, 0, 0)),
            pl.BlockSpec((KH * KW * Cin, Cout), lambda n: (0, 0)),
        ],
        out_specs=(
            pl.BlockSpec((1, H * W, Cout), lambda n: (n, 0, 0)),
            pl.BlockSpec((1, 1, Cout), lambda n: (n, 0, 0)),
            pl.BlockSpec((1, 1, Cout), lambda n: (n, 0, 0)),
        ),
        out_shape=(
            jax.ShapeDtypeStruct((N, H * W, Cout), jnp.bfloat16),
            jax.ShapeDtypeStruct((N, 1, Cout), jnp.float32),
            jax.ShapeDtypeStruct((N, 1, Cout), jnp.float32),
        ),
        scratch_shapes=scratch_shapes,
        compiler_params=pltpu.CompilerParams(
            dimension_semantics=("parallel",),
            vmem_limit_bytes=_vmem_limit_bytes(),
        ),
    )(x, wk)
    return y, s1, s2


# ---------------------- pass 2: BN affine (+res) (+relu) ----------------------
def _bn_apply_kernel(y_ref, scale_ref, shift_ref, *rest, apply_relu, add_residual):
    """y_ref: (TR, L) bf16; scale/shift: (1, L) f32; optional res_ref: (TR, L);
    o_ref: (TR, L) out dtype. One FMA per element (+ add, + relu)."""
    if add_residual:
        res_ref, o_ref = rest
    else:
        (o_ref,) = rest
    y = y_ref[...].astype(jnp.float32) * scale_ref[...] + shift_ref[...]
    if add_residual:
        y = y + res_ref[...].astype(jnp.float32)
    if apply_relu:
        y = jnp.maximum(y, 0.0)
    o_ref[...] = y.astype(o_ref.dtype)


def _bn_apply(y, scale, shift, residual, apply_relu, out_dtype):
    """y: (M, Cout) bf16; scale/shift: (Cout,) f32; residual: (M, Cout) or None."""
    M, Cout = y.shape
    add_residual = residual is not None
    total = M * Cout

    # Lane-dense layout: view the row-major (M, Cout) buffer as (total/128, 128) so
    # stores use all 128 lanes; scale/shift get tiled to a 128-lane period in glue.
    lane_dense = (128 % Cout == 0) and (total % 128 == 0)
    TR = None
    if lane_dense:
        R = total // 128
        TR = _pick_rows(R)
        lane_dense = TR is not None

    if lane_dense:
        rep = 128 // Cout
        y2 = y.reshape(R, 128)
        sc = jnp.tile(scale.astype(jnp.float32), rep).reshape(1, 128)
        sh = jnp.tile(shift.astype(jnp.float32), rep).reshape(1, 128)
        res2 = residual.reshape(R, 128) if add_residual else None
        rows, lanes, tr = R, 128, TR
    else:
        # Fallback (Cout doesn't pack into 128 lanes): channel-minor tiles.
        tr = _pick_rows(M) or M
        y2 = y
        sc = scale.astype(jnp.float32).reshape(1, Cout)
        sh = shift.astype(jnp.float32).reshape(1, Cout)
        res2 = residual if add_residual else None
        rows, lanes = M, Cout

    inputs = [y2, sc, sh]
    in_specs = [
        pl.BlockSpec((tr, lanes), lambda i: (i, 0)),
        pl.BlockSpec((1, lanes), lambda i: (0, 0)),
        pl.BlockSpec((1, lanes), lambda i: (0, 0)),
    ]
    if add_residual:
        inputs.append(res2)
        in_specs.append(pl.BlockSpec((tr, lanes), lambda i: (i, 0)))

    kernel = functools.partial(_bn_apply_kernel, apply_relu=apply_relu,
                               add_residual=add_residual)
    out = pl.pallas_call(
        kernel,
        grid=(rows // tr,),
        in_specs=in_specs,
        out_specs=pl.BlockSpec((tr, lanes), lambda i: (i, 0)),
        out_shape=jax.ShapeDtypeStruct((rows, lanes), out_dtype),
        compiler_params=pltpu.CompilerParams(
            dimension_semantics=("parallel",),
            vmem_limit_bytes=_vmem_limit_bytes(),
        ),
    )(*inputs)
    return out.reshape(M, Cout)


# ------------------------------- layer wrapper --------------------------------
def conv_bn(x, w, gamma, beta, *, apply_relu, residual=None, out_dtype=jnp.float32):
    """'same' stride-1 conv (no bias) + training-mode BatchNorm, optional residual
    add and ReLU. x: (N,H,W,Cin) -> (N,H,W,Cout) out_dtype."""
    N, H, W, _ = x.shape
    Cout = w.shape[-1]
    M = N * H * W

    y, s1, s2 = _conv_pass(x, w)                     # Pallas pass 1

    # Tiny per-channel glue between the two passes (f32).
    total1 = jnp.sum(s1, axis=(0, 1))                # (Cout,)
    total2 = jnp.sum(s2, axis=(0, 1))                # (Cout,)
    mean = total1 / M
    var = jnp.maximum(total2 / M - mean * mean, 0.0)  # biased variance
    scale = gamma.astype(jnp.float32) * jax.lax.rsqrt(var + EPS)
    shift = beta.astype(jnp.float32) - mean * scale

    res2 = None
    if residual is not None:
        assert residual.shape == (N, H, W, Cout)
        res2 = residual.reshape(M, Cout)

    out = _bn_apply(y.reshape(M, Cout), scale, shift, res2, apply_relu, out_dtype)
    return out.reshape(N, H, W, Cout)


def resblock_forward(x_nchw, params):
    """Pallas implementation of ResBlock.forward. x_nchw: (N, C, H, W) f32."""
    x = jnp.transpose(x_nchw, (0, 2, 3, 1))  # -> NHWC
    main = params["main"]

    # Shortcut branch: conv + bn (Conv Block) or pure identity (Identity Block).
    if params.get("skip") is not None:
        sp = params["skip"]
        skip = conv_bn(x, sp["w"], sp["gamma"], sp["beta"], apply_relu=False,
                       out_dtype=jnp.bfloat16)
    else:
        assert x.shape[-1] == main[-1]["w"].shape[-1], "identity skip needs Cin==Cout"
        skip = x

    # Main branch: conv+bn+relu for all but the last layer; the last layer fuses the
    # residual add + final relu into its BN-apply pass.  Intermediates stay bf16.
    fx = x
    for i, p in enumerate(main):
        last = i == len(main) - 1
        fx = conv_bn(fx, p["w"], p["gamma"], p["beta"], apply_relu=True,
                     residual=skip if last else None,
                     out_dtype=jnp.float32 if last else jnp.bfloat16)
    return jnp.transpose(fx, (0, 3, 1, 2))  # -> NCHW


# ------------------------------ reference -------------------------------------
def _conv_bn_ref(x, w, gamma, beta, relu):
    y = jax.lax.conv_general_dilated(
        x, w, (1, 1),
        ((w.shape[0] // 2, w.shape[0] // 2), (w.shape[1] // 2, w.shape[1] // 2)),
        dimension_numbers=("NHWC", "HWIO", "NHWC"),
        precision=jax.lax.Precision.HIGHEST,
    )
    mean = y.mean(axis=(0, 1, 2), keepdims=True)
    var = ((y - mean) ** 2).mean(axis=(0, 1, 2), keepdims=True)
    y = (y - mean) * jax.lax.rsqrt(var + EPS)
    y = y * gamma.reshape(1, 1, 1, -1) + beta.reshape(1, 1, 1, -1)
    return jnp.maximum(y, 0.0) if relu else y


def _resblock_ref(x_nchw, params):
    x = jnp.transpose(x_nchw, (0, 2, 3, 1))
    if params.get("skip") is not None:
        sp = params["skip"]
        skip = _conv_bn_ref(x, sp["w"], sp["gamma"], sp["beta"], relu=False)
    else:
        skip = x
    fx = x
    main = params["main"]
    for i, p in enumerate(main):
        fx = _conv_bn_ref(fx, p["w"], p["gamma"], p["beta"],
                          relu=(i < len(main) - 1))
    return jnp.transpose(jnp.maximum(fx + skip, 0.0), (0, 3, 1, 2))


# --------------------------------- main ----------------------------------------
def _init_params(key, main_conv_shapes, skip_conv_shape):
    """Deterministic parameter init. Conv shapes are (KH, KW, Cin, Cout)."""
    params = {"main": [], "skip": None}
    for shape in main_conv_shapes:
        key, sub = jax.random.split(key)
        kh, kw, ci, co = shape
        w = jax.random.normal(sub, (kh, kw, ci, co), jnp.float32) * 0.1
        params["main"].append(
            {"w": w, "gamma": jnp.ones((co,), jnp.float32),
             "beta": jnp.zeros((co,), jnp.float32)}
        )
    if skip_conv_shape is not None:
        key, sub = jax.random.split(key)
        kh, kw, ci, co = skip_conv_shape
        w = jax.random.normal(sub, (kh, kw, ci, co), jnp.float32) * 0.1
        params["skip"] = {"w": w, "gamma": jnp.ones((co,), jnp.float32),
                          "beta": jnp.zeros((co,), jnp.float32)}
    return params


if __name__ == "__main__":
    key = jax.random.PRNGKey(0)
    key, xkey = jax.random.split(key)

    # Small "Conv Block" config: two 3x3 main convs (4->8->8), 1x1 skip conv (4->8).
    main_conv_shapes = [(3, 3, 4, 8), (3, 3, 8, 8)]
    skip_conv_shape = (1, 1, 4, 8)
    params = _init_params(key, main_conv_shapes, skip_conv_shape)

    x = jax.random.normal(xkey, (2, 4, 16, 16), jnp.float32)  # NCHW like PyTorch

    fwd = jax.jit(resblock_forward)
    out = jax.block_until_ready(fwd(x, params))

    ref = jax.block_until_ready(_resblock_ref(x, params))
    assert out.shape == (2, 8, 16, 16)
    assert jnp.allclose(out, ref, rtol=5e-2, atol=5e-2), (
        f"max abs diff {float(jnp.max(jnp.abs(out - ref)))}"
    )

    print("KERNEL_OK")
</pallas_src>

<mosaic_0001>
module attributes {stable_mosaic.version = 11 : i64} {
  func.func @_conv_stats_kernel(%arg0: i32, %arg1: memref<1x16x16x4xf32, #tpu.memory_space<vmem>>, %arg2: memref<36x8xbf16, #tpu.memory_space<vmem>>, %arg3: memref<1x256x8xbf16, #tpu.memory_space<vmem>>, %arg4: memref<1x1x8xf32, #tpu.memory_space<vmem>>, %arg5: memref<1x1x8xf32, #tpu.memory_space<vmem>>, %arg6: memref<18x18x4xbf16, #tpu.memory_space<vmem>>, %arg7: memref<256x36xbf16, #tpu.memory_space<vmem>>) attributes {dimension_semantics = [#tpu.dimension_semantics<parallel>], iteration_bounds = array<i64: 2>, scalar_prefetch = 0 : i64, scratch_operands = 2 : i64, tpu.core_type = #tpu.core_type<tc>, window_params = [{transform_indices = @transform_0, window_bounds = array<i64: 1, 16, 16, 4>}, {pipeline_mode = #tpu.pipeline_mode<synchronous>, transform_indices = @transform_1, window_bounds = array<i64: 36, 8>}, {transform_indices = @transform_2, window_bounds = array<i64: 1, 256, 8>}, {transform_indices = @transform_3, window_bounds = array<i64: 1, 1, 8>}, {transform_indices = @transform_4, window_bounds = array<i64: 1, 1, 8>}]} {
    %cst = arith.constant 0.000000e+00 : bf16
    %0 = vector.broadcast %cst : bf16 to vector<18x18x4xbf16>
    %c0 = arith.constant 0 : index
    %c0_0 = arith.constant 0 : index
    %c0_1 = arith.constant 0 : index
    %1 = vector.load %arg6[%c0, %c0_0, %c0_1] : memref<18x18x4xbf16, #tpu.memory_space<vmem>>, vector<18x18x4xbf16>
    tpu.vector_store %arg6[%c0, %c0_0, %c0_1], %0 {strides = array<i32>} : memref<18x18x4xbf16, #tpu.memory_space<vmem>>, vector<18x18x4xbf16>,
    %c0_2 = arith.constant 0 : index
    %c0_3 = arith.constant 0 : index
    %c0_4 = arith.constant 0 : index
    %c0_5 = arith.constant 0 : index
    %2 = vector.load %arg1[%c0_2, %c0_3, %c0_4, %c0_5] : memref<1x16x16x4xf32, #tpu.memory_space<vmem>>, vector<1x16x16x4xf32>
    %3 = vector.shape_cast %2 : vector<1x16x16x4xf32> to vector<16x16x4xf32>
    %4 = arith.truncf %3 : vector<16x16x4xf32> to vector<16x16x4xbf16>
    %c1 = arith.constant 1 : index
    %c1_6 = arith.constant 1 : index
    %c0_7 = arith.constant 0 : index
    %5 = vector.load %arg6[%c1, %c1_6, %c0_7] : memref<18x18x4xbf16, #tpu.memory_space<vmem>>, vector<16x16x4xbf16>
    tpu.vector_store %arg6[%c1, %c1_6, %c0_7], %4 {strides = array<i32>} : memref<18x18x4xbf16, #tpu.memory_space<vmem>>, vector<16x16x4xbf16>,
    %c0_8 = arith.constant 0 : index
    %c0_9 = arith.constant 0 : index
    %c0_10 = arith.constant 0 : index
    %6 = vector.load %arg6[%c0_8, %c0_9, %c0_10] : memref<18x18x4xbf16, #tpu.memory_space<vmem>>, vector<16x16x4xbf16>
    %7 = vector.shape_cast %6 : vector<16x16x4xbf16> to vector<256x4xbf16>
    %c0_11 = arith.constant 0 : index
    %c0_12 = arith.constant 0 : index
    %8 = vector.load %arg7[%c0_11, %c0_12] : memref<256x36xbf16, #tpu.memory_space<vmem>>, vector<256x4xbf16>
    tpu.vector_store %arg7[%c0_11, %c0_12], %7 {strides = array<i32>} : memref<256x36xbf16, #tpu.memory_space<vmem>>, vector<256x4xbf16>,
    %c0_13 = arith.constant 0 : index
    %c1_14 = arith.constant 1 : index
    %c0_15 = arith.constant 0 : index
    %9 = vector.load %arg6[%c0_13, %c1_14, %c0_15] : memref<18x18x4xbf16, #tpu.memory_space<vmem>>, vector<16x16x4xbf16>
    %10 = vector.shape_cast %9 : vector<16x16x4xbf16> to vector<256x4xbf16>
    %c0_16 = arith.constant 0 : index
    %c4 = arith.constant 4 : index
    %11 = vector.load %arg7[%c0_16, %c4] : memref<256x36xbf16, #tpu.memory_space<vmem>>, vector<256x4xbf16>
    tpu.vector_store %arg7[%c0_16, %c4], %10 {strides = array<i32>} : memref<256x36xbf16, #tpu.memory_space<vmem>>, vector<256x4xbf16>,
    %c0_17 = arith.constant 0 : index
    %c2 = arith.constant 2 : index
    %c0_18 = arith.constant 0 : index
    %12 = vector.load %arg6[%c0_17, %c2, %c0_18] : memref<18x18x4xbf16, #tpu.memory_space<vmem>>, vector<16x16x4xbf16>
    %13 = vector.shape_cast %12 : vector<16x16x4xbf16> to vector<256x4xbf16>
    %c0_19 = arith.constant 0 : index
    %c8 = arith.constant 8 : index
    %14 = vector.load %arg7[%c0_19, %c8] : memref<256x36xbf16, #tpu.memory_space<vmem>>, vector<256x4xbf16>
    tpu.vector_store %arg7[%c0_19, %c8], %13 {strides = array<i32>} : memref<256x36xbf16, #tpu.memory_space<vmem>>, vector<256x4xbf16>,
    %c1_20 = arith.constant 1 : index
    %c0_21 = arith.constant 0 : index
    %c0_22 = arith.constant 0 : index
    %15 = vector.load %arg6[%c1_20, %c0_21, %c0_22] : memref<18x18x4xbf16, #tpu.memory_space<vmem>>, vector<16x16x4xbf16>
    %16 = vector.shape_cast %15 : vector<16x16x4xbf16> to vector<256x4xbf16>
    %c0_23 = arith.constant 0 : index
    %c12 = arith.constant 12 : index
    %17 = vector.load %arg7[%c0_23, %c12] : memref<256x36xbf16, #tpu.memory_space<vmem>>, vector<256x4xbf16>
    tpu.vector_store %arg7[%c0_23, %c12], %16 {strides = array<i32>} : memref<256x36xbf16, #tpu.memory_space<vmem>>, vector<256x4xbf16>,
    %c1_24 = arith.constant 1 : index
    %c1_25 = arith.constant 1 : index
    %c0_26 = arith.constant 0 : index
    %18 = vector.load %arg6[%c1_24, %c1_25, %c0_26] : memref<18x18x4xbf16, #tpu.memory_space<vmem>>, vector<16x16x4xbf16>
    %19 = vector.shape_cast %18 : vector<16x16x4xbf16> to vector<256x4xbf16>
    %c0_27 = arith.constant 0 : index
    %c16 = arith.constant 16 : index
    %20 = vector.load %arg7[%c0_27, %c16] : memref<256x36xbf16, #tpu.memory_space<vmem>>, vector<256x4xbf16>
    tpu.vector_store %arg7[%c0_27, %c16], %19 {strides = array<i32>} : memref<256x36xbf16, #tpu.memory_space<vmem>>, vector<256x4xbf16>,
    %c1_28 = arith.constant 1 : index
    %c2_29 = arith.constant 2 : index
    %c0_30 = arith.constant 0 : index
    %21 = vector.load %arg6[%c1_28, %c2_29, %c0_30] : memref<18x18x4xbf16, #tpu.memory_space<vmem>>, vector<16x16x4xbf16>
    %22 = vector.shape_cast %21 : vector<16x16x4xbf16> to vector<256x4xbf16>
    %c0_31 = arith.constant 0 : index
    %c20 = arith.constant 20 : index
    %23 = vector.load %arg7[%c0_31, %c20] : memref<256x36xbf16, #tpu.memory_space<vmem>>, vector<256x4xbf16>
    tpu.vector_store %arg7[%c0_31, %c20], %22 {strides = array<i32>} : memref<256x36xbf16, #tpu.memory_space<vmem>>, vector<256x4xbf16>,
    %c2_32 = arith.constant 2 : index
    %c0_33 = arith.constant 0 : index
    %c0_34 = arith.constant 0 : index
    %24 = vector.load %arg6[%c2_32, %c0_33, %c0_34] : memref<18x18x4xbf16, #tpu.memory_space<vmem>>, vector<16x16x4xbf16>
    %25 = vector.shape_cast %24 : vector<16x16x4xbf16> to vector<256x4xbf16>
    %c0_35 = arith.constant 0 : index
    %c24 = arith.constant 24 : index
    %26 = vector.load %arg7[%c0_35, %c24] : memref<256x36xbf16, #tpu.memory_space<vmem>>, vector<256x4xbf16>
    tpu.vector_store %arg7[%c0_35, %c24], %25 {strides = array<i32>} : memref<256x36xbf16, #tpu.memory_space<vmem>>, vector<256x4xbf16>,
    %c2_36 = arith.constant 2 : index
    %c1_37 = arith.constant 1 : index
    %c0_38 = arith.constant 0 : index
    %27 = vector.load %arg6[%c2_36, %c1_37, %c0_38] : memref<18x18x4xbf16, #tpu.memory_space<vmem>>, vector<16x16x4xbf16>
    %28 = vector.shape_cast %27 : vector<16x16x4xbf16> to vector<256x4xbf16>
    %c0_39 = arith.constant 0 : index
    %c28 = arith.constant 28 : index
    %29 = vector.load %arg7[%c0_39, %c28] : memref<256x36xbf16, #tpu.memory_space<vmem>>, vector<256x4xbf16>
    tpu.vector_store %arg7[%c0_39, %c28], %28 {strides = array<i32>} : memref<256x36xbf16, #tpu.memory_space<vmem>>, vector<256x4xbf16>,
    %c2_40 = arith.constant 2 : index
    %c2_41 = arith.constant 2 : index
    %c0_42 = arith.constant 0 : index
    %30 = vector.load %arg6[%c2_40, %c2_41, %c0_42] : memref<18x18x4xbf16, #tpu.memory_space<vmem>>, vector<16x16x4xbf16>
    %31 = vector.shape_cast %30 : vector<16x16x4xbf16> to vector<256x4xbf16>
    %c0_43 = arith.constant 0 : index
    %c32 = arith.constant 32 : index
    %32 = vector.load %arg7[%c0_43, %c32] : memref<256x36xbf16, #tpu.memory_space<vmem>>, vector<256x4xbf16>
    tpu.vector_store %arg7[%c0_43, %c32], %31 {strides = array<i32>} : memref<256x36xbf16, #tpu.memory_space<vmem>>, vector<256x4xbf16>,
    %c0_44 = arith.constant 0 : index
    %c0_45 = arith.constant 0 : index
    %33 = vector.load %arg7[%c0_44, %c0_45] : memref<256x36xbf16, #tpu.memory_space<vmem>>, vector<256x36xbf16>
    %c0_46 = arith.constant 0 : index
    %c0_47 = arith.constant 0 : index
    %34 = vector.load %arg2[%c0_46, %c0_47] : memref<36x8xbf16, #tpu.memory_space<vmem>>, vector<36x8xbf16>
    %cst_48 = arith.constant dense<0.000000e+00> : vector<256x8xf32>
    %35 = tpu.matmul %33, %34, %cst_48 {dimension_numbers = #tpu.dot_dimension_numbers<[1], [0], [0], [1], [0, 0, 1, 1], [], []>} : vector<256x36xbf16>, vector<36x8xbf16>, vector<256x8xf32> -> vector<256x8xf32>
    %36 = arith.truncf %35 : vector<256x8xf32> to vector<256x8xbf16>
    %37 = vector.shape_cast %36 : vector<256x8xbf16> to vector<1x256x8xbf16>
    %c0_49 = arith.constant 0 : index
    %c0_50 = arith.constant 0 : index
    %c0_51 = arith.constant 0 : index
    %38 = vector.load %arg3[%c0_49, %c0_50, %c0_51] : memref<1x256x8xbf16, #tpu.memory_space<vmem>>, vector<1x256x8xbf16>
    tpu.vector_store %arg3[%c0_49, %c0_50, %c0_51], %37 {strides = array<i32>} : memref<1x256x8xbf16, #tpu.memory_space<vmem>>, vector<1x256x8xbf16>,
    %cst_52 = arith.constant dense<0.000000e+00> : vector<8xf32>
    %39 = vector.multi_reduction <add>, %35, %cst_52 [0] : vector<256x8xf32> to vector<8xf32>
    %40 = vector.shape_cast %39 : vector<8xf32> to vector<1x8xf32>
    %41 = vector.shape_cast %40 : vector<1x8xf32> to vector<1x1x8xf32>
    %c0_53 = arith.constant 0 : index
    %c0_54 = arith.constant 0 : index
    %c0_55 = arith.constant 0 : index
    %42 = vector.load %arg4[%c0_53, %c0_54, %c0_55] : memref<1x1x8xf32, #tpu.memory_space<vmem>>, vector<1x1x8xf32>
    tpu.vector_store %arg4[%c0_53, %c0_54, %c0_55], %41 {strides = array<i32>} : memref<1x1x8xf32, #tpu.memory_space<vmem>>, vector<1x1x8xf32>,
    %43 = arith.mulf %35, %35 : vector<256x8xf32>
    %cst_56 = arith.constant dense<0.000000e+00> : vector<8xf32>
    %44 = vector.multi_reduction <add>, %43, %cst_56 [0] : vector<256x8xf32> to vector<8xf32>
    %45 = vector.shape_cast %44 : vector<8xf32> to vector<1x8xf32>
    %46 = vector.shape_cast %45 : vector<1x8xf32> to vector<1x1x8xf32>
    %c0_57 = arith.constant 0 : index
    %c0_58 = arith.constant 0 : index
    %c0_59 = arith.constant 0 : index
    %47 = vector.load %arg5[%c0_57, %c0_58, %c0_59] : memref<1x1x8xf32, #tpu.memory_space<vmem>>, vector<1x1x8xf32>
    tpu.vector_store %arg5[%c0_57, %c0_58, %c0_59], %46 {strides = array<i32>} : memref<1x1x8xf32, #tpu.memory_space<vmem>>, vector<1x1x8xf32>,
    return
  }
  func.func @transform_0(%arg0: i32) -> (i32, i32, i32, i32) {
    %c0_i32 = arith.constant 0 : i32
    %c0_i32_0 = arith.constant 0 : i32
    %c0_i32_1 = arith.constant 0 : i32
    %c0_i32_2 = arith.constant 0 : i32
    return %arg0, %c0_i32, %c0_i32_0, %c0_i32_1 : i32, i32, i32, i32
  }
  func.func @transform_1(%arg0: i32) -> (i32, i32) {
    %c0_i32 = arith.constant 0 : i32
    %c0_i32_0 = arith.constant 0 : i32
    %c0_i32_1 = arith.constant 0 : i32
    return %c0_i32, %c0_i32_0 : i32, i32
  }
  func.func @transform_2(%arg0: i32) -> (i32, i32, i32) {
    %c0_i32 = arith.constant 0 : i32
    %c0_i32_0 = arith.constant 0 : i32
    %c0_i32_1 = arith.constant 0 : i32
    return %arg0, %c0_i32, %c0_i32_0 : i32, i32, i32
  }
  func.func @transform_3(%arg0: i32) -> (i32, i32, i32) {
    %c0_i32 = arith.constant 0 : i32
    %c0_i32_0 = arith.constant 0 : i32
    %c0_i32_1 = arith.constant 0 : i32
    return %arg0, %c0_i32, %c0_i32_0 : i32, i32, i32
  }
  func.func @transform_4(%arg0: i32) -> (i32, i32, i32) {
    %c0_i32 = arith.constant 0 : i32
    %c0_i32_0 = arith.constant 0 : i32
    %c0_i32_1 = arith.constant 0 : i32
    return %arg0, %c0_i32, %c0_i32_0 : i32, i32, i32
  }
}

module attributes {stable_mosaic.version = 11 : i64} {
  func.func @_bn_apply_kernel(%arg0: i32, %arg1: memref<32x128xbf16, #tpu.memory_space<vmem>>, %arg2: memref<1x128xf32, #tpu.memory_space<vmem>>, %arg3: memref<1x128xf32, #tpu.memory_space<vmem>>, %arg4: memref<32x128xbf16, #tpu.memory_space<vmem>>) attributes {dimension_semantics = [#tpu.dimension_semantics<parallel>], iteration_bounds = array<i64: 1>, scalar_prefetch = 0 : i64, scratch_operands = 0 : i64, tpu.core_type = #tpu.core_type<tc>, window_params = [{transform_indices = @transform_0, window_bounds = array<i64: 32, 128>}, {pipeline_mode = #tpu.pipeline_mode<synchronous>, transform_indices = @transform_1, window_bounds = array<i64: 1, 128>}, {pipeline_mode = #tpu.pipeline_mode<synchronous>, transform_indices = @transform_2, window_bounds = array<i64: 1, 128>}, {transform_indices = @transform_3, window_bounds = array<i64: 32, 128>}]} {
    %c0 = arith.constant 0 : index
    %c0_0 = arith.constant 0 : index
    %0 = vector.load %arg1[%c0, %c0_0] : memref<32x128xbf16, #tpu.memory_space<vmem>>, vector<32x128xbf16>
    %1 = arith.extf %0 : vector<32x128xbf16> to vector<32x128xf32>
    %c0_1 = arith.constant 0 : index
    %c0_2 = arith.constant 0 : index
    %2 = vector.load %arg2[%c0_1, %c0_2] : memref<1x128xf32, #tpu.memory_space<vmem>>, vector<1x128xf32>
    %3 = vector.broadcast %2 : vector<1x128xf32> to vector<32x128xf32>
    %4 = arith.mulf %1, %3 : vector<32x128xf32>
    %c0_3 = arith.constant 0 : index
    %c0_4 = arith.constant 0 : index
    %5 = vector.load %arg3[%c0_3, %c0_4] : memref<1x128xf32, #tpu.memory_space<vmem>>, vector<1x128xf32>
    %6 = vector.broadcast %5 : vector<1x128xf32> to vector<32x128xf32>
    %7 = arith.addf %4, %6 : vector<32x128xf32>
    %cst = arith.constant 0.000000e+00 : f32
    %8 = vector.broadcast %cst : f32 to vector<32x128xf32>
    %9 = arith.maximumf %7, %8 : vector<32x128xf32>
    %10 = arith.truncf %9 : vector<32x128xf32> to vector<32x128xbf16>
    %c0_5 = arith.constant 0 : index
    %c0_6 = arith.constant 0 : index
    %11 = vector.load %arg4[%c0_5, %c0_6] : memref<32x128xbf16, #tpu.memory_space<vmem>>, vector<32x128xbf16>
    tpu.vector_store %arg4[%c0_5, %c0_6], %10 {strides = array<i32>} : memref<32x128xbf16, #tpu.memory_space<vmem>>, vector<32x128xbf16>,
    return
  }
  func.func @transform_0(%arg0: i32) -> (i32, i32) {
    %c0_i32 = arith.constant 0 : i32
    %c0_i32_0 = arith.constant 0 : i32
    return %arg0, %c0_i32 : i32, i32
  }
  func.func @transform_1(%arg0: i32) -> (i32, i32) {
    %c0_i32 = arith.constant 0 : i32
    %c0_i32_0 = arith.constant 0 : i32
    %c0_i32_1 = arith.constant 0 : i32
    return %c0_i32, %c0_i32_0 : i32, i32
  }
  func.func @transform_2(%arg0: i32) -> (i32, i32) {
    %c0_i32 = arith.constant 0 : i32
    %c0_i32_0 = arith.constant 0 : i32
    %c0_i32_1 = arith.constant 0 : i32
    return %c0_i32, %c0_i32_0 : i32, i32
  }
  func.func @transform_3(%arg0: i32) -> (i32, i32) {
    %c0_i32 = arith.constant 0 : i32
    %c0_i32_0 = arith.constant 0 : i32
    return %arg0, %c0_i32 : i32, i32
  }
}

module attributes {stable_mosaic.version = 11 : i64} {
  func.func @_conv_stats_kernel(%arg0: i32, %arg1: memref<1x16x16x8xbf16, #tpu.memory_space<vmem>>, %arg2: memref<72x8xbf16, #tpu.memory_space<vmem>>, %arg3: memref<1x256x8xbf16, #tpu.memory_space<vmem>>, %arg4: memref<1x1x8xf32, #tpu.memory_space<vmem>>, %arg5: memref<1x1x8xf32, #tpu.memory_space<vmem>>, %arg6: memref<18x18x8xbf16, #tpu.memory_space<vmem>>, %arg7: memref<256x72xbf16, #tpu.memory_space<vmem>>) attributes {dimension_semantics = [#tpu.dimension_semantics<parallel>], iteration_bounds = array<i64: 2>, scalar_prefetch = 0 : i64, scratch_operands = 2 : i64, tpu.core_type = #tpu.core_type<tc>, window_params = [{transform_indices = @transform_0, window_bounds = array<i64: 1, 16, 16, 8>}, {pipeline_mode = #tpu.pipeline_mode<synchronous>, transform_indices = @transform_1, window_bounds = array<i64: 72, 8>}, {transform_indices = @transform_2, window_bounds = array<i64: 1, 256, 8>}, {transform_indices = @transform_3, window_bounds = array<i64: 1, 1, 8>}, {transform_indices = @transform_4, window_bounds = array<i64: 1, 1, 8>}]} {
    %cst = arith.constant 0.000000e+00 : bf16
    %0 = vector.broadcast %cst : bf16 to vector<18x18x8xbf16>
    %c0 = arith.constant 0 : index
    %c0_0 = arith.constant 0 : index
    %c0_1 = arith.constant 0 : index
    %1 = vector.load %arg6[%c0, %c0_0, %c0_1] : memref<18x18x8xbf16, #tpu.memory_space<vmem>>, vector<18x18x8xbf16>
    tpu.vector_store %arg6[%c0, %c0_0, %c0_1], %0 {strides = array<i32>} : memref<18x18x8xbf16, #tpu.memory_space<vmem>>, vector<18x18x8xbf16>,
    %c0_2 = arith.constant 0 : index
    %c0_3 = arith.constant 0 : index
    %c0_4 = arith.constant 0 : index
    %c0_5 = arith.constant 0 : index
    %2 = vector.load %arg1[%c0_2, %c0_3, %c0_4, %c0_5] : memref<1x16x16x8xbf16, #tpu.memory_space<vmem>>, vector<1x16x16x8xbf16>
    %3 = vector.shape_cast %2 : vector<1x16x16x8xbf16> to vector<16x16x8xbf16>
    %c1 = arith.constant 1 : index
    %c1_6 = arith.constant 1 : index
    %c0_7 = arith.constant 0 : index
    %4 = vector.load %arg6[%c1, %c1_6, %c0_7] : memref<18x18x8xbf16, #tpu.memory_space<vmem>>, vector<16x16x8xbf16>
    tpu.vector_store %arg6[%c1, %c1_6, %c0_7], %3 {strides = array<i32>} : memref<18x18x8xbf16, #tpu.memory_space<vmem>>, vector<16x16x8xbf16>,
    %c0_8 = arith.constant 0 : index
    %c0_9 = arith.constant 0 : index
    %c0_10 = arith.constant 0 : index
    %5 = vector.load %arg6[%c0_8, %c0_9, %c0_10] : memref<18x18x8xbf16, #tpu.memory_space<vmem>>, vector<16x16x8xbf16>
    %6 = vector.shape_cast %5 : vector<16x16x8xbf16> to vector<256x8xbf16>
    %c0_11 = arith.constant 0 : index
    %c0_12 = arith.constant 0 : index
    %7 = vector.load %arg7[%c0_11, %c0_12] : memref<256x72xbf16, #tpu.memory_space<vmem>>, vector<256x8xbf16>
    tpu.vector_store %arg7[%c0_11, %c0_12], %6 {strides = array<i32>} : memref<256x72xbf16, #tpu.memory_space<vmem>>, vector<256x8xbf16>,
    %c0_13 = arith.constant 0 : index
    %c1_14 = arith.constant 1 : index
    %c0_15 = arith.constant 0 : index
    %8 = vector.load %arg6[%c0_13, %c1_14, %c0_15] : memref<18x18x8xbf16, #tpu.memory_space<vmem>>, vector<16x16x8xbf16>
    %9 = vector.shape_cast %8 : vector<16x16x8xbf16> to vector<256x8xbf16>
    %c0_16 = arith.constant 0 : index
    %c8 = arith.constant 8 : index
    %10 = vector.load %arg7[%c0_16, %c8] : memref<256x72xbf16, #tpu.memory_space<vmem>>, vector<256x8xbf16>
    tpu.vector_store %arg7[%c0_16, %c8], %9 {strides = array<i32>} : memref<256x72xbf16, #tpu.memory_space<vmem>>, vector<256x8xbf16>,
    %c0_17 = arith.constant 0 : index
    %c2 = arith.constant 2 : index
    %c0_18 = arith.constant 0 : index
    %11 = vector.load %arg6[%c0_17, %c2, %c0_18] : memref<18x18x8xbf16, #tpu.memory_space<vmem>>, vector<16x16x8xbf16>
    %12 = vector.shape_cast %11 : vector<16x16x8xbf16> to vector<256x8xbf16>
    %c0_19 = arith.constant 0 : index
    %c16 = arith.constant 16 : index
    %13 = vector.load %arg7[%c0_19, %c16] : memref<256x72xbf16, #tpu.memory_space<vmem>>, vector<256x8xbf16>
    tpu.vector_store %arg7[%c0_19, %c16], %12 {strides = array<i32>} : memref<256x72xbf16, #tpu.memory_space<vmem>>, vector<256x8xbf16>,
    %c1_20 = arith.constant 1 : index
    %c0_21 = arith.constant 0 : index
    %c0_22 = arith.constant 0 : index
    %14 = vector.load %arg6[%c1_20, %c0_21, %c0_22] : memref<18x18x8xbf16, #tpu.memory_space<vmem>>, vector<16x16x8xbf16>
    %15 = vector.shape_cast %14 : vector<16x16x8xbf16> to vector<256x8xbf16>
    %c0_23 = arith.constant 0 : index
    %c24 = arith.constant 24 : index
    %16 = vector.load %arg7[%c0_23, %c24] : memref<256x72xbf16, #tpu.memory_space<vmem>>, vector<256x8xbf16>
    tpu.vector_store %arg7[%c0_23, %c24], %15 {strides = array<i32>} : memref<256x72xbf16, #tpu.memory_space<vmem>>, vector<256x8xbf16>,
    %c1_24 = arith.constant 1 : index
    %c1_25 = arith.constant 1 : index
    %c0_26 = arith.constant 0 : index
    %17 = vector.load %arg6[%c1_24, %c1_25, %c0_26] : memref<18x18x8xbf16, #tpu.memory_space<vmem>>, vector<16x16x8xbf16>
    %18 = vector.shape_cast %17 : vector<16x16x8xbf16> to vector<256x8xbf16>
    %c0_27 = arith.constant 0 : index
    %c32 = arith.constant 32 : index
    %19 = vector.load %arg7[%c0_27, %c32] : memref<256x72xbf16, #tpu.memory_space<vmem>>, vector<256x8xbf16>
    tpu.vector_store %arg7[%c0_27, %c32], %18 {strides = array<i32>} : memref<256x72xbf16, #tpu.memory_space<vmem>>, vector<256x8xbf16>,
    %c1_28 = arith.constant 1 : index
    %c2_29 = arith.constant 2 : index
    %c0_30 = arith.constant 0 : index
    %20 = vector.load %arg6[%c1_28, %c2_29, %c0_30] : memref<18x18x8xbf16, #tpu.memory_space<vmem>>, vector<16x16x8xbf16>
    %21 = vector.shape_cast %20 : vector<16x16x8xbf16> to vector<256x8xbf16>
    %c0_31 = arith.constant 0 : index
    %c40 = arith.constant 40 : index
    %22 = vector.load %arg7[%c0_31, %c40] : memref<256x72xbf16, #tpu.memory_space<vmem>>, vector<256x8xbf16>
    tpu.vector_store %arg7[%c0_31, %c40], %21 {strides = array<i32>} : memref<256x72xbf16, #tpu.memory_space<vmem>>, vector<256x8xbf16>,
    %c2_32 = arith.constant 2 : index
    %c0_33 = arith.constant 0 : index
    %c0_34 = arith.constant 0 : index
    %23 = vector.load %arg6[%c2_32, %c0_33, %c0_34] : memref<18x18x8xbf16, #tpu.memory_space<vmem>>, vector<16x16x8xbf16>
    %24 = vector.shape_cast %23 : vector<16x16x8xbf16> to vector<256x8xbf16>
    %c0_35 = arith.constant 0 : index
    %c48 = arith.constant 48 : index
    %25 = vector.load %arg7[%c0_35, %c48] : memref<256x72xbf16, #tpu.memory_space<vmem>>, vector<256x8xbf16>
    tpu.vector_store %arg7[%c0_35, %c48], %24 {strides = array<i32>} : memref<256x72xbf16, #tpu.memory_space<vmem>>, vector<256x8xbf16>,
    %c2_36 = arith.constant 2 : index
    %c1_37 = arith.constant 1 : index
    %c0_38 = arith.constant 0 : index
    %26 = vector.load %arg6[%c2_36, %c1_37, %c0_38] : memref<18x18x8xbf16, #tpu.memory_space<vmem>>, vector<16x16x8xbf16>
    %27 = vector.shape_cast %26 : vector<16x16x8xbf16> to vector<256x8xbf16>
    %c0_39 = arith.constant 0 : index
    %c56 = arith.constant 56 : index
    %28 = vector.load %arg7[%c0_39, %c56] : memref<256x72xbf16, #tpu.memory_space<vmem>>, vector<256x8xbf16>
    tpu.vector_store %arg7[%c0_39, %c56], %27 {strides = array<i32>} : memref<256x72xbf16, #tpu.memory_space<vmem>>, vector<256x8xbf16>,
    %c2_40 = arith.constant 2 : index
    %c2_41 = arith.constant 2 : index
    %c0_42 = arith.constant 0 : index
    %29 = vector.load %arg6[%c2_40, %c2_41, %c0_42] : memref<18x18x8xbf16, #tpu.memory_space<vmem>>, vector<16x16x8xbf16>
    %30 = vector.shape_cast %29 : vector<16x16x8xbf16> to vector<256x8xbf16>
    %c0_43 = arith.constant 0 : index
    %c64 = arith.constant 64 : index
    %31 = vector.load %arg7[%c0_43, %c64] : memref<256x72xbf16, #tpu.memory_space<vmem>>, vector<256x8xbf16>
    tpu.vector_store %arg7[%c0_43, %c64], %30 {strides = array<i32>} : memref<256x72xbf16, #tpu.memory_space<vmem>>, vector<256x8xbf16>,
    %c0_44 = arith.constant 0 : index
    %c0_45 = arith.constant 0 : index
    %32 = vector.load %arg7[%c0_44, %c0_45] : memref<256x72xbf16, #tpu.memory_space<vmem>>, vector<256x72xbf16>
    %c0_46 = arith.constant 0 : index
    %c0_47 = arith.constant 0 : index
    %33 = vector.load %arg2[%c0_46, %c0_47] : memref<72x8xbf16, #tpu.memory_space<vmem>>, vector<72x8xbf16>
    %cst_48 = arith.constant dense<0.000000e+00> : vector<256x8xf32>
    %34 = tpu.matmul %32, %33, %cst_48 {dimension_numbers = #tpu.dot_dimension_numbers<[1], [0], [0], [1], [0, 0, 1, 1], [], []>} : vector<256x72xbf16>, vector<72x8xbf16>, vector<256x8xf32> -> vector<256x8xf32>
    %35 = arith.truncf %34 : vector<256x8xf32> to vector<256x8xbf16>
    %36 = vector.shape_cast %35 : vector<256x8xbf16> to vector<1x256x8xbf16>
    %c0_49 = arith.constant 0 : index
    %c0_50 = arith.constant 0 : index
    %c0_51 = arith.constant 0 : index
    %37 = vector.load %arg3[%c0_49, %c0_50, %c0_51] : memref<1x256x8xbf16, #tpu.memory_space<vmem>>, vector<1x256x8xbf16>
    tpu.vector_store %arg3[%c0_49, %c0_50, %c0_51], %36 {strides = array<i32>} : memref<1x256x8xbf16, #tpu.memory_space<vmem>>, vector<1x256x8xbf16>,
    %cst_52 = arith.constant dense<0.000000e+00> : vector<8xf32>
    %38 = vector.multi_reduction <add>, %34, %cst_52 [0] : vector<256x8xf32> to vector<8xf32>
    %39 = vector.shape_cast %38 : vector<8xf32> to vector<1x8xf32>
    %40 = vector.shape_cast %39 : vector<1x8xf32> to vector<1x1x8xf32>
    %c0_53 = arith.constant 0 : index
    %c0_54 = arith.constant 0 : index
    %c0_55 = arith.constant 0 : index
    %41 = vector.load %arg4[%c0_53, %c0_54, %c0_55] : memref<1x1x8xf32, #tpu.memory_space<vmem>>, vector<1x1x8xf32>
    tpu.vector_store %arg4[%c0_53, %c0_54, %c0_55], %40 {strides = array<i32>} : memref<1x1x8xf32, #tpu.memory_space<vmem>>, vector<1x1x8xf32>,
    %42 = arith.mulf %34, %34 : vector<256x8xf32>
    %cst_56 = arith.constant dense<0.000000e+00> : vector<8xf32>
    %43 = vector.multi_reduction <add>, %42, %cst_56 [0] : vector<256x8xf32> to vector<8xf32>
    %44 = vector.shape_cast %43 : vector<8xf32> to vector<1x8xf32>
    %45 = vector.shape_cast %44 : vector<1x8xf32> to vector<1x1x8xf32>
    %c0_57 = arith.constant 0 : index
    %c0_58 = arith.constant 0 : index
    %c0_59 = arith.constant 0 : index
    %46 = vector.load %arg5[%c0_57, %c0_58, %c0_59] : memref<1x1x8xf32, #tpu.memory_space<vmem>>, vector<1x1x8xf32>
    tpu.vector_store %arg5[%c0_57, %c0_58, %c0_59], %45 {strides = array<i32>} : memref<1x1x8xf32, #tpu.memory_space<vmem>>, vector<1x1x8xf32>,
    return
  }
  func.func @transform_0(%arg0: i32) -> (i32, i32, i32, i32) {
    %c0_i32 = arith.constant 0 : i32
    %c0_i32_0 = arith.constant 0 : i32
    %c0_i32_1 = arith.constant 0 : i32
    %c0_i32_2 = arith.constant 0 : i32
    return %arg0, %c0_i32, %c0_i32_0, %c0_i32_1 : i32, i32, i32, i32
  }
  func.func @transform_1(%arg0: i32) -> (i32, i32) {
    %c0_i32 = arith.constant 0 : i32
    %c0_i32_0 = arith.constant 0 : i32
    %c0_i32_1 = arith.constant 0 : i32
    return %c0_i32, %c0_i32_0 : i32, i32
  }
  func.func @transform_2(%arg0: i32) -> (i32, i32, i32) {
    %c0_i32 = arith.constant 0 : i32
    %c0_i32_0 = arith.constant 0 : i32
    %c0_i32_1 = arith.constant 0 : i32
    return %arg0, %c0_i32, %c0_i32_0 : i32, i32, i32
  }
  func.func @transform_3(%arg0: i32) -> (i32, i32, i32) {
    %c0_i32 = arith.constant 0 : i32
    %c0_i32_0 = arith.constant 0 : i32
    %c0_i32_1 = arith.constant 0 : i32
    return %arg0, %c0_i32, %c0_i32_0 : i32, i32, i32
  }
  func.func @transform_4(%arg0: i32) -> (i32, i32, i32) {
    %c0_i32 = arith.constant 0 : i32
    %c0_i32_0 = arith.constant 0 : i32
    %c0_i32_1 = arith.constant 0 : i32
    return %arg0, %c0_i32, %c0_i32_0 : i32, i32, i32
  }
}

module attributes {stable_mosaic.version = 11 : i64} {
  func.func @_conv_stats_kernel(%arg0: i32, %arg1: memref<1x16x16x4xf32, #tpu.memory_space<vmem>>, %arg2: memref<4x8xbf16, #tpu.memory_space<vmem>>, %arg3: memref<1x256x8xbf16, #tpu.memory_space<vmem>>, %arg4: memref<1x1x8xf32, #tpu.memory_space<vmem>>, %arg5: memref<1x1x8xf32, #tpu.memory_space<vmem>>) attributes {dimension_semantics = [#tpu.dimension_semantics<parallel>], iteration_bounds = array<i64: 2>, scalar_prefetch = 0 : i64, scratch_operands = 0 : i64, tpu.core_type = #tpu.core_type<tc>, window_params = [{transform_indices = @transform_0, window_bounds = array<i64: 1, 16, 16, 4>}, {pipeline_mode = #tpu.pipeline_mode<synchronous>, transform_indices = @transform_1, window_bounds = array<i64: 4, 8>}, {transform_indices = @transform_2, window_bounds = array<i64: 1, 256, 8>}, {transform_indices = @transform_3, window_bounds = array<i64: 1, 1, 8>}, {transform_indices = @transform_4, window_bounds = array<i64: 1, 1, 8>}]} {
    %c0 = arith.constant 0 : index
    %c0_0 = arith.constant 0 : index
    %c0_1 = arith.constant 0 : index
    %c0_2 = arith.constant 0 : index
    %0 = vector.load %arg1[%c0, %c0_0, %c0_1, %c0_2] : memref<1x16x16x4xf32, #tpu.memory_space<vmem>>, vector<1x16x16x4xf32>
    %1 = vector.shape_cast %0 : vector<1x16x16x4xf32> to vector<16x16x4xf32>
    %2 = vector.shape_cast %1 : vector<16x16x4xf32> to vector<256x4xf32>
    %3 = arith.truncf %2 : vector<256x4xf32> to vector<256x4xbf16>
    %c0_3 = arith.constant 0 : index
    %c0_4 = arith.constant 0 : index
    %4 = vector.load %arg2[%c0_3, %c0_4] : memref<4x8xbf16, #tpu.memory_space<vmem>>, vector<4x8xbf16>
    %cst = arith.constant dense<0.000000e+00> : vector<256x8xf32>
    %5 = tpu.matmul %3, %4, %cst {dimension_numbers = #tpu.dot_dimension_numbers<[1], [0], [0], [1], [0, 0, 1, 1], [], []>} : vector<256x4xbf16>, vector<4x8xbf16>, vector<256x8xf32> -> vector<256x8xf32>
    %6 = arith.truncf %5 : vector<256x8xf32> to vector<256x8xbf16>
    %7 = vector.shape_cast %6 : vector<256x8xbf16> to vector<1x256x8xbf16>
    %c0_5 = arith.constant 0 : index
    %c0_6 = arith.constant 0 : index
    %c0_7 = arith.constant 0 : index
    %8 = vector.load %arg3[%c0_5, %c0_6, %c0_7] : memref<1x256x8xbf16, #tpu.memory_space<vmem>>, vector<1x256x8xbf16>
    tpu.vector_store %arg3[%c0_5, %c0_6, %c0_7], %7 {strides = array<i32>} : memref<1x256x8xbf16, #tpu.memory_space<vmem>>, vector<1x256x8xbf16>,
    %cst_8 = arith.constant dense<0.000000e+00> : vector<8xf32>
    %9 = vector.multi_reduction <add>, %5, %cst_8 [0] : vector<256x8xf32> to vector<8xf32>
    %10 = vector.shape_cast %9 : vector<8xf32> to vector<1x8xf32>
    %11 = vector.shape_cast %10 : vector<1x8xf32> to vector<1x1x8xf32>
    %c0_9 = arith.constant 0 : index
    %c0_10 = arith.constant 0 : index
    %c0_11 = arith.constant 0 : index
    %12 = vector.load %arg4[%c0_9, %c0_10, %c0_11] : memref<1x1x8xf32, #tpu.memory_space<vmem>>, vector<1x1x8xf32>
    tpu.vector_store %arg4[%c0_9, %c0_10, %c0_11], %11 {strides = array<i32>} : memref<1x1x8xf32, #tpu.memory_space<vmem>>, vector<1x1x8xf32>,
    %13 = arith.mulf %5, %5 : vector<256x8xf32>
    %cst_12 = arith.constant dense<0.000000e+00> : vector<8xf32>
    %14 = vector.multi_reduction <add>, %13, %cst_12 [0] : vector<256x8xf32> to vector<8xf32>
    %15 = vector.shape_cast %14 : vector<8xf32> to vector<1x8xf32>
    %16 = vector.shape_cast %15 : vector<1x8xf32> to vector<1x1x8xf32>
    %c0_13 = arith.constant 0 : index
    %c0_14 = arith.constant 0 : index
    %c0_15 = arith.constant 0 : index
    %17 = vector.load %arg5[%c0_13, %c0_14, %c0_15] : memref<1x1x8xf32, #tpu.memory_space<vmem>>, vector<1x1x8xf32>
    tpu.vector_store %arg5[%c0_13, %c0_14, %c0_15], %16 {strides = array<i32>} : memref<1x1x8xf32, #tpu.memory_space<vmem>>, vector<1x1x8xf32>,
    return
  }
  func.func @transform_0(%arg0: i32) -> (i32, i32, i32, i32) {
    %c0_i32 = arith.constant 0 : i32
    %c0_i32_0 = arith.constant 0 : i32
    %c0_i32_1 = arith.constant 0 : i32
    %c0_i32_2 = arith.constant 0 : i32
    return %arg0, %c0_i32, %c0_i32_0, %c0_i32_1 : i32, i32, i32, i32
  }
  func.func @transform_1(%arg0: i32) -> (i32, i32) {
    %c0_i32 = arith.constant 0 : i32
    %c0_i32_0 = arith.constant 0 : i32
    %c0_i32_1 = arith.constant 0 : i32
    return %c0_i32, %c0_i32_0 : i32, i32
  }
  func.func @transform_2(%arg0: i32) -> (i32, i32, i32) {
    %c0_i32 = arith.constant 0 : i32
    %c0_i32_0 = arith.constant 0 : i32
    %c0_i32_1 = arith.constant 0 : i32
    return %arg0, %c0_i32, %c0_i32_0 : i32, i32, i32
  }
  func.func @transform_3(%arg0: i32) -> (i32, i32, i32) {
    %c0_i32 = arith.constant 0 : i32
    %c0_i32_0 = arith.constant 0 : i32
    %c0_i32_1 = arith.constant 0 : i32
    return %arg0, %c0_i32, %c0_i32_0 : i32, i32, i32
  }
  func.func @transform_4(%arg0: i32) -> (i32, i32, i32) {
    %c0_i32 = arith.constant 0 : i32
    %c0_i32_0 = arith.constant 0 : i32
    %c0_i32_1 = arith.constant 0 : i32
    return %arg0, %c0_i32, %c0_i32_0 : i32, i32, i32
  }
}

module attributes {stable_mosaic.version = 11 : i64} {
  func.func @_bn_apply_kernel(%arg0: i32, %arg1: memref<32x128xbf16, #tpu.memory_space<vmem>>, %arg2: memref<1x128xf32, #tpu.memory_space<vmem>>, %arg3: memref<1x128xf32, #tpu.memory_space<vmem>>, %arg4: memref<32x128xbf16, #tpu.memory_space<vmem>>) attributes {dimension_semantics = [#tpu.dimension_semantics<parallel>], iteration_bounds = array<i64: 1>, scalar_prefetch = 0 : i64, scratch_operands = 0 : i64, tpu.core_type = #tpu.core_type<tc>, window_params = [{transform_indices = @transform_0, window_bounds = array<i64: 32, 128>}, {pipeline_mode = #tpu.pipeline_mode<synchronous>, transform_indices = @transform_1, window_bounds = array<i64: 1, 128>}, {pipeline_mode = #tpu.pipeline_mode<synchronous>, transform_indices = @transform_2, window_bounds = array<i64: 1, 128>}, {transform_indices = @transform_3, window_bounds = array<i64: 32, 128>}]} {
    %c0 = arith.constant 0 : index
    %c0_0 = arith.constant 0 : index
    %0 = vector.load %arg1[%c0, %c0_0] : memref<32x128xbf16, #tpu.memory_space<vmem>>, vector<32x128xbf16>
    %1 = arith.extf %0 : vector<32x128xbf16> to vector<32x128xf32>
    %c0_1 = arith.constant 0 : index
    %c0_2 = arith.constant 0 : index
    %2 = vector.load %arg2[%c0_1, %c0_2] : memref<1x128xf32, #tpu.memory_space<vmem>>, vector<1x128xf32>
    %3 = vector.broadcast %2 : vector<1x128xf32> to vector<32x128xf32>
    %4 = arith.mulf %1, %3 : vector<32x128xf32>
    %c0_3 = arith.constant 0 : index
    %c0_4 = arith.constant 0 : index
    %5 = vector.load %arg3[%c0_3, %c0_4] : memref<1x128xf32, #tpu.memory_space<vmem>>, vector<1x128xf32>
    %6 = vector.broadcast %5 : vector<1x128xf32> to vector<32x128xf32>
    %7 = arith.addf %4, %6 : vector<32x128xf32>
    %8 = arith.truncf %7 : vector<32x128xf32> to vector<32x128xbf16>
    %c0_5 = arith.constant 0 : index
    %c0_6 = arith.constant 0 : index
    %9 = vector.load %arg4[%c0_5, %c0_6] : memref<32x128xbf16, #tpu.memory_space<vmem>>, vector<32x128xbf16>
    tpu.vector_store %arg4[%c0_5, %c0_6], %8 {strides = array<i32>} : memref<32x128xbf16, #tpu.memory_space<vmem>>, vector<32x128xbf16>,
    return
  }
  func.func @transform_0(%arg0: i32) -> (i32, i32) {
    %c0_i32 = arith.constant 0 : i32
    %c0_i32_0 = arith.constant 0 : i32
    return %arg0, %c0_i32 : i32, i32
  }
  func.func @transform_1(%arg0: i32) -> (i32, i32) {
    %c0_i32 = arith.constant 0 : i32
    %c0_i32_0 = arith.constant 0 : i32
    %c0_i32_1 = arith.constant 0 : i32
    return %c0_i32, %c0_i32_0 : i32, i32
  }
  func.func @transform_2(%arg0: i32) -> (i32, i32) {
    %c0_i32 = arith.constant 0 : i32
    %c0_i32_0 = arith.constant 0 : i32
    %c0_i32_1 = arith.constant 0 : i32
    return %c0_i32, %c0_i32_0 : i32, i32
  }
  func.func @transform_3(%arg0: i32) -> (i32, i32) {
    %c0_i32 = arith.constant 0 : i32
    %c0_i32_0 = arith.constant 0 : i32
    return %arg0, %c0_i32 : i32, i32
  }
}

module attributes {stable_mosaic.version = 11 : i64} {
  func.func @_bn_apply_kernel(%arg0: i32, %arg1: memref<32x128xbf16, #tpu.memory_space<vmem>>, %arg2: memref<1x128xf32, #tpu.memory_space<vmem>>, %arg3: memref<1x128xf32, #tpu.memory_space<vmem>>, %arg4: memref<32x128xbf16, #tpu.memory_space<vmem>>, %arg5: memref<32x128xf32, #tpu.memory_space<vmem>>) attributes {dimension_semantics = [#tpu.dimension_semantics<parallel>], iteration_bounds = array<i64: 1>, scalar_prefetch = 0 : i64, scratch_operands = 0 : i64, tpu.core_type = #tpu.core_type<tc>, window_params = [{transform_indices = @transform_0, window_bounds = array<i64: 32, 128>}, {pipeline_mode = #tpu.pipeline_mode<synchronous>, transform_indices = @transform_1, window_bounds = array<i64: 1, 128>}, {pipeline_mode = #tpu.pipeline_mode<synchronous>, transform_indices = @transform_2, window_bounds = array<i64: 1, 128>}, {transform_indices = @transform_3, window_bounds = array<i64: 32, 128>}, {transform_indices = @transform_4, window_bounds = array<i64: 32, 128>}]} {
    %c0 = arith.constant 0 : index
    %c0_0 = arith.constant 0 : index
    %0 = vector.load %arg1[%c0, %c0_0] : memref<32x128xbf16, #tpu.memory_space<vmem>>, vector<32x128xbf16>
    %1 = arith.extf %0 : vector<32x128xbf16> to vector<32x128xf32>
    %c0_1 = arith.constant 0 : index
    %c0_2 = arith.constant 0 : index
    %2 = vector.load %arg2[%c0_1, %c0_2] : memref<1x128xf32, #tpu.memory_space<vmem>>, vector<1x128xf32>
    %3 = vector.broadcast %2 : vector<1x128xf32> to vector<32x128xf32>
    %4 = arith.mulf %1, %3 : vector<32x128xf32>
    %c0_3 = arith.constant 0 : index
    %c0_4 = arith.constant 0 : index
    %5 = vector.load %arg3[%c0_3, %c0_4] : memref<1x128xf32, #tpu.memory_space<vmem>>, vector<1x128xf32>
    %6 = vector.broadcast %5 : vector<1x128xf32> to vector<32x128xf32>
    %7 = arith.addf %4, %6 : vector<32x128xf32>
    %c0_5 = arith.constant 0 : index
    %c0_6 = arith.constant 0 : index
    %8 = vector.load %arg4[%c0_5, %c0_6] : memref<32x128xbf16, #tpu.memory_space<vmem>>, vector<32x128xbf16>
    %9 = arith.extf %8 : vector<32x128xbf16> to vector<32x128xf32>
    %10 = arith.addf %7, %9 : vector<32x128xf32>
    %cst = arith.constant 0.000000e+00 : f32
    %11 = vector.broadcast %cst : f32 to vector<32x128xf32>
    %12 = arith.maximumf %10, %11 : vector<32x128xf32>
    %c0_7 = arith.constant 0 : index
    %c0_8 = arith.constant 0 : index
    %13 = vector.load %arg5[%c0_7, %c0_8] : memref<32x128xf32, #tpu.memory_space<vmem>>, vector<32x128xf32>
    tpu.vector_store %arg5[%c0_7, %c0_8], %12 {strides = array<i32>} : memref<32x128xf32, #tpu.memory_space<vmem>>, vector<32x128xf32>,
    return
  }
  func.func @transform_0(%arg0: i32) -> (i32, i32) {
    %c0_i32 = arith.constant 0 : i32
    %c0_i32_0 = arith.constant 0 : i32
    return %arg0, %c0_i32 : i32, i32
  }
  func.func @transform_1(%arg0: i32) -> (i32, i32) {
    %c0_i32 = arith.constant 0 : i32
    %c0_i32_0 = arith.constant 0 : i32
    %c0_i32_1 = arith.constant 0 : i32
    return %c0_i32, %c0_i32_0 : i32, i32
  }
  func.func @transform_2(%arg0: i32) -> (i32, i32) {
    %c0_i32 = arith.constant 0 : i32
    %c0_i32_0 = arith.constant 0 : i32
    %c0_i32_1 = arith.constant 0 : i32
    return %c0_i32, %c0_i32_0 : i32, i32
  }
  func.func @transform_3(%arg0: i32) -> (i32, i32) {
    %c0_i32 = arith.constant 0 : i32
    %c0_i32_0 = arith.constant 0 : i32
    return %arg0, %c0_i32 : i32, i32
  }
  func.func @transform_4(%arg0: i32) -> (i32, i32) {
    %c0_i32 = arith.constant 0 : i32
    %c0_i32_0 = arith.constant 0 : i32
    return %arg0, %c0_i32 : i32, i32
  }
}

</mosaic_0001>

<bundles_post_ra>
// kernel: tile.44
= control target key start
LH: loop header
LB: loop body
LE: loop exit
PB: predicated region body
PF: predicated region fallthrough
CT: control target
= control target key end

     0   :  { %s131_s10 = smov 120   ;;  %s132_s11 = smov 104   ;;  %vm3_vm0 = vcmask 64512   ;;  %vm9_vm1 = vcmask 1048512   ;;  %vm15_vm2 = vcmask 982912   ;;  %vm21_vm3 = vcmask 917312   ;;  %s207_s0 = inlined_call_operand.vmem [shape: f32[16,8], index: 0, kind: input, shape index: {}]   ;;  %s208_s1 = inlined_call_operand.vmem [shape: f32[1,128], index: 1, kind: output, shape index: {}]  }
   0x1   :  { %v101_v0 = vld [vmem:[%s207_s0 + $0xf] sm:$0x1]   ;;  %v103_v1 = vld [vmem:[%s207_s0 + $0xd] sm:$0x1]   ;;  %v102_v2 = vld [vmem:[%s207_s0 + $0xe] sm:$0x1]  }
   0x2   :  { %7 = vrot.lane.b32.xlu0 %v101_v0, %s131_s10  ;;  %19 = vrot.lane.b32.xlu1 %v103_v1, %s132_s11  ;;  %v104_v3 = vld [vmem:[%s207_s0 + $0xc] sm:$0x1]   ;;  %s133_s16 = smov 112   ;;  %s134_s17 = smov 96   ;;  %v105_v4 = vld [vmem:[%s207_s0 + $0xb] sm:$0x1]  }
   0x3   :  { %v106_v5 = vld [vmem:[%s207_s0 + $0xa] sm:$0x1]   ;;  %v2_v6 = vld [vmem:[%s207_s0] sm:$0x1]   ;;  %s135_s24 = smov 88   ;;  %s136_s25 = smov 80  }
   0x4   :  { %4 = vst.msk [vmem:[#allocation0] sm:$0x1] %vm3_vm0, %v2_v6   ;;  %v107_v7 = vld [vmem:[%s207_s0 + $0x9] sm:$0x1]   ;;  %v108_v8 = vld [vmem:[%s207_s0 + $0x8] sm:$0x1]  }
   0x5   :  { %s137_s30 = smov 72   ;;  %s138_s2 = smov 64   ;;  %v109_v9 = vld [vmem:[%s207_s0 + $0x7] sm:$0x1]   ;;  %v110_v10 = vld [vmem:[%s207_s0 + $0x6] sm:$0x1]  }
   0x6   :  { %13 = vrot.lane.b32.xlu0 %v102_v2, %s133_s16  ;;  %25 = vrot.lane.b32.xlu1 %v104_v3, %s134_s17  ;;  %s139_s7 = smov 56   ;;  %s140_s8 = smov 48   ;;  %v111_v11 = vld [vmem:[%s207_s0 + $0x5] sm:$0x1]   ;;  %v112_v12 = vld [vmem:[%s207_s0 + $0x4] sm:$0x1]  }
   0x7   :  { %s141_s13 = smov 40   ;;  %s142_s14 = smov 32   ;;  %v113_v13 = vld [vmem:[%s207_s0 + $0x3] sm:$0x1]   ;;  %v114_v14 = vld [vmem:[%s207_s0 + $0x2] sm:$0x1]  }
   0x8   :  { %s143_s19 = smov 24   ;;  %s144_s20 = smov 16   ;;  %v115_v15 = vld [vmem:[%s207_s0 + $0x1] sm:$0x1]   ;;  %vm27_vm4 = vcmask 851712   ;;  %vm33_vm5 = vcmask 786112  }
   0x9   :  { %s145_s0 = smov 8   ;;  %vm39_vm6 = vcmask 720512   ;;  %vm45_vm7 = vcmask 654912   ;;  %vm51_vm8 = vcmask 589312   ;;  %vm57_vm9 = vcmask 523712  }
   0xa   :  { %31 = vrot.lane.b32.xlu0 %v105_v4, %s135_s24  ;;  %37 = vrot.lane.b32.xlu1 %v106_v5, %s136_s25  ;;  %vm63_vm10 = vcmask 458112   ;;  %vm69_vm11 = vcmask 392512   ;;  %vm75_vm12 = vcmask 326912   ;;  %vm81_vm13 = vcmask 261312  }
   0xb   :  { %vm87_vm14 = vcmask 195712   ;;  %vm93_vm15 = vcmask 130112  }
   0xe   :  { %43 = vrot.lane.b32.xlu0 %v107_v7, %s137_s30  ;;  %49 = vrot.lane.b32.xlu1 %v108_v8, %s138_s2 }
  0x12   :  { %55 = vrot.lane.b32.xlu0 %v109_v9, %s139_s7  ;;  %61 = vrot.lane.b32.xlu1 %v110_v10, %s140_s8 }
  0x16   :  { %67 = vrot.lane.b32.xlu0 %v111_v11, %s141_s13  ;;  %73 = vrot.lane.b32.xlu1 %v112_v12, %s142_s14 }
  0x1a   :  { %79 = vrot.lane.b32.xlu0 %v113_v13, %s143_s19  ;;  %85 = vrot.lane.b32.xlu1 %v114_v14, %s144_s20 }
  0x1e   :  { %91 = vrot.lane.b32.xlu0 %v115_v15, %s145_s0 }
  0x74   :  { %v8_v16 = vpop.permute.xlu0 %7   ;;  %v20_v17 = vpop.permute.xlu1 %19  }
  0x75   :  { %10 = vst.msk [vmem:[#allocation0] sm:$0x1] %vm9_vm1, %v8_v16  }
  0x78   :  { %v14_v18 = vpop.permute.xlu0 %13   ;;  %v26_v19 = vpop.permute.xlu1 %25  }
  0x79   :  { %16 = vst.msk [vmem:[#allocation0] sm:$0x1] %vm15_vm2, %v14_v18  }
  0x7a   :  { %22 = vst.msk [vmem:[#allocation0] sm:$0x1] %vm21_vm3, %v20_v17  }
  0x7b   :  { %28 = vst.msk [vmem:[#allocation0] sm:$0x1] %vm27_vm4, %v26_v19  }
  0x7c   :  { %v32_v20 = vpop.permute.xlu0 %31   ;;  %v38_v21 = vpop.permute.xlu1 %37  }
  0x7d   :  { %34 = vst.msk [vmem:[#allocation0] sm:$0x1] %vm33_vm5, %v32_v20  }
  0x7e   :  { %40 = vst.msk [vmem:[#allocation0] sm:$0x1] %vm39_vm6, %v38_v21  }
  0x80   :  { %v44_v22 = vpop.permute.xlu0 %43   ;;  %v50_v23 = vpop.permute.xlu1 %49  }
  0x81   :  { %46 = vst.msk [vmem:[#allocation0] sm:$0x1] %vm45_vm7, %v44_v22  }
  0x82   :  { %52 = vst.msk [vmem:[#allocation0] sm:$0x1] %vm51_vm8, %v50_v23  }
  0x84   :  { %v56_v24 = vpop.permute.xlu0 %55   ;;  %v62_v25 = vpop.permute.xlu1 %61  }
  0x85   :  { %58 = vst.msk [vmem:[#allocation0] sm:$0x1] %vm57_vm9, %v56_v24  }
  0x86   :  { %64 = vst.msk [vmem:[#allocation0] sm:$0x1] %vm63_vm10, %v62_v25  }
  0x88   :  { %v68_v26 = vpop.permute.xlu0 %67   ;;  %v74_v27 = vpop.permute.xlu1 %73  }
  0x89   :  { %70 = vst.msk [vmem:[#allocation0] sm:$0x1] %vm69_vm11, %v68_v26  }
  0x8a   :  { %76 = vst.msk [vmem:[#allocation0] sm:$0x1] %vm75_vm12, %v74_v27  }
  0x8c   :  { %v80_v28 = vpop.permute.xlu0 %79   ;;  %v86_v29 = vpop.permute.xlu1 %85  }
  0x8d   :  { %82 = vst.msk [vmem:[#allocation0] sm:$0x1] %vm81_vm13, %v80_v28  }
  0x8e   :  { %88 = vst.msk [vmem:[#allocation0] sm:$0x1] %vm87_vm14, %v86_v29  }
  0x90   :  { %v92_v30 = vpop.permute.xlu0 %91  }
  0x91   :  { %94 = vst.msk [vmem:[#allocation0] sm:$0x1] %vm93_vm15, %v92_v30  }
  0x98   :  { %v98_v31 = vld [vmem:[#allocation0] sm:$0x1] }
  0x99   :  { %100 = vst [vmem:[%s208_s1] sm:$0x1] %v98_v31 }

// kernel: tile.43
= control target key start
LH: loop header
LB: loop body
LE: loop exit
PB: predicated region body
PF: predicated region fallthrough
CT: control target
= control target key end

     0   :  { %s28_s0 = inlined_call_operand.vmem [shape: f32[8], index: 0, kind: input, shape index: {}]   ;;  %s29_s1 = inlined_call_operand.vmem [shape: f32[16,8], index: 1, kind: output, shape index: {}]  }
   0x1   :  { %v4_v0 = vld [vmem:[%s28_s0] ss:$0 sm:$0xff] }
   0x2   :  { %5 = vst [vmem:[%s29_s1] sm:$0xff] %v4_v0  ;;  %8 = vst [vmem:[%s29_s1 + $0x8] sm:$0xff] %v4_v0 }

// kernel: resblock_forward.9
= control target key start
LH: loop header
LB: loop body
LE: loop exit
PB: predicated region body
PF: predicated region fallthrough
CT: control target
= control target key end

     0   :  { %s140_s0 = inlined_call_operand.vmem [shape: bf16[32,128], index: 0, kind: input, shape index: {}]   ;;  %s141_s1 = inlined_call_operand.vmem [shape: f32[1,128], index: 1, kind: input, shape index: {}]   ;;  %s142_s2 = inlined_call_operand.vmem [shape: f32[1,128], index: 2, kind: input, shape index: {}]   ;;  %s143_s3 = inlined_call_operand.vmem [shape: bf16[32,128], index: 3, kind: output, shape index: {}]  }
   0x1   :  { %v83_v0 = vld [vmem:[%s140_s0] sm:$0xff]   ;;  %v100_v4 = vld [vmem:[%s140_s0 + $0x8] sm:$0xff]  }
   0x2   :  { %v72_v1 = vld [vmem:[%s141_s1] ss:$0 sm:$0xff]  ;;  %v84_v2 = vunpack.c.l.bf16 %v83_v0  ;;  %v85_v3 = vunpack.c.h.bf16 %v83_v0  ;;  %v88_v6 = vunpack.c.l.bf16 %v100_v4  ;;  %v89_v7 = vunpack.c.h.bf16 %v100_v4 }
   0x3   :  { %v73_v5 = vld [vmem:[%s142_s2] ss:$0 sm:$0xff] }
   0x4   :  { %v29_v8 = vmul.f32 %v84_v2, %v72_v1  ;;  %v30_v9 = vmul.f32 %v85_v3, %v72_v1  ;;  %v31_v10 = vmul.f32 %v88_v6, %v72_v1  ;;  %v32_v11 = vmul.f32 %v89_v7, %v72_v1 }
   0x6   :  { %v40_v12 = vadd.f32 %v73_v5, %v29_v8  ;;  %v41_v13 = vadd.f32 %v73_v5, %v30_v9  ;;  %v42_v14 = vadd.f32 %v73_v5, %v31_v10  ;;  %v43_v15 = vadd.f32 %v73_v5, %v32_v11 }
   0x8   :  { %v44_v16 = vmax.f32 %v40_v12, 0.0  ;;  %v45_v17 = vmax.f32 %v41_v13, 0.0  ;;  %v46_v18 = vmax.f32 %v42_v14, 0.0  ;;  %v47_v19 = vmax.f32 %v43_v15, 0.0 }
   0xa   :  { %v93_v20 = vpack.c.bf16 %v45_v17, %v44_v16  ;;  %v98_v21 = vpack.c.bf16 %v47_v19, %v46_v18 }
   0xc   :  { %94 = vst [vmem:[%s143_s3] sm:$0xff] %v93_v20   ;;  %101 = vst [vmem:[%s143_s3 + $0x8] sm:$0xff] %v98_v21  }

// kernel: resblock_forward.7
= control target key start
LH: loop header
LB: loop body
LE: loop exit
PB: predicated region body
PF: predicated region fallthrough
CT: control target
= control target key end

     0   :  { %s136_s0 = inlined_call_operand.vmem [shape: bf16[32,128], index: 0, kind: input, shape index: {}]   ;;  %s137_s1 = inlined_call_operand.vmem [shape: f32[1,128], index: 1, kind: input, shape index: {}]   ;;  %s138_s2 = inlined_call_operand.vmem [shape: f32[1,128], index: 2, kind: input, shape index: {}]   ;;  %s139_s3 = inlined_call_operand.vmem [shape: bf16[32,128], index: 3, kind: output, shape index: {}]  }
   0x1   :  { %v79_v0 = vld [vmem:[%s136_s0] sm:$0xff]   ;;  %v96_v4 = vld [vmem:[%s136_s0 + $0x8] sm:$0xff]  }
   0x2   :  { %v68_v1 = vld [vmem:[%s137_s1] ss:$0 sm:$0xff]  ;;  %v80_v2 = vunpack.c.l.bf16 %v79_v0  ;;  %v81_v3 = vunpack.c.h.bf16 %v79_v0  ;;  %v84_v6 = vunpack.c.l.bf16 %v96_v4  ;;  %v85_v7 = vunpack.c.h.bf16 %v96_v4 }
   0x3   :  { %v69_v5 = vld [vmem:[%s138_s2] ss:$0 sm:$0xff] }
   0x4   :  { %v29_v8 = vmul.f32 %v80_v2, %v68_v1  ;;  %v30_v9 = vmul.f32 %v81_v3, %v68_v1  ;;  %v31_v10 = vmul.f32 %v84_v6, %v68_v1  ;;  %v32_v11 = vmul.f32 %v85_v7, %v68_v1 }
   0x6   :  { %v40_v12 = vadd.f32 %v69_v5, %v29_v8  ;;  %v41_v13 = vadd.f32 %v69_v5, %v30_v9  ;;  %v42_v14 = vadd.f32 %v69_v5, %v31_v10  ;;  %v43_v15 = vadd.f32 %v69_v5, %v32_v11 }
   0x8   :  { %v89_v16 = vpack.c.bf16 %v41_v13, %v40_v12  ;;  %v94_v17 = vpack.c.bf16 %v43_v15, %v42_v14 }
   0xa   :  { %90 = vst [vmem:[%s139_s3] sm:$0xff] %v89_v16   ;;  %97 = vst [vmem:[%s139_s3 + $0x8] sm:$0xff] %v94_v17  }

// kernel: resblock_forward.6
= control target key start
LH: loop header
LB: loop body
LE: loop exit
PB: predicated region body
PF: predicated region fallthrough
CT: control target
= control target key end

     0   :  { %s1108_s15 = smov 0   ;;  %s1432_s0 = inlined_call_operand.vmem [shape: f32[2,16,16,4], index: 0, kind: input, shape index: {}]   ;;  %s1433_s1 = inlined_call_operand.vmem [shape: bf16[4,8], index: 1, kind: input, shape index: {}]   ;;  %s1434_s2 = inlined_call_operand.vmem [shape: bf16[2,256,8], index: 2, kind: output, shape index: {0}]   ;;  %s1435_s3 = inlined_call_operand.vmem [shape: f32[2,1,8], index: 3, kind: output, shape index: {1}]   ;;  %s1436_s4 = inlined_call_operand.vmem [shape: f32[2,1,8], index: 4, kind: output, shape index: {2}]  }
   0x1 LB: > { %s919_s16 = sadd.s32 4294967295, %s1081_s15   ;;  %p923_p0 = scmp.ge.s32.totalorder %s1081_s15, 1  ;;  %s1081_s15 = sphi %s1108_s15, %s15_s15  }
   0x2   : > { %p167_p1 = scmp.lt.s32.totalorder %s1081_s15, 3 }
   0x4   : > { %p168_p2 = pnand %p923_p0, %p167_p1 }
   0x5   : > { %v264_v0 = vld [vmem:[%s1433_s1] sm:$0x3] (!%p168_p2)  ;;  %vm314_vm0 = vcmask (!%p168_p2), 1041408   ;;  %p199_p3 = scmp.lt.s32.totalorder (!%p168_p2), %s919_s16, 1  ;;  %vm265_vm1 = vcmask (!%p168_p2), 31744   ;;  %vm607_vm2 = vcmask (!%p168_p2), 60416  }
   0x6   : > { %171 = sbr.rel (%p168_p2) target bundleno = 313 (0x139), region = 28  ;;  %1065 = vmatprep.subr.msk.bf16.mxu0 (!%p168_p2), %vm314_vm0, %v264_v0  ;;  %v316_v1 = vsel (!%p168_p2), %vm314_vm0, %v264_v0, 0  ;;  %1066 = vmatprep.subr.msk.bf16.mxu1 (!%p168_p2), %vm314_vm0, %v264_v0  ;;  %vm640_vm3 = vcmask (!%p168_p2), 64512   ;;  %vm710_vm4 = vcmask (!%p168_p2), 57344  }
   0x7   : > { %1030 = vmatpush3.bf16.msra.mxu0 (!%p168_p2), %v316_v1  ;;  %1064 = vmatpush3.bf16.msra.mxu1 (!%p168_p2), %v316_v1 }
   0xd   : > { %s1438_s16 = smov (!%p199_p3, %s919_s16), 1 }
   0xe   : > { %s978_s19 = sshll.u32 %s1438_s16, 8  ;;  %s979_s23 = sshll.u32 %s1438_s16, 7 }
   0xf   : > { %s1125_s22 = scalar_lea.vmem %s1432_s0, %s978_s19  ;;  %s1179_s26 = scalar_lea.vmem %s1434_s2, %s979_s23 }
  0x10   : > { %v216_v2 = vld [vmem:[%s1125_s22] sm:$0xff]  ;;  %v217_v3 = vld [vmem:[%s1125_s22 + $0x8] sm:$0xff]  ;;  %v218_v4 = vld [vmem:[%s1125_s22 + $0x10] sm:$0xff]  ;;  %s211_s29 = scalar_lea.vmem %s1435_s3, %s1438_s16  ;;  %s214_s6 = scalar_lea.vmem %s1436_s4, %s1438_s16 }
  0x11   : > { %v248_v5 = vpack.c.bf16 %v217_v3, %v216_v2  ;;  %v219_v6 = vld [vmem:[%s1125_s22 + $0x18] sm:$0xff]  ;;  %v220_v7 = vld [vmem:[%s1125_s22 + $0x20] sm:$0xff]  ;;  %v221_v8 = vld [vmem:[%s1125_s22 + $0x28] sm:$0xff] }
  0x12   : > { %v249_v9 = vpack.c.bf16 %v219_v6, %v218_v4  ;;  %v250_v10 = vpack.c.bf16 %v221_v8, %v220_v7  ;;  %v222_v11 = vld [vmem:[%s1125_s22 + $0x30] sm:$0xff]  ;;  %v223_v12 = vld [vmem:[%s1125_s22 + $0x38] sm:$0xff]  ;;  %v224_v13 = vld [vmem:[%s1125_s22 + $0x40] sm:$0xff] }
  0x13   : > { %1031 = vmatprep.mubr.msk.bf16.mxu0 %vm265_vm1, %v248_v5  ;;  %v225_v14 = vld [vmem:[%s1125_s22 + $0x48] sm:$0xff]  ;;  %v232_v15 = vld [vmem:[%s1125_s22 + $0x80] sm:$0xff]  ;;  %v234_v18 = vld [vmem:[%s1125_s22 + $0x90] sm:$0xff]  ;;  %v251_v23 = vpack.c.bf16 %v223_v12, %v222_v11 }
  0x14   : > { %1032 = vmatmul.mubr.msk.bf16.vlgmr.msra.gmra.mrb[0].mxu0 %vm265_vm1, %v249_v9  ;;  %v233_v16 = vld [vmem:[%s1125_s22 + $0x88] sm:$0xff]  ;;  %v235_v19 = vld [vmem:[%s1125_s22 + $0x98] sm:$0xff]  ;;  %v236_v20 = vld [vmem:[%s1125_s22 + $0xa0] sm:$0xff]  ;;  %v252_v25 = vpack.c.bf16 %v225_v14, %v224_v13 }
  0x15   : > { %1035 = vmatprep.mubr.msk.bf16.mxu0 %vm265_vm1, %v250_v10  ;;  %v256_v17 = vpack.c.bf16 %v233_v16, %v232_v15  ;;  %v257_v21 = vpack.c.bf16 %v235_v19, %v234_v18  ;;  %v237_v22 = vld [vmem:[%s1125_s22 + $0xa8] sm:$0xff]  ;;  %v238_v26 = vld [vmem:[%s1125_s22 + $0xb0] sm:$0xff]  ;;  %v239_v27 = vld [vmem:[%s1125_s22 + $0xb8] sm:$0xff] }
  0x16   : > { %v258_v24 = vpack.c.bf16 %v237_v22, %v236_v20  ;;  %v240_v28 = vld [vmem:[%s1125_s22 + $0xc0] sm:$0xff]  ;;  %v241_v29 = vld [vmem:[%s1125_s22 + $0xc8] sm:$0xff]  ;;  %v226_v30 = vld [vmem:[%s1125_s22 + $0x50] sm:$0xff]  ;;  %v259_v32 = vpack.c.bf16 %v239_v27, %v238_v26 }
  0x17   : > { %1047 = vmatprep.mubr.msk.bf16.mxu1 %vm265_vm1, %v256_v17  ;;  %v227_v31 = vld [vmem:[%s1125_s22 + $0x58] sm:$0xff]  ;;  %v228_v33 = vld [vmem:[%s1125_s22 + $0x60] sm:$0xff]  ;;  %v229_v34 = vld [vmem:[%s1125_s22 + $0x68] sm:$0xff]  ;;  %v260_v35 = vpack.c.bf16 %v241_v29, %v240_v28 }
  0x18   : > { %1048 = vmatmul.mubr.msk.bf16.vlgmr.msra.gmra.mrb[0].mxu1 %vm265_vm1, %v257_v21  ;;  %v253_v36 = vpack.c.bf16 %v227_v31, %v226_v30  ;;  %v254_v37 = vpack.c.bf16 %v229_v34, %v228_v33  ;;  %v242_v38 = vld [vmem:[%s1125_s22 + $0xd0] sm:$0xff]  ;;  %v243_v39 = vld [vmem:[%s1125_s22 + $0xd8] sm:$0xff]  ;;  %v244_v40 = vld [vmem:[%s1125_s22 + $0xe0] sm:$0xff] }
  0x19   : > { %1051 = vmatprep.mubr.msk.bf16.mxu1 %vm265_vm1, %v258_v24  ;;  %v245_v41 = vld [vmem:[%s1125_s22 + $0xe8] sm:$0xff]  ;;  %v230_v42 = vld [vmem:[%s1125_s22 + $0x70] sm:$0xff]  ;;  %v231_v43 = vld [vmem:[%s1125_s22 + $0x78] sm:$0xff]  ;;  %v261_v44 = vpack.c.bf16 %v243_v39, %v242_v38 }
  0x1a   : > { %v262_v45 = vpack.c.bf16 %v245_v41, %v244_v40  ;;  %v255_v46 = vpack.c.bf16 %v231_v43, %v230_v42  ;;  %v246_v47 = vld [vmem:[%s1125_s22 + $0xf0] sm:$0xff]  ;;  %v247_v48 = vld [vmem:[%s1125_s22 + $0xf8] sm:$0xff] }
  0x1b   : > { %v263_v49 = vpack.c.bf16 %v247_v48, %v246_v47 }
  0x1c   : > { %1036 = vmatmul.mubr.msk.bf16.gmra.mrb[4].mxu0 %vm265_vm1, %v251_v23 }
  0x1d   : > { %1039 = vmatprep.mubr.msk.bf16.mxu0 %vm265_vm1, %v252_v25 }
  0x20   : > { %1052 = vmatmul.mubr.msk.bf16.gmra.mrb[4].mxu1 %vm265_vm1, %v259_v32 }
  0x21   : > { %1055 = vmatprep.mubr.msk.bf16.mxu1 %vm265_vm1, %v260_v35 }
  0x24   : > { %1040 = vmatmul.mubr.msk.bf16.gmra.mrb[8].mxu0 %vm265_vm1, %v253_v36 }
  0x25   : > { %1043 = vmatprep.mubr.msk.bf16.mxu0 %vm265_vm1, %v254_v37 }
  0x28   : > { %1056 = vmatmul.mubr.msk.bf16.gmra.mrb[8].mxu1 %vm265_vm1, %v261_v44 }
  0x29   : > { %1059 = vmatprep.mubr.msk.bf16.mxu1 %vm265_vm1, %v262_v45 }
  0x2c   : > { %1044 = vmatmul.mubr.msk.bf16.gmra.mrb[12].mxu0 %vm265_vm1, %v255_v46 }
  0x30   : > { %1060 = vmatmul.mubr.msk.bf16.gmra.mrb[12].mxu1 %vm265_vm1, %v263_v49 }
  0xe7   : > { %v1033_v50 = vpop.f32.mrb[0].mxu0 }
  0xe8   : > { %v982_v51 = vpack.c.bf16 %v1033_v50, %v1033_v50  ;;  %v352_v52 = vpop.f32.mrb[1].mxu0  ;;  %v714_v56 = vmul.f32 %v1033_v50, %v1033_v50  ;;  %v644_v2 = vsel %vm640_vm3, %v1033_v50, 0.0 }
  0xe9   : > { %v980_v53 = vpack.c.bf16 %v352_v52, %v352_v52  ;;  %v712_v54 = vmul.f32 %v352_v52, %v352_v52  ;;  %v1034_v55 = vpop.f32.mrb[2].mxu0  ;;  %v641_v59 = vsel %vm640_vm3, %v352_v52, 0.0 }
  0xea   : > { %610 = vst.msk [vmem:[%s1179_s26 + $0x8] sm:$0xf] %vm607_vm2, %v982_v51  ;;  %v983_v57 = vpack.c.bf16 %v1034_v55, %v1034_v55  ;;  %v355_v58 = vpop.f32.mrb[3].mxu0  ;;  %v715_v63 = vmul.f32 %v1034_v55, %v1034_v55  ;;  %v747_v11 = vsel %vm640_vm3, %v714_v56, 0.0  ;;  %v646_v15 = vsel %vm640_vm3, %v1034_v55, 0.0 }
  0xeb   : > { %608 = vst.msk [vmem:[%s1179_s26] sm:$0xf] %vm607_vm2, %v980_v53  ;;  %v981_v60 = vpack.c.bf16 %v355_v58, %v355_v58  ;;  %v642_v61 = vsel %vm640_vm3, %v355_v58, 0.0  ;;  %v713_v62 = vmul.f32 %v355_v58, %v355_v58  ;;  %v1189_v1 = vpop.f32.mrb[0].mxu1  ;;  %v744_v3 = vsel %vm640_vm3, %v712_v54, 0.0 }
  0xec   : > { %611 = vst.msk [vmem:[%s1179_s26 + $0xc] sm:$0xf] %vm607_vm2, %v983_v57  ;;  %v643_v0 = vadd.f32 %v642_v61, %v641_v59  ;;  %v998_v5 = vpack.c.bf16 %v1189_v1, %v1189_v1  ;;  %v1198_v6 = vpop.f32.mrb[1].mxu1  ;;  %v749_v16 = vsel %vm640_vm3, %v715_v63, 0.0 }
  0xed   : > { %609 = vst.msk [vmem:[%s1179_s26 + $0x4] sm:$0xf] %vm607_vm2, %v981_v60  ;;  %v745_v4 = vsel %vm640_vm3, %v713_v62, 0.0  ;;  %v996_v9 = vpack.c.bf16 %v1198_v6, %v1198_v6  ;;  %v1202_v10 = vpop.f32.mrb[2].mxu1 }
  0xee   : > { %v645_v7 = vadd.f32 %v644_v2, %v643_v0  ;;  %v746_v8 = vadd.f32 %v745_v4, %v744_v3  ;;  %626 = vst.msk [vmem:[%s1179_s26 + $0x48] sm:$0xf] %vm607_vm2, %v998_v5  ;;  %v999_v13 = vpack.c.bf16 %v1202_v10, %v1202_v10  ;;  %v1209_v14 = vpop.f32.mrb[3].mxu1 }
  0xef   : > { %v1037_v12 = vpop.f32.mrb[4].mxu0  ;;  %624 = vst.msk [vmem:[%s1179_s26 + $0x40] sm:$0xf] %vm607_vm2, %v996_v9  ;;  %v997_v37 = vpack.c.bf16 %v1209_v14, %v1209_v14 }
  0xf0   : > { %v748_v17 = vadd.f32 %v747_v11, %v746_v8  ;;  %v986_v18 = vpack.c.bf16 %v1037_v12, %v1037_v12  ;;  %v368_v19 = vpop.f32.mrb[5].mxu0  ;;  %v647_v21 = vadd.f32 %v646_v15, %v645_v7  ;;  %627 = vst.msk [vmem:[%s1179_s26 + $0x4c] sm:$0xf] %vm607_vm2, %v999_v13  ;;  %v718_v31 = vmul.f32 %v1037_v12, %v1037_v12 }
  0xf1   : > { %v984_v20 = vpack.c.bf16 %v368_v19, %v368_v19  ;;  %v648_v22 = vsel %vm640_vm3, %v368_v19, 0.0  ;;  %v716_v23 = vmul.f32 %v368_v19, %v368_v19  ;;  %v1038_v24 = vpop.f32.mrb[6].mxu0  ;;  %v652_v39 = vsel %vm640_vm3, %v1037_v12, 0.0  ;;  %625 = vst.msk [vmem:[%s1179_s26 + $0x44] sm:$0xf] %vm607_vm2, %v997_v37 }
  0xf2   : > { %614 = vst.msk [vmem:[%s1179_s26 + $0x18] sm:$0xf] %vm607_vm2, %v986_v18  ;;  %v750_v25 = vadd.f32 %v749_v16, %v748_v17  ;;  %v987_v26 = vpack.c.bf16 %v1038_v24, %v1038_v24  ;;  %v371_v27 = vpop.f32.mrb[7].mxu0  ;;  %v649_v28 = vadd.f32 %v648_v22, %v647_v21  ;;  %v719_v40 = vmul.f32 %v1038_v24, %v1038_v24 }
  0xf3   : > { %612 = vst.msk [vmem:[%s1179_s26 + $0x10] sm:$0xf] %vm607_vm2, %v984_v20  ;;  %v751_v29 = vsel %vm640_vm3, %v716_v23, 0.0  ;;  %v985_v30 = vpack.c.bf16 %v371_v27, %v371_v27  ;;  %v650_v33 = vsel %vm640_vm3, %v371_v27, 0.0  ;;  %v717_v34 = vmul.f32 %v371_v27, %v371_v27  ;;  %v1226_v35 = vpop.f32.mrb[4].mxu1 }
  0xf4   : > { %v752_v32 = vadd.f32 %v751_v29, %v750_v25  ;;  %615 = vst.msk [vmem:[%s1179_s26 + $0x1c] sm:$0xf] %vm607_vm2, %v987_v26  ;;  %v651_v36 = vadd.f32 %v650_v33, %v649_v28  ;;  %v1232_v38 = vpop.f32.mrb[5].mxu1  ;;  %v1002_v42 = vpack.c.bf16 %v1226_v35, %v1226_v35  ;;  %v755_v48 = vsel %vm640_vm3, %v718_v31, 0.0 }
  0xf5   : > { %613 = vst.msk [vmem:[%s1179_s26 + $0x14] sm:$0xf] %vm607_vm2, %v985_v30  ;;  %v753_v41 = vsel %vm640_vm3, %v717_v34, 0.0  ;;  %v1238_v43 = vpop.f32.mrb[6].mxu1  ;;  %v654_v49 = vsel %vm640_vm3, %v1038_v24, 0.0  ;;  %v757_v57 = vsel %vm640_vm3, %v719_v40, 0.0  ;;  %v1000_v9 = vpack.c.bf16 %v1232_v38, %v1232_v38 }
  0xf6   : > { %v653_v44 = vadd.f32 %v652_v39, %v651_v36  ;;  %v754_v45 = vadd.f32 %v753_v41, %v752_v32  ;;  %v1242_v47 = vpop.f32.mrb[7].mxu1  ;;  %630 = vst.msk [vmem:[%s1179_s26 + $0x58] sm:$0xf] %vm607_vm2, %v1002_v42  ;;  %v1003_v20 = vpack.c.bf16 %v1238_v43, %v1238_v43 }
  0xf7   : > { %v1041_v46 = vpop.f32.mrb[8].mxu0  ;;  %628 = vst.msk [vmem:[%s1179_s26 + $0x50] sm:$0xf] %vm607_vm2, %v1000_v9 }
  0xf8   : > { %v990_v50 = vpack.c.bf16 %v1041_v46, %v1041_v46  ;;  %v384_v51 = vpop.f32.mrb[9].mxu0  ;;  %v756_v52 = vadd.f32 %v755_v48, %v754_v45  ;;  %v655_v54 = vadd.f32 %v654_v49, %v653_v44  ;;  %v722_v0 = vmul.f32 %v1041_v46, %v1041_v46  ;;  %631 = vst.msk [vmem:[%s1179_s26 + $0x5c] sm:$0xf] %vm607_vm2, %v1003_v20 }
  0xf9   : > { %v988_v53 = vpack.c.bf16 %v384_v51, %v384_v51  ;;  %v656_v55 = vsel %vm640_vm3, %v384_v51, 0.0  ;;  %v1042_v56 = vpop.f32.mrb[10].mxu0  ;;  %v720_v58 = vmul.f32 %v384_v51, %v384_v51  ;;  %v660_v12 = vsel %vm640_vm3, %v1041_v46, 0.0 }
  0xfa   : > { %618 = vst.msk [vmem:[%s1179_s26 + $0x28] sm:$0xf] %vm607_vm2, %v990_v50  ;;  %v991_v59 = vpack.c.bf16 %v1042_v56, %v1042_v56  ;;  %v387_v60 = vpop.f32.mrb[11].mxu0  ;;  %v657_v61 = vadd.f32 %v656_v55, %v655_v54  ;;  %v758_v62 = vadd.f32 %v757_v57, %v756_v52  ;;  %v723_v13 = vmul.f32 %v1042_v56, %v1042_v56 }
  0xfb   : > { %616 = vst.msk [vmem:[%s1179_s26 + $0x20] sm:$0xf] %vm607_vm2, %v988_v53  ;;  %v989_v63 = vpack.c.bf16 %v387_v60, %v387_v60  ;;  %v759_v2 = vsel %vm640_vm3, %v720_v58, 0.0  ;;  %v658_v3 = vsel %vm640_vm3, %v387_v60, 0.0  ;;  %v721_v4 = vmul.f32 %v387_v60, %v387_v60  ;;  %v1258_v5 = vpop.f32.mrb[8].mxu1 }
  0xfc   : > { %619 = vst.msk [vmem:[%s1179_s26 + $0x2c] sm:$0xf] %vm607_vm2, %v991_v59  ;;  %v760_v7 = vadd.f32 %v759_v2, %v758_v62  ;;  %v659_v8 = vadd.f32 %v658_v3, %v657_v61  ;;  %v1264_v11 = vpop.f32.mrb[9].mxu1  ;;  %v763_v22 = vsel %vm640_vm3, %v722_v0, 0.0  ;;  %v662_v23 = vsel %vm640_vm3, %v1042_v56, 0.0 }
  0xfd   : > { %617 = vst.msk [vmem:[%s1179_s26 + $0x24] sm:$0xf] %vm607_vm2, %v989_v63  ;;  %v761_v15 = vsel %vm640_vm3, %v721_v4, 0.0  ;;  %v1268_v16 = vpop.f32.mrb[10].mxu1  ;;  %v765_v31 = vsel %vm640_vm3, %v723_v13, 0.0  ;;  %v1001_v49 = vpack.c.bf16 %v1242_v47, %v1242_v47  ;;  %v728_v54 = vmul.f32 %v1198_v6, %v1198_v6 }
  0xfe   : > { %v661_v17 = vadd.f32 %v660_v12, %v659_v8  ;;  %v762_v18 = vadd.f32 %v761_v15, %v760_v7  ;;  %v1274_v21 = vpop.f32.mrb[11].mxu1  ;;  %v1006_v58 = vpack.c.bf16 %v1258_v5, %v1258_v5  ;;  %v672_v62 = vsel %vm640_vm3, %v1198_v6, 0.0 }
  0xff   : > { %v1045_v19 = vpop.f32.mrb[12].mxu0  ;;  %629 = vst.msk [vmem:[%s1179_s26 + $0x54] sm:$0xf] %vm607_vm2, %v1001_v49  ;;  %v1004_v63 = vpack.c.bf16 %v1264_v11, %v1264_v11  ;;  %v1007_v3 = vpack.c.bf16 %v1268_v16, %v1268_v16  ;;  %v775_v7 = vsel %vm640_vm3, %v728_v54, 0.0  ;;  %v729_v8 = vmul.f32 %v1209_v14, %v1209_v14 }
 0x100   : > { %v994_v24 = vpack.c.bf16 %v1045_v19, %v1045_v19  ;;  %v400_v25 = vpop.f32.mrb[13].mxu0  ;;  %v764_v26 = vadd.f32 %v763_v22, %v762_v18  ;;  %v663_v28 = vadd.f32 %v662_v23, %v661_v17  ;;  %v726_v40 = vmul.f32 %v1045_v19, %v1045_v19  ;;  %634 = vst.msk [vmem:[%s1179_s26 + $0x68] sm:$0xf] %vm607_vm2, %v1006_v58 }
 0x101   : > { %v992_v27 = vpack.c.bf16 %v400_v25, %v400_v25  ;;  %v664_v29 = vsel %vm640_vm3, %v400_v25, 0.0  ;;  %v1046_v30 = vpop.f32.mrb[14].mxu0  ;;  %v724_v32 = vmul.f32 %v400_v25, %v400_v25  ;;  %v668_v51 = vsel %vm640_vm3, %v1045_v19, 0.0  ;;  %632 = vst.msk [vmem:[%s1179_s26 + $0x60] sm:$0xf] %vm607_vm2, %v1004_v63 }
 0x102   : > { %622 = vst.msk [vmem:[%s1179_s26 + $0x38] sm:$0xf] %vm607_vm2, %v994_v24  ;;  %v995_v33 = vpack.c.bf16 %v1046_v30, %v1046_v30  ;;  %v403_v34 = vpop.f32.mrb[15].mxu0  ;;  %v665_v36 = vadd.f32 %v664_v29, %v663_v28  ;;  %v766_v37 = vadd.f32 %v765_v31, %v764_v26  ;;  %v727_v52 = vmul.f32 %v1046_v30, %v1046_v30 }
 0x103   : > { %620 = vst.msk [vmem:[%s1179_s26 + $0x30] sm:$0xf] %vm607_vm2, %v992_v27  ;;  %v993_v39 = vpack.c.bf16 %v403_v34, %v403_v34  ;;  %v767_v41 = vsel %vm640_vm3, %v724_v32, 0.0  ;;  %v666_v42 = vsel %vm640_vm3, %v403_v34, 0.0  ;;  %v725_v44 = vmul.f32 %v403_v34, %v403_v34  ;;  %v1290_v45 = vpop.f32.mrb[12].mxu1 }
 0x104   : > { %623 = vst.msk [vmem:[%s1179_s26 + $0x3c] sm:$0xf] %vm607_vm2, %v995_v33  ;;  %v768_v46 = vadd.f32 %v767_v41, %v766_v37  ;;  %v667_v48 = vadd.f32 %v666_v42, %v665_v36  ;;  %v1296_v50 = vpop.f32.mrb[13].mxu1  ;;  %v771_v60 = vsel %vm640_vm3, %v726_v40, 0.0  ;;  %v670_v61 = vsel %vm640_vm3, %v1046_v30, 0.0 }
 0x105   : > { %621 = vst.msk [vmem:[%s1179_s26 + $0x34] sm:$0xf] %vm607_vm2, %v993_v39  ;;  %v769_v53 = vsel %vm640_vm3, %v725_v44, 0.0  ;;  %v1302_v55 = vpop.f32.mrb[14].mxu1  ;;  %v773_v4 = vsel %vm640_vm3, %v727_v52, 0.0  ;;  %v1005_v6 = vpack.c.bf16 %v1274_v21, %v1274_v21  ;;  %v730_v13 = vmul.f32 %v1189_v1, %v1189_v1 }
 0x106   : > { %v669_v56 = vadd.f32 %v668_v51, %v667_v48  ;;  %v770_v57 = vadd.f32 %v769_v53, %v768_v46  ;;  %v1308_v59 = vpop.f32.mrb[15].mxu1  ;;  %635 = vst.msk [vmem:[%s1179_s26 + $0x6c] sm:$0xf] %vm607_vm2, %v1007_v3  ;;  %v674_v15 = vsel %vm640_vm3, %v1209_v14, 0.0  ;;  %v1010_v17 = vpack.c.bf16 %v1290_v45, %v1290_v45 }
 0x107   : > { %633 = vst.msk [vmem:[%s1179_s26 + $0x64] sm:$0xf] %vm607_vm2, %v1005_v6  ;;  %v676_v18 = vsel %vm640_vm3, %v1189_v1, 0.0  ;;  %v1008_v22 = vpack.c.bf16 %v1296_v50, %v1296_v50  ;;  %v731_v23 = vmul.f32 %v1202_v10, %v1202_v10  ;;  %v777_v24 = vsel %vm640_vm3, %v729_v8, 0.0 }
 0x108   : > { %v772_v0 = vadd.f32 %v771_v60, %v770_v57  ;;  %v671_v2 = vadd.f32 %v670_v61, %v669_v56  ;;  %v732_v14 = vmul.f32 %v1232_v38, %v1232_v38  ;;  %638 = vst.msk [vmem:[%s1179_s26 + $0x78] sm:$0xf] %vm607_vm2, %v1010_v17  ;;  %v1011_v25 = vpack.c.bf16 %v1302_v55, %v1302_v55 }
 0x109   : > { %636 = vst.msk [vmem:[%s1179_s26 + $0x70] sm:$0xf] %vm607_vm2, %v1008_v22  ;;  %v779_v27 = vsel %vm640_vm3, %v730_v13, 0.0  ;;  %v678_v28 = vsel %vm640_vm3, %v1202_v10, 0.0  ;;  %v680_v29 = vsel %vm640_vm3, %v1232_v38, 0.0  ;;  %v1009_v30 = vpack.c.bf16 %v1308_v59, %v1308_v59 }
 0x10a   : > { %v673_v9 = vadd.f32 %v672_v62, %v671_v2  ;;  %v774_v12 = vadd.f32 %v773_v4, %v772_v0  ;;  %639 = vst.msk [vmem:[%s1179_s26 + $0x7c] sm:$0xf] %vm607_vm2, %v1011_v25  ;;  %v781_v33 = vsel %vm640_vm3, %v731_v23, 0.0  ;;  %v783_v34 = vsel %vm640_vm3, %v732_v14, 0.0 }
 0x10b   : > { %v733_v36 = vmul.f32 %v1242_v47, %v1242_v47  ;;  %637 = vst.msk [vmem:[%s1179_s26 + $0x74] sm:$0xf] %vm607_vm2, %v1009_v30  ;;  %v734_v38 = vmul.f32 %v1226_v35, %v1226_v35  ;;  %v682_v39 = vsel %vm640_vm3, %v1242_v47, 0.0  ;;  %v684_v42 = vsel %vm640_vm3, %v1226_v35, 0.0 }
 0x10c   : > { %v776_v19 = vadd.f32 %v775_v7, %v774_v12  ;;  %v675_v20 = vadd.f32 %v674_v15, %v673_v9  ;;  %v735_v44 = vmul.f32 %v1238_v43, %v1238_v43  ;;  %v736_v48 = vmul.f32 %v1264_v11, %v1264_v11 }
 0x10d   : > { %v785_v46 = vsel %vm640_vm3, %v733_v36, 0.0  ;;  %v787_v52 = vsel %vm640_vm3, %v734_v38, 0.0  ;;  %v686_v47 = vsel %vm640_vm3, %v1238_v43, 0.0  ;;  %v688_v53 = vsel %vm640_vm3, %v1264_v11, 0.0 }
 0x10e   : > { %v677_v1 = vadd.f32 %v676_v18, %v675_v20  ;;  %v778_v26 = vadd.f32 %v777_v24, %v776_v19  ;;  %v789_v56 = vsel %vm640_vm3, %v735_v44, 0.0  ;;  %v791_v57 = vsel %vm640_vm3, %v736_v48, 0.0 }
 0x10f   : > { %v737_v58 = vmul.f32 %v1274_v21, %v1274_v21  ;;  %v738_v62 = vmul.f32 %v1258_v5, %v1258_v5  ;;  %v690_v43 = vsel %vm640_vm3, %v1274_v21, 0.0  ;;  %v692_v11 = vsel %vm640_vm3, %v1258_v5, 0.0 }
 0x110   : > { %v780_v31 = vadd.f32 %v779_v27, %v778_v26  ;;  %v679_v32 = vadd.f32 %v678_v28, %v677_v1  ;;  %v739_v2 = vmul.f32 %v1268_v16, %v1268_v16  ;;  %v740_v4 = vmul.f32 %v1296_v50, %v1296_v50 }
 0x111   : > { %v793_v3 = vsel %vm640_vm3, %v737_v58, 0.0  ;;  %v795_v6 = vsel %vm640_vm3, %v738_v62, 0.0  ;;  %v694_v21 = vsel %vm640_vm3, %v1268_v16, 0.0  ;;  %v696_v9 = vsel %vm640_vm3, %v1296_v50, 0.0 }
 0x112   : > { %v681_v10 = vadd.f32 %v680_v29, %v679_v32  ;;  %v782_v37 = vadd.f32 %v781_v33, %v780_v31  ;;  %v797_v13 = vsel %vm640_vm3, %v739_v2, 0.0  ;;  %v799_v15 = vsel %vm640_vm3, %v740_v4, 0.0 }
 0x113   : > { %v741_v17 = vmul.f32 %v1308_v59, %v1308_v59  ;;  %v742_v20 = vmul.f32 %v1290_v45, %v1290_v45  ;;  %v698_v16 = vsel %vm640_vm3, %v1308_v59, 0.0  ;;  %v700_v50 = vsel %vm640_vm3, %v1290_v45, 0.0 }
 0x114   : > { %v784_v40 = vadd.f32 %v783_v34, %v782_v37  ;;  %v683_v41 = vadd.f32 %v682_v39, %v681_v10  ;;  %v743_v24 = vmul.f32 %v1302_v55, %v1302_v55  ;;  %v702_v27 = vsel %vm640_vm3, %v1302_v55, 0.0 }
 0x115   : > { %v801_v14 = vsel %vm640_vm3, %v741_v17, 0.0  ;;  %v803_v26 = vsel %vm640_vm3, %v742_v20, 0.0 }
 0x116   : > { %v685_v49 = vadd.f32 %v684_v42, %v683_v41  ;;  %v786_v51 = vadd.f32 %v785_v46, %v784_v40  ;;  %v805_v29 = vsel %vm640_vm3, %v743_v24, 0.0 }
 0x118   : > { %v788_v54 = vadd.f32 %v787_v52, %v786_v51  ;;  %v687_v35 = vadd.f32 %v686_v47, %v685_v49 }
 0x11a   : > { %v689_v60 = vadd.f32 %v688_v53, %v687_v35  ;;  %v790_v61 = vadd.f32 %v789_v56, %v788_v54 }
 0x11c   : > { %v792_v63 = vadd.f32 %v791_v57, %v790_v61  ;;  %v691_v0 = vadd.f32 %v690_v43, %v689_v60 }
 0x11e   : > { %v693_v7 = vadd.f32 %v692_v11, %v691_v0  ;;  %v794_v8 = vadd.f32 %v793_v3, %v792_v63 }
 0x120   : > { %v796_v12 = vadd.f32 %v795_v6, %v794_v8  ;;  %v695_v5 = vadd.f32 %v694_v21, %v693_v7 }
 0x122   : > { %v697_v18 = vadd.f32 %v696_v9, %v695_v5  ;;  %v798_v19 = vadd.f32 %v797_v13, %v796_v12 }
 0x124   : > { %v800_v22 = vadd.f32 %v799_v15, %v798_v19  ;;  %v699_v23 = vadd.f32 %v698_v16, %v697_v18 }
 0x126   : > { %v701_v25 = vadd.f32 %v700_v50, %v699_v23  ;;  %v802_v1 = vadd.f32 %v801_v14, %v800_v22 }
 0x128   : > { %v703_v28 = vadd.f32 %v702_v27, %v701_v25  ;;  %v804_v59 = vadd.f32 %v803_v26, %v802_v1 }
 0x12a   : > { %v704_v30 = vrot.slane %v703_v28, 4  ;;  %v806_v45 = vadd.f32 %v805_v29, %v804_v59 }
 0x12c   : > { %v705_v31 = vadd.f32 %v704_v30, %v703_v28  ;;  %v807_v32 = vrot.slane %v806_v45, 4 }
 0x12e   : > { %v706_v33 = vrot.slane %v705_v31, 2  ;;  %v808_v34 = vadd.f32 %v807_v32, %v806_v45 }
 0x130   : > { %v707_v36 = vadd.f32 %v706_v33, %v705_v31  ;;  %v809_v10 = vrot.slane %v808_v34, 2 }
 0x132   : > { %v708_v37 = vrot.slane %v707_v36, 1  ;;  %v810_v38 = vadd.f32 %v809_v10, %v808_v34 }
 0x134   : > { %v709_v55 = vadd.f32 %v708_v37, %v707_v36  ;;  %v811_v39 = vrot.slane %v810_v38, 1 }
 0x136   : > { %711 = vst.msk [vmem:[%s211_s29] sm:$0x1] %vm710_vm4, %v709_v55  ;;  %v812_v40 = vadd.f32 %v811_v39, %v810_v38 }
 0x138   : > { %813 = vst.msk [vmem:[%s214_s6] sm:$0x1] %vm710_vm4, %v812_v40 }
 0x139 PF: > { %s15_s15 = sadd.s32 1, %s1081_s15  }
 0x13a   : > { %p12_p4 = scmp.ge.s32.totalorder %s15_s15, 4  }
 0x13c   :  { %14 = sbr.rel (!%p12_p4) target bundleno = 1 (0x1), region = 82 }

// kernel: resblock_forward.11
= control target key start
LH: loop header
LB: loop body
LE: loop exit
PB: predicated region body
PF: predicated region fallthrough
CT: control target
= control target key end

     0   :  { %s146_s0 = inlined_call_operand.vmem [shape: bf16[32,128], index: 0, kind: input, shape index: {}]   ;;  %s147_s1 = inlined_call_operand.vmem [shape: f32[1,128], index: 1, kind: input, shape index: {}]   ;;  %s148_s2 = inlined_call_operand.vmem [shape: f32[1,128], index: 2, kind: input, shape index: {}]   ;;  %s149_s3 = inlined_call_operand.vmem [shape: bf16[32,128], index: 3, kind: input, shape index: {}]   ;;  %s150_s4 = inlined_call_operand.vmem [shape: f32[32,128], index: 4, kind: output, shape index: {}]  }
   0x1   :  { %v74_v0 = vld [vmem:[%s146_s0] sm:$0xff]   ;;  %v89_v5 = vld [vmem:[%s146_s0 + $0x8] sm:$0xff]  }
   0x2   :  { %v71_v1 = vld [vmem:[%s147_s1] ss:$0 sm:$0xff]  ;;  %v75_v2 = vunpack.c.l.bf16 %v74_v0  ;;  %v76_v4 = vunpack.c.h.bf16 %v74_v0  ;;  %v90_v6 = vld [vmem:[%s149_s3 + $0x8] sm:$0xff]   ;;  %v79_v9 = vunpack.c.l.bf16 %v89_v5  ;;  %v80_v13 = vunpack.c.h.bf16 %v89_v5 }
   0x3   :  { %v82_v3 = vld [vmem:[%s149_s3] sm:$0xff]   ;;  %v87_v15 = vunpack.c.l.bf16 %v90_v6  ;;  %v88_v19 = vunpack.c.h.bf16 %v90_v6 }
   0x4   :  { %v72_v7 = vld [vmem:[%s148_s2] ss:$0 sm:$0xff]  ;;  %v83_v8 = vunpack.c.l.bf16 %v82_v3  ;;  %v32_v10 = vmul.f32 %v75_v2, %v71_v1  ;;  %v33_v11 = vmul.f32 %v76_v4, %v71_v1  ;;  %v84_v12 = vunpack.c.h.bf16 %v82_v3 }
   0x5   :  { %v34_v14 = vmul.f32 %v79_v9, %v71_v1  ;;  %v35_v18 = vmul.f32 %v80_v13, %v71_v1 }
   0x6   :  { %v43_v16 = vadd.f32 %v72_v7, %v32_v10  ;;  %v44_v17 = vadd.f32 %v72_v7, %v33_v11 }
   0x7   :  { %v45_v20 = vadd.f32 %v72_v7, %v34_v14  ;;  %v46_v23 = vadd.f32 %v72_v7, %v35_v18 }
   0x8   :  { %v55_v21 = vadd.f32 %v83_v8, %v43_v16  ;;  %v56_v22 = vadd.f32 %v84_v12, %v44_v17 }
   0x9   :  { %v57_v24 = vadd.f32 %v87_v15, %v45_v20  ;;  %v58_v27 = vadd.f32 %v88_v19, %v46_v23 }
   0xa   :  { %v59_v25 = vmax.f32 %v55_v21, 0.0  ;;  %v60_v26 = vmax.f32 %v56_v22, 0.0 }
   0xb   :  { %v61_v28 = vmax.f32 %v57_v24, 0.0  ;;  %v62_v29 = vmax.f32 %v58_v27, 0.0 }
   0xc   :  { %63 = vst [vmem:[%s150_s4] sm:$0xff] %v59_v25  ;;  %64 = vst [vmem:[%s150_s4 + $0x8] sm:$0xff] %v60_v26 }
   0xd   :  { %65 = vst [vmem:[%s150_s4 + $0x10] sm:$0xff] %v61_v28  ;;  %66 = vst [vmem:[%s150_s4 + $0x18] sm:$0xff] %v62_v29 }

// kernel: resblock_forward.8
= control target key start
LH: loop header
LB: loop body
LE: loop exit
PB: predicated region body
PF: predicated region fallthrough
CT: control target
= control target key end

     0   :  { %s5162_s15 = smov 0   ;;  %s6429_s0 = inlined_call_operand.vmem [shape: f32[2,16,16,4], index: 0, kind: input, shape index: {}]   ;;  %s6430_s1 = inlined_call_operand.vmem [shape: bf16[36,8], index: 1, kind: input, shape index: {}]   ;;  %s6431_s2 = inlined_call_operand.vmem [shape: bf16[2,256,8], index: 2, kind: output, shape index: {0}]   ;;  %s6432_s3 = inlined_call_operand.vmem [shape: f32[2,1,8], index: 3, kind: output, shape index: {1}]   ;;  %s6433_s4 = inlined_call_operand.vmem [shape: f32[2,1,8], index: 4, kind: output, shape index: {2}]  }
   0x1 LB: > { %s4635_s16 = sadd.s32 4294967295, %s5126_s15   ;;  %p4639_p0 = scmp.ge.s32.totalorder %s5126_s15, 1  ;;  %s5126_s15 = sphi %s5162_s15, %s15_s15  }
   0x2   : > { %p167_p1 = scmp.lt.s32.totalorder %s5126_s15, 3 }
   0x4   : > { %p168_p2 = pnand %p4639_p0, %p167_p1 }
   0x5   : > { %vm216_vm0 = vcmask (!%p168_p2), 27648   ;;  %vm219_vm1 = vcmask (!%p168_p2), 24576   ;;  %v5128_v0 = vmov (!%p168_p2), 0   ;;  %p199_p3 = scmp.lt.s32.totalorder (!%p168_p2), %s4635_s16, 1  ;;  %vm1034_vm2 = vsmask.f32 (!%p168_p2), 3328 }
   0x6   : > { %171 = sbr.rel (%p168_p2) target bundleno = 763 (0x2fb), region = 28  ;;  %217 = vst.msk [vmem:[#allocation2] sm:$0xf] (!%p168_p2), %vm216_vm0, %v5128_v0  ;;  %218 = vst.msk [vmem:[#allocation2 + $0x4] sm:$0xf] (!%p168_p2), %vm216_vm0, %v5128_v0  ;;  %vm1630_vm4 = vcmask (!%p168_p2), 1042432  }
   0x7   : > { %220 = vst.msk [vmem:[#allocation2 + $0x8] sm:$0x1] (!%p168_p2), %vm219_vm1, %v5128_v0  ;;  %223 = vst.msk [vmem:[#allocation2 + $0x14] sm:$0x1] (!%p168_p2), %vm219_vm1, %v5128_v0  ;;  %vm1035_vm3 = vsmask.f32 (!%p168_p2), 7440 }
   0x8   : > { %221 = vst.msk [vmem:[#allocation2 + $0xc] sm:$0xf] (!%p168_p2), %vm216_vm0, %v5128_v0  ;;  %222 = vst.msk [vmem:[#allocation2 + $0x10] sm:$0xf] (!%p168_p2), %vm216_vm0, %v5128_v0  ;;  %vm400_vm5 = vsmask.f32 (!%p168_p2), 256 }
   0x9   : > { %224 = vst.msk [vmem:[#allocation2 + $0x18] sm:$0xf] (!%p168_p2), %vm216_vm0, %v5128_v0  ;;  %225 = vst.msk [vmem:[#allocation2 + $0x1c] sm:$0xf] (!%p168_p2), %vm216_vm0, %v5128_v0  ;;  %vm401_vm6 = vsmask.f32 (!%p168_p2), 4368 }
   0xa   : > { %226 = vst.msk [vmem:[#allocation2 + $0x20] sm:$0x1] (!%p168_p2), %vm219_vm1, %v5128_v0  ;;  %229 = vst.msk [vmem:[#allocation2 + $0x2c] sm:$0x1] (!%p168_p2), %vm219_vm1, %v5128_v0  ;;  %vm1631_vm7 = vcmask (!%p168_p2), 1046532   ;;  %s5129_s21 = smov (!%p168_p2), 8  }
   0xb   : > { %227 = vst.msk [vmem:[#allocation2 + $0x24] sm:$0xf] (!%p168_p2), %vm216_vm0, %v5128_v0  ;;  %228 = vst.msk [vmem:[#allocation2 + $0x28] sm:$0xf] (!%p168_p2), %vm216_vm0, %v5128_v0  ;;  %vm725_vm8 = vsmask.f32 (!%p168_p2), 7938 }
   0xc   : > { %230 = vst.msk [vmem:[#allocation2 + $0x30] sm:$0xf] (!%p168_p2), %vm216_vm0, %v5128_v0  ;;  %231 = vst.msk [vmem:[#allocation2 + $0x34] sm:$0xf] (!%p168_p2), %vm216_vm0, %v5128_v0  ;;  %s5130_s22 = smov (!%p168_p2), 4   ;;  %s5131_s23 = smov (!%p168_p2), 12  }
   0xd   : > { %232 = vst.msk [vmem:[#allocation2 + $0x38] sm:$0x1] %vm219_vm1, %v5128_v0  ;;  %235 = vst.msk [vmem:[#allocation2 + $0x44] sm:$0x1] %vm219_vm1, %v5128_v0  ;;  %s6445_s16 = smov (!%p199_p3, %s4635_s16), 1  ;;  %s5132_s24 = smov 24  }
   0xe   : > { %233 = vst.msk [vmem:[#allocation2 + $0x3c] sm:$0xf] %vm216_vm0, %v5128_v0  ;;  %234 = vst.msk [vmem:[#allocation2 + $0x40] sm:$0xf] %vm216_vm0, %v5128_v0  ;;  %s4921_s17 = sshll.u32 %s6445_s16, 8  ;;  %s5133_s25 = smov 20  }
   0xf   : > { %236 = vst.msk [vmem:[#allocation2 + $0x48] sm:$0xf] %vm216_vm0, %v5128_v0  ;;  %237 = vst.msk [vmem:[#allocation2 + $0x4c] sm:$0xf] %vm216_vm0, %v5128_v0  ;;  %s5234_s20 = scalar_lea.vmem %s6429_s0, %s4921_s17  ;;  %v986_v4 = vld [vmem:[#allocation2] sm:$0xf]  ;;  %s211_s17 = scalar_lea.vmem %s6432_s3, %s6445_s16 }
  0x10   : > { %238 = vst.msk [vmem:[#allocation2 + $0x50] sm:$0x1] %vm219_vm1, %v5128_v0  ;;  %241 = vst.msk [vmem:[#allocation2 + $0x5c] sm:$0x1] %vm219_vm1, %v5128_v0  ;;  %v272_v1 = vld [vmem:[%s5234_s20] sm:$0xff]  ;;  %v273_v2 = vld [vmem:[%s5234_s20 + $0x8] sm:$0xff] }
  0x11   : > { %239 = vst.msk [vmem:[#allocation2 + $0x54] sm:$0xf] %vm216_vm0, %v5128_v0  ;;  %240 = vst.msk [vmem:[#allocation2 + $0x58] sm:$0xf] %vm216_vm0, %v5128_v0  ;;  %v274_v3 = vld [vmem:[%s5234_s20 + $0x10] sm:$0xff]  ;;  %v4923_v7 = vpack.c.bf16 %v272_v1, %v272_v1  ;;  %v4924_v8 = vpack.c.bf16 %v273_v2, %v273_v2  ;;  %v1038_v9 = vshrl.u32 %v986_v4, 16 }
  0x12   : > { %242 = vst.msk [vmem:[#allocation2 + $0x60] sm:$0xf] %vm216_vm0, %v5128_v0  ;;  %243 = vst.msk [vmem:[#allocation2 + $0x64] sm:$0xf] %vm216_vm0, %v5128_v0  ;;  %v987_v5 = vld [vmem:[#allocation2 + $0x4] sm:$0xf]  ;;  %v4925_v18 = vpack.c.bf16 %v274_v3, %v274_v3 }
  0x13   : > { %244 = vst.msk [vmem:[#allocation2 + $0x68] sm:$0x1] %vm219_vm1, %v5128_v0  ;;  %247 = vst.msk [vmem:[#allocation2 + $0x74] sm:$0x1] %vm219_vm1, %v5128_v0  ;;  %v988_v6 = vld [vmem:[#allocation2 + $0x8] sm:$0x1] }
  0x14   : > { %245 = vst.msk [vmem:[#allocation2 + $0x6c] sm:$0xf] %vm216_vm0, %v5128_v0  ;;  %246 = vst.msk [vmem:[#allocation2 + $0x70] sm:$0xf] %vm216_vm0, %v5128_v0  ;;  %v1041_v10 = vshll.u32 %v986_v4, 16  ;;  %v1047_v11 = vshll.u32 %v987_v5, 16 }
  0x15   : > { %248 = vst.msk [vmem:[#allocation2 + $0x78] sm:$0xf] %vm216_vm0, %v5128_v0  ;;  %249 = vst.msk [vmem:[#allocation2 + $0x7c] sm:$0xf] %vm216_vm0, %v5128_v0  ;;  %v1051_v12 = vshrl.u32 %v987_v5, 16  ;;  %v1057_v14 = vshll.u32 %v988_v6, 16 }
  0x16   : > { %250 = vst.msk [vmem:[#allocation2 + $0x80] sm:$0x1] %vm219_vm1, %v5128_v0  ;;  %253 = vst.msk [vmem:[#allocation2 + $0x8c] sm:$0x1] %vm219_vm1, %v5128_v0  ;;  %v1534_v13 = vld [vmem:[#allocation2] sm:$0xe] }
  0x17   : > { %251 = vst.msk [vmem:[#allocation2 + $0x84] sm:$0xf] %vm216_vm0, %v5128_v0  ;;  %252 = vst.msk [vmem:[#allocation2 + $0x88] sm:$0xf] %vm216_vm0, %v5128_v0  ;;  %v1535_v15 = vld [vmem:[#allocation2 + $0x4] sm:$0xf] }
  0x18   : > { %254 = vst.msk [vmem:[#allocation2 + $0x90] sm:$0xf] %vm216_vm0, %v5128_v0  ;;  %255 = vst.msk [vmem:[#allocation2 + $0x94] sm:$0xf] %vm216_vm0, %v5128_v0  ;;  %v1536_v16 = vld [vmem:[#allocation2 + $0x8] sm:$0x1] }
  0x19   : > { %256 = vst.msk [vmem:[#allocation2 + $0x98] sm:$0x1] %vm219_vm1, %v5128_v0  ;;  %259 = vst.msk [vmem:[#allocation2 + $0xa4] sm:$0x1] %vm219_vm1, %v5128_v0  ;;  %v4708_v17 = vrot.slane %v1534_v13, 9  ;;  %v1040_v19 = vrot.slane %v1038_v9, 4 }
  0x1a   : > { %257 = vst.msk [vmem:[#allocation2 + $0x9c] sm:$0xf] %vm216_vm0, %v5128_v0  ;;  %258 = vst.msk [vmem:[#allocation2 + $0xa0] sm:$0xf] %vm216_vm0, %v5128_v0  ;;  %v1043_v20 = vrot.slane %v1041_v10, 5  ;;  %v1049_v21 = vrot.slane %v1047_v11, 5 }
  0x1b   : > { %260 = vst.msk [vmem:[#allocation2 + $0xa8] sm:$0xf] %vm216_vm0, %v5128_v0  ;;  %261 = vst.msk [vmem:[#allocation2 + $0xac] sm:$0xf] %vm216_vm0, %v5128_v0  ;;  %v1053_v22 = vrot.slane %v1051_v12, 4  ;;  %v1059_v24 = vrot.slane %v1057_v14, 5 }
  0x1c   : > { %262 = vst.msk [vmem:[#allocation2 + $0xb0] sm:$0x1] %vm219_vm1, %v5128_v0  ;;  %265 = vst.msk [vmem:[#allocation2 + $0xbc] sm:$0x1] %vm219_vm1, %v5128_v0  ;;  %v1635_v25 = vrot.slane %v1535_v15, 5  ;;  %v1638_v26 = vrot.slane %v1536_v16, 5  ;;  %v1044_v30 = vor.u32 %v1043_v20, %v1040_v19 }
  0x1d   : > { %263 = vst.msk [vmem:[#allocation2 + $0xb4] sm:$0xf] %vm216_vm0, %v5128_v0  ;;  %264 = vst.msk [vmem:[#allocation2 + $0xb8] sm:$0xf] %vm216_vm0, %v5128_v0  ;;  %v404_v27 = vshrl.u32 %v4923_v7, 16  ;;  %v275_v28 = vld [vmem:[%s5234_s20 + $0x18] sm:$0xff]  ;;  %v1054_v31 = vor.u32 %v1053_v22, %v1049_v21 }
  0x1e   : > { %266 = vst.msk [vmem:[#allocation2 + $0xc0] sm:$0xf] %vm216_vm0, %v5128_v0  ;;  %267 = vst.msk [vmem:[#allocation2 + $0xc4] sm:$0xf] %vm216_vm0, %v5128_v0  ;;  %v407_v32 = vshll.u32 %v4923_v7, 16  ;;  %v412_v33 = vshrl.u32 %v4924_v8, 16  ;;  %v4926_v44 = vpack.c.bf16 %v275_v28, %v275_v28 }
  0x1f   : > { %268 = vst.msk [vmem:[#allocation2 + $0xc8] sm:$0x1] %vm219_vm1, %v5128_v0  ;;  %271 = vst.msk [vmem:[#allocation2 + $0xd4] sm:$0x1] %vm219_vm1, %v5128_v0  ;;  %v1637_v35 = vrot.slane %v1635_v25, 4  ;;  %v406_v37 = vrot.slane %v404_v27, 7 }
  0x20   : > { %269 = vst.msk [vmem:[#allocation2 + $0xcc] sm:$0xf] %vm216_vm0, %v5128_v0  ;;  %270 = vst.msk [vmem:[#allocation2 + $0xd0] sm:$0xf] %vm216_vm0, %v5128_v0  ;;  %v415_v38 = vshll.u32 %v4924_v8, 16  ;;  %v1045_v39 = vrot.slane %v1044_v30, 4 }
  0x21   : > { %vm5241_vm9 = vmor %vm1630_vm4, %vm1631_vm7  ;;  %v1055_v40 = vrot.slane %v1054_v31, 4  ;;  %v414_v41 = vrot.slane %v412_v33, 7  ;;  %v727_v43 = vld [vmem:[#allocation2 + $0xc] sm:$0xf]  ;;  %v409_v46 = vor.u32 %v407_v32, %v406_v37  ;;  %v410_v47 = vrot.slane %v406_v37, 4  ;;  %v276_v54 = vld [vmem:[%s5234_s20 + $0x20] sm:$0xff] }
  0x22   : > { %vm5248_vm10 = vmor %vm1034_vm2, %vm1035_vm3  ;;  %v1636_v34 = vsel %vm5241_vm9, %v4708_v17, %v1635_v25  ;;  %v1639_v45 = vsel %vm5241_vm9, %v1637_v35, %v1638_v26  ;;  %v421_v49 = vshrl.u32 %v4925_v18, 16  ;;  %v277_v55 = vld [vmem:[%s5234_s20 + $0x28] sm:$0xff]  ;;  %v733_v56 = vld [vmem:[#allocation2 + $0x14] sm:$0x1]  ;;  %v424_v0 = vshll.u32 %v4925_v18, 16  ;;  %s5134_s26 = smov 32  }
  0x23   : > { %vm5256_vm11 = vmor %vm400_vm5, %vm401_vm6  ;;  %v1050_v50 = vsel %vm5248_vm10, %v1045_v39, %v1049_v21  ;;  %v1060_v51 = vsel %vm5248_vm10, %v1055_v40, %v1059_v24  ;;  %v4724_v52 = vcombine.low %v1636_v34, %v1639_v45  ;;  %v417_v53 = vor.u32 %v415_v38, %v414_v41  ;;  %v278_v61 = vld [vmem:[%s5234_s20 + $0x30] sm:$0xff]  ;;  %v279_v62 = vld [vmem:[%s5234_s20 + $0x38] sm:$0xff]  ;;  %s5135_s27 = smov 16   ;;  %s5136_s28 = smov 28  }
  0x24   : > { %vm5262_vm12 = vmand %vm216_vm0, %vm725_vm8  ;;  %v4692_v57 = vcombine.low %v1050_v50, %v1060_v51  ;;  %v419_v58 = vrot.slane %v414_v41, 4  ;;  %v423_v60 = vrot.slane %v421_v49, 7  ;;  %v429_v1 = vshrl.u32 %v4926_v44, 16  ;;  %v736_v4 = vld [vmem:[#allocation2 + $0x18] sm:$0xf]  ;;  %s4922_s9 = sshll.u32 %s6445_s16, 7 }
  0x25   : > { %vm5270_vm13 = vmand %vm219_vm1, %vm400_vm5  ;;  %v728_v59 = vsel %vm5262_vm12, %v409_v46, %v727_v43  ;;  %1793 = vrot.lane.b32.xlu1 %v4724_v52, %s5129_s21  ;;  %v418_v63 = vsel %vm5256_vm11, %v410_v47, %v417_v53  ;;  %v432_v2 = vshll.u32 %v4926_v44, 16  ;;  %v4927_v5 = vpack.c.bf16 %v276_v54, %v276_v54  ;;  %v740_v16 = vld [vmem:[#allocation2 + $0x20] sm:$0x1]  ;;  %v743_v20 = vld [vmem:[#allocation2 + $0x24] sm:$0xf]  ;;  %s6266_s12 = scalar_lea.vmem %s6431_s2, %s4922_s9 }
  0x26   : > { %729 = vst [vmem:[#allocation2 + $0xc] sm:$0xf] %v728_v59  ;;  %1469 = vrot.lane.b32.xlu0 %v4692_v57, %s5130_s22  ;;  %730 = vst.msk [vmem:[#allocation2 + $0x10] sm:$0xf] %vm216_vm0, %v418_v63  ;;  %v427_v3 = vrot.slane %v423_v60, 4  ;;  %v4928_v6 = vpack.c.bf16 %v277_v55, %v277_v55  ;;  %v734_v7 = vsel %vm5270_vm13, %v419_v58, %v733_v56  ;;  %v431_v9 = vrot.slane %v429_v1, 7 }
  0x27   : > { %v426_v8 = vor.u32 %v424_v0, %v423_v60  ;;  %735 = vst [vmem:[#allocation2 + $0x14] sm:$0x1] %v734_v7  ;;  %v4929_v10 = vpack.c.bf16 %v278_v61, %v278_v61  ;;  %v5291_v11 = vpack.c.bf16 %v279_v62, %v279_v62  ;;  %v438_v12 = vshrl.u32 %v4927_v5, 16  ;;  %v747_v21 = vld [vmem:[#allocation2 + $0x2c] sm:$0x1]  ;;  %v280_v60 = vld [vmem:[%s5234_s20 + $0x40] sm:$0xff] }
  0x28   : > { %v441_v13 = vshll.u32 %v4927_v5, 16  ;;  %v446_v14 = vshrl.u32 %v4928_v6, 16  ;;  %v449_v15 = vshll.u32 %v4928_v6, 16  ;;  %v434_v17 = vor.u32 %v432_v2, %v431_v9  ;;  %v750_v32 = vld [vmem:[#allocation2 + $0x30] sm:$0xf]  ;;  %v281_v2 = vld [vmem:[%s5234_s20 + $0x48] sm:$0xff] }
  0x29   : > { %v436_v18 = vrot.slane %v431_v9, 4  ;;  %v737_v19 = vsel %vm5262_vm12, %v426_v8, %v736_v4  ;;  %v455_v22 = vshrl.u32 %v4929_v10, 16  ;;  %v440_v24 = vrot.slane %v438_v12, 7  ;;  %v6166_v36 = vld [vmem:[#allocation2 + $0xd0] sm:$0xf] }
  0x2a   : > { %738 = vst [vmem:[#allocation2 + $0x18] sm:$0xf] %v737_v19  ;;  %v448_v25 = vrot.slane %v446_v14, 7  ;;  %v458_v26 = vshll.u32 %v4929_v10, 16  ;;  %v435_v27 = vsel %vm5256_vm11, %v427_v3, %v434_v17  ;;  %v463_v31 = vshrl.u32 %v5291_v11, 16 }
  0x2b   : > { %v741_v28 = vsel %vm5270_vm13, %v436_v18, %v740_v16  ;;  %v5299_v30 = vrot.slane %v455_v22, 7  ;;  %739 = vst.msk [vmem:[#allocation2 + $0x1c] sm:$0xf] %vm216_vm0, %v435_v27  ;;  %v443_v33 = vor.u32 %v441_v13, %v440_v24  ;;  %v444_v34 = vrot.slane %v440_v24, 4 }
  0x2c   : > { %v451_v35 = vor.u32 %v449_v15, %v448_v25  ;;  %v453_v37 = vrot.slane %v448_v25, 4  ;;  %742 = vst [vmem:[#allocation2 + $0x20] sm:$0x1] %v741_v28  ;;  %v466_v43 = vshll.u32 %v5291_v11, 16  ;;  %v5322_v16 = vpack.c.bf16 %v280_v60, %v280_v60 }
  0x2d   : > { %v2580_v38 = vld [vmem:[#allocation2 + $0xc] sm:$0xe]  ;;  %v2581_v40 = vld [vmem:[#allocation2 + $0x10] sm:$0xf]  ;;  %v460_v41 = vor.u32 %v458_v26, %v5299_v30  ;;  %v744_v45 = vsel %vm5262_vm12, %v443_v33, %v743_v20  ;;  %vm969_vm14 = vcmask 31744   ;;  %vm1517_vm15 = vcmask 64544  }
  0x2e   : > { %v5069_v39 = vld [vmem:[#allocation2 + $0xc] sm:$0xff]   ;;  %v452_v44 = vsel %vm5256_vm11, %v444_v34, %v451_v35  ;;  %v2582_v46 = vld [vmem:[#allocation2 + $0x14] sm:$0x1]  ;;  %v2678_v47 = vrot.slane %v2581_v40, 5  ;;  %v748_v50 = vsel %vm5270_vm13, %v453_v37, %v747_v21  ;;  %745 = vst [vmem:[#allocation2 + $0x24] sm:$0xf] %v744_v45 }
  0x2f   : > { %v1537_v49 = vld [vmem:[#allocation2 + $0xc] sm:$0xe]  ;;  %1970 = vrot.lane.b32.xlu0 %v5069_v39, %s5131_s23  ;;  %746 = vst.msk [vmem:[#allocation2 + $0x28] sm:$0xf] %vm216_vm0, %v452_v44  ;;  %v4772_v51 = vrot.slane %v2580_v38, 9  ;;  %v2681_v52 = vrot.slane %v2582_v46, 5  ;;  %v751_v55 = vsel %vm5262_vm12, %v460_v41, %v750_v32  ;;  %v5331_v32 = vpack.c.bf16 %v281_v2, %v281_v2 }
  0x30   : > { %v1538_v53 = vld [vmem:[#allocation2 + $0x10] sm:$0xf]  ;;  %v1539_v54 = vld [vmem:[#allocation2 + $0x14] sm:$0x1]  ;;  %749 = vst [vmem:[#allocation2 + $0x2c] sm:$0x1] %v748_v50 }
  0x31   : > { %v2680_v56 = vrot.slane %v2678_v47, 4  ;;  %v4709_v57 = vrot.slane %v1537_v49, 9  ;;  %v1642_v58 = vrot.slane %v1538_v53, 5  ;;  %v1645_v59 = vrot.slane %v1539_v54, 5  ;;  %752 = vst [vmem:[#allocation2 + $0x30] sm:$0xf] %v751_v55 }
  0x32   : > { %v3624_v61 = vld [vmem:[#allocation2 + $0x18] sm:$0xe]  ;;  %v2679_v4 = vsel %vm5241_vm9, %v4772_v51, %v2678_v47  ;;  %v3625_v8 = vld [vmem:[#allocation2 + $0x1c] sm:$0xf]  ;;  %v989_v28 = vld [vmem:[#allocation2 + $0xc] sm:$0xf] }
  0x33   : > { %v1644_v62 = vrot.slane %v1642_v58, 4  ;;  %v4836_v63 = vrot.slane %v3624_v61, 9  ;;  %v2583_v0 = vld [vmem:[#allocation2 + $0x18] sm:$0xe]  ;;  %v2682_v5 = vsel %vm5241_vm9, %v2680_v56, %v2681_v52  ;;  %v3626_v9 = vld [vmem:[#allocation2 + $0x20] sm:$0x1]  ;;  %v1643_v19 = vsel %vm5241_vm9, %v4709_v57, %v1642_v58 }
  0x34   : > { %v2038_v1 = vld [vmem:[#allocation2 + $0x18] sm:$0xf]  ;;  %v4773_v6 = vrot.slane %v2583_v0, 9  ;;  %v3722_v12 = vrot.slane %v3625_v8, 5  ;;  %v3725_v13 = vrot.slane %v3626_v9, 5  ;;  %v4788_v18 = vcombine.low %v2679_v4, %v2682_v5 }
  0x35   : > { %v5070_v3 = vld [vmem:[#allocation2 + $0x18] sm:$0xff]   ;;  %v2108_v10 = vshrl.u32 %v2038_v1, 16  ;;  %v2585_v15 = vld [vmem:[#allocation2 + $0x20] sm:$0x1]  ;;  %v1646_v20 = vsel %vm5241_vm9, %v1644_v62, %v1645_v59  ;;  %v3627_v26 = vld [vmem:[#allocation2 + $0x24] sm:$0xe] }
  0x36   : > { %v5071_v7 = vld [vmem:[#allocation2 + $0x18] sm:$0xff]   ;;  %1972 = vrot.lane.b32.xlu1 %v5070_v3, %s5131_s23  ;;  %v5072_v17 = vld [vmem:[#allocation2 + $0x24] sm:$0xff]   ;;  %v3723_v22 = vsel %vm5241_vm9, %v4836_v63, %v3722_v12  ;;  %v3724_v24 = vrot.slane %v3722_v12, 4  ;;  %v2688_v25 = vrot.slane %v2585_v15, 5  ;;  %v4837_v37 = vrot.slane %v3627_v26, 9 }
  0x37   : > { %v2584_v14 = vld [vmem:[#allocation2 + $0x1c] sm:$0xf]  ;;  %3014 = vrot.lane.b32.xlu0 %v5071_v7, %s5132_s24  ;;  %v3628_v27 = vld [vmem:[#allocation2 + $0x28] sm:$0xf]  ;;  %v3629_v35 = vld [vmem:[#allocation2 + $0x2c] sm:$0x1]  ;;  %v4725_v39 = vcombine.low %v1643_v19, %v1646_v20 }
  0x38   : > { %v2685_v21 = vrot.slane %v2584_v14, 5  ;;  %v3729_v38 = vrot.slane %v3628_v27, 5  ;;  %v3726_v40 = vsel %vm5241_vm9, %v3724_v24, %v3725_v13  ;;  %v3732_v41 = vrot.slane %v3629_v35, 5  ;;  %v2039_v44 = vld [vmem:[#allocation2 + $0x1c] sm:$0xf]  ;;  %v5073_v11 = vld [vmem:[#allocation2 + $0x24] sm:$0xff]  }
  0x39   : > { %v2040_v45 = vld [vmem:[#allocation2 + $0x20] sm:$0x1]  ;;  %v2110_v46 = vrot.slane %v2108_v10, 4  ;;  %v4852_v47 = vcombine.low %v3723_v22, %v3726_v40  ;;  %v2111_v53 = vshll.u32 %v2038_v1, 16  ;;  %v2117_v54 = vshll.u32 %v2039_v44, 16 }
  0x3a   : > { %v2686_v33 = vsel %vm5241_vm9, %v4773_v6, %v2685_v21  ;;  %v2687_v34 = vrot.slane %v2685_v21, 4  ;;  %3016 = vrot.lane.b32.xlu1 %v5072_v17, %s5132_s24  ;;  %v3730_v50 = vsel %vm5241_vm9, %v4837_v37, %v3729_v38  ;;  %v3731_v51 = vrot.slane %v3729_v38, 4  ;;  %v990_v56 = vld [vmem:[#allocation2 + $0x10] sm:$0xf]  ;;  %v991_v59 = vld [vmem:[#allocation2 + $0x14] sm:$0x1] }
  0x3b   : > { %2836 = vrot.lane.b32.xlu0 %v4788_v18, %s5133_s25  ;;  %v2121_v55 = vshrl.u32 %v2039_v44, 16  ;;  %v2127_v58 = vshll.u32 %v2040_v45, 16  ;;  %v1062_v60 = vshrl.u32 %v989_v28, 16  ;;  %v1065_v61 = vshll.u32 %v989_v28, 16  ;;  %v3082_v3 = vld [vmem:[#allocation2 + $0x24] sm:$0xf] }
  0x3c   : > { %v2689_v49 = vsel %vm5241_vm9, %v2687_v34, %v2688_v25  ;;  %v3733_v57 = vsel %vm5241_vm9, %v3731_v51, %v3732_v41  ;;  %v2113_v63 = vrot.slane %v2111_v53, 5  ;;  %v2119_v0 = vrot.slane %v2117_v54, 5  ;;  %v3083_v12 = vld [vmem:[#allocation2 + $0x28] sm:$0xf]  ;;  %v3084_v22 = vld [vmem:[#allocation2 + $0x2c] sm:$0x1] }
  0x3d   : > { %v4789_v52 = vcombine.low %v2686_v33, %v2689_v49  ;;  %v4853_v62 = vcombine.low %v3730_v50, %v3733_v57  ;;  %v2123_v2 = vrot.slane %v2121_v55, 4  ;;  %v2129_v1 = vrot.slane %v2127_v58, 5  ;;  %v2035_v28 = vld [vmem:[#allocation2 + $0xc] sm:$0xf]  ;;  %v2036_v38 = vld [vmem:[#allocation2 + $0x10] sm:$0xf] }
  0x3e   : > { %1795 = vrot.lane.b32.xlu1 %v4725_v39, %s5129_s21  ;;  %v1064_v4 = vrot.slane %v1062_v60, 4  ;;  %v1067_v5 = vrot.slane %v1065_v61, 5  ;;  %v1071_v6 = vshll.u32 %v990_v56, 16  ;;  %v2114_v7 = vor.u32 %v2113_v63, %v2110_v46  ;;  %v2037_v49 = vld [vmem:[#allocation2 + $0x14] sm:$0x1] }
  0x3f   : > { %3880 = vrot.lane.b32.xlu0 %v4852_v47, %s5134_s26  ;;  %v2124_v8 = vor.u32 %v2123_v2, %v2119_v0  ;;  %v1075_v9 = vshrl.u32 %v990_v56, 16  ;;  %v1081_v10 = vshll.u32 %v991_v59, 16  ;;  %v3152_v15 = vshrl.u32 %v3082_v3, 16  ;;  %v992_v55 = vld [vmem:[#allocation2 + $0x18] sm:$0xf] }
  0x40   : > { %v1068_v13 = vor.u32 %v1067_v5, %v1064_v4  ;;  %v1073_v14 = vrot.slane %v1071_v6, 5  ;;  %v3155_v17 = vshll.u32 %v3082_v3, 16  ;;  %v2115_v18 = vrot.slane %v2114_v7, 4  ;;  %v993_v60 = vld [vmem:[#allocation2 + $0x1c] sm:$0xf] }
  0x41   : > { %v2125_v19 = vrot.slane %v2124_v8, 4  ;;  %v1077_v20 = vrot.slane %v1075_v9, 4  ;;  %v1083_v21 = vrot.slane %v1081_v10, 5  ;;  %v3154_v25 = vrot.slane %v3152_v15, 4  ;;  %v994_v2 = vld [vmem:[#allocation2 + $0x20] sm:$0x1] }
  0x42   : > { %2838 = vrot.lane.b32.xlu1 %v4789_v52, %s5133_s25  ;;  %v1069_v24 = vrot.slane %v1068_v13, 4  ;;  %v3157_v26 = vrot.slane %v3155_v17, 5  ;;  %v3161_v27 = vshll.u32 %v3083_v12, 16  ;;  %v2120_v33 = vsel %vm5248_vm10, %v2115_v18, %v2119_v0  ;;  %v3079_v6 = vld [vmem:[#allocation2 + $0x18] sm:$0xf] }
  0x43   : > { %3882 = vrot.lane.b32.xlu0 %v4853_v62, %s5134_s26  ;;  %v2130_v34 = vsel %vm5248_vm10, %v2125_v19, %v2129_v1  ;;  %v1078_v35 = vor.u32 %v1077_v20, %v1073_v14  ;;  %v3165_v37 = vshrl.u32 %v3083_v12, 16  ;;  %v3171_v47 = vshll.u32 %v3084_v22, 16  ;;  %v3080_v12 = vld [vmem:[#allocation2 + $0x1c] sm:$0xf] }
  0x44   : > { %v4757_v39 = vcombine.low %v2120_v33, %v2130_v34  ;;  %v1074_v40 = vsel %vm5248_vm10, %v1069_v24, %v1073_v14  ;;  %v3158_v41 = vor.u32 %v3157_v26, %v3154_v25  ;;  %v3163_v44 = vrot.slane %v3161_v27, 5  ;;  %v3081_v33 = vld [vmem:[#allocation2 + $0x20] sm:$0x1] }
  0x45   : > { %v1079_v45 = vrot.slane %v1078_v35, 4  ;;  %v3167_v46 = vrot.slane %v3165_v37, 4  ;;  %v2084_v50 = vshrl.u32 %v2035_v28, 16  ;;  %v2087_v52 = vshll.u32 %v2035_v28, 16  ;;  %v995_v37 = vld [vmem:[#allocation2 + $0x24] sm:$0xf] }
  0x46   : > { %2517 = vrot.lane.b32.xlu1 %v4757_v39, %s5135_s27  ;;  %v3159_v51 = vrot.slane %v3158_v41, 4  ;;  %v2093_v53 = vshll.u32 %v2036_v38, 16  ;;  %v2097_v54 = vshrl.u32 %v2036_v38, 16  ;;  %v3173_v58 = vrot.slane %v3171_v47, 5 }
  0x47   : > { %v1084_v56 = vsel %vm5248_vm10, %v1079_v45, %v1083_v21  ;;  %v3168_v57 = vor.u32 %v3167_v46, %v3163_v44  ;;  %v2086_v59 = vrot.slane %v2084_v50, 4  ;;  %v2089_v63 = vrot.slane %v2087_v52, 5  ;;  %v997_v50 = vld [vmem:[#allocation2 + $0x2c] sm:$0x1] }
  0x48   : > { %v4693_v61 = vcombine.low %v1074_v40, %v1084_v56  ;;  %v3164_v62 = vsel %vm5248_vm10, %v3159_v51, %v3163_v44  ;;  %v2095_v0 = vrot.slane %v2093_v53, 5  ;;  %v2099_v1 = vrot.slane %v2097_v54, 4  ;;  %v996_v44 = vld [vmem:[#allocation2 + $0x28] sm:$0xf] }
  0x49   : > { %v3169_v3 = vrot.slane %v3168_v57, 4  ;;  %v2103_v4 = vshll.u32 %v2037_v49, 16  ;;  %v1086_v5 = vshrl.u32 %v992_v55, 16  ;;  %v2090_v7 = vor.u32 %v2089_v63, %v2086_v59 }
  0x4a   : > { %1471 = vrot.lane.b32.xlu0 %v4693_v61, %s5130_s22  ;;  %v1089_v8 = vshll.u32 %v992_v55, 16  ;;  %v1095_v9 = vshll.u32 %v993_v60, 16  ;;  %v1099_v10 = vshrl.u32 %v993_v60, 16  ;;  %v2100_v14 = vor.u32 %v2099_v1, %v2095_v0  ;;  %v1540_v55 = vld [vmem:[#allocation2 + $0x18] sm:$0xe] }
  0x4b   : > { %v3174_v13 = vsel %vm5248_vm10, %v3169_v3, %v3173_v58  ;;  %v2105_v15 = vrot.slane %v2103_v4, 5  ;;  %v1088_v17 = vrot.slane %v1086_v5, 4  ;;  %v2091_v19 = vrot.slane %v2090_v7, 4  ;;  %v1541_v60 = vld [vmem:[#allocation2 + $0x1c] sm:$0xf] }
  0x4c   : > { %v4821_v18 = vcombine.low %v3164_v62, %v3174_v13  ;;  %v1091_v20 = vrot.slane %v1089_v8, 5  ;;  %v1097_v21 = vrot.slane %v1095_v9, 5  ;;  %v2101_v22 = vrot.slane %v2100_v14, 4 }
  0x4d   : > { %v1101_v24 = vrot.slane %v1099_v10, 4  ;;  %v1105_v25 = vshll.u32 %v994_v2, 16  ;;  %v3128_v26 = vshrl.u32 %v3079_v6, 16  ;;  %v2096_v27 = vsel %vm5248_vm10, %v2091_v19, %v2095_v0  ;;  %v1542_v2 = vld [vmem:[#allocation2 + $0x20] sm:$0x1] }
  0x4e   : > { %3561 = vrot.lane.b32.xlu1 %v4821_v18, %s5136_s28  ;;  %v1092_v28 = vor.u32 %v1091_v20, %v1088_v17  ;;  %v3131_v34 = vshll.u32 %v3079_v6, 16  ;;  %v3137_v35 = vshll.u32 %v3080_v12, 16  ;;  %v2106_v38 = vsel %vm5248_vm10, %v2101_v22, %v2105_v15  ;;  %v1543_v6 = vld [vmem:[#allocation2 + $0x24] sm:$0xe]  ;;  %v1545_v18 = vld [vmem:[#allocation2 + $0x2c] sm:$0x1] }
  0x4f   : > { %v1102_v39 = vor.u32 %v1101_v24, %v1097_v21  ;;  %v1107_v40 = vrot.slane %v1105_v25, 5  ;;  %v3130_v41 = vrot.slane %v3128_v26, 4  ;;  %v4756_v45 = vcombine.low %v2096_v27, %v2106_v38  ;;  %v2042_v38 = vld [vmem:[#allocation2 + $0x28] sm:$0xf] }
  0x50   : > { %v1093_v46 = vrot.slane %v1092_v28, 4  ;;  %v3133_v47 = vrot.slane %v3131_v34, 5  ;;  %v3139_v49 = vrot.slane %v3137_v35, 5  ;;  %v3141_v52 = vshrl.u32 %v3080_v12, 16  ;;  %v1544_v12 = vld [vmem:[#allocation2 + $0x28] sm:$0xf] }
  0x51   : > { %v1103_v51 = vrot.slane %v1102_v39, 4  ;;  %v3147_v53 = vshll.u32 %v3081_v33, 16  ;;  %v1110_v54 = vshrl.u32 %v995_v37, 16  ;;  %2515 = vrot.lane.b32.xlu0 %v4756_v45, %s5135_s27  ;;  %v1113_v58 = vshll.u32 %v995_v37, 16  ;;  %v2041_v28 = vld [vmem:[#allocation2 + $0x24] sm:$0xf] }
  0x52   : > { %v1098_v56 = vsel %vm5248_vm10, %v1093_v46, %v1097_v21  ;;  %v3134_v57 = vor.u32 %v3133_v47, %v3130_v41  ;;  %v1119_v59 = vshll.u32 %v996_v44, 16  ;;  %v3143_v62 = vrot.slane %v3141_v52, 4  ;;  %v2043_v45 = vld [vmem:[#allocation2 + $0x2c] sm:$0x1] }
  0x53   : > { %v1108_v61 = vsel %vm5248_vm10, %v1103_v51, %v1107_v40  ;;  %v3149_v63 = vrot.slane %v3147_v53, 5  ;;  %v1112_v0 = vrot.slane %v1110_v54, 4  ;;  %v1115_v4 = vrot.slane %v1113_v58, 5  ;;  %v754_v51 = vld [vmem:[#allocation2 + $0x38] sm:$0x1] }
  0x54   : > { %v4694_v3 = vcombine.low %v1098_v56, %v1108_v61  ;;  %v3135_v1 = vrot.slane %v3134_v57, 4  ;;  %v1121_v5 = vrot.slane %v1119_v59, 5  ;;  %v3144_v7 = vor.u32 %v3143_v62, %v3139_v49  ;;  %v2044_v59 = vld [vmem:[#allocation2 + $0x30] sm:$0xf] }
  0x55   : > { %v1123_v8 = vshrl.u32 %v996_v44, 16  ;;  %v1129_v9 = vshll.u32 %v997_v50, 16  ;;  %v4710_v10 = vrot.slane %v1540_v55, 9  ;;  %v1116_v14 = vor.u32 %v1115_v4, %v1112_v0  ;;  %v2587_v0 = vld [vmem:[#allocation2 + $0x28] sm:$0xf] }
  0x56   : > { %1473 = vrot.lane.b32.xlu1 %v4694_v3, %s5130_s22  ;;  %v3140_v13 = vsel %vm5248_vm10, %v3135_v1, %v3139_v49  ;;  %v1649_v15 = vrot.slane %v1541_v60, 5  ;;  %v1652_v17 = vrot.slane %v1542_v2, 5  ;;  %v3145_v19 = vrot.slane %v3144_v7, 4 }
  0x57   : > { %v1125_v20 = vrot.slane %v1123_v8, 4  ;;  %v1131_v21 = vrot.slane %v1129_v9, 5  ;;  %v4711_v22 = vrot.slane %v1543_v6, 9  ;;  %v1117_v24 = vrot.slane %v1116_v14, 4 }
  0x58   : > { %v1650_v25 = vsel %vm5241_vm9, %v4710_v10, %v1649_v15  ;;  %v1651_v26 = vrot.slane %v1649_v15, 4  ;;  %v1656_v27 = vrot.slane %v1544_v12, 5  ;;  %v3150_v33 = vsel %vm5248_vm10, %v3145_v19, %v3149_v63  ;;  %v2586_v63 = vld [vmem:[#allocation2 + $0x24] sm:$0xe] }
  0x59   : > { %v1126_v34 = vor.u32 %v1125_v20, %v1121_v5  ;;  %v1659_v35 = vrot.slane %v1545_v18, 5  ;;  %v461_v37 = vrot.slane %v5299_v30, 4  ;;  %v4820_v39 = vcombine.low %v3140_v13, %v3150_v33 }
  0x5a   : > { %v1122_v40 = vsel %vm5248_vm10, %v1117_v24, %v1121_v5  ;;  %v1653_v41 = vsel %vm5241_vm9, %v1651_v26, %v1652_v17  ;;  %v1657_v44 = vsel %vm5241_vm9, %v4711_v22, %v1656_v27  ;;  %v1658_v49 = vrot.slane %v1656_v27, 4  ;;  %v2588_v5 = vld [vmem:[#allocation2 + $0x2c] sm:$0x1] }
  0x5b   : > { %v1127_v46 = vrot.slane %v1126_v34, 4  ;;  %v4726_v47 = vcombine.low %v1650_v25, %v1653_v41  ;;  %v465_v50 = vrot.slane %v463_v31, 7  ;;  %3559 = vrot.lane.b32.xlu0 %v4820_v39, %s5136_s28  ;;  %v2132_v30 = vshrl.u32 %v2041_v28, 16  ;;  %v283_v41 = vld [vmem:[%s5234_s20 + $0x58] sm:$0xff] }
  0x5c   : > { %v2135_v52 = vshll.u32 %v2041_v28, 16  ;;  %v2141_v53 = vshll.u32 %v2042_v38, 16  ;;  %v2145_v54 = vshrl.u32 %v2042_v38, 16  ;;  %v1660_v56 = vsel %vm5241_vm9, %v1658_v49, %v1659_v35 }
  0x5d   : > { %v1132_v55 = vsel %vm5248_vm10, %v1127_v46, %v1131_v21  ;;  %v468_v57 = vor.u32 %v466_v43, %v465_v50  ;;  %v470_v58 = vrot.slane %v465_v50, 4  ;;  %v4727_v31 = vcombine.low %v1657_v44, %v1660_v56  ;;  %v2589_v21 = vld [vmem:[#allocation2 + $0x30] sm:$0xe] }
  0x5e   : > { %v4695_v60 = vcombine.low %v1122_v40, %v1132_v55  ;;  %v2134_v61 = vrot.slane %v2132_v30, 4  ;;  %v2137_v62 = vrot.slane %v2135_v52, 5  ;;  %v2143_v3 = vrot.slane %v2141_v53, 5  ;;  %v282_v40 = vld [vmem:[%s5234_s20 + $0x50] sm:$0xff] }
  0x5f   : > { %v469_v2 = vsel %vm5256_vm11, %v461_v37, %v468_v57  ;;  %v2147_v1 = vrot.slane %v2145_v54, 4  ;;  %v2151_v4 = vshll.u32 %v2043_v45, 16  ;;  %1797 = vrot.lane.b32.xlu0 %v4726_v47, %s5129_s21  ;;  %v755_v6 = vsel %vm5270_vm13, %v470_v58, %v754_v51 }
  0x60   : > { %1475 = vrot.lane.b32.xlu1 %v4695_v60, %s5130_s22  ;;  %753 = vst.msk [vmem:[#allocation2 + $0x34] sm:$0xf] %vm216_vm0, %v469_v2  ;;  %v2138_v43 = vor.u32 %v2137_v62, %v2134_v61  ;;  %v2156_v7 = vshrl.u32 %v2044_v59, 16  ;;  %v2159_v8 = vshll.u32 %v2044_v59, 16  ;;  %756 = vst [vmem:[#allocation2 + $0x38] sm:$0x1] %v755_v6  ;;  %v5421_v56 = vpack.c.bf16 %v282_v40, %v282_v40 }
  0x61   : > { %v2148_v9 = vor.u32 %v2147_v1, %v2143_v3  ;;  %v2153_v10 = vrot.slane %v2151_v4, 5  ;;  %v4774_v12 = vrot.slane %v2586_v63, 9  ;;  %v2692_v13 = vrot.slane %v2587_v0, 5  ;;  %v761_v61 = vld [vmem:[#allocation2 + $0x44] sm:$0x1] }
  0x62   : > { %v2139_v14 = vrot.slane %v2138_v43, 4  ;;  %v2158_v15 = vrot.slane %v2156_v7, 4  ;;  %v2161_v17 = vrot.slane %v2159_v8, 5  ;;  %v2695_v18 = vrot.slane %v2588_v5, 5  ;;  %v3630_v7 = vld [vmem:[#allocation2 + $0x30] sm:$0xe] }
  0x63   : > { %v2149_v19 = vrot.slane %v2148_v9, 4  ;;  %v2694_v20 = vrot.slane %v2692_v13, 4  ;;  %1974 = vrot.lane.b32.xlu0 %v5073_v11, %s5131_s23  ;;  %v2693_v24 = vsel %vm5241_vm9, %v4774_v12, %v2692_v13  ;;  %v472_v25 = vshrl.u32 %v5322_v16, 16  ;;  %v284_v40 = vld [vmem:[%s5234_s20 + $0x60] sm:$0xff] }
  0x64   : > { %1799 = vrot.lane.b32.xlu1 %v4727_v31, %s5129_s21  ;;  %v2144_v22 = vsel %vm5248_vm10, %v2139_v14, %v2143_v3  ;;  %v475_v26 = vshll.u32 %v5322_v16, 16  ;;  %v480_v33 = vshrl.u32 %v5331_v32, 16  ;;  %v483_v34 = vshll.u32 %v5331_v32, 16  ;;  %v757_v16 = vld [vmem:[#allocation2 + $0x3c] sm:$0xf] }
  0x65   : > { %v2154_v27 = vsel %vm5248_vm10, %v2149_v19, %v2153_v10  ;;  %v2696_v28 = vsel %vm5241_vm9, %v2694_v20, %v2695_v18  ;;  %v2162_v37 = vor.u32 %v2161_v17, %v2158_v15  ;;  %v4775_v38 = vrot.slane %v2589_v21, 9  ;;  %v3085_v31 = vld [vmem:[#allocation2 + $0x30] sm:$0xf] }
  0x66   : > { %v4758_v35 = vcombine.low %v2144_v22, %v2154_v27  ;;  %v474_v39 = vrot.slane %v472_v25, 7  ;;  %v482_v46 = vrot.slane %v480_v33, 7  ;;  %v4790_v51 = vcombine.low %v2693_v24, %v2696_v28  ;;  %v998_v25 = vld [vmem:[#allocation2 + $0x30] sm:$0xf] }
  0x67   : > { %v5074_v44 = vld [vmem:[#allocation2 + $0x30] sm:$0xff]   ;;  %v2046_v47 = vld [vmem:[#allocation2 + $0x38] sm:$0x1]  ;;  %v2163_v57 = vrot.slane %v2162_v37, 4  ;;  %v5423_v3 = vpack.c.bf16 %v283_v41, %v283_v41  ;;  %v3176_v9 = vshrl.u32 %v3085_v31, 16  ;;  %v3179_v10 = vshll.u32 %v3085_v31, 16 }
  0x68   : > { %v2045_v45 = vld [vmem:[#allocation2 + $0x34] sm:$0xf]  ;;  %2519 = vrot.lane.b32.xlu0 %v4758_v35, %s5135_s27  ;;  %v477_v52 = vor.u32 %v475_v26, %v474_v39  ;;  %1976 = vrot.lane.b32.xlu1 %v5074_v44, %s5131_s23  ;;  %v2175_v32 = vshll.u32 %v2046_v47, 16  ;;  %v2591_v53 = vld [vmem:[#allocation2 + $0x38] sm:$0x1]  ;;  %v485_v55 = vor.u32 %v483_v34, %v482_v46  ;;  %v478_v60 = vrot.slane %v474_v39, 4 }
  0x69   : > { %v2165_v49 = vshll.u32 %v2045_v45, 16  ;;  %v2169_v50 = vshrl.u32 %v2045_v45, 16  ;;  %v2590_v30 = vld [vmem:[#allocation2 + $0x34] sm:$0xf]  ;;  %v2702_v63 = vrot.slane %v2591_v53, 5  ;;  %v487_v0 = vrot.slane %v482_v46, 4 }
  0x6a   : > { %v2699_v54 = vrot.slane %v2590_v30, 5  ;;  %v2177_v62 = vrot.slane %v2175_v32, 5  ;;  %v3086_v2 = vld [vmem:[#allocation2 + $0x34] sm:$0xf]  ;;  %v486_v11 = vsel %vm5256_vm11, %v478_v60, %v485_v55  ;;  %v758_v43 = vsel %vm5262_vm12, %v477_v52, %v757_v16  ;;  %v3087_v6 = vld [vmem:[#allocation2 + $0x38] sm:$0x1] }
  0x6b   : > { %v2167_v58 = vrot.slane %v2165_v49, 5  ;;  %v2171_v59 = vrot.slane %v2169_v50, 4  ;;  %v5075_v5 = vld [vmem:[#allocation2 + $0x30] sm:$0xff]   ;;  %759 = vst [vmem:[#allocation2 + $0x3c] sm:$0xf] %v758_v43  ;;  %v3185_v12 = vshll.u32 %v3086_v2, 16  ;;  %v762_v24 = vsel %vm5270_vm13, %v487_v0, %v761_v61 }
  0x6c   : > { %2840 = vrot.lane.b32.xlu0 %v4790_v51, %s5133_s25  ;;  %v2701_v4 = vrot.slane %v2699_v54, 4  ;;  %v2700_v8 = vsel %vm5241_vm9, %v4775_v38, %v2699_v54  ;;  %760 = vst.msk [vmem:[#allocation2 + $0x40] sm:$0xf] %vm216_vm0, %v486_v11  ;;  %v3631_v13 = vld [vmem:[#allocation2 + $0x34] sm:$0xf]  ;;  %v3189_v17 = vshrl.u32 %v3086_v2, 16  ;;  %v5446_v32 = vpack.c.bf16 %v284_v40, %v284_v40 }
  0x6d   : > { %v2172_v1 = vor.u32 %v2171_v59, %v2167_v58  ;;  %v2168_v14 = vsel %vm5248_vm10, %v2163_v57, %v2167_v58  ;;  %v3195_v18 = vshll.u32 %v3087_v6, 16  ;;  %v3632_v19 = vld [vmem:[#allocation2 + $0x38] sm:$0x1]  ;;  %v3178_v20 = vrot.slane %v3176_v9, 4  ;;  %763 = vst [vmem:[#allocation2 + $0x44] sm:$0x1] %v762_v24 }
  0x6e   : > { %v3181_v21 = vrot.slane %v3179_v10, 5  ;;  %v3187_v22 = vrot.slane %v3185_v12, 5  ;;  %v2703_v27 = vsel %vm5241_vm9, %v2701_v4, %v2702_v63  ;;  %v3191_v28 = vrot.slane %v3189_v17, 4  ;;  %v999_v34 = vld [vmem:[#allocation2 + $0x34] sm:$0xf] }
  0x6f   : > { %v2173_v15 = vrot.slane %v2172_v1, 4  ;;  %v4838_v33 = vrot.slane %v3630_v7, 9  ;;  %v3736_v38 = vrot.slane %v3631_v13, 5  ;;  %v3739_v39 = vrot.slane %v3632_v19, 5  ;;  %v1000_v58 = vld [vmem:[#allocation2 + $0x38] sm:$0x1] }
  0x70   : > { %3018 = vrot.lane.b32.xlu0 %v5075_v5, %s5132_s24  ;;  %v3182_v37 = vor.u32 %v3181_v21, %v3178_v20  ;;  %v3192_v41 = vor.u32 %v3191_v28, %v3187_v22  ;;  %v3197_v44 = vrot.slane %v3195_v18, 5  ;;  %v1134_v45 = vshrl.u32 %v998_v25, 16 }
  0x71   : > { %v2178_v26 = vsel %vm5248_vm10, %v2173_v15, %v2177_v62  ;;  %v1137_v46 = vshll.u32 %v998_v25, 16  ;;  %v4791_v16 = vcombine.low %v2700_v8, %v2703_v27  ;;  %v3738_v49 = vrot.slane %v3736_v38, 4 }
  0x72   : > { %v4759_v35 = vcombine.low %v2168_v14, %v2178_v26  ;;  %v3183_v47 = vrot.slane %v3182_v37, 4  ;;  %v1143_v50 = vshll.u32 %v999_v34, 16  ;;  %v3193_v51 = vrot.slane %v3192_v41, 4  ;;  %v3088_v54 = vld [vmem:[#allocation2 + $0x3c] sm:$0xf] }
  0x73   : > { %v3737_v30 = vsel %vm5241_vm9, %v4838_v33, %v3736_v38  ;;  %v1147_v52 = vshrl.u32 %v999_v34, 16  ;;  %v3089_v55 = vld [vmem:[#allocation2 + $0x40] sm:$0xf]  ;;  %v3740_v57 = vsel %vm5241_vm9, %v3738_v49, %v3739_v39  ;;  %v1136_v59 = vrot.slane %v1134_v45, 4  ;;  %v3633_v0 = vld [vmem:[#allocation2 + $0x3c] sm:$0xe] }
  0x74   : > { %2521 = vrot.lane.b32.xlu1 %v4759_v35, %s5135_s27  ;;  %v3188_v53 = vsel %vm5248_vm10, %v3183_v47, %v3187_v22  ;;  %v1139_v60 = vrot.slane %v1137_v46, 5  ;;  %v3198_v31 = vsel %vm5248_vm10, %v3193_v51, %v3197_v44  ;;  %v3200_v61 = vshrl.u32 %v3088_v54, 16  ;;  %v5076_v2 = vld [vmem:[#allocation2 + $0x3c] sm:$0xff]   ;;  %v3090_v4 = vld [vmem:[#allocation2 + $0x44] sm:$0x1] }
  0x75   : > { %v3203_v62 = vshll.u32 %v3088_v54, 16  ;;  %v3209_v63 = vshll.u32 %v3089_v55, 16  ;;  %v4822_v1 = vcombine.low %v3188_v53, %v3198_v31  ;;  %v3213_v5 = vshrl.u32 %v3089_v55, 16  ;;  %v3634_v6 = vld [vmem:[#allocation2 + $0x40] sm:$0xf] }
  0x76   : > { %v4854_v11 = vcombine.low %v3737_v30, %v3740_v57  ;;  %v1140_v43 = vor.u32 %v1139_v60, %v1136_v59  ;;  %v3202_v7 = vrot.slane %v3200_v61, 4  ;;  %v3219_v10 = vshll.u32 %v3090_v4, 16  ;;  %v3635_v12 = vld [vmem:[#allocation2 + $0x44] sm:$0x1]  ;;  %v1001_v18 = vld [vmem:[#allocation2 + $0x3c] sm:$0xf] }
  0x77   : > { %v3205_v8 = vrot.slane %v3203_v62, 5  ;;  %v3211_v9 = vrot.slane %v3209_v63, 5  ;;  %3563 = vrot.lane.b32.xlu0 %v4822_v1, %s5136_s28  ;;  %v3215_v13 = vrot.slane %v3213_v5, 4  ;;  %v1145_v15 = vrot.slane %v1143_v50, 5  ;;  %v1002_v28 = vld [vmem:[#allocation2 + $0x40] sm:$0xf] }
  0x78   : > { %2842 = vrot.lane.b32.xlu1 %v4791_v16, %s5133_s25  ;;  %v1141_v14 = vrot.slane %v1140_v43, 4  ;;  %v1149_v17 = vrot.slane %v1147_v52, 4  ;;  %v3221_v20 = vrot.slane %v3219_v10, 5  ;;  %v1153_v21 = vshll.u32 %v1000_v58, 16  ;;  %v1546_v38 = vld [vmem:[#allocation2 + $0x30] sm:$0xe] }
  0x79   : > { %v3206_v19 = vor.u32 %v3205_v8, %v3202_v7  ;;  %v4839_v22 = vrot.slane %v3633_v0, 9  ;;  %v3216_v24 = vor.u32 %v3215_v13, %v3211_v9  ;;  %v3743_v27 = vrot.slane %v3634_v6, 5  ;;  %v1003_v45 = vld [vmem:[#allocation2 + $0x44] sm:$0x1]  ;;  %v1547_v46 = vld [vmem:[#allocation2 + $0x34] sm:$0xf] }
  0x7a   : > { %v1146_v25 = vsel %vm5248_vm10, %v1141_v14, %v1145_v15  ;;  %v1150_v26 = vor.u32 %v1149_v17, %v1145_v15  ;;  %v1155_v34 = vrot.slane %v1153_v21, 5  ;;  %v3746_v35 = vrot.slane %v3635_v12, 5  ;;  %v1548_v16 = vld [vmem:[#allocation2 + $0x38] sm:$0x1]  ;;  %v5090_v30 = vld [vmem:[%s6430_s1] sm:$0xff]   ;;  %v5093_v6 = vld [vmem:[%s6430_s1 + $0x8] sm:$0xff]  }
  0x7b   : > { %v3207_v33 = vrot.slane %v3206_v19, 4  ;;  %v1158_v37 = vshrl.u32 %v1001_v18, 16  ;;  %v3217_v39 = vrot.slane %v3216_v24, 4  ;;  %3884 = vrot.lane.b32.xlu0 %v4854_v11, %s5134_s26  ;;  %v3744_v41 = vsel %vm5241_vm9, %v4839_v22, %v3743_v27  ;;  %v1549_v57 = vld [vmem:[#allocation2 + $0x3c] sm:$0xe]  ;;  %5006 = vmatprep.subr.bf16.mxu0 %v5090_v30  ;;  %v285_v24 = vld [vmem:[%s5234_s20 + $0x68] sm:$0xff] }
  0x7c   : > { %3020 = vrot.lane.b32.xlu1 %v5076_v2, %s5132_s24  ;;  %v1151_v40 = vrot.slane %v1150_v26, 4  ;;  %v3745_v44 = vrot.slane %v3743_v27, 4  ;;  %v1161_v50 = vshll.u32 %v1001_v18, 16  ;;  %v1167_v51 = vshll.u32 %v1002_v28, 16  ;;  %v1550_v61 = vld [vmem:[#allocation2 + $0x40] sm:$0xf]  ;;  %5044 = vmatprep.subr.bf16.mxu1 %v5090_v30 }
  0x7d   : > { %v3212_v47 = vsel %vm5248_vm10, %v3207_v33, %v3211_v9  ;;  %v1160_v49 = vrot.slane %v1158_v37, 4  ;;  %v3222_v52 = vsel %vm5248_vm10, %v3217_v39, %v3221_v20  ;;  %v1171_v55 = vshrl.u32 %v1002_v28, 16  ;;  %v1551_v62 = vld [vmem:[#allocation2 + $0x44] sm:$0x1]  ;;  %5007 = vmatpush3.bf16.msra.mxu0 %v5090_v30  ;;  %5047 = vmatpush3.bf16.msra.mxu1 %v5090_v30  ;;  %v2047_v17 = vld [vmem:[#allocation2 + $0x3c] sm:$0xf] }
  0x7e   : > { %v1156_v53 = vsel %vm5248_vm10, %v1151_v40, %v1155_v34  ;;  %v3747_v54 = vsel %vm5241_vm9, %v3745_v44, %v3746_v35  ;;  %v4823_v58 = vcombine.low %v3212_v47, %v3222_v52  ;;  %v1163_v31 = vrot.slane %v1161_v50, 5  ;;  %5008 = vmatprep.subr.bf16.mxu0 %v5093_v6  ;;  %5045 = vmatprep.subr.bf16.mxu1 %v5093_v6  ;;  %v2048_v22 = vld [vmem:[#allocation2 + $0x40] sm:$0xf]  ;;  %v764_v37 = vld [vmem:[#allocation2 + $0x48] sm:$0xf] }
  0x7f   : > { %v4696_v59 = vcombine.low %v1146_v25, %v1156_v53  ;;  %v4855_v60 = vcombine.low %v3744_v41, %v3747_v54  ;;  %v1169_v63 = vrot.slane %v1167_v51, 5  ;;  %v1173_v0 = vrot.slane %v1171_v55, 4  ;;  %v5077_v40 = vld [vmem:[#allocation2 + $0x3c] sm:$0xff]   ;;  %v768_v54 = vld [vmem:[#allocation2 + $0x50] sm:$0x1] }
  0x80   : > { %v1177_v2 = vshll.u32 %v1003_v45, 16  ;;  %v4712_v1 = vrot.slane %v1546_v38, 9  ;;  %3565 = vrot.lane.b32.xlu1 %v4823_v58, %s5136_s28  ;;  %v1164_v4 = vor.u32 %v1163_v31, %v1160_v49  ;;  %v1663_v5 = vrot.slane %v1547_v46, 5  ;;  %v2049_v38 = vld [vmem:[#allocation2 + $0x44] sm:$0x1] }
  0x81   : > { %3886 = vrot.lane.b32.xlu0 %v4855_v60, %s5134_s26  ;;  %v1666_v11 = vrot.slane %v1548_v16, 5  ;;  %v4713_v43 = vrot.slane %v1549_v57, 9  ;;  %v1174_v7 = vor.u32 %v1173_v0, %v1169_v63  ;;  %v1670_v9 = vrot.slane %v1550_v61, 5  ;;  %5009 = vmatpush3.bf16.msra.mxu0 %v5093_v6  ;;  %v2592_v45 = vld [vmem:[#allocation2 + $0x3c] sm:$0xe] }
  0x82   : > { %v1179_v8 = vrot.slane %v1177_v2, 5  ;;  %v1673_v10 = vrot.slane %v1551_v62, 5  ;;  %v1165_v12 = vrot.slane %v1164_v4, 4  ;;  %v1664_v13 = vsel %vm5241_vm9, %v4712_v1, %v1663_v5  ;;  %5048 = vmatpush3.bf16.msra.mxu1 %v5093_v6  ;;  %v2593_v51 = vld [vmem:[#allocation2 + $0x40] sm:$0xf] }
  0x83   : > { %v1665_v14 = vrot.slane %v1663_v5, 4  ;;  %v489_v15 = vshrl.u32 %v5421_v56, 16  ;;  %v1175_v18 = vrot.slane %v1174_v7, 4  ;;  %v1671_v19 = vsel %vm5241_vm9, %v4713_v43, %v1670_v9  ;;  %v2594_v60 = vld [vmem:[#allocation2 + $0x44] sm:$0x1] }
  0x84   : > { %v1672_v20 = vrot.slane %v1670_v9, 4  ;;  %v492_v21 = vshll.u32 %v5421_v56, 16  ;;  %1477 = vrot.lane.b32.xlu1 %v4696_v59, %s5130_s22  ;;  %v1170_v25 = vsel %vm5248_vm10, %v1165_v12, %v1169_v63  ;;  %v497_v28 = vshrl.u32 %v5423_v3, 16 }
  0x85   : > { %v1667_v26 = vsel %vm5241_vm9, %v1665_v14, %v1666_v11  ;;  %v491_v27 = vrot.slane %v489_v15, 7  ;;  %v1180_v33 = vsel %vm5248_vm10, %v1175_v18, %v1179_v8  ;;  %v500_v35 = vshll.u32 %v5423_v3, 16  ;;  %v286_v18 = vld [vmem:[%s5234_s20 + $0x70] sm:$0xff] }
  0x86   : > { %v4728_v34 = vcombine.low %v1664_v13, %v1667_v26  ;;  %v1674_v56 = vsel %vm5241_vm9, %v1672_v20, %v1673_v10  ;;  %v4697_v39 = vcombine.low %v1170_v25, %v1180_v33  ;;  %v4936_v46 = vpack.c.bf16 %v285_v24, %v285_v24  ;;  %v775_v25 = vld [vmem:[#allocation2 + $0x5c] sm:$0x1] }
  0x87   : > { %v494_v41 = vor.u32 %v492_v21, %v491_v27  ;;  %v495_v44 = vrot.slane %v491_v27, 4  ;;  %v499_v16 = vrot.slane %v497_v28, 7  ;;  %v2180_v47 = vshrl.u32 %v2047_v17, 16 }
  0x88   : > { %1801 = vrot.lane.b32.xlu0 %v4728_v34, %s5129_s21  ;;  %v2183_v49 = vshll.u32 %v2047_v17, 16  ;;  %v2189_v50 = vshll.u32 %v2048_v22, 16  ;;  %1479 = vrot.lane.b32.xlu1 %v4697_v39, %s5130_s22  ;;  %v4729_v30 = vcombine.low %v1671_v19, %v1674_v56  ;;  %v2193_v52 = vshrl.u32 %v2048_v22, 16  ;;  %v771_v17 = vld [vmem:[#allocation2 + $0x54] sm:$0xf]  ;;  %v287_v39 = vld [vmem:[%s5234_s20 + $0x78] sm:$0xff] }
  0x89   : > { %v765_v3 = vsel %vm5262_vm12, %v494_v41, %v764_v37  ;;  %v2199_v53 = vshll.u32 %v2049_v38, 16  ;;  %v502_v55 = vor.u32 %v500_v35, %v499_v16  ;;  %v504_v57 = vrot.slane %v499_v16, 4 }
  0x8a   : > { %766 = vst [vmem:[#allocation2 + $0x48] sm:$0xf] %v765_v3  ;;  %v2182_v58 = vrot.slane %v2180_v47, 4  ;;  %v2185_v59 = vrot.slane %v2183_v49, 5  ;;  %v2191_v31 = vrot.slane %v2189_v50, 5  ;;  %v2195_v61 = vrot.slane %v2193_v52, 4 }
  0x8b   : > { %v4776_v62 = vrot.slane %v2592_v45, 9  ;;  %v2706_v63 = vrot.slane %v2593_v51, 5  ;;  %v503_v0 = vsel %vm5256_vm11, %v495_v44, %v502_v55  ;;  %v2201_v1 = vrot.slane %v2199_v53, 5  ;;  %v289_v3 = vld [vmem:[%s5234_s20 + $0x88] sm:$0xff] }
  0x8c   : > { %1978 = vrot.lane.b32.xlu0 %v5077_v40, %s5131_s23  ;;  %v2186_v2 = vor.u32 %v2185_v59, %v2182_v58  ;;  %v769_v4 = vsel %vm5270_vm13, %v504_v57, %v768_v54  ;;  %1803 = vrot.lane.b32.xlu1 %v4729_v30, %s5129_s21  ;;  %767 = vst.msk [vmem:[#allocation2 + $0x4c] sm:$0xf] %vm216_vm0, %v503_v0  ;;  %v2709_v43 = vrot.slane %v2594_v60, 5  ;;  %v506_v6 = vshrl.u32 %v5446_v32, 16  ;;  %v288_v40 = vld [vmem:[%s5234_s20 + $0x80] sm:$0xff] }
  0x8d   : > { %v2196_v5 = vor.u32 %v2195_v61, %v2191_v31  ;;  %770 = vst [vmem:[#allocation2 + $0x50] sm:$0x1] %v769_v4  ;;  %v2708_v11 = vrot.slane %v2706_v63, 4  ;;  %v509_v8 = vshll.u32 %v5446_v32, 16  ;;  %v514_v9 = vshrl.u32 %v4936_v46, 16 }
  0x8e   : > { %v2187_v7 = vrot.slane %v2186_v2, 4  ;;  %v508_v12 = vrot.slane %v506_v6, 7  ;;  %v517_v13 = vshll.u32 %v4936_v46, 16  ;;  %v2707_v21 = vsel %vm5241_vm9, %v4776_v62, %v2706_v63 }
  0x8f   : > { %v2197_v10 = vrot.slane %v2196_v5, 4  ;;  %v516_v15 = vrot.slane %v514_v9, 7  ;;  %v2710_v32 = vsel %vm5241_vm9, %v2708_v11, %v2709_v43  ;;  %v5523_v16 = vpack.c.bf16 %v286_v18, %v286_v18 }
  0x90   : > { %v2192_v14 = vsel %vm5248_vm10, %v2187_v7, %v2191_v31  ;;  %v511_v24 = vor.u32 %v509_v8, %v508_v12  ;;  %v512_v34 = vrot.slane %v508_v12, 4  ;;  %v4792_v46 = vcombine.low %v2707_v21, %v2710_v32 }
  0x91   : > { %v2202_v19 = vsel %vm5248_vm10, %v2197_v10, %v2201_v1  ;;  %v2050_v20 = vld [vmem:[#allocation2 + $0x48] sm:$0xf]  ;;  %v519_v56 = vor.u32 %v517_v13, %v516_v15  ;;  %v521_v35 = vrot.slane %v516_v15, 4  ;;  %v5532_v58 = vpack.c.bf16 %v287_v39, %v287_v39 }
  0x92   : > { %v2595_v22 = vld [vmem:[#allocation2 + $0x48] sm:$0xe]  ;;  %v4760_v26 = vcombine.low %v2192_v14, %v2202_v19  ;;  %v2204_v27 = vshrl.u32 %v2050_v20, 16  ;;  %v2207_v28 = vshll.u32 %v2050_v20, 16  ;;  %v772_v37 = vsel %vm5262_vm12, %v511_v24, %v771_v17 }
  0x93   : > { %v4777_v33 = vrot.slane %v2595_v22, 9  ;;  %v3091_v38 = vld [vmem:[#allocation2 + $0x48] sm:$0xf]  ;;  %v2051_v44 = vld [vmem:[#allocation2 + $0x4c] sm:$0xf]  ;;  %v520_v30 = vsel %vm5256_vm11, %v512_v34, %v519_v56  ;;  %v776_v57 = vsel %vm5270_vm13, %v521_v35, %v775_v25  ;;  %v5535_v4 = vpack.c.bf16 %v288_v40, %v288_v40 }
  0x94   : > { %v5078_v41 = vld [vmem:[#allocation2 + $0x48] sm:$0xff]   ;;  %2523 = vrot.lane.b32.xlu0 %v4760_v26, %s5135_s27  ;;  %v2206_v45 = vrot.slane %v2204_v27, 4  ;;  %773 = vst [vmem:[#allocation2 + $0x54] sm:$0xf] %v772_v37  ;;  %v2052_v47 = vld [vmem:[#allocation2 + $0x50] sm:$0x1]  ;;  %v5537_v5 = vpack.c.bf16 %v289_v3, %v289_v3 }
  0x95   : > { %v2209_v49 = vrot.slane %v2207_v28, 5  ;;  %v2213_v50 = vshll.u32 %v2051_v44, 16  ;;  %v2217_v51 = vshrl.u32 %v2051_v44, 16  ;;  %1980 = vrot.lane.b32.xlu1 %v5078_v41, %s5131_s23  ;;  %v2223_v52 = vshll.u32 %v2052_v47, 16  ;;  %v2596_v53 = vld [vmem:[#allocation2 + $0x4c] sm:$0xf] }
  0x96   : > { %v2597_v54 = vld [vmem:[#allocation2 + $0x50] sm:$0x1]  ;;  %774 = vst.msk [vmem:[#allocation2 + $0x58] sm:$0xf] %vm216_vm0, %v520_v30  ;;  %v3224_v55 = vshrl.u32 %v3091_v38, 16  ;;  %v2713_v61 = vrot.slane %v2596_v53, 5 }
  0x97   : > { %v2210_v59 = vor.u32 %v2209_v49, %v2206_v45  ;;  %v2215_v60 = vrot.slane %v2213_v50, 5  ;;  %v2219_v31 = vrot.slane %v2217_v51, 4  ;;  %v5079_v62 = vld [vmem:[#allocation2 + $0x48] sm:$0xff]   ;;  %777 = vst [vmem:[#allocation2 + $0x5c] sm:$0x1] %v776_v57  ;;  %v2225_v63 = vrot.slane %v2223_v52, 5  ;;  %v5553_v3 = vpop.permute.xlu1 %1793 }
  0x98   : > { %2844 = vrot.lane.b32.xlu0 %v4792_v46, %s5133_s25  ;;  %v2716_v0 = vrot.slane %v2597_v54, 5  ;;  %v3092_v2 = vld [vmem:[#allocation2 + $0x4c] sm:$0xf]  ;;  %v3093_v1 = vld [vmem:[#allocation2 + $0x50] sm:$0x1]  ;;  %v2714_v6 = vsel %vm5241_vm9, %v4777_v33, %v2713_v61  ;;  %v2715_v7 = vrot.slane %v2713_v61, 4  ;;  %v5545_v19 = vpop.permute.xlu0 %1469 }
  0x99   : > { %v2211_v11 = vrot.slane %v2210_v59, 4  ;;  %v2220_v43 = vor.u32 %v2219_v31, %v2215_v60  ;;  %v3226_v8 = vrot.slane %v3224_v55, 4  ;;  %v3227_v9 = vshll.u32 %v3091_v38, 16  ;;  %v3636_v22 = vld [vmem:[#allocation2 + $0x48] sm:$0xe] }
  0x9a   : > { %v3233_v10 = vshll.u32 %v3092_v2, 16  ;;  %v3237_v12 = vshrl.u32 %v3092_v2, 16  ;;  %v2717_v15 = vsel %vm5241_vm9, %v2715_v7, %v2716_v0  ;;  %v3243_v17 = vshll.u32 %v3093_v1, 16  ;;  %v3637_v39 = vld [vmem:[#allocation2 + $0x4c] sm:$0xf] }
  0x9b   : > { %v2216_v13 = vsel %vm5248_vm10, %v2211_v11, %v2215_v60  ;;  %v2221_v14 = vrot.slane %v2220_v43, 4  ;;  %v3094_v18 = vld [vmem:[#allocation2 + $0x54] sm:$0xf]  ;;  %v3229_v20 = vrot.slane %v3227_v9, 5  ;;  %v523_v24 = vshrl.u32 %v5523_v16, 16 }
  0x9c   : > { %3022 = vrot.lane.b32.xlu0 %v5079_v62, %s5132_s24  ;;  %v3235_v21 = vrot.slane %v3233_v10, 5  ;;  %v3239_v32 = vrot.slane %v3237_v12, 4  ;;  %v4793_v26 = vcombine.low %v2714_v6, %v2717_v15  ;;  %v3245_v27 = vrot.slane %v3243_v17, 5  ;;  %v3638_v46 = vld [vmem:[#allocation2 + $0x50] sm:$0x1] }
  0x9d   : > { %v2226_v25 = vsel %vm5248_vm10, %v2221_v14, %v2225_v63  ;;  %v3095_v28 = vld [vmem:[#allocation2 + $0x58] sm:$0xf]  ;;  %v526_v33 = vshll.u32 %v5523_v16, 16  ;;  %v3230_v56 = vor.u32 %v3229_v20, %v3226_v8  ;;  %v3248_v38 = vshrl.u32 %v3094_v18, 16  ;;  %v1004_v30 = vld [vmem:[#allocation2 + $0x48] sm:$0xf] }
  0x9e   : > { %v4761_v34 = vcombine.low %v2216_v13, %v2226_v25  ;;  %v3240_v35 = vor.u32 %v3239_v32, %v3235_v21  ;;  %v3096_v37 = vld [vmem:[#allocation2 + $0x5c] sm:$0x1]  ;;  %v3251_v40 = vshll.u32 %v3094_v18, 16  ;;  %v3257_v41 = vshll.u32 %v3095_v28, 16  ;;  %v1005_v57 = vld [vmem:[#allocation2 + $0x4c] sm:$0xf] }
  0x9f   : > { %v3261_v44 = vshrl.u32 %v3095_v28, 16  ;;  %v3267_v45 = vshll.u32 %v3096_v37, 16  ;;  %v3231_v47 = vrot.slane %v3230_v56, 4  ;;  %v3250_v50 = vrot.slane %v3248_v38, 4  ;;  %v1006_v1 = vld [vmem:[#allocation2 + $0x50] sm:$0x1] }
  0xa0   : > { %2525 = vrot.lane.b32.xlu1 %v4761_v34, %s5135_s27  ;;  %v3241_v49 = vrot.slane %v3240_v35, 4  ;;  %v4840_v51 = vrot.slane %v3636_v22, 9  ;;  %v3253_v52 = vrot.slane %v3251_v40, 5  ;;  %v3259_v53 = vrot.slane %v3257_v41, 5  ;;  %v3639_v43 = vld [vmem:[#allocation2 + $0x54] sm:$0xe] }
  0xa1   : > { %v3263_v54 = vrot.slane %v3261_v44, 4  ;;  %v3269_v55 = vrot.slane %v3267_v45, 5  ;;  %v5555_v59 = vpop.permute.xlu0 %1970  ;;  %v3236_v60 = vsel %vm5248_vm10, %v3231_v47, %v3235_v21  ;;  %v3750_v61 = vrot.slane %v3637_v39, 5  ;;  %v5080_v6 = vld [vmem:[#allocation2 + $0x54] sm:$0xff]   ;;  %v3641_v18 = vld [vmem:[#allocation2 + $0x5c] sm:$0x1] }
  0xa2   : > { %v3246_v31 = vsel %vm5248_vm10, %v3241_v49, %v3245_v27  ;;  %v3753_v62 = vrot.slane %v3638_v46, 5  ;;  %v3254_v0 = vor.u32 %v3253_v52, %v3250_v50  ;;  %v1182_v11 = vshrl.u32 %v1004_v30, 16  ;;  %v3640_v12 = vld [vmem:[#allocation2 + $0x58] sm:$0xf]  ;;  %v1007_v25 = vld [vmem:[#allocation2 + $0x54] sm:$0xf] }
  0xa3   : > { %v4824_v63 = vcombine.low %v3236_v60, %v3246_v31  ;;  %v3264_v2 = vor.u32 %v3263_v54, %v3259_v53  ;;  %v3751_v7 = vsel %vm5241_vm9, %v4840_v51, %v3750_v61  ;;  %v3752_v8 = vrot.slane %v3750_v61, 4  ;;  %v1008_v35 = vld [vmem:[#allocation2 + $0x58] sm:$0xf]  ;;  %v1009_v44 = vld [vmem:[#allocation2 + $0x5c] sm:$0x1] }
  0xa4   : > { %2846 = vrot.lane.b32.xlu1 %v4793_v26, %s5133_s25  ;;  %v1185_v9 = vshll.u32 %v1004_v30, 16  ;;  %v1191_v10 = vshll.u32 %v1005_v57, 16  ;;  %v3255_v13 = vrot.slane %v3254_v0, 4  ;;  %v1184_v15 = vrot.slane %v1182_v11, 4  ;;  %v1552_v50 = vld [vmem:[#allocation2 + $0x48] sm:$0xe] }
  0xa5   : > { %3567 = vrot.lane.b32.xlu0 %v4824_v63, %s5136_s28  ;;  %v3265_v14 = vrot.slane %v3264_v2, 4  ;;  %v1195_v17 = vshrl.u32 %v1005_v57, 16  ;;  %v3754_v20 = vsel %vm5241_vm9, %v3752_v8, %v3753_v62  ;;  %v1201_v22 = vshll.u32 %v1006_v1, 16  ;;  %v1553_v54 = vld [vmem:[#allocation2 + $0x4c] sm:$0xf] }
  0xa6   : > { %v1187_v21 = vrot.slane %v1185_v9, 5  ;;  %v1193_v32 = vrot.slane %v1191_v10, 5  ;;  %v3260_v27 = vsel %vm5248_vm10, %v3255_v13, %v3259_v53  ;;  %v4856_v34 = vcombine.low %v3751_v7, %v3754_v20  ;;  %v1554_v62 = vld [vmem:[#allocation2 + $0x50] sm:$0x1]  ;;  %v1556_v10 = vld [vmem:[#allocation2 + $0x58] sm:$0xf] }
  0xa7   : > { %v3270_v28 = vsel %vm5248_vm10, %v3265_v14, %v3269_v55  ;;  %v1197_v56 = vrot.slane %v1195_v17, 4  ;;  %v1203_v40 = vrot.slane %v1201_v22, 5  ;;  %v4841_v41 = vrot.slane %v3639_v43, 9  ;;  %v1555_v43 = vld [vmem:[#allocation2 + $0x54] sm:$0xe] }
  0xa8   : > { %v5567_v26 = vpop.permute.xlu1 %1972  ;;  %3024 = vrot.lane.b32.xlu1 %v5080_v6, %s5132_s24  ;;  %v4825_v38 = vcombine.low %v3260_v27, %v3270_v28  ;;  %v1188_v39 = vor.u32 %v1187_v21, %v1184_v15  ;;  %v3757_v46 = vrot.slane %v3640_v12, 5  ;;  %v3760_v47 = vrot.slane %v3641_v18, 5  ;;  %v1557_v12 = vld [vmem:[#allocation2 + $0x5c] sm:$0x1] }
  0xa9   : > { %v5573_v37 = vpop.permute.xlu0 %3014  ;;  %3888 = vrot.lane.b32.xlu0 %v4856_v34, %s5134_s26  ;;  %v1198_v45 = vor.u32 %v1197_v56, %v1193_v32  ;;  %v1206_v49 = vshrl.u32 %v1007_v25, 16  ;;  %v1209_v30 = vshll.u32 %v1007_v25, 16  ;;  %v1215_v52 = vshll.u32 %v1008_v35, 16 }
  0xaa   : > { %v1189_v51 = vrot.slane %v1188_v39, 4  ;;  %v1219_v53 = vshrl.u32 %v1008_v35, 16  ;;  %v3758_v60 = vsel %vm5241_vm9, %v4841_v41, %v3757_v46  ;;  %v3759_v31 = vrot.slane %v3757_v46, 4  ;;  %v778_v35 = vld [vmem:[#allocation2 + $0x60] sm:$0xf] }
  0xab   : > { %v1199_v57 = vrot.slane %v1198_v45, 4  ;;  %v1208_v61 = vrot.slane %v1206_v49, 4  ;;  %v1211_v2 = vrot.slane %v1209_v30, 5  ;;  %v1217_v1 = vrot.slane %v1215_v52, 5  ;;  %v2054_v45 = vld [vmem:[#allocation2 + $0x58] sm:$0xf] }
  0xac   : > { %v5577_v55 = vpop.permute.xlu1 %3016  ;;  %3569 = vrot.lane.b32.xlu1 %v4825_v38, %s5136_s28  ;;  %v1194_v0 = vsel %vm5248_vm10, %v1189_v51, %v1193_v32  ;;  %v1221_v11 = vrot.slane %v1219_v53, 4  ;;  %v3761_v7 = vsel %vm5241_vm9, %v3759_v31, %v3760_v47  ;;  %v1225_v8 = vshll.u32 %v1009_v44, 16  ;;  %v2053_v38 = vld [vmem:[#allocation2 + $0x54] sm:$0xf]  ;;  %v782_v53 = vld [vmem:[#allocation2 + $0x68] sm:$0x1] }
  0xad   : > { %v5581_v63 = vpop.permute.xlu0 %2836  ;;  %v1204_v6 = vsel %vm5248_vm10, %v1199_v57, %v1203_v40  ;;  %v4714_v9 = vrot.slane %v1552_v50, 9  ;;  %v4857_v14 = vcombine.low %v3758_v60, %v3761_v7  ;;  %v1212_v15 = vor.u32 %v1211_v2, %v1208_v61  ;;  %v2055_v61 = vld [vmem:[#allocation2 + $0x5c] sm:$0x1]  ;;  %v5088_v7 = vld [vmem:[#allocation2 + $0xc] sm:$0xff]  }
  0xae   : > { %v4698_v13 = vcombine.low %v1194_v0, %v1204_v6  ;;  %v1222_v17 = vor.u32 %v1221_v11, %v1217_v1  ;;  %v1227_v18 = vrot.slane %v1225_v8, 5  ;;  %v1677_v20 = vrot.slane %v1553_v54, 5  ;;  %v5083_v11 = vld [vmem:[#allocation2] sm:$0xff]   ;;  %v5089_v8 = vld [vmem:[#allocation2 + $0x18] sm:$0xff]   ;;  %971 = vst.msk [vmem:[#allocation3 + $0x8] sm:$0xff] %vm969_vm14, %v5088_v7 }
  0xaf   : > { %v1680_v21 = vrot.slane %v1554_v62, 5  ;;  %v4715_v32 = vrot.slane %v1555_v43, 9  ;;  %3890 = vrot.lane.b32.xlu0 %v4857_v14, %s5134_s26  ;;  %v1213_v27 = vrot.slane %v1212_v15, 4  ;;  %v1684_v34 = vrot.slane %v1556_v10, 5  ;;  %v2598_v62 = vld [vmem:[#allocation2 + $0x54] sm:$0xe] }
  0xb0   : > { %v5590_v22 = vpop.permute.xlu1 %1795  ;;  %1481 = vrot.lane.b32.xlu1 %v4698_v13, %s5130_s22  ;;  %v1223_v28 = vrot.slane %v1222_v17, 4  ;;  %v1687_v56 = vrot.slane %v1557_v12, 5  ;;  %v1678_v39 = vsel %vm5241_vm9, %v4714_v9, %v1677_v20  ;;  %v1679_v40 = vrot.slane %v1677_v20, 4  ;;  %v5091_v9 = vld [vmem:[#allocation2 + $0x24] sm:$0xff]   ;;  %v2600_v15 = vld [vmem:[#allocation2 + $0x5c] sm:$0x1] }
  0xb1   : > { %v5592_v25 = vpop.permute.xlu0 %3880  ;;  %v525_v41 = vrot.slane %v523_v24, 7  ;;  %v531_v44 = vshrl.u32 %v5532_v58, 16  ;;  %v1218_v46 = vsel %vm5248_vm10, %v1213_v27, %v1217_v1  ;;  %v1685_v49 = vsel %vm5241_vm9, %v4715_v32, %v1684_v34  ;;  %v5098_v32 = vld [vmem:[#allocation2 + $0x30] sm:$0xff]   ;;  %v5099_v27 = vld [vmem:[#allocation2 + $0x3c] sm:$0xff]   ;;  %970 = vst.msk [vmem:[#allocation3] sm:$0xff] %vm969_vm14, %v5083_v11  ;;  %972 = vst.msk [vmem:[#allocation3 + $0x10] sm:$0xff] %vm969_vm14, %v5089_v8 }
  0xb2   : > { %v1228_v47 = vsel %vm5248_vm10, %v1223_v28, %v1227_v18  ;;  %v1686_v50 = vrot.slane %v1684_v34, 4  ;;  %v1681_v30 = vsel %vm5241_vm9, %v1679_v40, %v1680_v21  ;;  %v534_v31 = vshll.u32 %v5532_v58, 16  ;;  %v5081_v58 = vld [vmem:[#allocation2 + $0x54] sm:$0xff]   ;;  %973 = vst.msk [vmem:[#allocation3 + $0x18] sm:$0xff] %vm969_vm14, %v5091_v9  ;;  %974 = vst.msk [vmem:[#allocation3 + $0x20] sm:$0xff] %vm969_vm14, %v5098_v32 }
  0xb3   : > { %v4699_v51 = vcombine.low %v1218_v46, %v1228_v47  ;;  %v528_v24 = vor.u32 %v526_v33, %v525_v41  ;;  %v529_v52 = vrot.slane %v525_v41, 4  ;;  %v4730_v54 = vcombine.low %v1678_v39, %v1681_v30  ;;  %v2599_v33 = vld [vmem:[#allocation2 + $0x58] sm:$0xf]  ;;  %975 = vst.msk [vmem:[#allocation3 + $0x28] sm:$0xff] %vm969_vm14, %v5099_v27 }
  0xb4   : > { %v1688_v57 = vsel %vm5241_vm9, %v1686_v50, %v1687_v56  ;;  %v533_v60 = vrot.slane %v531_v44, 7  ;;  %v2228_v1 = vshrl.u32 %v2053_v38, 16  ;;  %v2231_v16 = vshll.u32 %v2053_v38, 16  ;;  %v5617_v43 = vpop.permute.xlu1 %2838  ;;  %1518 = vst.msk [vmem:[#allocation3] sm:$0xff] %vm1517_vm15, %v5545_v19 }
  0xb5   : > { %1483 = vrot.lane.b32.xlu1 %v4699_v51, %s5130_s22  ;;  %v4731_v0 = vcombine.low %v1685_v49, %v1688_v57  ;;  %v779_v2 = vsel %vm5262_vm12, %v528_v24, %v778_v35  ;;  %v5619_v6 = vpop.permute.xlu0 %3882  ;;  %1805 = vrot.lane.b32.xlu0 %v4730_v54, %s5129_s21  ;;  %v2237_v13 = vshll.u32 %v2054_v45, 16  ;;  %v2241_v14 = vshrl.u32 %v2054_v45, 16 }
  0xb6   : > { %v536_v10 = vor.u32 %v534_v31, %v533_v60  ;;  %v538_v12 = vrot.slane %v533_v60, 4  ;;  %780 = vst [vmem:[#allocation2 + $0x60] sm:$0xf] %v779_v2  ;;  %v2230_v17 = vrot.slane %v2228_v1, 4  ;;  %v2233_v18 = vrot.slane %v2231_v16, 5 }
  0xb7   : > { %v2247_v20 = vshll.u32 %v2055_v61, 16  ;;  %v4778_v21 = vrot.slane %v2598_v62, 9  ;;  %v2239_v34 = vrot.slane %v2237_v13, 5  ;;  %v2243_v56 = vrot.slane %v2241_v14, 4 }
  0xb8   : > { %v537_v28 = vsel %vm5256_vm11, %v529_v52, %v536_v10  ;;  %v783_v35 = vsel %vm5270_vm13, %v538_v12, %v782_v53  ;;  %v2234_v38 = vor.u32 %v2233_v18, %v2230_v17  ;;  %v2720_v40 = vrot.slane %v2599_v33, 5  ;;  %v5631_v49 = vpop.permute.xlu1 %2517  ;;  %v290_v52 = vld [vmem:[%s5234_s20 + $0x90] sm:$0xff]  ;;  %v291_v33 = vld [vmem:[%s5234_s20 + $0x98] sm:$0xff]  ;;  %v785_v12 = vld [vmem:[#allocation2 + $0x6c] sm:$0xf] }
  0xb9   : > { %1807 = vrot.lane.b32.xlu1 %v4731_v0, %s5129_s21  ;;  %781 = vst.msk [vmem:[#allocation2 + $0x64] sm:$0xf] %vm216_vm0, %v537_v28  ;;  %v2249_v39 = vrot.slane %v2247_v20, 5  ;;  %784 = vst [vmem:[#allocation2 + $0x68] sm:$0x1] %v783_v35  ;;  %v2723_v41 = vrot.slane %v2600_v15, 5  ;;  %1982 = vrot.lane.b32.xlu0 %v5081_v58, %s5131_s23  ;;  %v2244_v44 = vor.u32 %v2243_v56, %v2239_v34 }
  0xba   : > { %vm1841_vm1 = vcmask 97344   ;;  %v2235_v45 = vrot.slane %v2234_v38, 4  ;;  %v2722_v46 = vrot.slane %v2720_v40, 4  ;;  %v540_v47 = vshrl.u32 %v5535_v4, 16 }
  0xbb   : > { %v2245_v51 = vrot.slane %v2244_v44, 4  ;;  %v2721_v30 = vsel %vm5241_vm9, %v4778_v21, %v2720_v40  ;;  %v548_v24 = vshrl.u32 %v5537_v5, 16  ;;  %1842 = vst.msk [vmem:[#allocation3] sm:$0xff] %vm1841_vm1, %v5553_v3  ;;  %v543_v60 = vshll.u32 %v5535_v4, 16 }
  0xbc   : > { %v1472_v50 = vpop.permute.xlu0 %1471  ;;  %v2240_v53 = vsel %vm5248_vm10, %v2235_v45, %v2239_v34  ;;  %v2724_v57 = vsel %vm5241_vm9, %v2722_v46, %v2723_v41  ;;  %v551_v19 = vshll.u32 %v5537_v5, 16  ;;  %v542_v1 = vrot.slane %v540_v47, 7  ;;  %v789_v41 = vld [vmem:[#allocation2 + $0x74] sm:$0x1] }
  0xbd   : > { %1519 = vst.msk [vmem:[#allocation3 + $0x8] sm:$0xff] %vm1517_vm15, %v1472_v50  ;;  %v2056_v54 = vld [vmem:[#allocation2 + $0x60] sm:$0xf]  ;;  %v2250_v31 = vsel %vm5248_vm10, %v2245_v51, %v2249_v39  ;;  %v5657_v16 = vrot.slane %v548_v24, 7  ;;  %v4794_v4 = vcombine.low %v2721_v30, %v2724_v57  ;;  %v5660_v8 = vpack.c.bf16 %v290_v52, %v290_v52 }
  0xbe   : > { %1843 = vst.msk [vmem:[#allocation3 + $0x8] sm:$0xff] %vm1841_vm1, %v5590_v22  ;;  %v2252_v61 = vshrl.u32 %v2056_v54, 16  ;;  %v2255_v62 = vshll.u32 %v2056_v54, 16  ;;  %v2601_v0 = vld [vmem:[#allocation2 + $0x60] sm:$0xe]  ;;  %v4762_v2 = vcombine.low %v2240_v53, %v2250_v31  ;;  %v545_v20 = vor.u32 %v543_v60, %v542_v1 }
  0xbf   : > { %v4779_v10 = vrot.slane %v2601_v0, 9  ;;  %v3097_v13 = vld [vmem:[#allocation2 + $0x60] sm:$0xf]  ;;  %v546_v21 = vrot.slane %v542_v1, 4  ;;  %v553_v32 = vor.u32 %v551_v19, %v5657_v16  ;;  %v5669_v44 = vpack.c.bf16 %v291_v33, %v291_v33 }
  0xc0   : > { %v5082_v11 = vld [vmem:[#allocation2 + $0x60] sm:$0xff]   ;;  %v2254_v7 = vrot.slane %v2252_v61, 4  ;;  %2527 = vrot.lane.b32.xlu0 %v4762_v2, %s5135_s27  ;;  %v2058_v5 = vld [vmem:[#allocation2 + $0x68] sm:$0x1]  ;;  %v2257_v22 = vrot.slane %v2255_v62, 5  ;;  %v5663_v14 = vpop.permute.xlu1 %3561  ;;  %v555_v51 = vrot.slane %v5657_v16, 4  ;;  %v786_v24 = vsel %vm5262_vm12, %v545_v20, %v785_v12 }
  0xc1   : > { %v2057_v3 = vld [vmem:[#allocation2 + $0x64] sm:$0xf]  ;;  %1984 = vrot.lane.b32.xlu1 %v5082_v11, %s5131_s23  ;;  %v2271_v15 = vshll.u32 %v2058_v5, 16  ;;  %v2603_v18 = vld [vmem:[#allocation2 + $0x68] sm:$0x1]  ;;  %v554_v39 = vsel %vm5256_vm11, %v546_v21, %v553_v32  ;;  %vm2018_vm2 = vcmask 130144  }
  0xc2   : > { %v2261_v9 = vshll.u32 %v2057_v3, 16  ;;  %v2265_v58 = vshrl.u32 %v2057_v3, 16  ;;  %v2602_v17 = vld [vmem:[#allocation2 + $0x64] sm:$0xf]  ;;  %v2258_v27 = vor.u32 %v2257_v22, %v2254_v7  ;;  %v2730_v38 = vrot.slane %v2603_v18, 5  ;;  %2019 = vst.msk [vmem:[#allocation3] sm:$0xff] %vm2018_vm2, %v5555_v59 }
  0xc3   : > { %v2727_v56 = vrot.slane %v2602_v17, 5  ;;  %v2273_v35 = vrot.slane %v2271_v15, 5  ;;  %v3098_v40 = vld [vmem:[#allocation2 + $0x64] sm:$0xf]  ;;  %788 = vst.msk [vmem:[#allocation2 + $0x70] sm:$0xf] %vm216_vm0, %v554_v39  ;;  %v5684_v0 = vpop.permute.xlu0 %2515 }
  0xc4   : > { %v2263_v28 = vrot.slane %v2261_v9, 5  ;;  %v2267_v34 = vrot.slane %v2265_v58, 4  ;;  %v2259_v45 = vrot.slane %v2258_v27, 4  ;;  %2848 = vrot.lane.b32.xlu0 %v4794_v4, %s5133_s25  ;;  %v5084_v50 = vld [vmem:[#allocation2 + $0x60] sm:$0xff]   ;;  %v3099_v52 = vld [vmem:[#allocation2 + $0x68] sm:$0x1]  ;;  %v790_v4 = vsel %vm5270_vm13, %v555_v51, %v789_v41 }
  0xc5   : > { %v2729_v47 = vrot.slane %v2727_v56, 4  ;;  %v3642_v30 = vld [vmem:[#allocation2 + $0x60] sm:$0xe]  ;;  %v3272_v53 = vshrl.u32 %v3097_v13, 16  ;;  %v3275_v54 = vshll.u32 %v3097_v13, 16  ;;  %v2728_v19 = vsel %vm5241_vm9, %v4779_v10, %v2727_v56  ;;  %2020 = vst.msk [vmem:[#allocation3 + $0x8] sm:$0xff] %vm2018_vm2, %v5567_v26 }
  0xc6   : > { %v2268_v46 = vor.u32 %v2267_v34, %v2263_v28  ;;  %v2264_v57 = vsel %vm5248_vm10, %v2259_v45, %v2263_v28  ;;  %787 = vst [vmem:[#allocation2 + $0x6c] sm:$0xf] %v786_v24  ;;  %v3281_v31 = vshll.u32 %v3098_v40, 16  ;;  %v3643_v61 = vld [vmem:[#allocation2 + $0x64] sm:$0xf]  ;;  %v3285_v11 = vshrl.u32 %v3098_v40, 16 }
  0xc7   : > { %v3644_v62 = vld [vmem:[#allocation2 + $0x68] sm:$0x1]  ;;  %v2731_v1 = vsel %vm5241_vm9, %v2729_v47, %v2730_v38  ;;  %v3274_v16 = vrot.slane %v3272_v53, 4  ;;  %v3277_v33 = vrot.slane %v3275_v54, 5  ;;  %v1010_v3 = vld [vmem:[#allocation2 + $0x60] sm:$0xf] }
  0xc8   : > { %v2269_v60 = vrot.slane %v2268_v46, 4  ;;  %v1474_v2 = vpop.permute.xlu1 %1473  ;;  %3026 = vrot.lane.b32.xlu0 %v5084_v50, %s5132_s24  ;;  %v3283_v26 = vrot.slane %v3281_v31, 5  ;;  %v3291_v7 = vshll.u32 %v3099_v52, 16  ;;  %v3287_v9 = vrot.slane %v3285_v11, 4  ;;  %791 = vst [vmem:[#allocation2 + $0x74] sm:$0x1] %v790_v4 }
  0xc9   : > { %1520 = vst.msk [vmem:[#allocation3 + $0x10] sm:$0xff] %vm1517_vm15, %v1474_v2  ;;  %v3278_v22 = vor.u32 %v3277_v33, %v3274_v16  ;;  %v4842_v58 = vrot.slane %v3642_v30, 9  ;;  %v292_v10 = vld [vmem:[%s5234_s20 + $0xa0] sm:$0xff]  ;;  %v3764_v13 = vrot.slane %v3643_v61, 5  ;;  %v3767_v15 = vrot.slane %v3644_v62, 5  ;;  %v293_v18 = vld [vmem:[%s5234_s20 + $0xa8] sm:$0xff] }
  0xca   : > { %v2274_v59 = vsel %vm5248_vm10, %v2269_v60, %v2273_v35  ;;  %v3293_v12 = vrot.slane %v3291_v7, 5  ;;  %v1230_v17 = vshrl.u32 %v1010_v3, 16  ;;  %v4795_v20 = vcombine.low %v2728_v19, %v2731_v1  ;;  %v3101_v27 = vld [vmem:[#allocation2 + $0x70] sm:$0xf]  ;;  %v1011_v52 = vld [vmem:[#allocation2 + $0x64] sm:$0xf] }
  0xcb   : > { %v4763_v5 = vcombine.low %v2264_v57, %v2274_v59  ;;  %v3279_v21 = vrot.slane %v3278_v22, 4  ;;  %v3288_v32 = vor.u32 %v3287_v9, %v3283_v26  ;;  %v1233_v28 = vshll.u32 %v1010_v3, 16  ;;  %v1012_v60 = vld [vmem:[#allocation2 + $0x68] sm:$0x1] }
  0xcc   : > { %v3305_v34 = vshll.u32 %v3101_v27, 16  ;;  %v3309_v56 = vshrl.u32 %v3101_v27, 16  ;;  %v3766_v35 = vrot.slane %v3764_v13, 4  ;;  %v5699_v39 = vpack.c.bf16 %v292_v10, %v292_v10 }
  0xcd   : > { %2529 = vrot.lane.b32.xlu1 %v4763_v5, %s5135_s27  ;;  %v5697_v38 = vpop.permute.xlu0 %3559  ;;  %v3284_v40 = vsel %vm5248_vm10, %v3279_v21, %v3283_v26  ;;  %v3289_v41 = vrot.slane %v3288_v32, 4  ;;  %v3100_v45 = vld [vmem:[#allocation2 + $0x6c] sm:$0xf]  ;;  %v3765_v46 = vsel %vm5241_vm9, %v4842_v58, %v3764_v13  ;;  %v5705_v47 = vpack.c.bf16 %v293_v18, %v293_v18  ;;  %v3646_v5 = vld [vmem:[#allocation2 + $0x70] sm:$0xf] }
  0xce   : > { %v3296_v50 = vshrl.u32 %v3100_v45, 16  ;;  %v3299_v51 = vshll.u32 %v3100_v45, 16  ;;  %v3307_v30 = vrot.slane %v3305_v34, 5  ;;  %v3311_v24 = vrot.slane %v3309_v56, 4  ;;  %v5085_v53 = vld [vmem:[#allocation2 + $0x6c] sm:$0xff]  }
  0xcf   : > { %v3294_v54 = vsel %vm5248_vm10, %v3289_v41, %v3293_v12  ;;  %v3768_v57 = vsel %vm5241_vm9, %v3766_v35, %v3767_v15  ;;  %v1232_v19 = vrot.slane %v1230_v17, 4  ;;  %v1235_v31 = vrot.slane %v1233_v28, 5  ;;  %v3102_v62 = vld [vmem:[#allocation2 + $0x74] sm:$0x1]  ;;  %v3645_v33 = vld [vmem:[#allocation2 + $0x6c] sm:$0xe] }
  0xd0   : > { %v4826_v61 = vcombine.low %v3284_v40, %v3294_v54  ;;  %v3298_v2 = vrot.slane %v3296_v50, 4  ;;  %v3301_v1 = vrot.slane %v3299_v51, 5  ;;  %v3312_v16 = vor.u32 %v3311_v24, %v3307_v30  ;;  %v1013_v22 = vld [vmem:[#allocation2 + $0x6c] sm:$0xf]  ;;  %v3647_v13 = vld [vmem:[#allocation2 + $0x74] sm:$0x1] }
  0xd1   : > { %2850 = vrot.lane.b32.xlu1 %v4795_v20, %s5133_s25  ;;  %v1798_v3 = vpop.permute.xlu0 %1797  ;;  %v3315_v59 = vshll.u32 %v3102_v62, 16  ;;  %v4858_v26 = vcombine.low %v3765_v46, %v3768_v57  ;;  %v1236_v7 = vor.u32 %v1235_v31, %v1232_v19  ;;  %v1239_v4 = vshll.u32 %v1011_v52, 16  ;;  %v1014_v21 = vld [vmem:[#allocation2 + $0x70] sm:$0xf]  ;;  %v1015_v46 = vld [vmem:[#allocation2 + $0x74] sm:$0x1] }
  0xd2   : > { %v1476_v11 = vpop.permute.xlu1 %1475  ;;  %1844 = vst.msk [vmem:[#allocation3 + $0x10] sm:$0xff] %vm1841_vm1, %v1798_v3  ;;  %3571 = vrot.lane.b32.xlu0 %v4826_v61, %s5136_s28  ;;  %v3302_v9 = vor.u32 %v3301_v1, %v3298_v2  ;;  %v3313_v58 = vrot.slane %v3312_v16, 4  ;;  %v1243_v10 = vshrl.u32 %v1011_v52, 16  ;;  %v1249_v12 = vshll.u32 %v1012_v60, 16  ;;  %v1558_v54 = vld [vmem:[#allocation2 + $0x60] sm:$0xe] }
  0xd3   : > { %1521 = vst.msk [vmem:[#allocation3 + $0x18] sm:$0xff] %vm1517_vm15, %v1476_v11  ;;  %v3317_v15 = vrot.slane %v3315_v59, 5  ;;  %v1237_v17 = vrot.slane %v1236_v7, 4  ;;  %v1241_v18 = vrot.slane %v1239_v4, 5  ;;  %v4843_v20 = vrot.slane %v3645_v33, 9  ;;  %v5104_v60 = vld [vmem:[#allocation2 + $0x48] sm:$0xff]  }
  0xd4   : > { %v3303_v32 = vrot.slane %v3302_v9, 4  ;;  %v1245_v27 = vrot.slane %v1243_v10, 4  ;;  %v1251_v28 = vrot.slane %v1249_v12, 5  ;;  %v3771_v34 = vrot.slane %v3646_v5, 5  ;;  %v1559_v57 = vld [vmem:[#allocation2 + $0x64] sm:$0xf] }
  0xd5   : > { %3028 = vrot.lane.b32.xlu1 %v5085_v53, %s5132_s24  ;;  %v1975_v35 = vpop.permute.xlu0 %1974  ;;  %v3318_v40 = vsel %vm5248_vm10, %v3313_v58, %v3317_v15  ;;  %v1242_v41 = vsel %vm5248_vm10, %v1237_v17, %v1241_v18  ;;  %v3774_v45 = vrot.slane %v3647_v13, 5  ;;  %v1254_v50 = vshrl.u32 %v1013_v22, 16  ;;  %v1560_v2 = vld [vmem:[#allocation2 + $0x68] sm:$0x1]  ;;  %v1561_v11 = vld [vmem:[#allocation2 + $0x6c] sm:$0xe] }
  0xd6   : > { %v1800_v56 = vpop.permute.xlu1 %1799  ;;  %2021 = vst.msk [vmem:[#allocation3 + $0x10] sm:$0xff] %vm2018_vm2, %v1975_v35  ;;  %v3308_v51 = vsel %vm5248_vm10, %v3303_v32, %v3307_v30  ;;  %3892 = vrot.lane.b32.xlu0 %v4858_v26, %s5134_s26  ;;  %v1246_v24 = vor.u32 %v1245_v27, %v1241_v18  ;;  %v3772_v52 = vsel %vm5241_vm9, %v4843_v20, %v3771_v34  ;;  %v3773_v53 = vrot.slane %v3771_v34, 4  ;;  %v5105_v59 = vld [vmem:[#allocation2 + $0x54] sm:$0xff]  }
  0xd7   : > { %1845 = vst.msk [vmem:[#allocation3 + $0x18] sm:$0xff] %vm1841_vm1, %v1800_v56  ;;  %v4827_v19 = vcombine.low %v3308_v51, %v3318_v40  ;;  %v1256_v31 = vrot.slane %v1254_v50, 4  ;;  %v1257_v61 = vshll.u32 %v1013_v22, 16  ;;  %v1263_v62 = vshll.u32 %v1014_v21, 16  ;;  %v1562_v22 = vld [vmem:[#allocation2 + $0x70] sm:$0xf] }
  0xd8   : > { %v1247_v1 = vrot.slane %v1246_v24, 4  ;;  %v3775_v16 = vsel %vm5241_vm9, %v3773_v53, %v3774_v45  ;;  %v1267_v30 = vshrl.u32 %v1014_v21, 16  ;;  %v1273_v33 = vshll.u32 %v1015_v46, 16  ;;  %976 = vst.msk [vmem:[#allocation3 + $0x30] sm:$0xff] %vm969_vm14, %v5104_v60  ;;  %v1563_v15 = vld [vmem:[#allocation2 + $0x74] sm:$0x1] }
  0xd9   : > { %3573 = vrot.lane.b32.xlu1 %v4827_v19, %s5136_s28  ;;  %v4859_v26 = vcombine.low %v3772_v52, %v3775_v16  ;;  %v1259_v7 = vrot.slane %v1257_v61, 5  ;;  %v1265_v4 = vrot.slane %v1263_v62, 5  ;;  %v4716_v5 = vrot.slane %v1558_v54, 9  ;;  %977 = vst.msk [vmem:[#allocation3 + $0x38] sm:$0xff] %vm969_vm14, %v5105_v59  ;;  %v2059_v61 = vld [vmem:[#allocation2 + $0x6c] sm:$0xf] }
  0xda   : > { %v2520_v3 = vpop.permute.xlu0 %2519  ;;  %v1977_v9 = vpop.permute.xlu1 %1976  ;;  %v1252_v58 = vsel %vm5248_vm10, %v1247_v1, %v1251_v28  ;;  %v1269_v10 = vrot.slane %v1267_v30, 4  ;;  %v1275_v12 = vrot.slane %v1273_v33, 5  ;;  %v1691_v13 = vrot.slane %v1559_v57, 5  ;;  %v5086_v1 = vld [vmem:[#allocation2 + $0x6c] sm:$0xff]   ;;  %v796_v59 = vld [vmem:[#allocation2 + $0x80] sm:$0x1] }
  0xdb   : > { %2022 = vst.msk [vmem:[#allocation3 + $0x18] sm:$0xff] %vm2018_vm2, %v1977_v9  ;;  %v4700_v17 = vcombine.low %v1242_v41, %v1252_v58  ;;  %3894 = vrot.lane.b32.xlu0 %v4859_v26, %s5134_s26  ;;  %v1260_v18 = vor.u32 %v1259_v7, %v1256_v31  ;;  %v1694_v20 = vrot.slane %v1560_v2, 5  ;;  %v4717_v21 = vrot.slane %v1561_v11, 9  ;;  %v792_v31 = vld [vmem:[#allocation2 + $0x78] sm:$0xf] }
  0xdc   : > { %v1270_v32 = vor.u32 %v1269_v10, %v1265_v4  ;;  %v1692_v27 = vsel %vm5241_vm9, %v4716_v5, %v1691_v13  ;;  %v1693_v34 = vrot.slane %v1691_v13, 4  ;;  %v1698_v28 = vrot.slane %v1562_v22, 5  ;;  %v2060_v33 = vld [vmem:[#allocation2 + $0x70] sm:$0xf]  ;;  %v2061_v11 = vld [vmem:[#allocation2 + $0x74] sm:$0x1] }
  0xdd   : > { %1485 = vrot.lane.b32.xlu1 %v4700_v17, %s5130_s22  ;;  %v1261_v35 = vrot.slane %v1260_v18, 4  ;;  %v1701_v40 = vrot.slane %v1563_v15, 5  ;;  %v557_v45 = vshrl.u32 %v5660_v8, 16  ;;  %v560_v41 = vshll.u32 %v5660_v8, 16  ;;  %v2604_v7 = vld [vmem:[#allocation2 + $0x6c] sm:$0xe] }
  0xde   : > { %v2841_v56 = vpop.permute.xlu0 %2840  ;;  %v1271_v46 = vrot.slane %v1270_v32, 4  ;;  %v1695_v50 = vsel %vm5241_vm9, %v1693_v34, %v1694_v20  ;;  %v1699_v51 = vsel %vm5241_vm9, %v4717_v21, %v1698_v28  ;;  %v1700_v24 = vrot.slane %v1698_v28, 4 }
  0xdf   : > { %v1266_v52 = vsel %vm5248_vm10, %v1261_v35, %v1265_v4  ;;  %v4732_v53 = vcombine.low %v1692_v27, %v1695_v50  ;;  %v559_v54 = vrot.slane %v557_v45, 7  ;;  %v565_v57 = vshrl.u32 %v5669_v44, 16 }
  0xe0   : > { %v1276_v60 = vsel %vm5248_vm10, %v1271_v46, %v1275_v12  ;;  %v1702_v8 = vsel %vm5241_vm9, %v1700_v24, %v1701_v40  ;;  %v568_v19 = vshll.u32 %v5669_v44, 16  ;;  %vm2563_vm3 = vcmask 162944  }
  0xe1   : > { %v4701_v62 = vcombine.low %v1266_v52, %v1276_v60  ;;  %1809 = vrot.lane.b32.xlu0 %v4732_v53, %s5129_s21  ;;  %v4733_v2 = vcombine.low %v1699_v51, %v1702_v8  ;;  %v562_v16 = vor.u32 %v560_v41, %v559_v54  ;;  %v563_v30 = vrot.slane %v559_v54, 4  ;;  %2565 = vst.msk [vmem:[#allocation3 + $0x8] sm:$0xff] %vm2563_vm3, %v5631_v49  ;;  %v294_v51 = vld [vmem:[%s5234_s20 + $0xb0] sm:$0xff] }
  0xe2   : > { %2564 = vst.msk [vmem:[#allocation3] sm:$0xff] %vm2563_vm3, %v5684_v0  ;;  %2566 = vst.msk [vmem:[#allocation3 + $0x10] sm:$0xff] %vm2563_vm3, %v2520_v3  ;;  %v3019_v44 = vpop.permute.xlu0 %3018  ;;  %v567_v26 = vrot.slane %v565_v57, 7  ;;  %vm2884_vm4 = vcmask 195744   ;;  %vm3062_vm5 = vcmask 228544   ;;  %vm3607_vm6 = vcmask 261344  }
  0xe3   : > { %1487 = vrot.lane.b32.xlu1 %v4701_v62, %s5130_s22  ;;  %v793_v4 = vsel %vm5262_vm12, %v562_v16, %v792_v31  ;;  %vm3928_vm7 = vcmask 294144   ;;  %2886 = vst.msk [vmem:[#allocation3 + $0x8] sm:$0xff] %vm2884_vm4, %v5617_v43  ;;  %v2276_v49 = vshrl.u32 %v2059_v61, 16  ;;  %v2279_v5 = vshll.u32 %v2059_v61, 16  ;;  %2885 = vst.msk [vmem:[#allocation3] sm:$0xff] %vm2884_vm4, %v5581_v63  ;;  %v295_v16 = vld [vmem:[%s5234_s20 + $0xb8] sm:$0xff] }
  0xe4   : > { %v2605_v0 = vld [vmem:[#allocation2 + $0x70] sm:$0xf]  ;;  %2887 = vst.msk [vmem:[#allocation3 + $0x10] sm:$0xff] %vm2884_vm4, %v2841_v56  ;;  %v570_v22 = vor.u32 %v568_v19, %v567_v26  ;;  %v572_v9 = vrot.slane %v567_v26, 4  ;;  %794 = vst [vmem:[#allocation2 + $0x78] sm:$0xf] %v793_v4 }
  0xe5   : > { %3064 = vst.msk [vmem:[#allocation3 + $0x8] sm:$0xff] %vm3062_vm5, %v5577_v55  ;;  %v2285_v58 = vshll.u32 %v2060_v33, 16  ;;  %v2289_v10 = vshrl.u32 %v2060_v33, 16  ;;  %3063 = vst.msk [vmem:[#allocation3] sm:$0xff] %vm3062_vm5, %v5573_v37  ;;  %v2606_v43 = vld [vmem:[#allocation2 + $0x74] sm:$0x1]  ;;  %1986 = vrot.lane.b32.xlu0 %v5086_v1, %s5131_s23 }
  0xe6   : > { %v2522_v3 = vpop.permute.xlu1 %2521  ;;  %3065 = vst.msk [vmem:[#allocation3 + $0x10] sm:$0xff] %vm3062_vm5, %v3019_v44  ;;  %v2278_v63 = vrot.slane %v2276_v49, 4  ;;  %v2281_v12 = vrot.slane %v2279_v5, 5  ;;  %v2295_v13 = vshll.u32 %v2061_v11, 16  ;;  %v571_v55 = vsel %vm5256_vm11, %v563_v30, %v570_v22  ;;  %v799_v19 = vld [vmem:[#allocation2 + $0x84] sm:$0xf] }
  0xe7   : > { %2567 = vst.msk [vmem:[#allocation3 + $0x18] sm:$0xff] %vm2563_vm3, %v2522_v3  ;;  %v2287_v37 = vrot.slane %v2285_v58, 5  ;;  %v2291_v15 = vrot.slane %v2289_v10, 4  ;;  %v797_v17 = vsel %vm5270_vm13, %v572_v9, %v796_v59  ;;  %1811 = vrot.lane.b32.xlu1 %v4733_v2, %s5129_s21  ;;  %v2734_v18 = vrot.slane %v2605_v0, 5  ;;  %v803_v1 = vld [vmem:[#allocation2 + $0x8c] sm:$0x1] }
  0xe8   : > { %3609 = vst.msk [vmem:[#allocation3 + $0x8] sm:$0xff] %vm3607_vm6, %v5663_v14  ;;  %3608 = vst.msk [vmem:[#allocation3] sm:$0xff] %vm3607_vm6, %v5697_v38  ;;  %v2282_v14 = vor.u32 %v2281_v12, %v2278_v63  ;;  %v4780_v38 = vrot.slane %v2604_v7, 9  ;;  %v2737_v20 = vrot.slane %v2606_v43, 5  ;;  %v2297_v27 = vrot.slane %v2295_v13, 5  ;;  %v296_v9 = vld [vmem:[%s5234_s20 + $0xc0] sm:$0xff] }
  0xe9   : > { %3930 = vst.msk [vmem:[#allocation3 + $0x8] sm:$0xff] %vm3928_vm7, %v5619_v6  ;;  %3929 = vst.msk [vmem:[#allocation3] sm:$0xff] %vm3928_vm7, %v5592_v25  ;;  %v5791_v6 = vld [vmem:[%s6430_s1 + $0x10] ss:$0 sps:$4 sm:$0x33]   ;;  %v2292_v32 = vor.u32 %v2291_v15, %v2287_v37  ;;  %v574_v25 = vshrl.u32 %v5699_v39, 16  ;;  %v3564_v45 = vpop.permute.xlu0 %3563  ;;  %v5814_v7 = vpack.c.bf16 %v294_v51, %v294_v51  ;;  %v5824_v13 = vpack.c.bf16 %v295_v16, %v295_v16 }
  0xea   : > { %795 = vst.msk [vmem:[#allocation2 + $0x7c] sm:$0xf] %vm216_vm0, %v571_v55  ;;  %798 = vst [vmem:[#allocation2 + $0x80] sm:$0x1] %v797_v17  ;;  %v2843_v21 = vpop.permute.xlu1 %2842  ;;  %v582_v34 = vshrl.u32 %v5705_v47, 16  ;;  %v2283_v28 = vrot.slane %v2282_v14, 4  ;;  %v2735_v53 = vsel %vm5241_vm9, %v4780_v38, %v2734_v18 }
  0xeb   : > { %2888 = vst.msk [vmem:[#allocation3 + $0x18] sm:$0xff] %vm2884_vm4, %v2843_v21  ;;  %v2736_v56 = vrot.slane %v2734_v18, 4  ;;  %v577_v35 = vshll.u32 %v5699_v39, 16  ;;  %v585_v40 = vshll.u32 %v5705_v47, 16  ;;  %v2293_v41 = vrot.slane %v2292_v32, 4 }
  0xec   : > { %v576_v46 = vrot.slane %v574_v25, 7  ;;  %v584_v50 = vrot.slane %v582_v34, 7  ;;  %vm4030_vm8 = vcmask 1041408   ;;  %3610 = vst.msk [vmem:[#allocation3 + $0x10] sm:$0xff] %vm3607_vm6, %v3564_v45  ;;  %v2288_v24 = vsel %vm5248_vm10, %v2283_v28, %v2287_v37  ;;  %v2062_v52 = vld [vmem:[#allocation2 + $0x78] sm:$0xf] }
  0xed   : > { %v2738_v39 = vsel %vm5241_vm9, %v2736_v56, %v2737_v20  ;;  %v2607_v47 = vld [vmem:[#allocation2 + $0x78] sm:$0xe]  ;;  %5050 = vmatprep.subr.msk.bf16.mxu0 %vm4030_vm8, %v5791_v6  ;;  %v2298_v57 = vsel %vm5248_vm10, %v2293_v41, %v2297_v27  ;;  %v2300_v60 = vshrl.u32 %v2062_v52, 16  ;;  %v2303_v8 = vshll.u32 %v2062_v52, 16  ;;  %5051 = vmatprep.subr.msk.bf16.mxu1 %vm4030_vm8, %v5791_v6  ;;  %v3885_v30 = vpop.permute.xlu0 %3884  ;;  %v297_v45 = vld [vmem:[%s5234_s20 + $0xc8] sm:$0xff] }
  0xee   : > { %v3021_v54 = vpop.permute.xlu1 %3020  ;;  %v4764_v31 = vcombine.low %v2288_v24, %v2298_v57  ;;  %v4781_v61 = vrot.slane %v2607_v47, 9  ;;  %v579_v62 = vor.u32 %v577_v35, %v576_v46  ;;  %v580_v2 = vrot.slane %v576_v46, 4  ;;  %3931 = vst.msk [vmem:[#allocation3 + $0x10] sm:$0xff] %vm3928_vm7, %v3885_v30  ;;  %v3103_v22 = vld [vmem:[#allocation2 + $0x78] sm:$0xf]  ;;  %v298_v24 = vld [vmem:[%s5234_s20 + $0xd0] sm:$0xff] }
  0xef   : > { %3066 = vst.msk [vmem:[#allocation3 + $0x18] sm:$0xff] %vm3062_vm5, %v3021_v54  ;;  %v2302_v59 = vrot.slane %v2300_v60, 4  ;;  %v4796_v44 = vcombine.low %v2735_v53, %v2738_v39  ;;  %v587_v26 = vor.u32 %v585_v40, %v584_v50  ;;  %v2305_v49 = vrot.slane %v2303_v8, 5  ;;  %v3648_v8 = vld [vmem:[#allocation2 + $0x78] sm:$0xe] }
  0xf0   : > { %2531 = vrot.lane.b32.xlu0 %v4764_v31, %s5135_s27  ;;  %v800_v3 = vsel %vm5262_vm12, %v579_v62, %v799_v19  ;;  %v589_v12 = vrot.slane %v584_v50, 4  ;;  %v5829_v25 = vpack.c.bf16 %v296_v9, %v296_v9  ;;  %v3320_v41 = vshrl.u32 %v3103_v22, 16 }
  0xf1   : > { %v5087_v33 = vld [vmem:[#allocation2 + $0x78] sm:$0xff]   ;;  %v2064_v4 = vld [vmem:[#allocation2 + $0x80] sm:$0x1]  ;;  %v588_v63 = vsel %vm5256_vm11, %v580_v2, %v587_v26  ;;  %801 = vst [vmem:[#allocation2 + $0x84] sm:$0xf] %v800_v3  ;;  %v2306_v55 = vor.u32 %v2305_v49, %v2302_v59  ;;  %v3323_v46 = vshll.u32 %v3103_v22, 16  ;;  %v5844_v31 = vpack.c.bf16 %v297_v45, %v297_v45 }
  0xf2   : > { %v2063_v11 = vld [vmem:[#allocation2 + $0x7c] sm:$0xf]  ;;  %1988 = vrot.lane.b32.xlu1 %v5087_v33, %s5131_s23  ;;  %v2319_v58 = vshll.u32 %v2064_v4, 16  ;;  %v2609_v43 = vld [vmem:[#allocation2 + $0x80] sm:$0x1]  ;;  %v804_v21 = vsel %vm5270_vm13, %v589_v12, %v803_v1  ;;  %v3566_v32 = vpop.permute.xlu1 %3565  ;;  %v3322_v54 = vrot.slane %v3320_v41, 4  ;;  %v5851_v30 = vpack.c.bf16 %v298_v24, %v298_v24 }
  0xf3   : > { %v2309_v5 = vshll.u32 %v2063_v11, 16  ;;  %v2313_v0 = vshrl.u32 %v2063_v11, 16  ;;  %v2608_v10 = vld [vmem:[#allocation2 + $0x7c] sm:$0xf]  ;;  %802 = vst.msk [vmem:[#allocation2 + $0x88] sm:$0xf] %vm216_vm0, %v588_v63  ;;  %v3887_v27 = vpop.permute.xlu0 %3886 }
  0xf4   : > { %v2741_v17 = vrot.slane %v2608_v10, 5  ;;  %v2321_v14 = vrot.slane %v2319_v58, 5  ;;  %v2744_v38 = vrot.slane %v2609_v43, 5  ;;  %v3104_v18 = vld [vmem:[#allocation2 + $0x7c] sm:$0xf]  ;;  %v2307_v34 = vrot.slane %v2306_v55, 4  ;;  %2852 = vrot.lane.b32.xlu0 %v4796_v44, %s5133_s25 }
  0xf5   : > { %v2311_v37 = vrot.slane %v2309_v5, 5  ;;  %v2315_v15 = vrot.slane %v2313_v0, 4  ;;  %v3105_v20 = vld [vmem:[#allocation2 + $0x80] sm:$0x1]  ;;  %v5092_v40 = vld [vmem:[#allocation2 + $0x78] sm:$0xff]   ;;  %3611 = vst.msk [vmem:[#allocation3 + $0x18] sm:$0xff] %vm3607_vm6, %v3566_v32 }
  0xf6   : > { %v5834_v56 = vsel %vm5241_vm9, %v4781_v61, %v2741_v17  ;;  %v2743_v35 = vrot.slane %v2741_v17, 4  ;;  %805 = vst [vmem:[#allocation2 + $0x8c] sm:$0x1] %v804_v21  ;;  %v3329_v50 = vshll.u32 %v3104_v18, 16  ;;  %v3333_v51 = vshrl.u32 %v3104_v18, 16  ;;  %3932 = vst.msk [vmem:[#allocation3 + $0x18] sm:$0xff] %vm3928_vm7, %v3887_v27  ;;  %v1478_v19 = vpop.permute.xlu1 %1477 }
  0xf7   : > { %v2316_v28 = vor.u32 %v2315_v15, %v2311_v37  ;;  %v2312_v52 = vsel %vm5248_vm10, %v2307_v34, %v2311_v37  ;;  %v3339_v47 = vshll.u32 %v3105_v20, 16  ;;  %v3325_v57 = vrot.slane %v3323_v46, 5  ;;  %v3649_v16 = vld [vmem:[#allocation2 + $0x7c] sm:$0xf]  ;;  %1522 = vst.msk [vmem:[#allocation3 + $0x20] sm:$0xff] %vm1517_vm15, %v1478_v19  ;;  %v3946_v24 = vld [vmem:[#allocation3 + $0x8] sm:$0xff] }
  0xf8   : > { %v2745_v39 = vsel %vm5241_vm9, %v2743_v35, %v2744_v38  ;;  %v3331_v60 = vrot.slane %v3329_v50, 5  ;;  %3030 = vrot.lane.b32.xlu0 %v5092_v40, %s5132_s24  ;;  %v3335_v2 = vrot.slane %v3333_v51, 4  ;;  %v3106_v1 = vld [vmem:[#allocation2 + $0x84] sm:$0xf]  ;;  %v3650_v3 = vld [vmem:[#allocation2 + $0x80] sm:$0x1] }
  0xf9   : > { %v2317_v53 = vrot.slane %v2316_v28, 4  ;;  %v4797_v62 = vcombine.low %v5834_v56, %v2745_v39  ;;  %v3326_v11 = vor.u32 %v3325_v57, %v3322_v54  ;;  %v3341_v59 = vrot.slane %v3339_v47, 5  ;;  %v1017_v28 = vld [vmem:[#allocation2 + $0x7c] sm:$0xf]  ;;  %v1018_v56 = vld [vmem:[#allocation2 + $0x80] sm:$0x1] }
  0xfa   : > { %v3107_v44 = vld [vmem:[#allocation2 + $0x88] sm:$0xf]  ;;  %v3344_v26 = vshrl.u32 %v3106_v1, 16  ;;  %v3336_v4 = vor.u32 %v3335_v2, %v3331_v60  ;;  %v3347_v49 = vshll.u32 %v3106_v1, 16  ;;  %v1802_v22 = vpop.permute.xlu0 %1801  ;;  %v4032_v43 = vsel %vm4030_vm8, %v5791_v6, 0  ;;  %v1480_v12 = vpop.permute.xlu1 %1479 }
  0xfb   : > { %v2322_v61 = vsel %vm5248_vm10, %v2317_v53, %v2321_v14  ;;  %v3353_v5 = vshll.u32 %v3107_v44, 16  ;;  %v3357_v0 = vshrl.u32 %v3107_v44, 16  ;;  %v3327_v9 = vrot.slane %v3326_v11, 4  ;;  %1846 = vst.msk [vmem:[#allocation3 + $0x20] sm:$0xff] %vm1841_vm1, %v1802_v22  ;;  %5011 = vmatpush3.bf16.msra.mxu0 %v4032_v43  ;;  %v3945_v14 = vld [vmem:[#allocation3] sm:$0xff]  ;;  %5049 = vmatpush3.bf16.msra.mxu1 %v4032_v43  ;;  %v3947_v35 = vld [vmem:[#allocation3 + $0x10] sm:$0xff] }
  0xfc   : > { %v4765_v33 = vcombine.low %v2312_v52, %v2322_v61  ;;  %v3346_v10 = vrot.slane %v3344_v26, 4  ;;  %v4844_v63 = vrot.slane %v3648_v8, 9  ;;  %v3337_v55 = vrot.slane %v3336_v4, 4  ;;  %1523 = vst.msk [vmem:[#allocation3 + $0x28] sm:$0xff] %vm1517_vm15, %v1480_v12  ;;  %v1016_v6 = vld [vmem:[#allocation2 + $0x78] sm:$0xf] }
  0xfd   : > { %v3108_v58 = vld [vmem:[#allocation2 + $0x8c] sm:$0x1]  ;;  %v3349_v37 = vrot.slane %v3347_v49, 5  ;;  %v3355_v15 = vrot.slane %v3353_v5, 5  ;;  %v3359_v17 = vrot.slane %v3357_v0, 4  ;;  %v3332_v38 = vsel %vm5248_vm10, %v3327_v9, %v3331_v60  ;;  %v5094_v45 = vld [vmem:[#allocation2 + $0x84] sm:$0xff]  }
  0xfe   : > { %2533 = vrot.lane.b32.xlu1 %v4765_v33, %s5135_s27  ;;  %v3363_v18 = vshll.u32 %v3108_v58, 16  ;;  %v3778_v20 = vrot.slane %v3649_v16, 5  ;;  %v3781_v21 = vrot.slane %v3650_v3, 5  ;;  %v3342_v32 = vsel %vm5248_vm10, %v3337_v55, %v3341_v59  ;;  %v1979_v40 = vpop.permute.xlu0 %1978  ;;  %v3651_v52 = vld [vmem:[#allocation2 + $0x84] sm:$0xe]  ;;  %v1804_v53 = vpop.permute.xlu1 %1803 }
  0xff   : > { %v3350_v27 = vor.u32 %v3349_v37, %v3346_v10  ;;  %v3360_v34 = vor.u32 %v3359_v17, %v3355_v15  ;;  %vm3981_vm8 = vcmask 293888   ;;  %v4828_v41 = vcombine.low %v3332_v38, %v3342_v32  ;;  %2023 = vst.msk [vmem:[#allocation3 + $0x20] sm:$0xff] %vm2018_vm2, %v1979_v40  ;;  %v3652_v60 = vld [vmem:[#allocation2 + $0x88] sm:$0xf]  ;;  %v3653_v2 = vld [vmem:[#allocation2 + $0x8c] sm:$0x1] }
 0x100   : > { %v3365_v46 = vrot.slane %v3363_v18, 5  ;;  %v3779_v50 = vsel %vm5241_vm9, %v4844_v63, %v3778_v20  ;;  %v3780_v51 = vrot.slane %v3778_v20, 4  ;;  %5012 = vmatprep.mubr.msk.bf16.mxu0 %vm3981_vm8, %v3945_v14  ;;  %v1278_v54 = vshrl.u32 %v1016_v6, 16  ;;  %1847 = vst.msk [vmem:[#allocation3 + $0x28] sm:$0xff] %vm1841_vm1, %v1804_v53  ;;  %v1019_v59 = vld [vmem:[#allocation2 + $0x84] sm:$0xf] }
 0x101   : > { %v3351_v39 = vrot.slane %v3350_v27, 4  ;;  %v3361_v47 = vrot.slane %v3360_v34, 4  ;;  %v1281_v57 = vshll.u32 %v1016_v6, 16  ;;  %5013 = vmatmul.mubr.msk.bf16.vlgmr.msra.gmra.mrb[0].mxu0 %vm3981_vm8, %v3946_v24  ;;  %3575 = vrot.lane.b32.xlu0 %v4828_v41, %s5136_s28  ;;  %v1287_v19 = vshll.u32 %v1017_v28, 16  ;;  %v1020_v44 = vld [vmem:[#allocation2 + $0x88] sm:$0xf] }
 0x102   : > { %2854 = vrot.lane.b32.xlu1 %v4797_v62, %s5133_s25  ;;  %v3782_v8 = vsel %vm5241_vm9, %v3780_v51, %v3781_v21  ;;  %v1291_v61 = vshrl.u32 %v1017_v28, 16  ;;  %v1297_v62 = vshll.u32 %v1018_v56, 16  ;;  %5016 = vmatprep.mubr.msk.bf16.mxu0 %vm3981_vm8, %v3947_v35  ;;  %v1280_v11 = vrot.slane %v1278_v54, 4  ;;  %v5110_v26 = vld [vmem:[#allocation2 + $0x60] sm:$0xff]   ;;  %v1021_v63 = vld [vmem:[#allocation2 + $0x8c] sm:$0x1] }
 0x103   : > { %v3356_v1 = vsel %vm5248_vm10, %v3351_v39, %v3355_v15  ;;  %v3366_v16 = vsel %vm5248_vm10, %v3361_v47, %v3365_v46  ;;  %v4860_v33 = vcombine.low %v3779_v50, %v3782_v8  ;;  %v1283_v49 = vrot.slane %v1281_v57, 5  ;;  %978 = vst.msk [vmem:[#allocation3 + $0x40] sm:$0xff] %vm969_vm14, %v5110_v26  ;;  %v1564_v37 = vld [vmem:[#allocation2 + $0x78] sm:$0xe]  ;;  %v3948_v15 = vld [vmem:[#allocation3 + $0x18] sm:$0xff] }
 0x104   : > { %v4829_v4 = vcombine.low %v3356_v1, %v3366_v16  ;;  %v1289_v5 = vrot.slane %v1287_v19, 5  ;;  %v1293_v0 = vrot.slane %v1291_v61, 4  ;;  %v1299_v3 = vrot.slane %v1297_v62, 5  ;;  %v1565_v20 = vld [vmem:[#allocation2 + $0x7c] sm:$0xf]  ;;  %v5111_v6 = vld [vmem:[#allocation2 + $0x6c] sm:$0xff]  }
 0x105   : > { %v4845_v22 = vrot.slane %v3651_v52, 9  ;;  %v3785_v9 = vrot.slane %v3652_v60, 5  ;;  %v3788_v58 = vrot.slane %v3653_v2, 5  ;;  %3896 = vrot.lane.b32.xlu0 %v4860_v33, %s5134_s26  ;;  %v1284_v10 = vor.u32 %v1283_v49, %v1280_v11  ;;  %v1566_v56 = vld [vmem:[#allocation2 + $0x80] sm:$0x1]  ;;  %979 = vst.msk [vmem:[#allocation3 + $0x48] sm:$0xff] %vm969_vm14, %v5111_v6 }
 0x106   : > { %3032 = vrot.lane.b32.xlu1 %v5094_v45, %s5132_s24  ;;  %v1294_v43 = vor.u32 %v1293_v0, %v1289_v5  ;;  %v1302_v12 = vshrl.u32 %v1019_v59, 16  ;;  %v1305_v55 = vshll.u32 %v1019_v59, 16  ;;  %v1311_v38 = vshll.u32 %v1020_v44, 16  ;;  %v2524_v21 = vpop.permute.xlu0 %2523  ;;  %v1567_v46 = vld [vmem:[#allocation2 + $0x84] sm:$0xe] }
 0x107   : > { %v3786_v17 = vsel %vm5241_vm9, %v4845_v22, %v3785_v9  ;;  %v3787_v14 = vrot.slane %v3785_v9, 4  ;;  %v1315_v18 = vshrl.u32 %v1020_v44, 16  ;;  %v1285_v32 = vrot.slane %v1284_v10, 4  ;;  %2568 = vst.msk [vmem:[#allocation3 + $0x20] sm:$0xff] %vm2563_vm3, %v2524_v21  ;;  %v1981_v50 = vpop.permute.xlu1 %1980  ;;  %v1568_v39 = vld [vmem:[#allocation2 + $0x88] sm:$0xf] }
 0x108   : > { %v1295_v27 = vrot.slane %v1294_v43, 4  ;;  %v1304_v34 = vrot.slane %v1302_v12, 4  ;;  %v1307_v28 = vrot.slane %v1305_v55, 5  ;;  %v1313_v40 = vrot.slane %v1311_v38, 5  ;;  %v1569_v47 = vld [vmem:[#allocation2 + $0x8c] sm:$0x1] }
 0x109   : > { %v3789_v35 = vsel %vm5241_vm9, %v3787_v14, %v3788_v58  ;;  %v1317_v45 = vrot.slane %v1315_v18, 4  ;;  %v1321_v41 = vshll.u32 %v1021_v63, 16  ;;  %5017 = vmatmul.mubr.msk.bf16.gmra.mrb[4].mxu0 %vm3981_vm8, %v3948_v15  ;;  %v1290_v51 = vsel %vm5248_vm10, %v1285_v32, %v1289_v5  ;;  %2024 = vst.msk [vmem:[#allocation3 + $0x28] sm:$0xff] %vm2018_vm2, %v1981_v50  ;;  %v2065_v44 = vld [vmem:[#allocation2 + $0x84] sm:$0xf] }
 0x10a   : > { %3577 = vrot.lane.b32.xlu1 %v4829_v4, %s5136_s28  ;;  %v1300_v24 = vsel %vm5248_vm10, %v1295_v27, %v1299_v3  ;;  %v4861_v52 = vcombine.low %v3786_v17, %v3789_v35  ;;  %v1308_v53 = vor.u32 %v1307_v28, %v1304_v34  ;;  %v4718_v8 = vrot.slane %v1564_v37, 9  ;;  %v2845_v19 = vpop.permute.xlu0 %2844  ;;  %v806_v0 = vld [vmem:[#allocation2 + $0x90] sm:$0xf]  ;;  %v2066_v3 = vld [vmem:[#allocation2 + $0x88] sm:$0xf] }
 0x10b   : > { %v4702_v54 = vcombine.low %v1290_v51, %v1300_v24  ;;  %v1318_v57 = vor.u32 %v1317_v45, %v1313_v40  ;;  %v1323_v60 = vrot.slane %v1321_v41, 5  ;;  %v1705_v62 = vrot.slane %v1565_v20, 5  ;;  %2889 = vst.msk [vmem:[#allocation3 + $0x20] sm:$0xff] %vm2884_vm4, %v2845_v19  ;;  %v2067_v22 = vld [vmem:[#allocation2 + $0x8c] sm:$0x1]  ;;  %v5114_v41 = vld [vmem:[#allocation2 + $0x78] sm:$0xff]  }
 0x10c   : > { %3898 = vrot.lane.b32.xlu0 %v4861_v52, %s5134_s26  ;;  %v1309_v61 = vrot.slane %v1308_v53, 4  ;;  %v1708_v2 = vrot.slane %v1566_v56, 5  ;;  %v4719_v1 = vrot.slane %v1567_v46, 9  ;;  %v1712_v33 = vrot.slane %v1568_v39, 5  ;;  %v810_v18 = vld [vmem:[#allocation2 + $0x98] sm:$0x1] }
 0x10d   : > { %v1319_v16 = vrot.slane %v1318_v57, 4  ;;  %v1715_v11 = vrot.slane %v1569_v47, 5  ;;  %v591_v59 = vshrl.u32 %v5814_v7, 16  ;;  %v1706_v4 = vsel %vm5241_vm9, %v4718_v8, %v1705_v62  ;;  %v2610_v20 = vld [vmem:[#allocation2 + $0x84] sm:$0xe]  ;;  %980 = vst.msk [vmem:[#allocation3 + $0x50] sm:$0xff] %vm969_vm14, %v5114_v41 }
 0x10e   : > { %1489 = vrot.lane.b32.xlu1 %v4702_v54, %s5130_s22  ;;  %v1314_v26 = vsel %vm5248_vm10, %v1309_v61, %v1313_v40  ;;  %v1707_v49 = vrot.slane %v1705_v62, 4  ;;  %v594_v5 = vshll.u32 %v5814_v7, 16  ;;  %v1713_v58 = vsel %vm5241_vm9, %v4719_v1, %v1712_v33  ;;  %v3023_v63 = vpop.permute.xlu0 %3022  ;;  %v2611_v34 = vld [vmem:[#allocation2 + $0x88] sm:$0xf]  ;;  %v2612_v53 = vld [vmem:[#allocation2 + $0x8c] sm:$0x1] }
 0x10f   : > { %v1324_v9 = vsel %vm5248_vm10, %v1319_v16, %v1323_v60  ;;  %v1714_v10 = vrot.slane %v1712_v33, 4  ;;  %v593_v43 = vrot.slane %v591_v59, 7  ;;  %v599_v37 = vshrl.u32 %v5824_v13, 16  ;;  %3067 = vst.msk [vmem:[#allocation3 + $0x20] sm:$0xff] %vm3062_vm5, %v3023_v63  ;;  %v5115_v46 = vld [vmem:[#allocation2 + $0x84] sm:$0xff]  }
 0x110   : > { %v4703_v12 = vcombine.low %v1314_v26, %v1324_v9  ;;  %v1709_v55 = vsel %vm5241_vm9, %v1707_v49, %v1708_v2  ;;  %v602_v7 = vshll.u32 %v5824_v13, 16  ;;  %v2324_v32 = vshrl.u32 %v2065_v44, 16  ;;  %v5096_v13 = vld [vmem:[#allocation2 + $0x84] sm:$0xff]   ;;  %981 = vst.msk [vmem:[#allocation3 + $0x58] sm:$0xff] %vm969_vm14, %v5115_v46 }
 0x111   : > { %v4734_v15 = vcombine.low %v1706_v4, %v1709_v55  ;;  %v1716_v17 = vsel %vm5241_vm9, %v1714_v10, %v1715_v11  ;;  %v596_v14 = vor.u32 %v594_v5, %v593_v43  ;;  %v597_v38 = vrot.slane %v593_v43, 4 }
 0x112   : > { %1491 = vrot.lane.b32.xlu1 %v4703_v12, %s5130_s22  ;;  %v4735_v21 = vcombine.low %v1713_v58, %v1716_v17  ;;  %v601_v6 = vrot.slane %v599_v37, 7  ;;  %v2327_v27 = vshll.u32 %v2065_v44, 16  ;;  %v2333_v56 = vshll.u32 %v2066_v3, 16  ;;  %v2526_v45 = vpop.permute.xlu1 %2525  ;;  %v817_v12 = vld [vmem:[#allocation2 + $0xa4] sm:$0x1] }
 0x113   : > { %1813 = vrot.lane.b32.xlu0 %v4734_v15, %s5129_s21  ;;  %v807_v28 = vsel %vm5262_vm12, %v596_v14, %v806_v0  ;;  %v2337_v35 = vshrl.u32 %v2066_v3, 16  ;;  %v2343_v40 = vshll.u32 %v2067_v22, 16  ;;  %v2326_v24 = vrot.slane %v2324_v32, 4  ;;  %2569 = vst.msk [vmem:[#allocation3 + $0x28] sm:$0xff] %vm2563_vm3, %v2526_v45  ;;  %v813_v22 = vld [vmem:[#allocation2 + $0x9c] sm:$0xf] }
 0x114   : > { %v604_v50 = vor.u32 %v602_v7, %v601_v6  ;;  %v606_v51 = vrot.slane %v601_v6, 4  ;;  %808 = vst [vmem:[#allocation2 + $0x90] sm:$0xf] %v807_v28  ;;  %v2329_v52 = vrot.slane %v2327_v27, 5  ;;  %v2335_v39 = vrot.slane %v2333_v56, 5  ;;  %v299_v32 = vld [vmem:[%s5234_s20 + $0xd8] sm:$0xff] }
 0x115   : > { %v2339_v47 = vrot.slane %v2337_v35, 4  ;;  %v2345_v54 = vrot.slane %v2343_v40, 5  ;;  %v4782_v57 = vrot.slane %v2610_v20, 9  ;;  %v2748_v61 = vrot.slane %v2611_v34, 5 }
 0x116   : > { %1815 = vrot.lane.b32.xlu1 %v4735_v21, %s5129_s21  ;;  %v605_v60 = vsel %vm5256_vm11, %v597_v38, %v604_v50  ;;  %v2330_v8 = vor.u32 %v2329_v52, %v2326_v24  ;;  %v811_v19 = vsel %vm5270_vm13, %v606_v51, %v810_v18  ;;  %v2751_v2 = vrot.slane %v2612_v53, 5  ;;  %v2847_v33 = vpop.permute.xlu1 %2846  ;;  %v300_v50 = vld [vmem:[%s5234_s20 + $0xe0] sm:$0xff] }
 0x117   : > { %1990 = vrot.lane.b32.xlu0 %v5096_v13, %s5131_s23  ;;  %809 = vst.msk [vmem:[#allocation2 + $0x94] sm:$0xf] %vm216_vm0, %v605_v60  ;;  %v2340_v62 = vor.u32 %v2339_v47, %v2335_v39  ;;  %812 = vst [vmem:[#allocation2 + $0x98] sm:$0x1] %v811_v19  ;;  %v608_v1 = vshrl.u32 %v5829_v25, 16  ;;  %v611_v16 = vshll.u32 %v5829_v25, 16  ;;  %v3568_v26 = vpop.permute.xlu0 %3567  ;;  %v2749_v10 = vsel %vm5241_vm9, %v4782_v57, %v2748_v61 }
 0x118   : > { %v2331_v11 = vrot.slane %v2330_v8, 4  ;;  %v2750_v59 = vrot.slane %v2748_v61, 4  ;;  %v616_v44 = vshrl.u32 %v5844_v31, 16  ;;  %2890 = vst.msk [vmem:[#allocation3 + $0x28] sm:$0xff] %vm2884_vm4, %v2847_v33  ;;  %v619_v5 = vshll.u32 %v5844_v31, 16 }
 0x119   : > { %v2341_v4 = vrot.slane %v2340_v62, 4  ;;  %v610_v49 = vrot.slane %v608_v1, 7  ;;  %3612 = vst.msk [vmem:[#allocation3 + $0x20] sm:$0xff] %vm3607_vm6, %v3568_v26  ;;  %v625_v25 = vshrl.u32 %v5851_v30, 16  ;;  %v5957_v1 = vpack.c.bf16 %v299_v32, %v299_v32 }
 0x11a   : > { %v2336_v0 = vsel %vm5248_vm10, %v2331_v11, %v2335_v39  ;;  %v618_v3 = vrot.slane %v616_v44, 7  ;;  %v2752_v43 = vsel %vm5241_vm9, %v2750_v59, %v2751_v2  ;;  %v3025_v55 = vpop.permute.xlu1 %3024 }
 0x11b   : > { %v2346_v9 = vsel %vm5248_vm10, %v2341_v4, %v2345_v54  ;;  %v2068_v58 = vld [vmem:[#allocation2 + $0x90] sm:$0xf]  ;;  %v613_v63 = vor.u32 %v611_v16, %v610_v49  ;;  %3068 = vst.msk [vmem:[#allocation3 + $0x28] sm:$0xff] %vm3062_vm5, %v3025_v55  ;;  %v3889_v14 = vpop.permute.xlu0 %3888  ;;  %v614_v38 = vrot.slane %v610_v49, 4  ;;  %v4798_v28 = vcombine.low %v2749_v10, %v2752_v43  ;;  %v301_v49 = vld [vmem:[%s5234_s20 + $0xe8] sm:$0xff] }
 0x11c   : > { %v2613_v31 = vld [vmem:[#allocation2 + $0x90] sm:$0xe]  ;;  %v4766_v37 = vcombine.low %v2336_v0, %v2346_v9  ;;  %v2348_v7 = vshrl.u32 %v2068_v58, 16  ;;  %v2351_v15 = vshll.u32 %v2068_v58, 16  ;;  %v621_v18 = vor.u32 %v619_v5, %v618_v3  ;;  %3933 = vst.msk [vmem:[#allocation3 + $0x20] sm:$0xff] %vm3928_vm7, %v3889_v14 }
 0x11d   : > { %v4783_v17 = vrot.slane %v2613_v31, 9  ;;  %v623_v20 = vrot.slane %v618_v3, 4  ;;  %v814_v21 = vsel %vm5262_vm12, %v613_v63, %v813_v22  ;;  %v3109_v6 = vld [vmem:[#allocation2 + $0x90] sm:$0xf]  ;;  %v5959_v16 = vpack.c.bf16 %v300_v50, %v300_v50 }
 0x11e   : > { %v5097_v27 = vld [vmem:[#allocation2 + $0x90] sm:$0xff]   ;;  %2535 = vrot.lane.b32.xlu0 %v4766_v37, %s5135_s27  ;;  %v2350_v13 = vrot.slane %v2348_v7, 4  ;;  %815 = vst [vmem:[#allocation2 + $0x9c] sm:$0xf] %v814_v21  ;;  %v2070_v56 = vld [vmem:[#allocation2 + $0x98] sm:$0x1]  ;;  %v622_v41 = vsel %vm5256_vm11, %v614_v38, %v621_v18  ;;  %v3570_v46 = vpop.permute.xlu1 %3569  ;;  %v5973_v7 = vpack.c.bf16 %v301_v49, %v301_v49 }
 0x11f   : > { %v2069_v34 = vld [vmem:[#allocation2 + $0x94] sm:$0xf]  ;;  %v2353_v35 = vrot.slane %v2351_v15, 5  ;;  %1992 = vrot.lane.b32.xlu1 %v5097_v27, %s5131_s23  ;;  %v2367_v51 = vshll.u32 %v2070_v56, 16  ;;  %v2615_v52 = vld [vmem:[#allocation2 + $0x98] sm:$0x1]  ;;  %v818_v39 = vsel %vm5270_vm13, %v623_v20, %v817_v12 }
 0x120   : > { %v2357_v40 = vshll.u32 %v2069_v34, 16  ;;  %v2361_v45 = vshrl.u32 %v2069_v34, 16  ;;  %v2614_v24 = vld [vmem:[#allocation2 + $0x94] sm:$0xf]  ;;  %816 = vst.msk [vmem:[#allocation2 + $0xa0] sm:$0xf] %vm216_vm0, %v622_v41 }
 0x121   : > { %v3368_v53 = vshrl.u32 %v3109_v6, 16  ;;  %3613 = vst.msk [vmem:[#allocation3 + $0x28] sm:$0xff] %vm3607_vm6, %v3570_v46  ;;  %v2354_v47 = vor.u32 %v2353_v35, %v2350_v13  ;;  %v2755_v60 = vrot.slane %v2614_v24, 5  ;;  %v5100_v8 = vld [vmem:[#allocation2 + $0x90] sm:$0xff]   ;;  %819 = vst [vmem:[#allocation2 + $0xa4] sm:$0x1] %v818_v39  ;;  %v3891_v4 = vpop.permute.xlu0 %3890 }
 0x122   : > { %v2359_v54 = vrot.slane %v2357_v40, 5  ;;  %v2363_v57 = vrot.slane %v2361_v45, 4  ;;  %v2369_v19 = vrot.slane %v2367_v51, 5  ;;  %2856 = vrot.lane.b32.xlu0 %v4798_v28, %s5133_s25  ;;  %v2758_v61 = vrot.slane %v2615_v52, 5  ;;  %v3110_v62 = vld [vmem:[#allocation2 + $0x94] sm:$0xf]  ;;  %v1482_v26 = vpop.permute.xlu1 %1481 }
 0x123   : > { %v3111_v2 = vld [vmem:[#allocation2 + $0x98] sm:$0x1]  ;;  %v2355_v33 = vrot.slane %v2354_v47, 4  ;;  %v5963_v59 = vsel %vm5241_vm9, %v4783_v17, %v2755_v60  ;;  %v2757_v44 = vrot.slane %v2755_v60, 4  ;;  %v3370_v5 = vrot.slane %v3368_v53, 4  ;;  %1524 = vst.msk [vmem:[#allocation3 + $0x30] sm:$0xff] %vm1517_vm15, %v1482_v26 }
 0x124   : > { %v2364_v11 = vor.u32 %v2363_v57, %v2359_v54  ;;  %v3371_v0 = vshll.u32 %v3109_v6, 16  ;;  %v3377_v3 = vshll.u32 %v3110_v62, 16  ;;  %v3381_v22 = vshrl.u32 %v3110_v62, 16  ;;  %3934 = vst.msk [vmem:[#allocation3 + $0x28] sm:$0xff] %vm3928_vm7, %v3891_v4  ;;  %v3654_v37 = vld [vmem:[#allocation2 + $0x90] sm:$0xe] }
 0x125   : > { %v2360_v9 = vsel %vm5248_vm10, %v2355_v33, %v2359_v54  ;;  %v2759_v10 = vsel %vm5241_vm9, %v2757_v44, %v2758_v61  ;;  %v3387_v43 = vshll.u32 %v3111_v2, 16  ;;  %v3112_v31 = vld [vmem:[#allocation2 + $0x9c] sm:$0xf]  ;;  %v628_v20 = vshll.u32 %v5851_v30, 16  ;;  %v3655_v13 = vld [vmem:[#allocation2 + $0x94] sm:$0xf] }
 0x126   : > { %v2365_v58 = vrot.slane %v2364_v11, 4  ;;  %3034 = vrot.lane.b32.xlu0 %v5100_v8, %s5132_s24  ;;  %v3373_v63 = vrot.slane %v3371_v0, 5  ;;  %v3379_v12 = vrot.slane %v3377_v3, 5  ;;  %v3383_v55 = vrot.slane %v3381_v22, 4  ;;  %v3949_v15 = vld [vmem:[#allocation3 + $0x20] sm:$0xff] }
 0x127   : > { %v4799_v14 = vcombine.low %v5963_v59, %v2759_v10  ;;  %v3389_v38 = vrot.slane %v3387_v43, 5  ;;  %v3113_v18 = vld [vmem:[#allocation2 + $0xa0] sm:$0xf]  ;;  %5020 = vmatprep.mubr.msk.bf16.mxu0 %vm3981_vm8, %v3949_v15  ;;  %v3392_v34 = vshrl.u32 %v3112_v31, 16  ;;  %v1484_v28 = vpop.permute.xlu1 %1483  ;;  %v3395_v56 = vshll.u32 %v3112_v31, 16  ;;  %v1806_v46 = vpop.permute.xlu0 %1805  ;;  %v5116_v43 = vld [vmem:[#allocation2 + $0x90] sm:$0xff]  }
 0x128   : > { %v2370_v17 = vsel %vm5248_vm10, %v2365_v58, %v2369_v19  ;;  %v3374_v6 = vor.u32 %v3373_v63, %v3370_v5  ;;  %v3384_v32 = vor.u32 %v3383_v55, %v3379_v12  ;;  %v3114_v27 = vld [vmem:[#allocation2 + $0xa4] sm:$0x1]  ;;  %v3401_v35 = vshll.u32 %v3113_v18, 16  ;;  %v3656_v41 = vld [vmem:[#allocation2 + $0x98] sm:$0x1]  ;;  %1525 = vst.msk [vmem:[#allocation3 + $0x38] sm:$0xff] %vm1517_vm15, %v1484_v28 }
 0x129   : > { %v4767_v21 = vcombine.low %v2360_v9, %v2370_v17  ;;  %v3405_v40 = vshrl.u32 %v3113_v18, 16  ;;  %v3411_v45 = vshll.u32 %v3114_v27, 16  ;;  %v3394_v24 = vrot.slane %v3392_v34, 4  ;;  %v1022_v53 = vld [vmem:[#allocation2 + $0x90] sm:$0xf]  ;;  %1848 = vst.msk [vmem:[#allocation3 + $0x30] sm:$0xff] %vm1841_vm1, %v1806_v46 }
 0x12a   : > { %v3375_v50 = vrot.slane %v3374_v6, 4  ;;  %v3385_v51 = vrot.slane %v3384_v32, 4  ;;  %v4846_v52 = vrot.slane %v3654_v37, 9  ;;  %v3397_v39 = vrot.slane %v3395_v56, 5  ;;  %v1023_v60 = vld [vmem:[#allocation2 + $0x94] sm:$0xf] }
 0x12b   : > { %2537 = vrot.lane.b32.xlu1 %v4767_v21, %s5135_s27  ;;  %v3403_v47 = vrot.slane %v3401_v35, 5  ;;  %v3407_v54 = vrot.slane %v3405_v40, 4  ;;  %v3413_v57 = vrot.slane %v3411_v45, 5  ;;  %v5101_v8 = vld [vmem:[#allocation2 + $0x9c] sm:$0xff]   ;;  %v3792_v62 = vrot.slane %v3655_v13, 5  ;;  %v1808_v33 = vpop.permute.xlu1 %1807  ;;  %v1983_v5 = vpop.permute.xlu0 %1982  ;;  %982 = vst.msk [vmem:[#allocation3 + $0x60] sm:$0xff] %vm969_vm14, %v5116_v43 }
 0x12c   : > { %v3380_v19 = vsel %vm5248_vm10, %v3375_v50, %v3379_v12  ;;  %v3390_v61 = vsel %vm5248_vm10, %v3385_v51, %v3389_v38  ;;  %v3795_v2 = vrot.slane %v3656_v41, 5  ;;  %v3398_v59 = vor.u32 %v3397_v39, %v3394_v24  ;;  %v1024_v26 = vld [vmem:[#allocation2 + $0x98] sm:$0x1]  ;;  %v3657_v49 = vld [vmem:[#allocation2 + $0x9c] sm:$0xe]  ;;  %1849 = vst.msk [vmem:[#allocation3 + $0x38] sm:$0xff] %vm1841_vm1, %v1808_v33 }
 0x12d   : > { %v4830_v11 = vcombine.low %v3380_v19, %v3390_v61  ;;  %v3408_v44 = vor.u32 %v3407_v54, %v3403_v47  ;;  %v1326_v4 = vshrl.u32 %v1022_v53, 16  ;;  %v3950_v0 = vld [vmem:[#allocation3 + $0x28] sm:$0xff]  ;;  %v3793_v3 = vsel %vm5241_vm9, %v4846_v52, %v3792_v62  ;;  %2025 = vst.msk [vmem:[#allocation3 + $0x30] sm:$0xff] %vm2018_vm2, %v1983_v5  ;;  %v1025_v18 = vld [vmem:[#allocation2 + $0x9c] sm:$0xf] }
 0x12e   : > { %v3794_v22 = vrot.slane %v3792_v62, 4  ;;  %v1329_v9 = vshll.u32 %v1022_v53, 16  ;;  %v1335_v58 = vshll.u32 %v1023_v60, 16  ;;  %v3658_v10 = vld [vmem:[#allocation2 + $0xa0] sm:$0xf]  ;;  %5021 = vmatmul.mubr.msk.bf16.gmra.mrb[8].mxu0 %vm3981_vm8, %v3950_v0  ;;  %v3399_v31 = vrot.slane %v3398_v59, 4 }
 0x12f   : > { %2858 = vrot.lane.b32.xlu1 %v4799_v14, %s5133_s25  ;;  %3579 = vrot.lane.b32.xlu0 %v4830_v11, %s5136_s28  ;;  %v3409_v63 = vrot.slane %v3408_v44, 4  ;;  %v1328_v12 = vrot.slane %v1326_v4, 4  ;;  %v1339_v55 = vshrl.u32 %v1023_v60, 16  ;;  %v3659_v37 = vld [vmem:[#allocation2 + $0xa4] sm:$0x1]  ;;  %v1345_v38 = vshll.u32 %v1024_v26, 16 }
 0x130   : > { %v3796_v15 = vsel %vm5241_vm9, %v3794_v22, %v3795_v2  ;;  %v1331_v17 = vrot.slane %v1329_v9, 5  ;;  %v1337_v14 = vrot.slane %v1335_v58, 5  ;;  %v5117_v21 = vld [vmem:[#allocation2 + $0x9c] sm:$0xff]   ;;  %v3404_v6 = vsel %vm5248_vm10, %v3399_v31, %v3403_v47  ;;  %v1027_v45 = vld [vmem:[#allocation2 + $0xa4] sm:$0x1] }
 0x131   : > { %v3414_v32 = vsel %vm5248_vm10, %v3409_v63, %v3413_v57  ;;  %v4862_v27 = vcombine.low %v3793_v3, %v3796_v15  ;;  %v1341_v34 = vrot.slane %v1339_v55, 4  ;;  %v1026_v13 = vld [vmem:[#allocation2 + $0xa0] sm:$0xf]  ;;  %v1347_v35 = vrot.slane %v1345_v38, 5  ;;  %983 = vst.msk [vmem:[#allocation3 + $0x68] sm:$0xff] %vm969_vm14, %v5117_v21 }
 0x132   : > { %v4831_v28 = vcombine.low %v3404_v6, %v3414_v32  ;;  %v1332_v56 = vor.u32 %v1331_v17, %v1328_v12  ;;  %v4847_v40 = vrot.slane %v3657_v49, 9  ;;  %v3799_v46 = vrot.slane %v3658_v10, 5  ;;  %v1570_v24 = vld [vmem:[#allocation2 + $0x90] sm:$0xe]  ;;  %v1571_v54 = vld [vmem:[#allocation2 + $0x94] sm:$0xf]  ;;  %v2528_v57 = vpop.permute.xlu0 %2527 }
 0x133   : > { %3036 = vrot.lane.b32.xlu1 %v5101_v8, %s5132_s24  ;;  %3900 = vrot.lane.b32.xlu0 %v4862_v27, %s5134_s26  ;;  %v1342_v41 = vor.u32 %v1341_v34, %v1337_v14  ;;  %v3802_v50 = vrot.slane %v3659_v37, 5  ;;  %v1350_v51 = vshrl.u32 %v1025_v18, 16  ;;  %v1353_v53 = vshll.u32 %v1025_v18, 16  ;;  %v1572_v62 = vld [vmem:[#allocation2 + $0x98] sm:$0x1]  ;;  %v1985_v2 = vpop.permute.xlu1 %1984  ;;  %2570 = vst.msk [vmem:[#allocation3 + $0x30] sm:$0xff] %vm2563_vm3, %v2528_v57 }
 0x134   : > { %v1333_v52 = vrot.slane %v1332_v56, 4  ;;  %v1359_v39 = vshll.u32 %v1026_v13, 16  ;;  %v1363_v47 = vshrl.u32 %v1026_v13, 16  ;;  %v3800_v8 = vsel %vm5241_vm9, %v4847_v40, %v3799_v46  ;;  %v1573_v26 = vld [vmem:[#allocation2 + $0x9c] sm:$0xe]  ;;  %2026 = vst.msk [vmem:[#allocation3 + $0x38] sm:$0xff] %vm2018_vm2, %v1985_v2 }
 0x135   : > { %v1343_v60 = vrot.slane %v1342_v41, 4  ;;  %v3801_v19 = vrot.slane %v3799_v46, 4  ;;  %v1352_v61 = vrot.slane %v1350_v51, 4  ;;  %v1355_v11 = vrot.slane %v1353_v53, 5  ;;  %v1574_v3 = vld [vmem:[#allocation2 + $0xa0] sm:$0xf] }
 0x136   : > { %v1338_v33 = vsel %vm5248_vm10, %v1333_v52, %v1337_v14  ;;  %v1361_v59 = vrot.slane %v1359_v39, 5  ;;  %v1365_v44 = vrot.slane %v1363_v47, 4  ;;  %v1369_v5 = vshll.u32 %v1027_v45, 16  ;;  %v1575_v22 = vld [vmem:[#allocation2 + $0xa4] sm:$0x1]  ;;  %v2849_v31 = vpop.permute.xlu0 %2848 }
 0x137   : > { %3581 = vrot.lane.b32.xlu1 %v4831_v28, %s5136_s28  ;;  %v1348_v4 = vsel %vm5248_vm10, %v1343_v60, %v1347_v35  ;;  %v3803_v49 = vsel %vm5241_vm9, %v3801_v19, %v3802_v50  ;;  %v4720_v0 = vrot.slane %v1570_v24, 9  ;;  %v1356_v10 = vor.u32 %v1355_v11, %v1352_v61  ;;  %2891 = vst.msk [vmem:[#allocation3 + $0x30] sm:$0xff] %vm2884_vm4, %v2849_v31  ;;  %v820_v56 = vld [vmem:[#allocation2 + $0xa8] sm:$0xf]  ;;  %v2071_v35 = vld [vmem:[#allocation2 + $0x9c] sm:$0xf] }
 0x138   : > { %v4704_v9 = vcombine.low %v1338_v33, %v1348_v4  ;;  %v4863_v58 = vcombine.low %v3800_v8, %v3803_v49  ;;  %v1366_v43 = vor.u32 %v1365_v44, %v1361_v59  ;;  %v1371_v63 = vrot.slane %v1369_v5, 5  ;;  %v2072_v50 = vld [vmem:[#allocation2 + $0xa0] sm:$0xf]  ;;  %v2073_v39 = vld [vmem:[#allocation2 + $0xa4] sm:$0x1] }
 0x139   : > { %v1719_v12 = vrot.slane %v1571_v54, 5  ;;  %v1722_v55 = vrot.slane %v1572_v62, 5  ;;  %v4721_v37 = vrot.slane %v1573_v26, 9  ;;  %v1357_v15 = vrot.slane %v1356_v10, 4  ;;  %v824_v47 = vld [vmem:[#allocation2 + $0xb0] sm:$0x1] }
 0x13a   : > { %3902 = vrot.lane.b32.xlu0 %v4863_v58, %s5134_s26  ;;  %v1367_v17 = vrot.slane %v1366_v43, 4  ;;  %v1726_v14 = vrot.slane %v1574_v3, 5  ;;  %v1729_v38 = vrot.slane %v1575_v22, 5  ;;  %v627_v6 = vrot.slane %v625_v25, 7  ;;  %v3027_v40 = vpop.permute.xlu0 %3026  ;;  %v2616_v60 = vld [vmem:[#allocation2 + $0x9c] sm:$0xe] }
 0x13b   : > { %1493 = vrot.lane.b32.xlu1 %v4704_v9, %s5130_s22  ;;  %v1720_v18 = vsel %vm5241_vm9, %v4720_v0, %v1719_v12  ;;  %v1721_v21 = vrot.slane %v1719_v12, 4  ;;  %v633_v32 = vshrl.u32 %v5957_v1, 16  ;;  %v1362_v27 = vsel %vm5248_vm10, %v1357_v15, %v1361_v59  ;;  %3069 = vst.msk [vmem:[#allocation3 + $0x30] sm:$0xff] %vm3062_vm5, %v3027_v40  ;;  %v2617_v8 = vld [vmem:[#allocation2 + $0xa0] sm:$0xf] }
 0x13c   : > { %v1372_v34 = vsel %vm5248_vm10, %v1367_v17, %v1371_v63  ;;  %v1727_v13 = vsel %vm5241_vm9, %v4721_v37, %v1726_v14  ;;  %v1728_v28 = vrot.slane %v1726_v14, 4  ;;  %v630_v25 = vor.u32 %v628_v20, %v627_v6  ;;  %v5102_v61 = vld [vmem:[#allocation2 + $0x9c] sm:$0xff]   ;;  %v2618_v11 = vld [vmem:[#allocation2 + $0xa4] sm:$0x1] }
 0x13d   : > { %v4705_v45 = vcombine.low %v1362_v27, %v1372_v34  ;;  %v1723_v41 = vsel %vm5241_vm9, %v1721_v21, %v1722_v55  ;;  %v631_v46 = vrot.slane %v627_v6, 4  ;;  %v635_v52 = vrot.slane %v633_v32, 7 }
 0x13e   : > { %v4736_v51 = vcombine.low %v1720_v18, %v1723_v41  ;;  %v1730_v24 = vsel %vm5241_vm9, %v1728_v28, %v1729_v38  ;;  %v636_v53 = vshll.u32 %v5957_v1, 16  ;;  %v821_v30 = vsel %vm5262_vm12, %v630_v25, %v820_v56 }
 0x13f   : > { %1495 = vrot.lane.b32.xlu1 %v4705_v45, %s5130_s22  ;;  %v4737_v54 = vcombine.low %v1727_v13, %v1730_v24  ;;  %v2372_v20 = vshrl.u32 %v2071_v35, 16  ;;  %v2375_v57 = vshll.u32 %v2071_v35, 16  ;;  %v2530_v19 = vpop.permute.xlu1 %2529  ;;  %v640_v2 = vrot.slane %v635_v52, 4  ;;  %822 = vst [vmem:[#allocation2 + $0xa8] sm:$0xf] %v821_v30 }
 0x140   : > { %1817 = vrot.lane.b32.xlu0 %v4736_v51, %s5129_s21  ;;  %v638_v62 = vor.u32 %v636_v53, %v635_v52  ;;  %v2381_v1 = vshll.u32 %v2072_v50, 16  ;;  %v2385_v33 = vshrl.u32 %v2072_v50, 16  ;;  %2571 = vst.msk [vmem:[#allocation3 + $0x38] sm:$0xff] %vm2563_vm3, %v2530_v19  ;;  %v2391_v26 = vshll.u32 %v2073_v39, 16  ;;  %v827_v35 = vld [vmem:[#allocation2 + $0xb4] sm:$0xf] }
 0x141   : > { %v2374_v59 = vrot.slane %v2372_v20, 4  ;;  %v2377_v44 = vrot.slane %v2375_v57, 5  ;;  %v825_v0 = vsel %vm5270_vm13, %v640_v2, %v824_v47  ;;  %v4784_v22 = vrot.slane %v2616_v60, 9 }
 0x142   : > { %v639_v4 = vsel %vm5256_vm11, %v631_v46, %v638_v62  ;;  %v2383_v49 = vrot.slane %v2381_v1, 5  ;;  %v2387_v5 = vrot.slane %v2385_v33, 4  ;;  %826 = vst [vmem:[#allocation2 + $0xb0] sm:$0x1] %v825_v0  ;;  %v2762_v9 = vrot.slane %v2617_v8, 5  ;;  %v302_v8 = vld [vmem:[%s5234_s20 + $0xf0] sm:$0xff] }
 0x143   : > { %1819 = vrot.lane.b32.xlu1 %v4737_v54, %s5129_s21  ;;  %823 = vst.msk [vmem:[#allocation2 + $0xac] sm:$0xf] %vm216_vm0, %v639_v4  ;;  %v2378_v3 = vor.u32 %v2377_v44, %v2374_v59  ;;  %v2765_v58 = vrot.slane %v2618_v11, 5  ;;  %v2851_v10 = vpop.permute.xlu1 %2850  ;;  %v2393_v31 = vrot.slane %v2391_v26, 5  ;;  %v642_v63 = vshrl.u32 %v5959_v16, 16 }
 0x144   : > { %1994 = vrot.lane.b32.xlu0 %v5102_v61, %s5131_s23  ;;  %v2388_v43 = vor.u32 %v2387_v5, %v2383_v49  ;;  %v650_v12 = vshrl.u32 %v5973_v7, 16  ;;  %2892 = vst.msk [vmem:[#allocation3 + $0x38] sm:$0xff] %vm2884_vm4, %v2851_v10  ;;  %v2764_v37 = vrot.slane %v2762_v9, 4  ;;  %v645_v15 = vshll.u32 %v5959_v16, 16  ;;  %v3572_v21 = vpop.permute.xlu0 %3571  ;;  %v831_v46 = vld [vmem:[#allocation2 + $0xbc] sm:$0x1] }
 0x145   : > { %v2379_v55 = vrot.slane %v2378_v3, 4  ;;  %v644_v14 = vrot.slane %v642_v63, 7  ;;  %v653_v18 = vshll.u32 %v5973_v7, 16  ;;  %v2763_v27 = vsel %vm5241_vm9, %v4784_v22, %v2762_v9  ;;  %3614 = vst.msk [vmem:[#allocation3 + $0x30] sm:$0xff] %vm3607_vm6, %v3572_v21  ;;  %v303_v63 = vld [vmem:[%s5234_s20 + $0xf8] sm:$0xff]  ;;  %s214_s20 = scalar_lea.vmem %s6433_s4, %s6445_s16 }
 0x146   : > { %v2389_v17 = vrot.slane %v2388_v43, 4  ;;  %v652_v38 = vrot.slane %v650_v12, 7  ;;  %v2074_v32 = vld [vmem:[#allocation2 + $0xa8] sm:$0xf]  ;;  %v2766_v34 = vsel %vm5241_vm9, %v2764_v37, %v2765_v58  ;;  %v6075_v22 = vpack.c.bf16 %v302_v8, %v302_v8 }
 0x147   : > { %v2384_v6 = vsel %vm5248_vm10, %v2379_v55, %v2383_v49  ;;  %v2619_v13 = vld [vmem:[#allocation2 + $0xa8] sm:$0xe]  ;;  %v3029_v28 = vpop.permute.xlu1 %3028  ;;  %v2396_v56 = vshrl.u32 %v2074_v32, 16  ;;  %v2399_v7 = vshll.u32 %v2074_v32, 16  ;;  %v647_v41 = vor.u32 %v645_v15, %v644_v14 }
 0x148   : > { %v2394_v16 = vsel %vm5248_vm10, %v2389_v17, %v2393_v31  ;;  %3070 = vst.msk [vmem:[#allocation3 + $0x38] sm:$0xff] %vm3062_vm5, %v3029_v28  ;;  %v4785_v45 = vrot.slane %v2619_v13, 9  ;;  %v648_v25 = vrot.slane %v644_v14, 4  ;;  %v4800_v52 = vcombine.low %v2763_v27, %v2766_v34  ;;  %v3893_v39 = vpop.permute.xlu0 %3892  ;;  %v3115_v60 = vld [vmem:[#allocation2 + $0xa8] sm:$0xf] }
 0x149   : > { %v4768_v40 = vcombine.low %v2384_v6, %v2394_v16  ;;  %v2398_v24 = vrot.slane %v2396_v56, 4  ;;  %v655_v53 = vor.u32 %v653_v18, %v652_v38  ;;  %v2076_v47 = vld [vmem:[#allocation2 + $0xb0] sm:$0x1]  ;;  %v2401_v54 = vrot.slane %v2399_v7, 5  ;;  %3935 = vst.msk [vmem:[#allocation3 + $0x30] sm:$0xff] %vm3928_vm7, %v3893_v39 }
 0x14a   : > { %v5103_v50 = vld [vmem:[#allocation2 + $0xa8] sm:$0xff]   ;;  %v828_v57 = vsel %vm5262_vm12, %v647_v41, %v827_v35  ;;  %v2415_v19 = vshll.u32 %v2076_v47, 16  ;;  %v2621_v62 = vld [vmem:[#allocation2 + $0xb0] sm:$0x1]  ;;  %v657_v1 = vrot.slane %v652_v38, 4  ;;  %v3416_v55 = vshrl.u32 %v3115_v60, 16 }
 0x14b   : > { %v2075_v51 = vld [vmem:[#allocation2 + $0xac] sm:$0xf]  ;;  %2539 = vrot.lane.b32.xlu0 %v4768_v40, %s5135_s27  ;;  %1996 = vrot.lane.b32.xlu1 %v5103_v50, %s5131_s23  ;;  %v656_v2 = vsel %vm5256_vm11, %v648_v25, %v655_v53  ;;  %829 = vst [vmem:[#allocation2 + $0xb4] sm:$0xf] %v828_v57  ;;  %v2402_v33 = vor.u32 %v2401_v54, %v2398_v24  ;;  %v3574_v26 = vpop.permute.xlu1 %3573  ;;  %v2772_v49 = vrot.slane %v2621_v62, 5  ;;  %v3419_v37 = vshll.u32 %v3115_v60, 16 }
 0x14c   : > { %v2405_v30 = vshll.u32 %v2075_v51, 16  ;;  %v2409_v20 = vshrl.u32 %v2075_v51, 16  ;;  %v2620_v61 = vld [vmem:[#allocation2 + $0xac] sm:$0xf]  ;;  %830 = vst.msk [vmem:[#allocation2 + $0xb8] sm:$0xf] %vm216_vm0, %v656_v2  ;;  %v832_v3 = vsel %vm5270_vm13, %v657_v1, %v831_v46  ;;  %v6089_v16 = vpack.c.bf16 %v303_v63, %v303_v63 }
 0x14d   : > { %v2769_v44 = vrot.slane %v2620_v61, 5  ;;  %v2417_v4 = vrot.slane %v2415_v19, 5  ;;  %v3116_v5 = vld [vmem:[#allocation2 + $0xac] sm:$0xf]  ;;  %v3117_v0 = vld [vmem:[#allocation2 + $0xb0] sm:$0x1]  ;;  %v3895_v12 = vpop.permute.xlu0 %3894 }
 0x14e   : > { %v2407_v11 = vrot.slane %v2405_v30, 5  ;;  %v2411_v59 = vrot.slane %v2409_v20, 4  ;;  %3615 = vst.msk [vmem:[#allocation3 + $0x38] sm:$0xff] %vm3607_vm6, %v3574_v26  ;;  %v2403_v9 = vrot.slane %v2402_v33, 4  ;;  %v5106_v31 = vld [vmem:[#allocation2 + $0xa8] sm:$0xff]   ;;  %v3425_v15 = vshll.u32 %v3116_v5, 16 }
 0x14f   : > { %2860 = vrot.lane.b32.xlu0 %v4800_v52, %s5133_s25  ;;  %v6081_v10 = vsel %vm5241_vm9, %v4785_v45, %v2769_v44  ;;  %v2771_v43 = vrot.slane %v2769_v44, 4  ;;  %833 = vst [vmem:[#allocation2 + $0xbc] sm:$0x1] %v832_v3  ;;  %v3429_v17 = vshrl.u32 %v3116_v5, 16  ;;  %3936 = vst.msk [vmem:[#allocation3 + $0x38] sm:$0xff] %vm3928_vm7, %v3895_v12  ;;  %v3435_v21 = vshll.u32 %v3117_v0, 16  ;;  %v1486_v32 = vpop.permute.xlu1 %1485 }
 0x150   : > { %v2412_v58 = vor.u32 %v2411_v59, %v2407_v11  ;;  %v2408_v14 = vsel %vm5248_vm10, %v2403_v9, %v2407_v11  ;;  %v3660_v6 = vld [vmem:[#allocation2 + $0xa8] sm:$0xe]  ;;  %v3418_v27 = vrot.slane %v3416_v55, 4  ;;  %v3421_v34 = vrot.slane %v3419_v37, 5  ;;  %v3661_v28 = vld [vmem:[#allocation2 + $0xac] sm:$0xf] }
 0x151   : > { %v2773_v18 = vsel %vm5241_vm9, %v2771_v43, %v2772_v49  ;;  %v3427_v13 = vrot.slane %v3425_v15, 5  ;;  %1526 = vst.msk [vmem:[#allocation3 + $0x40] sm:$0xff] %vm1517_vm15, %v1486_v32  ;;  %v3951_v56 = vld [vmem:[#allocation3 + $0x30] sm:$0xff]  ;;  %v3431_v40 = vrot.slane %v3429_v17, 4  ;;  %v659_v41 = vshrl.u32 %v6075_v22, 16 }
 0x152   : > { %v2413_v38 = vrot.slane %v2412_v58, 4  ;;  %v4801_v35 = vcombine.low %v6081_v10, %v2773_v18  ;;  %v3118_v45 = vld [vmem:[#allocation2 + $0xb4] sm:$0xf]  ;;  %5024 = vmatprep.mubr.msk.bf16.mxu0 %vm3981_vm8, %v3951_v56  ;;  %v3422_v46 = vor.u32 %v3421_v34, %v3418_v27  ;;  %v3437_v50 = vrot.slane %v3435_v21, 5  ;;  %v3662_v54 = vld [vmem:[#allocation2 + $0xb0] sm:$0x1] }
 0x153   : > { %3038 = vrot.lane.b32.xlu0 %v5106_v31, %s5132_s24  ;;  %v3119_v51 = vld [vmem:[#allocation2 + $0xb8] sm:$0xf]  ;;  %v3440_v24 = vshrl.u32 %v3118_v45, 16  ;;  %v3432_v52 = vor.u32 %v3431_v40, %v3427_v13  ;;  %v3443_v53 = vshll.u32 %v3118_v45, 16  ;;  %v1810_v30 = vpop.permute.xlu0 %1809  ;;  %v4848_v8 = vrot.slane %v3660_v6, 9 }
 0x154   : > { %v2418_v7 = vsel %vm5248_vm10, %v2413_v38, %v2417_v4  ;;  %v3449_v39 = vshll.u32 %v3119_v51, 16  ;;  %v3453_v47 = vshrl.u32 %v3119_v51, 16  ;;  %v3423_v20 = vrot.slane %v3422_v46, 4  ;;  %1850 = vst.msk [vmem:[#allocation3 + $0x40] sm:$0xff] %vm1841_vm1, %v1810_v30  ;;  %v1028_v33 = vld [vmem:[#allocation2 + $0xa8] sm:$0xf] }
 0x155   : > { %v4769_v25 = vcombine.low %v2408_v14, %v2418_v7  ;;  %v3442_v60 = vrot.slane %v3440_v24, 4  ;;  %v3806_v19 = vrot.slane %v3661_v28, 5  ;;  %v3433_v61 = vrot.slane %v3432_v52, 4  ;;  %v1488_v11 = vpop.permute.xlu1 %1487  ;;  %v1029_v49 = vld [vmem:[#allocation2 + $0xac] sm:$0xf]  ;;  %v5107_v0 = vld [vmem:[#allocation2 + $0xb4] sm:$0xff]  }
 0x156   : > { %v3120_v57 = vld [vmem:[#allocation2 + $0xbc] sm:$0x1]  ;;  %v3445_v62 = vrot.slane %v3443_v53, 5  ;;  %v3451_v2 = vrot.slane %v3449_v39, 5  ;;  %v3455_v1 = vrot.slane %v3453_v47, 4  ;;  %v3428_v59 = vsel %vm5248_vm10, %v3423_v20, %v3427_v13  ;;  %1527 = vst.msk [vmem:[#allocation3 + $0x48] sm:$0xff] %vm1517_vm15, %v1488_v11 }
 0x157   : > { %2541 = vrot.lane.b32.xlu1 %v4769_v25, %s5135_s27  ;;  %v3459_v44 = vshll.u32 %v3120_v57, 16  ;;  %v3807_v26 = vsel %vm5241_vm9, %v4848_v8, %v3806_v19  ;;  %v3808_v4 = vrot.slane %v3806_v19, 4  ;;  %v1030_v5 = vld [vmem:[#allocation2 + $0xb0] sm:$0x1]  ;;  %v3438_v3 = vsel %vm5248_vm10, %v3433_v61, %v3437_v50  ;;  %v3663_v43 = vld [vmem:[#allocation2 + $0xb4] sm:$0xe]  ;;  %v1987_v31 = vpop.permute.xlu0 %1986 }
 0x158   : > { %v3446_v9 = vor.u32 %v3445_v62, %v3442_v60  ;;  %v3456_v58 = vor.u32 %v3455_v1, %v3451_v2  ;;  %v3809_v10 = vrot.slane %v3662_v54, 5  ;;  %v3952_v63 = vld [vmem:[#allocation3 + $0x38] sm:$0xff]  ;;  %v4832_v12 = vcombine.low %v3428_v59, %v3438_v3  ;;  %v3664_v17 = vld [vmem:[#allocation2 + $0xb8] sm:$0xf]  ;;  %2027 = vst.msk [vmem:[#allocation3 + $0x40] sm:$0xff] %vm2018_vm2, %v1987_v31  ;;  %v5118_v14 = vld [vmem:[#allocation2 + $0xa8] sm:$0xff]  }
 0x159   : > { %v3461_v55 = vrot.slane %v3459_v44, 5  ;;  %v1374_v37 = vshrl.u32 %v1028_v33, 16  ;;  %v1377_v15 = vshll.u32 %v1028_v33, 16  ;;  %5025 = vmatmul.mubr.msk.bf16.gmra.mrb[12].mxu0 %vm3981_vm8, %v3952_v63  ;;  %v1383_v6 = vshll.u32 %v1029_v49, 16  ;;  %v3665_v32 = vld [vmem:[#allocation2 + $0xbc] sm:$0x1]  ;;  %v1812_v27 = vpop.permute.xlu1 %1811 }
 0x15a   : > { %v3447_v38 = vrot.slane %v3446_v9, 4  ;;  %v3457_v18 = vrot.slane %v3456_v58, 4  ;;  %v3810_v21 = vsel %vm5241_vm9, %v3808_v4, %v3809_v10  ;;  %v5119_v34 = vld [vmem:[#allocation2 + $0xb4] sm:$0xff]   ;;  %3583 = vrot.lane.b32.xlu0 %v4832_v12, %s5136_s28  ;;  %v1387_v7 = vshrl.u32 %v1029_v49, 16  ;;  %1851 = vst.msk [vmem:[#allocation3 + $0x48] sm:$0xff] %vm1841_vm1, %v1812_v27 }
 0x15b   : > { %2862 = vrot.lane.b32.xlu1 %v4801_v35, %s5133_s25  ;;  %v4864_v13 = vcombine.low %v3807_v26, %v3810_v21  ;;  %v1376_v28 = vrot.slane %v1374_v37, 4  ;;  %v1379_v56 = vrot.slane %v1377_v15, 5  ;;  %v1031_v35 = vld [vmem:[#allocation2 + $0xb4] sm:$0xf]  ;;  %984 = vst.msk [vmem:[#allocation3 + $0x70] sm:$0xff] %vm969_vm14, %v5118_v14  ;;  %v1385_v25 = vrot.slane %v1383_v6, 5 }
 0x15c   : > { %v3452_v40 = vsel %vm5248_vm10, %v3447_v38, %v3451_v2  ;;  %v3462_v45 = vsel %vm5248_vm10, %v3457_v18, %v3461_v55  ;;  %v1393_v46 = vshll.u32 %v1030_v5, 16  ;;  %v1032_v50 = vld [vmem:[#allocation2 + $0xb8] sm:$0xf]  ;;  %985 = vst.msk [vmem:[#allocation3 + $0x78] sm:$0xff] %vm969_vm14, %v5119_v34  ;;  %v1389_v52 = vrot.slane %v1387_v7, 4 }
 0x15d   : > { %v4833_v51 = vcombine.low %v3452_v40, %v3462_v45  ;;  %v1380_v24 = vor.u32 %v1379_v56, %v1376_v28  ;;  %v4849_v53 = vrot.slane %v3663_v43, 9  ;;  %v1576_v39 = vld [vmem:[#allocation2 + $0xa8] sm:$0xe]  ;;  %v3813_v54 = vrot.slane %v3664_v17, 5  ;;  %v1033_v20 = vld [vmem:[#allocation2 + $0xbc] sm:$0x1] }
 0x15e   : > { %v1395_v47 = vrot.slane %v1393_v46, 5  ;;  %v3816_v30 = vrot.slane %v3665_v32, 5  ;;  %v1398_v57 = vshrl.u32 %v1031_v35, 16  ;;  %v1577_v60 = vld [vmem:[#allocation2 + $0xac] sm:$0xf]  ;;  %3904 = vrot.lane.b32.xlu0 %v4864_v13, %s5134_s26  ;;  %v1390_v19 = vor.u32 %v1389_v52, %v1385_v25 }
 0x15f   : > { %3040 = vrot.lane.b32.xlu1 %v5107_v0, %s5132_s24  ;;  %v1381_v8 = vrot.slane %v1380_v24, 4  ;;  %v1401_v61 = vshll.u32 %v1031_v35, 16  ;;  %v1407_v62 = vshll.u32 %v1032_v50, 16  ;;  %v1578_v2 = vld [vmem:[#allocation2 + $0xb0] sm:$0x1]  ;;  %v3814_v1 = vsel %vm5241_vm9, %v4849_v53, %v3813_v54 }
 0x160   : > { %v3815_v33 = vrot.slane %v3813_v54, 4  ;;  %v1400_v11 = vrot.slane %v1398_v57, 4  ;;  %v1411_v59 = vshrl.u32 %v1032_v50, 16  ;;  %v1579_v44 = vld [vmem:[#allocation2 + $0xb4] sm:$0xe]  ;;  %v1391_v4 = vrot.slane %v1390_v19, 4 }
 0x161   : > { %v1386_v26 = vsel %vm5248_vm10, %v1381_v8, %v1385_v25  ;;  %v1403_v49 = vrot.slane %v1401_v61, 5  ;;  %v1409_v5 = vrot.slane %v1407_v62, 5  ;;  %v1580_v0 = vld [vmem:[#allocation2 + $0xb8] sm:$0xf]  ;;  %v1417_v58 = vshll.u32 %v1033_v20, 16 }
 0x162   : > { %v3817_v3 = vsel %vm5241_vm9, %v3815_v33, %v3816_v30  ;;  %v1413_v9 = vrot.slane %v1411_v59, 4  ;;  %v4722_v10 = vrot.slane %v1576_v39, 9  ;;  %v1581_v43 = vld [vmem:[#allocation2 + $0xbc] sm:$0x1]  ;;  %v2532_v31 = vpop.permute.xlu0 %2531  ;;  %v1396_v63 = vsel %vm5248_vm10, %v1391_v4, %v1395_v47  ;;  %v2077_v46 = vld [vmem:[#allocation2 + $0xb4] sm:$0xf] }
 0x163   : > { %3585 = vrot.lane.b32.xlu1 %v4833_v51, %s5136_s28  ;;  %v4865_v12 = vcombine.low %v3814_v1, %v3817_v3  ;;  %v1404_v55 = vor.u32 %v1403_v49, %v1400_v11  ;;  %v1733_v37 = vrot.slane %v1577_v60, 5  ;;  %2572 = vst.msk [vmem:[#allocation3 + $0x40] sm:$0xff] %vm2563_vm3, %v2532_v31  ;;  %v4706_v17 = vcombine.low %v1386_v26, %v1396_v63  ;;  %v834_v52 = vld [vmem:[#allocation2 + $0xc0] sm:$0xf]  ;;  %v2078_v53 = vld [vmem:[#allocation2 + $0xb8] sm:$0xf] }
 0x164   : > { %v1989_v15 = vpop.permute.xlu1 %1988  ;;  %v1414_v14 = vor.u32 %v1413_v9, %v1409_v5  ;;  %v1419_v38 = vrot.slane %v1417_v58, 5  ;;  %v1736_v18 = vrot.slane %v1578_v2, 5  ;;  %v4723_v27 = vrot.slane %v1579_v44, 9  ;;  %v5108_v57 = vld [vmem:[#allocation2 + $0xb4] sm:$0xff]   ;;  %v2079_v8 = vld [vmem:[#allocation2 + $0xbc] sm:$0x1] }
 0x165   : > { %2028 = vst.msk [vmem:[#allocation3 + $0x48] sm:$0xff] %vm2018_vm2, %v1989_v15  ;;  %3906 = vrot.lane.b32.xlu0 %v4865_v12, %s5134_s26  ;;  %v1405_v21 = vrot.slane %v1404_v55, 4  ;;  %v1734_v6 = vsel %vm5241_vm9, %v4722_v10, %v1733_v37  ;;  %v1735_v32 = vrot.slane %v1733_v37, 4  ;;  %v1740_v13 = vrot.slane %v1580_v0, 5  ;;  %v3124_v62 = vld [vmem:[#allocation2 + $0xcc] sm:$0xf] }
 0x166   : > { %v1415_v34 = vrot.slane %v1414_v14, 4  ;;  %v1743_v28 = vrot.slane %v1581_v43, 5  ;;  %v661_v56 = vrot.slane %v659_v41, 7  ;;  %v2853_v7 = vpop.permute.xlu0 %2852  ;;  %v662_v45 = vshll.u32 %v6075_v22, 16  ;;  %v838_v22 = vld [vmem:[#allocation2 + $0xc8] sm:$0x1] }
 0x167   : > { %1497 = vrot.lane.b32.xlu1 %v4706_v17, %s5130_s22  ;;  %v1410_v35 = vsel %vm5248_vm10, %v1405_v21, %v1409_v5  ;;  %v1737_v40 = vsel %vm5241_vm9, %v1735_v32, %v1736_v18  ;;  %v667_v25 = vshrl.u32 %v6089_v16, 16  ;;  %2893 = vst.msk [vmem:[#allocation3 + $0x40] sm:$0xff] %vm2884_vm4, %v2853_v7  ;;  %v1741_v41 = vsel %vm5241_vm9, %v4723_v27, %v1740_v13  ;;  %v2622_v44 = vld [vmem:[#allocation2 + $0xb4] sm:$0xe]  ;;  %v2623_v26 = vld [vmem:[#allocation2 + $0xb8] sm:$0xf] }
 0x168   : > { %v1420_v50 = vsel %vm5248_vm10, %v1415_v34, %v1419_v38  ;;  %v4738_v51 = vcombine.low %v1734_v6, %v1737_v40  ;;  %v1742_v24 = vrot.slane %v1740_v13, 4  ;;  %v664_v47 = vor.u32 %v662_v45, %v661_v56  ;;  %v2624_v0 = vld [vmem:[#allocation2 + $0xbc] sm:$0x1] }
 0x169   : > { %v4707_v39 = vcombine.low %v1410_v35, %v1420_v50  ;;  %v665_v54 = vrot.slane %v661_v56, 4  ;;  %v669_v30 = vrot.slane %v667_v25, 7  ;;  %v670_v60 = vshll.u32 %v6089_v16, 16 }
 0x16a   : > { %1821 = vrot.lane.b32.xlu0 %v4738_v51, %s5129_s21  ;;  %v1744_v20 = vsel %vm5241_vm9, %v1742_v24, %v1743_v28  ;;  %v2420_v19 = vshrl.u32 %v2077_v46, 16  ;;  %v2423_v61 = vshll.u32 %v2077_v46, 16  ;;  %v3031_v2 = vpop.permute.xlu0 %3030  ;;  %v835_v11 = vsel %vm5262_vm12, %v664_v47, %v834_v52 }
 0x16b   : > { %1499 = vrot.lane.b32.xlu1 %v4707_v39, %s5130_s22  ;;  %v4739_v1 = vcombine.low %v1741_v41, %v1744_v20  ;;  %v674_v33 = vrot.slane %v669_v30, 4  ;;  %v2429_v59 = vshll.u32 %v2078_v53, 16  ;;  %3071 = vst.msk [vmem:[#allocation3 + $0x40] sm:$0xff] %vm3062_vm5, %v3031_v2  ;;  %v672_v4 = vor.u32 %v670_v60, %v669_v30  ;;  %836 = vst [vmem:[#allocation2 + $0xc0] sm:$0xf] %v835_v11 }
 0x16c   : > { %v2422_v16 = vrot.slane %v2420_v19, 4  ;;  %v2425_v49 = vrot.slane %v2423_v61, 5  ;;  %v2433_v5 = vshrl.u32 %v2078_v53, 16  ;;  %v2439_v9 = vshll.u32 %v2079_v8, 16  ;;  %v6185_v60 = vld [vmem:[#allocation2 + $0xd4] sm:$0x1] }
 0x16d   : > { %v2431_v3 = vrot.slane %v2429_v59, 5  ;;  %v839_v58 = vsel %vm5270_vm13, %v674_v33, %v838_v22  ;;  %v673_v42 = vsel %vm5256_vm11, %v665_v54, %v672_v4  ;;  %v2776_v63 = vrot.slane %v2623_v26, 5 }
 0x16e   : > { %1998 = vrot.lane.b32.xlu0 %v5108_v57, %s5131_s23  ;;  %v2426_v43 = vor.u32 %v2425_v49, %v2422_v16  ;;  %v2435_v31 = vrot.slane %v2433_v5, 4  ;;  %840 = vst [vmem:[#allocation2 + $0xc8] sm:$0x1] %v839_v58  ;;  %837 = vst.msk [vmem:[#allocation2 + $0xc4] sm:$0xf] %vm216_vm0, %v673_v42  ;;  %v4786_v12 = vrot.slane %v2622_v44, 9 }
 0x16f   : > { %1823 = vrot.lane.b32.xlu1 %v4739_v1, %s5129_s21  ;;  %v2779_v55 = vrot.slane %v2624_v0, 5  ;;  %v3488_v48 = vshrl.u32 %v3124_v62, 16  ;;  %v3491_v37 = vshll.u32 %v3124_v62, 16  ;;  %v2441_v14 = vrot.slane %v2439_v9, 5 }
 0x170   : > { %v2534_v10 = vpop.permute.xlu1 %2533  ;;  %v2427_v15 = vrot.slane %v2426_v43, 4  ;;  %v2436_v17 = vor.u32 %v2435_v31, %v2431_v3  ;;  %v2778_v38 = vrot.slane %v2776_v63, 4  ;;  %v2777_v34 = vsel %vm5241_vm9, %v4786_v12, %v2776_v63 }
 0x171   : > { %2573 = vst.msk [vmem:[#allocation3 + $0x48] sm:$0xff] %vm2563_vm3, %v2534_v10  ;;  %v6170_v32 = vrot.slane %v3488_v48, 4  ;;  %v6177_v28 = vrot.slane %v3491_v37, 5  ;;  %v3497_v56 = vshll.u32 %v6166_v36, 16  ;;  %v3501_v2 = vshrl.u32 %v6166_v36, 16 }
 0x172   : > { %v2432_v21 = vsel %vm5248_vm10, %v2427_v15, %v2431_v3  ;;  %v2437_v6 = vrot.slane %v2436_v17, 4  ;;  %v2080_v27 = vld [vmem:[#allocation2 + $0xc0] sm:$0xf]  ;;  %v2780_v13 = vsel %vm5241_vm9, %v2778_v38, %v2779_v55  ;;  %v3507_v63 = vshll.u32 %v6185_v60, 16 }
 0x173   : > { %v3576_v7 = vpop.permute.xlu0 %3575  ;;  %v2444_v40 = vshrl.u32 %v2080_v27, 16  ;;  %v2447_v45 = vshll.u32 %v2080_v27, 16  ;;  %v2625_v25 = vld [vmem:[#allocation2 + $0xc0] sm:$0xe]  ;;  %v4802_v47 = vcombine.low %v2777_v34, %v2780_v13  ;;  %v3494_v37 = vor.u32 %v6177_v28, %v6170_v32 }
 0x174   : > { %v2855_v18 = vpop.permute.xlu1 %2854  ;;  %v2442_v35 = vsel %vm5248_vm10, %v2437_v6, %v2441_v14  ;;  %3616 = vst.msk [vmem:[#allocation3 + $0x40] sm:$0xff] %vm3607_vm6, %v3576_v7  ;;  %v3121_v41 = vld [vmem:[#allocation2 + $0xc0] sm:$0xf]  ;;  %v4787_v19 = vrot.slane %v2625_v25, 9  ;;  %v3503_v28 = vrot.slane %v3501_v2, 4  ;;  %vm4323_vm0 = vcmask 60416  }
 0x175   : > { %2894 = vst.msk [vmem:[#allocation3 + $0x48] sm:$0xff] %vm2884_vm4, %v2855_v18  ;;  %v4770_v46 = vcombine.low %v2432_v21, %v2442_v35  ;;  %v2082_v50 = vld [vmem:[#allocation2 + $0xc8] sm:$0x1]  ;;  %v5109_v52 = vld [vmem:[#allocation2 + $0xc0] sm:$0xff]   ;;  %v2446_v39 = vrot.slane %v2444_v40, 4  ;;  %v2449_v54 = vrot.slane %v2447_v45, 5 }
 0x176   : > { %v2627_v51 = vld [vmem:[#allocation2 + $0xc8] sm:$0x1]  ;;  %v2081_v53 = vld [vmem:[#allocation2 + $0xc4] sm:$0xf]  ;;  %v2463_v20 = vshll.u32 %v2082_v50, 16  ;;  %2000 = vrot.lane.b32.xlu1 %v5109_v52, %s5131_s23  ;;  %v3464_v62 = vshrl.u32 %v3121_v41, 16 }
 0x177   : > { %2543 = vrot.lane.b32.xlu0 %v4770_v46, %s5135_s27  ;;  %v2453_v30 = vshll.u32 %v2081_v53, 16  ;;  %v2457_v22 = vshrl.u32 %v2081_v53, 16  ;;  %v2626_v57 = vld [vmem:[#allocation2 + $0xc4] sm:$0xf]  ;;  %v3897_v8 = vpop.permute.xlu0 %3896  ;;  %v2450_v1 = vor.u32 %v2449_v54, %v2446_v39  ;;  %v2786_v59 = vrot.slane %v2627_v51, 5 }
 0x178   : > { %v3033_v24 = vpop.permute.xlu1 %3032  ;;  %v2783_v61 = vrot.slane %v2626_v57, 5  ;;  %3937 = vst.msk [vmem:[#allocation3 + $0x40] sm:$0xff] %vm3928_vm7, %v3897_v8  ;;  %v3122_v44 = vld [vmem:[#allocation2 + $0xc4] sm:$0xf]  ;;  %v2465_v4 = vrot.slane %v2463_v20, 5  ;;  %v3466_v5 = vrot.slane %v3464_v62, 4 }
 0x179   : > { %3072 = vst.msk [vmem:[#allocation3 + $0x48] sm:$0xff] %vm3062_vm5, %v3033_v24  ;;  %v2455_v33 = vrot.slane %v2453_v30, 5  ;;  %v2459_v11 = vrot.slane %v2457_v22, 4  ;;  %v3123_v49 = vld [vmem:[#allocation2 + $0xc8] sm:$0x1]  ;;  %v3467_v0 = vshll.u32 %v3121_v41, 16 }
 0x17a   : > { %v2785_v16 = vrot.slane %v2783_v61, 4  ;;  %v2451_v3 = vrot.slane %v2450_v1, 4  ;;  %v5112_v58 = vld [vmem:[#allocation2 + $0xc0] sm:$0xff]   ;;  %v3473_v10 = vshll.u32 %v3122_v44, 16  ;;  %v3477_v42 = vshrl.u32 %v3122_v44, 16  ;;  %v5113_v1 = vld [vmem:[#allocation2 + $0xcc] sm:$0xff]  }
 0x17b   : > { %v2460_v9 = vor.u32 %v2459_v11, %v2455_v33  ;;  %2864 = vrot.lane.b32.xlu0 %v4802_v47, %s5133_s25  ;;  %v3469_v43 = vrot.slane %v3467_v0, 5  ;;  %v3483_v31 = vshll.u32 %v3123_v49, 16  ;;  %v3666_v15 = vld [vmem:[#allocation2 + $0xc0] sm:$0xe]  ;;  %v2784_v14 = vsel %vm5241_vm9, %v4787_v19, %v2783_v61  ;;  %v3667_v21 = vld [vmem:[#allocation2 + $0xc4] sm:$0xf] }
 0x17c   : > { %v3578_v26 = vpop.permute.xlu1 %3577  ;;  %v2456_v12 = vsel %vm5248_vm10, %v2451_v3, %v2455_v33  ;;  %v3475_v48 = vrot.slane %v3473_v10, 5  ;;  %v3479_v36 = vrot.slane %v3477_v42, 4  ;;  %v3499_v18 = vrot.slane %v3497_v56, 5  ;;  %v3668_v6 = vld [vmem:[#allocation2 + $0xc8] sm:$0x1] }
 0x17d   : > { %3617 = vst.msk [vmem:[#allocation3 + $0x48] sm:$0xff] %vm3607_vm6, %v3578_v26  ;;  %v2461_v55 = vrot.slane %v2460_v9, 4  ;;  %v3470_v38 = vor.u32 %v3469_v43, %v3466_v5  ;;  %v2787_v13 = vsel %vm5241_vm9, %v2785_v16, %v2786_v59  ;;  %v3485_v32 = vrot.slane %v3483_v31, 5  ;;  %v3670_v25 = vld [vmem:[#allocation2 + $0xd0] sm:$0xf] }
 0x17e   : > { %v3899_v17 = vpop.permute.xlu0 %3898  ;;  %v3480_v40 = vor.u32 %v3479_v36, %v3475_v48  ;;  %v4850_v45 = vrot.slane %v3666_v15, 9  ;;  %v3504_v46 = vor.u32 %v3503_v28, %v3499_v18  ;;  %v3820_v50 = vrot.slane %v3667_v21, 5  ;;  %v3669_v30 = vld [vmem:[#allocation2 + $0xcc] sm:$0xe]  ;;  %v3671_v8 = vld [vmem:[#allocation2 + $0xd4] sm:$0x1] }
 0x17f   : > { %3938 = vst.msk [vmem:[#allocation3 + $0x48] sm:$0xff] %vm3928_vm7, %v3899_v17  ;;  %v2466_v34 = vsel %vm5248_vm10, %v2461_v55, %v2465_v4  ;;  %3042 = vrot.lane.b32.xlu0 %v5112_v58, %s5132_s24  ;;  %v3953_v7 = vld [vmem:[#allocation3 + $0x40] sm:$0xff]  ;;  %v3471_v56 = vrot.slane %v3470_v38, 4  ;;  %v3823_v51 = vrot.slane %v3668_v6, 5  ;;  %v4803_v41 = vcombine.low %v2784_v14, %v2787_v13 }
 0x180   : > { %v1490_v27 = vpop.permute.xlu1 %1489  ;;  %v4771_v35 = vcombine.low %v2456_v12, %v2466_v34  ;;  %5028 = vmatprep.mubr.msk.bf16.mxu1 %vm3981_vm8, %v3953_v7  ;;  %v3481_v52 = vrot.slane %v3480_v40, 4  ;;  %v3495_v53 = vrot.slane %v3494_v37, 4  ;;  %v3505_v39 = vrot.slane %v3504_v46, 4 }
 0x181   : > { %1528 = vst.msk [vmem:[#allocation3 + $0x50] sm:$0xff] %vm1517_vm15, %v1490_v27  ;;  %v3476_v24 = vsel %vm5248_vm10, %v3471_v56, %v3475_v48  ;;  %v3509_v47 = vrot.slane %v3507_v63, 5  ;;  %v3822_v54 = vrot.slane %v3820_v50, 4  ;;  %v3827_v22 = vrot.slane %v3670_v25, 5 }
 0x182   : > { %2545 = vrot.lane.b32.xlu1 %v4771_v35, %s5135_s27  ;;  %v3486_v57 = vsel %vm5248_vm10, %v3481_v52, %v3485_v32  ;;  %v3821_v60 = vsel %vm5241_vm9, %v4850_v45, %v3820_v50  ;;  %v3500_v33 = vsel %vm5248_vm10, %v3495_v53, %v3499_v18  ;;  %v4851_v11 = vrot.slane %v3669_v30, 9 }
 0x183   : > { %v4834_v61 = vcombine.low %v3476_v24, %v3486_v57  ;;  %v3824_v62 = vsel %vm5241_vm9, %v3822_v54, %v3823_v51  ;;  %v3510_v59 = vsel %vm5248_vm10, %v3505_v39, %v3509_v47  ;;  %v3829_v26 = vrot.slane %v3827_v22, 4 }
 0x184   : > { %v1492_v20 = vpop.permute.xlu1 %1491  ;;  %v4866_v44 = vcombine.low %v3821_v60, %v3824_v62  ;;  %v3830_v4 = vrot.slane %v3671_v8, 5  ;;  %v4835_v5 = vcombine.low %v3500_v33, %v3510_v59  ;;  %v3828_v0 = vsel %vm5241_vm9, %v4851_v11, %v3827_v22 }
 0x185   : > { %1529 = vst.msk [vmem:[#allocation3 + $0x58] sm:$0xff] %vm1517_vm15, %v1492_v20  ;;  %v1814_v19 = vpop.permute.xlu0 %1813  ;;  %3587 = vrot.lane.b32.xlu0 %v4834_v61, %s5136_s28  ;;  %vm4426_vm10 = vcmask 57344  }
 0x186   : > { %1852 = vst.msk [vmem:[#allocation3 + $0x50] sm:$0xff] %vm1841_vm1, %v1814_v19  ;;  %v3954_v2 = vld [vmem:[#allocation3 + $0x48] sm:$0xff]  ;;  %2866 = vrot.lane.b32.xlu1 %v4803_v41, %s5133_s25  ;;  %v3831_v29 = vsel %vm5241_vm9, %v3829_v26, %v3830_v4  ;;  %vm4356_vm9 = vcmask 64512  }
 0x187   : > { %5029 = vmatmul.mubr.msk.bf16.vlgmr.msra.gmra.mrb[0].mxu1 %vm3981_vm8, %v3954_v2  ;;  %v4867_v3 = vcombine.low %v3828_v0, %v3831_v29 }
 0x188   : > { %v1816_v16 = vpop.permute.xlu1 %1815 }
 0x189   : > { %1853 = vst.msk [vmem:[#allocation3 + $0x58] sm:$0xff] %vm1841_vm1, %v1816_v16  ;;  %v1991_v49 = vpop.permute.xlu0 %1990  ;;  %3908 = vrot.lane.b32.xlu0 %v4866_v44, %s5134_s26 }
 0x18a   : > { %2029 = vst.msk [vmem:[#allocation3 + $0x50] sm:$0xff] %vm2018_vm2, %v1991_v49  ;;  %3044 = vrot.lane.b32.xlu1 %v5113_v1, %s5132_s24 }
 0x18e   : > { %3589 = vrot.lane.b32.xlu1 %v4835_v5, %s5136_s28 }
 0x190   : > { %v2536_v9 = vpop.permute.xlu0 %2535 }
 0x191   : > { %2574 = vst.msk [vmem:[#allocation3 + $0x50] sm:$0xff] %vm2563_vm3, %v2536_v9  ;;  %v1993_v58 = vpop.permute.xlu1 %1992 }
 0x192   : > { %3910 = vrot.lane.b32.xlu1 %v4867_v3, %s5134_s26  ;;  %2030 = vst.msk [vmem:[#allocation3 + $0x58] sm:$0xff] %vm2018_vm2, %v1993_v58 }
 0x194   : > { %v2857_v10 = vpop.permute.xlu0 %2856 }
 0x195   : > { %2895 = vst.msk [vmem:[#allocation3 + $0x50] sm:$0xff] %vm2884_vm4, %v2857_v10 }
 0x198   : > { %v3035_v42 = vpop.permute.xlu0 %3034 }
 0x199   : > { %3073 = vst.msk [vmem:[#allocation3 + $0x50] sm:$0xff] %vm3062_vm5, %v3035_v42 }
 0x19d   : > { %v2538_v43 = vpop.permute.xlu1 %2537 }
 0x19e   : > { %2575 = vst.msk [vmem:[#allocation3 + $0x58] sm:$0xff] %vm2563_vm3, %v2538_v43 }
 0x1a1   : > { %v2859_v23 = vpop.permute.xlu1 %2858  ;;  %v3580_v31 = vpop.permute.xlu0 %3579 }
 0x1a2   : > { %2896 = vst.msk [vmem:[#allocation3 + $0x58] sm:$0xff] %vm2884_vm4, %v2859_v23 }
 0x1a3   : > { %3618 = vst.msk [vmem:[#allocation3 + $0x50] sm:$0xff] %vm3607_vm6, %v3580_v31 }
 0x1a5   : > { %v3037_v63 = vpop.permute.xlu1 %3036  ;;  %v3901_v12 = vpop.permute.xlu0 %3900 }
 0x1a6   : > { %3074 = vst.msk [vmem:[#allocation3 + $0x58] sm:$0xff] %vm3062_vm5, %v3037_v63 }
 0x1a7   : > { %3939 = vst.msk [vmem:[#allocation3 + $0x50] sm:$0xff] %vm3928_vm7, %v3901_v12 }
 0x1a9   : > { %v3582_v55 = vpop.permute.xlu1 %3581 }
 0x1aa   : > { %3619 = vst.msk [vmem:[#allocation3 + $0x58] sm:$0xff] %vm3607_vm6, %v3582_v55 }
 0x1ac   : > { %v3903_v37 = vpop.permute.xlu0 %3902 }
 0x1ad   : > { %v1494_v48 = vpop.permute.xlu1 %1493  ;;  %3940 = vst.msk [vmem:[#allocation3 + $0x58] sm:$0xff] %vm3928_vm7, %v3903_v37 }
 0x1ae   : > { %1530 = vst.msk [vmem:[#allocation3 + $0x60] sm:$0xff] %vm1517_vm15, %v1494_v48  ;;  %v3955_v15 = vld [vmem:[#allocation3 + $0x50] sm:$0xff] }
 0x1af   : > { %5032 = vmatprep.mubr.msk.bf16.mxu1 %vm3981_vm8, %v3955_v15 }
 0x1b1   : > { %v1496_v17 = vpop.permute.xlu1 %1495 }
 0x1b2   : > { %1531 = vst.msk [vmem:[#allocation3 + $0x68] sm:$0xff] %vm1517_vm15, %v1496_v17  ;;  %v1818_v14 = vpop.permute.xlu0 %1817 }
 0x1b3   : > { %1854 = vst.msk [vmem:[#allocation3 + $0x60] sm:$0xff] %vm1841_vm1, %v1818_v14 }
 0x1b4   : > { %v3956_v38 = vld [vmem:[#allocation3 + $0x58] sm:$0xff] }
 0x1b5   : > { %v1820_v36 = vpop.permute.xlu1 %1819  ;;  %5033 = vmatmul.mubr.msk.bf16.gmra.mrb[4].mxu1 %vm3981_vm8, %v3956_v38 }
 0x1b6   : > { %1855 = vst.msk [vmem:[#allocation3 + $0x68] sm:$0xff] %vm1841_vm1, %v1820_v36  ;;  %v1995_v18 = vpop.permute.xlu0 %1994 }
 0x1b7   : > { %2031 = vst.msk [vmem:[#allocation3 + $0x60] sm:$0xff] %vm2018_vm2, %v1995_v18 }
 0x1bd   : > { %v2540_v21 = vpop.permute.xlu0 %2539  ;;  %v1997_v6 = vpop.permute.xlu1 %1996 }
 0x1be   : > { %2576 = vst.msk [vmem:[#allocation3 + $0x60] sm:$0xff] %vm2563_vm3, %v2540_v21 }
 0x1bf   : > { %2032 = vst.msk [vmem:[#allocation3 + $0x68] sm:$0xff] %vm2018_vm2, %v1997_v6 }
 0x1c1   : > { %v2861_v27 = vpop.permute.xlu0 %2860 }
 0x1c2   : > { %2897 = vst.msk [vmem:[#allocation3 + $0x60] sm:$0xff] %vm2884_vm4, %v2861_v27 }
 0x1c5   : > { %v3039_v34 = vpop.permute.xlu0 %3038 }
 0x1c6   : > { %3075 = vst.msk [vmem:[#allocation3 + $0x60] sm:$0xff] %vm3062_vm5, %v3039_v34 }
 0x1c9   : > { %v2542_v13 = vpop.permute.xlu1 %2541 }
 0x1ca   : > { %2577 = vst.msk [vmem:[#allocation3 + $0x68] sm:$0xff] %vm2563_vm3, %v2542_v13 }
 0x1cc   : > { %v3584_v28 = vpop.permute.xlu0 %3583 }
 0x1cd   : > { %v2863_v32 = vpop.permute.xlu1 %2862  ;;  %3620 = vst.msk [vmem:[#allocation3 + $0x60] sm:$0xff] %vm3607_vm6, %v3584_v28 }
 0x1ce   : > { %2898 = vst.msk [vmem:[#allocation3 + $0x68] sm:$0xff] %vm2884_vm4, %v2863_v32 }
 0x1d0   : > { %v3905_v35 = vpop.permute.xlu0 %3904 }
 0x1d1   : > { %v3041_v7 = vpop.permute.xlu1 %3040  ;;  %3941 = vst.msk [vmem:[#allocation3 + $0x60] sm:$0xff] %vm3928_vm7, %v3905_v35 }
 0x1d2   : > { %3076 = vst.msk [vmem:[#allocation3 + $0x68] sm:$0xff] %vm3062_vm5, %v3041_v7 }
 0x1d4   : > { %v5014_v40 = vpop.f32.mrb[0].mxu0 }
 0x1d5   : > { %v3586_v56 = vpop.permute.xlu1 %3585  ;;  %v4957_v45 = vpack.c.bf16 %v5014_v40, %v5014_v40  ;;  %v4068_v25 = vpop.f32.mrb[1].mxu0  ;;  %v4430_v41 = vmul.f32 %v5014_v40, %v5014_v40  ;;  %v4360_v8 = vsel %vm4356_vm9, %v5014_v40, 0.0 }
 0x1d6   : > { %3621 = vst.msk [vmem:[#allocation3 + $0x68] sm:$0xff] %vm3607_vm6, %v3586_v56  ;;  %v4955_v46 = vpack.c.bf16 %v4068_v25, %v4068_v25  ;;  %v4428_v50 = vmul.f32 %v4068_v25, %v4068_v25  ;;  %v5015_v51 = vpop.f32.mrb[2].mxu0  ;;  %v4357_v39 = vsel %vm4356_vm9, %v4068_v25, 0.0 }
 0x1d7   : > { %4326 = vst.msk [vmem:[%s6266_s12 + $0x8] sm:$0xf] %vm4323_vm0, %v4957_v45  ;;  %v4958_v24 = vpack.c.bf16 %v5015_v51, %v5015_v51  ;;  %v4071_v52 = vpop.f32.mrb[3].mxu0  ;;  %v3907_v53 = vpop.permute.xlu0 %3906  ;;  %v4431_v20 = vmul.f32 %v5015_v51, %v5015_v51  ;;  %v4463_v1 = vsel %vm4356_vm9, %v4430_v41, 0.0  ;;  %v4362_v59 = vsel %vm4356_vm9, %v5015_v51, 0.0 }
 0x1d8   : > { %4324 = vst.msk [vmem:[%s6266_s12] sm:$0xf] %vm4323_vm0, %v4955_v46  ;;  %v4956_v47 = vpack.c.bf16 %v4071_v52, %v4071_v52  ;;  %v4358_v54 = vsel %vm4356_vm9, %v4071_v52, 0.0  ;;  %v4429_v30 = vmul.f32 %v4071_v52, %v4071_v52  ;;  %v3957_v60 = vld [vmem:[#allocation3 + $0x60] sm:$0xff]  ;;  %v4460_v19 = vsel %vm4356_vm9, %v4428_v50, 0.0 }
 0x1d9   : > { %v1498_v22 = vpop.permute.xlu1 %1497  ;;  %3942 = vst.msk [vmem:[#allocation3 + $0x68] sm:$0xff] %vm3928_vm7, %v3907_v53  ;;  %v4359_v57 = vadd.f32 %v4358_v54, %v4357_v39  ;;  %5036 = vmatprep.mubr.msk.bf16.mxu1 %vm3981_vm8, %v3957_v60  ;;  %v4465_v44 = vsel %vm4356_vm9, %v4431_v20, 0.0 }
 0x1da   : > { %4327 = vst.msk [vmem:[%s6266_s12 + $0xc] sm:$0xf] %vm4323_vm0, %v4958_v24  ;;  %4325 = vst.msk [vmem:[%s6266_s12 + $0x4] sm:$0xf] %vm4323_vm0, %v4956_v47  ;;  %v4461_v61 = vsel %vm4356_vm9, %v4429_v30, 0.0 }
 0x1db   : > { %1532 = vst.msk [vmem:[#allocation3 + $0x70] sm:$0xff] %vm1517_vm15, %v1498_v22  ;;  %v4361_v62 = vadd.f32 %v4360_v8, %v4359_v57  ;;  %v4462_v2 = vadd.f32 %v4461_v61, %v4460_v19 }
 0x1dc   : > { %v5018_v33 = vpop.f32.mrb[4].mxu0  ;;  %v1822_v11 = vpop.permute.xlu0 %1821 }
 0x1dd   : > { %v4464_v26 = vadd.f32 %v4463_v1, %v4462_v2  ;;  %v4961_v4 = vpack.c.bf16 %v5018_v33, %v5018_v33  ;;  %v4084_v16 = vpop.f32.mrb[5].mxu0  ;;  %v1500_v49 = vpop.permute.xlu1 %1499  ;;  %1856 = vst.msk [vmem:[#allocation3 + $0x70] sm:$0xff] %vm1841_vm1, %v1822_v11  ;;  %v4363_v0 = vadd.f32 %v4362_v59, %v4361_v62  ;;  %v4434_v55 = vmul.f32 %v5018_v33, %v5018_v33 }
 0x1de   : > { %v4959_v5 = vpack.c.bf16 %v4084_v16, %v4084_v16  ;;  %v4364_v29 = vsel %vm4356_vm9, %v4084_v16, 0.0  ;;  %v4432_v3 = vmul.f32 %v4084_v16, %v4084_v16  ;;  %v5019_v9 = vpop.f32.mrb[6].mxu0  ;;  %1533 = vst.msk [vmem:[#allocation3 + $0x78] sm:$0xff] %vm1517_vm15, %v1500_v49  ;;  %v4368_v38 = vsel %vm4356_vm9, %v5018_v33, 0.0 }
 0x1df   : > { %4330 = vst.msk [vmem:[%s6266_s12 + $0x18] sm:$0xf] %vm4323_vm0, %v4961_v4  ;;  %v4466_v58 = vadd.f32 %v4465_v44, %v4464_v26  ;;  %v4962_v10 = vpack.c.bf16 %v5019_v9, %v5019_v9  ;;  %v4087_v42 = vpop.f32.mrb[7].mxu0  ;;  %v4365_v23 = vadd.f32 %v4364_v29, %v4363_v0  ;;  %v4435_v36 = vmul.f32 %v5019_v9, %v5019_v9 }
 0x1e0   : > { %v3958_v43 = vld [vmem:[#allocation3 + $0x68] sm:$0xff]  ;;  %4328 = vst.msk [vmem:[%s6266_s12 + $0x10] sm:$0xf] %vm4323_vm0, %v4959_v5  ;;  %v4467_v31 = vsel %vm4356_vm9, %v4432_v3, 0.0  ;;  %v4960_v63 = vpack.c.bf16 %v4087_v42, %v4087_v42  ;;  %v1999_v12 = vpop.permute.xlu0 %1998  ;;  %v4366_v37 = vsel %vm4356_vm9, %v4087_v42, 0.0  ;;  %v4433_v15 = vmul.f32 %v4087_v42, %v4087_v42 }
 0x1e1   : > { %5037 = vmatmul.mubr.msk.bf16.gmra.mrb[8].mxu1 %vm3981_vm8, %v3958_v43  ;;  %v4468_v48 = vadd.f32 %v4467_v31, %v4466_v58  ;;  %4331 = vst.msk [vmem:[%s6266_s12 + $0x1c] sm:$0xf] %vm4323_vm0, %v4962_v10  ;;  %v1824_v17 = vpop.permute.xlu1 %1823  ;;  %v4367_v14 = vadd.f32 %v4366_v37, %v4365_v23  ;;  %v4471_v27 = vsel %vm4356_vm9, %v4434_v55, 0.0  ;;  %v4370_v34 = vsel %vm4356_vm9, %v5019_v9, 0.0 }
 0x1e2   : > { %2033 = vst.msk [vmem:[#allocation3 + $0x70] sm:$0xff] %vm2018_vm2, %v1999_v12  ;;  %v4469_v18 = vsel %vm4356_vm9, %v4433_v15, 0.0  ;;  %v4473_v28 = vsel %vm4356_vm9, %v4435_v36, 0.0 }
 0x1e3   : > { %4329 = vst.msk [vmem:[%s6266_s12 + $0x14] sm:$0xf] %vm4323_vm0, %v4960_v63  ;;  %v4369_v21 = vadd.f32 %v4368_v38, %v4367_v14  ;;  %v4470_v6 = vadd.f32 %v4469_v18, %v4468_v48 }
 0x1e4   : > { %1857 = vst.msk [vmem:[#allocation3 + $0x78] sm:$0xff] %vm1841_vm1, %v1824_v17 }
 0x1e5   : > { %v4472_v13 = vadd.f32 %v4471_v27, %v4470_v6  ;;  %v4371_v32 = vadd.f32 %v4370_v34, %v4369_v21 }
 0x1e7   : > { %v4474_v7 = vadd.f32 %v4473_v28, %v4472_v13 }
 0x1e8   : > { %v2001_v56 = vpop.permute.xlu1 %2000 }
 0x1e9   : > { %v2544_v35 = vpop.permute.xlu0 %2543  ;;  %2034 = vst.msk [vmem:[#allocation3 + $0x78] sm:$0xff] %vm2018_vm2, %v2001_v56 }
 0x1ea   : > { %2578 = vst.msk [vmem:[#allocation3 + $0x70] sm:$0xff] %vm2563_vm3, %v2544_v35 }
 0x1ed   : > { %v2865_v40 = vpop.permute.xlu0 %2864 }
 0x1ee   : > { %2899 = vst.msk [vmem:[#allocation3 + $0x70] sm:$0xff] %vm2884_vm4, %v2865_v40 }
 0x1f1   : > { %v3043_v45 = vpop.permute.xlu0 %3042 }
 0x1f2   : > { %3077 = vst.msk [vmem:[#allocation3 + $0x70] sm:$0xff] %vm3062_vm5, %v3043_v45 }
 0x1f4   : > { %v2546_v25 = vpop.permute.xlu1 %2545 }
 0x1f5   : > { %2579 = vst.msk [vmem:[#allocation3 + $0x78] sm:$0xff] %vm2563_vm3, %v2546_v25 }
 0x1f7   : > { %v3588_v50 = vpop.permute.xlu0 %3587 }
 0x1f8   : > { %v2867_v46 = vpop.permute.xlu1 %2866  ;;  %3622 = vst.msk [vmem:[#allocation3 + $0x70] sm:$0xff] %vm3607_vm6, %v3588_v50 }
 0x1f9   : > { %2900 = vst.msk [vmem:[#allocation3 + $0x78] sm:$0xff] %vm2884_vm4, %v2867_v46 }
 0x1fb   : > { %v3909_v41 = vpop.permute.xlu0 %3908 }
 0x1fc   : > { %v3045_v51 = vpop.permute.xlu1 %3044  ;;  %3943 = vst.msk [vmem:[#allocation3 + $0x70] sm:$0xff] %vm3928_vm7, %v3909_v41 }
 0x1fd   : > { %3078 = vst.msk [vmem:[#allocation3 + $0x78] sm:$0xff] %vm3062_vm5, %v3045_v51 }
 0x200   : > { %v3590_v24 = vpop.permute.xlu1 %3589 }
 0x201   : > { %v5022_v52 = vpop.f32.mrb[8].mxu0  ;;  %3623 = vst.msk [vmem:[#allocation3 + $0x78] sm:$0xff] %vm3607_vm6, %v3590_v24 }
 0x202   : > { %v4965_v53 = vpack.c.bf16 %v5022_v52, %v5022_v52  ;;  %v4100_v39 = vpop.f32.mrb[9].mxu0  ;;  %v4438_v1 = vmul.f32 %v5022_v52, %v5022_v52  ;;  %v4376_v44 = vsel %vm4356_vm9, %v5022_v52, 0.0 }
 0x203   : > { %v4963_v47 = vpack.c.bf16 %v4100_v39, %v4100_v39  ;;  %v4372_v54 = vsel %vm4356_vm9, %v4100_v39, 0.0  ;;  %v4436_v30 = vmul.f32 %v4100_v39, %v4100_v39  ;;  %v5023_v22 = vpop.f32.mrb[10].mxu0  ;;  %v3959_v2 = vld [vmem:[#allocation3 + $0x70] sm:$0xff] }
 0x204   : > { %4334 = vst.msk [vmem:[%s6266_s12 + $0x28] sm:$0xf] %vm4323_vm0, %v4965_v53  ;;  %v4373_v20 = vadd.f32 %v4372_v54, %v4371_v32  ;;  %v4966_v57 = vpack.c.bf16 %v5023_v22, %v5023_v22  ;;  %v4103_v60 = vpop.f32.mrb[11].mxu0  ;;  %v3911_v8 = vpop.permute.xlu1 %3910  ;;  %5040 = vmatprep.mubr.msk.bf16.mxu1 %vm3981_vm8, %v3959_v2  ;;  %v4439_v26 = vmul.f32 %v5023_v22, %v5023_v22  ;;  %v4378_v49 = vsel %vm4356_vm9, %v5023_v22, 0.0 }
 0x205   : > { %4332 = vst.msk [vmem:[%s6266_s12 + $0x20] sm:$0xf] %vm4323_vm0, %v4963_v47  ;;  %v4475_v19 = vsel %vm4356_vm9, %v4436_v30, 0.0  ;;  %v4964_v61 = vpack.c.bf16 %v4103_v60, %v4103_v60  ;;  %v4374_v62 = vsel %vm4356_vm9, %v4103_v60, 0.0  ;;  %v4437_v59 = vmul.f32 %v4103_v60, %v4103_v60 }
 0x206   : > { %3944 = vst.msk [vmem:[#allocation3 + $0x78] sm:$0xff] %vm3928_vm7, %v3911_v8  ;;  %v4476_v33 = vadd.f32 %v4475_v19, %v4474_v7  ;;  %v4375_v11 = vadd.f32 %v4374_v62, %v4373_v20  ;;  %v4479_v0 = vsel %vm4356_vm9, %v4438_v1, 0.0  ;;  %v4481_v9 = vsel %vm4356_vm9, %v4439_v26, 0.0 }
 0x207   : > { %4335 = vst.msk [vmem:[%s6266_s12 + $0x2c] sm:$0xf] %vm4323_vm0, %v4966_v57  ;;  %4333 = vst.msk [vmem:[%s6266_s12 + $0x24] sm:$0xf] %vm4323_vm0, %v4964_v61  ;;  %v4477_v16 = vsel %vm4356_vm9, %v4437_v59, 0.0 }
 0x208   : > { %v4377_v4 = vadd.f32 %v4376_v44, %v4375_v11  ;;  %v4478_v5 = vadd.f32 %v4477_v16, %v4476_v33 }
 0x20a   : > { %v4379_v29 = vadd.f32 %v4378_v49, %v4377_v4  ;;  %v4480_v3 = vadd.f32 %v4479_v0, %v4478_v5 }
 0x20c   : > { %v4482_v10 = vadd.f32 %v4481_v9, %v4480_v3 }
 0x20d   : > { %v3960_v58 = vld [vmem:[#allocation3 + $0x78] sm:$0xff] }
 0x20e   : > { %5041 = vmatmul.mubr.msk.bf16.gmra.mrb[12].mxu1 %vm3981_vm8, %v3960_v58 }
 0x22c   : > { %v5026_v42 = vpop.f32.mrb[12].mxu0 }
 0x22d   : > { %v4969_v43 = vpack.c.bf16 %v5026_v42, %v5026_v42  ;;  %v4116_v23 = vpop.f32.mrb[13].mxu0  ;;  %v4442_v36 = vmul.f32 %v5026_v42, %v5026_v42  ;;  %v4384_v27 = vsel %vm4356_vm9, %v5026_v42, 0.0 }
 0x22e   : > { %v4967_v31 = vpack.c.bf16 %v4116_v23, %v4116_v23  ;;  %v4380_v63 = vsel %vm4356_vm9, %v4116_v23, 0.0  ;;  %v4440_v12 = vmul.f32 %v4116_v23, %v4116_v23  ;;  %v5027_v55 = vpop.f32.mrb[14].mxu0 }
 0x22f   : > { %4338 = vst.msk [vmem:[%s6266_s12 + $0x38] sm:$0xf] %vm4323_vm0, %v4969_v43  ;;  %v4381_v48 = vadd.f32 %v4380_v63, %v4379_v29  ;;  %v4970_v37 = vpack.c.bf16 %v5027_v55, %v5027_v55  ;;  %v4119_v15 = vpop.f32.mrb[15].mxu0  ;;  %v4443_v34 = vmul.f32 %v5027_v55, %v5027_v55  ;;  %v4386_v28 = vsel %vm4356_vm9, %v5027_v55, 0.0 }
 0x230   : > { %4336 = vst.msk [vmem:[%s6266_s12 + $0x30] sm:$0xf] %vm4323_vm0, %v4967_v31  ;;  %v4483_v17 = vsel %vm4356_vm9, %v4440_v12, 0.0  ;;  %v4968_v14 = vpack.c.bf16 %v4119_v15, %v4119_v15  ;;  %v4382_v38 = vsel %vm4356_vm9, %v4119_v15, 0.0  ;;  %v4441_v6 = vmul.f32 %v4119_v15, %v4119_v15 }
 0x231   : > { %v4484_v18 = vadd.f32 %v4483_v17, %v4482_v10  ;;  %4339 = vst.msk [vmem:[%s6266_s12 + $0x3c] sm:$0xf] %vm4323_vm0, %v4970_v37  ;;  %v4383_v21 = vadd.f32 %v4382_v38, %v4381_v48  ;;  %v4487_v35 = vsel %vm4356_vm9, %v4442_v36, 0.0  ;;  %v4489_v45 = vsel %vm4356_vm9, %v4443_v34, 0.0 }
 0x232   : > { %4337 = vst.msk [vmem:[%s6266_s12 + $0x34] sm:$0xf] %vm4323_vm0, %v4968_v14  ;;  %v4485_v32 = vsel %vm4356_vm9, %v4441_v6, 0.0 }
 0x233   : > { %v4385_v13 = vadd.f32 %v4384_v27, %v4383_v21  ;;  %v4486_v7 = vadd.f32 %v4485_v32, %v4484_v18 }
 0x235   : > { %v4387_v56 = vadd.f32 %v4386_v28, %v4385_v13  ;;  %v4488_v40 = vadd.f32 %v4487_v35, %v4486_v7 }
 0x237   : > { %v4490_v25 = vadd.f32 %v4489_v45, %v4488_v40 }
 0x25a   : > { %v5030_v46 = vpop.f32.mrb[0].mxu1 }
 0x25b   : > { %v4973_v50 = vpack.c.bf16 %v5030_v46, %v5030_v46  ;;  %v4132_v51 = vpop.f32.mrb[1].mxu1  ;;  %v4446_v57 = vmul.f32 %v5030_v46, %v5030_v46  ;;  %v4392_v61 = vsel %vm4356_vm9, %v5030_v46, 0.0 }
 0x25c   : > { %v4971_v41 = vpack.c.bf16 %v4132_v51, %v4132_v51  ;;  %v4388_v24 = vsel %vm4356_vm9, %v4132_v51, 0.0  ;;  %v4444_v52 = vmul.f32 %v4132_v51, %v4132_v51  ;;  %v5031_v53 = vpop.f32.mrb[2].mxu1 }
 0x25d   : > { %4342 = vst.msk [vmem:[%s6266_s12 + $0x48] sm:$0xf] %vm4323_vm0, %v4973_v50  ;;  %v4389_v39 = vadd.f32 %v4388_v24, %v4387_v56  ;;  %v4974_v47 = vpack.c.bf16 %v5031_v53, %v5031_v53  ;;  %v4135_v54 = vpop.f32.mrb[3].mxu1  ;;  %v4447_v62 = vmul.f32 %v5031_v53, %v5031_v53  ;;  %v4394_v33 = vsel %vm4356_vm9, %v5031_v53, 0.0 }
 0x25e   : > { %4340 = vst.msk [vmem:[%s6266_s12 + $0x40] sm:$0xf] %vm4323_vm0, %v4971_v41  ;;  %v4491_v30 = vsel %vm4356_vm9, %v4444_v52, 0.0  ;;  %v4972_v22 = vpack.c.bf16 %v4135_v54, %v4135_v54  ;;  %v4390_v20 = vsel %vm4356_vm9, %v4135_v54, 0.0  ;;  %v4445_v19 = vmul.f32 %v4135_v54, %v4135_v54 }
 0x25f   : > { %v4492_v60 = vadd.f32 %v4491_v30, %v4490_v25  ;;  %4343 = vst.msk [vmem:[%s6266_s12 + $0x4c] sm:$0xf] %vm4323_vm0, %v4974_v47  ;;  %v4391_v8 = vadd.f32 %v4390_v20, %v4389_v39  ;;  %v4495_v59 = vsel %vm4356_vm9, %v4446_v57, 0.0  ;;  %v4497_v4 = vsel %vm4356_vm9, %v4447_v62, 0.0 }
 0x260   : > { %4341 = vst.msk [vmem:[%s6266_s12 + $0x44] sm:$0xf] %vm4323_vm0, %v4972_v22  ;;  %v4493_v1 = vsel %vm4356_vm9, %v4445_v19, 0.0 }
 0x261   : > { %v4393_v2 = vadd.f32 %v4392_v61, %v4391_v8  ;;  %v4494_v11 = vadd.f32 %v4493_v1, %v4492_v60 }
 0x263   : > { %v4395_v44 = vadd.f32 %v4394_v33, %v4393_v2  ;;  %v4496_v26 = vadd.f32 %v4495_v59, %v4494_v11 }
 0x265   : > { %v4498_v16 = vadd.f32 %v4497_v4, %v4496_v26 }
 0x288   : > { %v5034_v49 = vpop.f32.mrb[4].mxu1 }
 0x289   : > { %v4977_v5 = vpack.c.bf16 %v5034_v49, %v5034_v49  ;;  %v4148_v0 = vpop.f32.mrb[5].mxu1  ;;  %v4450_v12 = vmul.f32 %v5034_v49, %v5034_v49  ;;  %v4400_v15 = vsel %vm4356_vm9, %v5034_v49, 0.0 }
 0x28a   : > { %v4975_v29 = vpack.c.bf16 %v4148_v0, %v4148_v0  ;;  %v4396_v3 = vsel %vm4356_vm9, %v4148_v0, 0.0  ;;  %v4448_v9 = vmul.f32 %v4148_v0, %v4148_v0  ;;  %v5035_v58 = vpop.f32.mrb[6].mxu1 }
 0x28b   : > { %4346 = vst.msk [vmem:[%s6266_s12 + $0x58] sm:$0xf] %vm4323_vm0, %v4977_v5  ;;  %v4397_v10 = vadd.f32 %v4396_v3, %v4395_v44  ;;  %v4978_v42 = vpack.c.bf16 %v5035_v58, %v5035_v58  ;;  %v4151_v43 = vpop.f32.mrb[7].mxu1  ;;  %v4451_v17 = vmul.f32 %v5035_v58, %v5035_v58  ;;  %v4402_v36 = vsel %vm4356_vm9, %v5035_v58, 0.0 }
 0x28c   : > { %4344 = vst.msk [vmem:[%s6266_s12 + $0x50] sm:$0xf] %vm4323_vm0, %v4975_v29  ;;  %v4499_v23 = vsel %vm4356_vm9, %v4448_v9, 0.0  ;;  %v4976_v31 = vpack.c.bf16 %v4151_v43, %v4151_v43  ;;  %v4398_v63 = vsel %vm4356_vm9, %v4151_v43, 0.0  ;;  %v4449_v37 = vmul.f32 %v4151_v43, %v4151_v43 }
 0x28d   : > { %v4500_v55 = vadd.f32 %v4499_v23, %v4498_v16  ;;  %4347 = vst.msk [vmem:[%s6266_s12 + $0x5c] sm:$0xf] %vm4323_vm0, %v4978_v42  ;;  %v4399_v48 = vadd.f32 %v4398_v63, %v4397_v10  ;;  %v4503_v21 = vsel %vm4356_vm9, %v4450_v12, 0.0  ;;  %v4505_v34 = vsel %vm4356_vm9, %v4451_v17, 0.0 }
 0x28e   : > { %4345 = vst.msk [vmem:[%s6266_s12 + $0x54] sm:$0xf] %vm4323_vm0, %v4976_v31  ;;  %v4501_v38 = vsel %vm4356_vm9, %v4449_v37, 0.0 }
 0x28f   : > { %v4401_v14 = vadd.f32 %v4400_v15, %v4399_v48  ;;  %v4502_v18 = vadd.f32 %v4501_v38, %v4500_v55 }
 0x291   : > { %v4403_v6 = vadd.f32 %v4402_v36, %v4401_v14  ;;  %v4504_v27 = vadd.f32 %v4503_v21, %v4502_v18 }
 0x293   : > { %v4506_v13 = vadd.f32 %v4505_v34, %v4504_v27 }
 0x2b4   : > { %v5038_v32 = vpop.f32.mrb[8].mxu1 }
 0x2b5   : > { %v4981_v28 = vpack.c.bf16 %v5038_v32, %v5038_v32  ;;  %v4164_v7 = vpop.f32.mrb[9].mxu1  ;;  %v4454_v52 = vmul.f32 %v5038_v32, %v5038_v32  ;;  %v4408_v54 = vsel %vm4356_vm9, %v5038_v32, 0.0 }
 0x2b6   : > { %v4979_v35 = vpack.c.bf16 %v4164_v7, %v4164_v7  ;;  %v4404_v56 = vsel %vm4356_vm9, %v4164_v7, 0.0  ;;  %v4452_v40 = vmul.f32 %v4164_v7, %v4164_v7  ;;  %v5039_v45 = vpop.f32.mrb[10].mxu1 }
 0x2b7   : > { %4350 = vst.msk [vmem:[%s6266_s12 + $0x68] sm:$0xf] %vm4323_vm0, %v4981_v28  ;;  %v4405_v25 = vadd.f32 %v4404_v56, %v4403_v6  ;;  %v4982_v46 = vpack.c.bf16 %v5039_v45, %v5039_v45  ;;  %v4167_v50 = vpop.f32.mrb[11].mxu1  ;;  %v4455_v30 = vmul.f32 %v5039_v45, %v5039_v45  ;;  %v4410_v57 = vsel %vm4356_vm9, %v5039_v45, 0.0 }
 0x2b8   : > { %4348 = vst.msk [vmem:[%s6266_s12 + $0x60] sm:$0xf] %vm4323_vm0, %v4979_v35  ;;  %v4507_v51 = vsel %vm4356_vm9, %v4452_v40, 0.0  ;;  %v4980_v41 = vpack.c.bf16 %v4167_v50, %v4167_v50  ;;  %v4406_v24 = vsel %vm4356_vm9, %v4167_v50, 0.0  ;;  %v4453_v47 = vmul.f32 %v4167_v50, %v4167_v50 }
 0x2b9   : > { %v4508_v53 = vadd.f32 %v4507_v51, %v4506_v13  ;;  %4351 = vst.msk [vmem:[%s6266_s12 + $0x6c] sm:$0xf] %vm4323_vm0, %v4982_v46  ;;  %v4407_v39 = vadd.f32 %v4406_v24, %v4405_v25  ;;  %v4511_v8 = vsel %vm4356_vm9, %v4454_v52, 0.0  ;;  %v4513_v62 = vsel %vm4356_vm9, %v4455_v30, 0.0 }
 0x2ba   : > { %4349 = vst.msk [vmem:[%s6266_s12 + $0x64] sm:$0xf] %vm4323_vm0, %v4980_v41  ;;  %v4509_v20 = vsel %vm4356_vm9, %v4453_v47, 0.0 }
 0x2bb   : > { %v4409_v22 = vadd.f32 %v4408_v54, %v4407_v39  ;;  %v4510_v60 = vadd.f32 %v4509_v20, %v4508_v53 }
 0x2bd   : > { %v4411_v19 = vadd.f32 %v4410_v57, %v4409_v22  ;;  %v4512_v61 = vadd.f32 %v4511_v8, %v4510_v60 }
 0x2bf   : > { %v4514_v2 = vadd.f32 %v4513_v62, %v4512_v61 }
 0x2e1   : > { %v5042_v1 = vpop.f32.mrb[12].mxu1 }
 0x2e2   : > { %v4985_v33 = vpack.c.bf16 %v5042_v1, %v5042_v1  ;;  %v4180_v11 = vpop.f32.mrb[13].mxu1  ;;  %v4458_v9 = vmul.f32 %v5042_v1, %v5042_v1  ;;  %v4416_v43 = vsel %vm4356_vm9, %v5042_v1, 0.0 }
 0x2e3   : > { %v4983_v59 = vpack.c.bf16 %v4180_v11, %v4180_v11  ;;  %v4412_v44 = vsel %vm4356_vm9, %v4180_v11, 0.0  ;;  %v4456_v26 = vmul.f32 %v4180_v11, %v4180_v11  ;;  %v5043_v4 = vpop.f32.mrb[14].mxu1 }
 0x2e4   : > { %4354 = vst.msk [vmem:[%s6266_s12 + $0x78] sm:$0xf] %vm4323_vm0, %v4985_v33  ;;  %v4413_v16 = vadd.f32 %v4412_v44, %v4411_v19  ;;  %v4986_v49 = vpack.c.bf16 %v5043_v4, %v5043_v4  ;;  %v4183_v5 = vpop.f32.mrb[15].mxu1  ;;  %v4459_v23 = vmul.f32 %v5043_v4, %v5043_v4  ;;  %v4418_v12 = vsel %vm4356_vm9, %v5043_v4, 0.0 }
 0x2e5   : > { %4352 = vst.msk [vmem:[%s6266_s12 + $0x70] sm:$0xf] %vm4323_vm0, %v4983_v59  ;;  %v4515_v0 = vsel %vm4356_vm9, %v4456_v26, 0.0  ;;  %v4984_v29 = vpack.c.bf16 %v4183_v5, %v4183_v5  ;;  %v4414_v3 = vsel %vm4356_vm9, %v4183_v5, 0.0  ;;  %v4457_v42 = vmul.f32 %v4183_v5, %v4183_v5 }
 0x2e6   : > { %v4516_v58 = vadd.f32 %v4515_v0, %v4514_v2  ;;  %4355 = vst.msk [vmem:[%s6266_s12 + $0x7c] sm:$0xf] %vm4323_vm0, %v4986_v49  ;;  %v4415_v10 = vadd.f32 %v4414_v3, %v4413_v16  ;;  %v4519_v48 = vsel %vm4356_vm9, %v4458_v9, 0.0  ;;  %v4521_v17 = vsel %vm4356_vm9, %v4459_v23, 0.0 }
 0x2e7   : > { %4353 = vst.msk [vmem:[%s6266_s12 + $0x74] sm:$0xf] %vm4323_vm0, %v4984_v29  ;;  %v4517_v63 = vsel %vm4356_vm9, %v4457_v42, 0.0 }
 0x2e8   : > { %v4417_v31 = vadd.f32 %v4416_v43, %v4415_v10  ;;  %v4518_v55 = vadd.f32 %v4517_v63, %v4516_v58 }
 0x2ea   : > { %v4419_v37 = vadd.f32 %v4418_v12, %v4417_v31  ;;  %v4520_v15 = vadd.f32 %v4519_v48, %v4518_v55 }
 0x2ec   : > { %v4420_v14 = vrot.slane %v4419_v37, 4  ;;  %v4522_v38 = vadd.f32 %v4521_v17, %v4520_v15 }
 0x2ee   : > { %v4421_v36 = vadd.f32 %v4420_v14, %v4419_v37  ;;  %v4523_v18 = vrot.slane %v4522_v38, 4 }
 0x2f0   : > { %v4422_v21 = vrot.slane %v4421_v36, 2  ;;  %v4524_v6 = vadd.f32 %v4523_v18, %v4522_v38 }
 0x2f2   : > { %v4423_v27 = vadd.f32 %v4422_v21, %v4421_v36  ;;  %v4525_v34 = vrot.slane %v4524_v6, 2 }
 0x2f4   : > { %v4424_v13 = vrot.slane %v4423_v27, 1  ;;  %v4526_v32 = vadd.f32 %v4525_v34, %v4524_v6 }
 0x2f6   : > { %v4425_v28 = vadd.f32 %v4424_v13, %v4423_v27  ;;  %v4527_v7 = vrot.slane %v4526_v32, 1 }
 0x2f8   : > { %4427 = vst.msk [vmem:[%s211_s17] sm:$0x1] %vm4426_vm10, %v4425_v28  ;;  %v4528_v35 = vadd.f32 %v4527_v7, %v4526_v32 }
 0x2fa   : > { %4529 = vst.msk [vmem:[%s214_s20] sm:$0x1] %vm4426_vm10, %v4528_v35 }
 0x2fb PF: > { %s15_s15 = sadd.s32 1, %s5126_s15  }
 0x2fc   : > { %p12_p4 = scmp.ge.s32.totalorder %s15_s15, 4  }
 0x2fe   :  { %14 = sbr.rel (!%p12_p4) target bundleno = 1 (0x1), region = 84 }

// kernel: resblock_forward.10
= control target key start
LH: loop header
LB: loop body
LE: loop exit
PB: predicated region body
PF: predicated region fallthrough
CT: control target
= control target key end

     0   :  { %s5029_s15 = smov 0   ;;  %s6297_s0 = inlined_call_operand.vmem [shape: bf16[2,16,16,8], index: 0, kind: input, shape index: {}]   ;;  %s6298_s1 = inlined_call_operand.vmem [shape: bf16[72,8], index: 1, kind: input, shape index: {}]   ;;  %s6299_s2 = inlined_call_operand.vmem [shape: bf16[2,256,8], index: 2, kind: output, shape index: {0}]   ;;  %s6300_s3 = inlined_call_operand.vmem [shape: f32[2,1,8], index: 3, kind: output, shape index: {1}]   ;;  %s6301_s4 = inlined_call_operand.vmem [shape: f32[2,1,8], index: 4, kind: output, shape index: {2}]  }
   0x1 LB: > { %s4552_s16 = sadd.s32 4294967295, %s4993_s15   ;;  %p4556_p0 = scmp.ge.s32.totalorder %s4993_s15, 1  ;;  %s4993_s15 = sphi %s5029_s15, %s15_s15  }
   0x2   : > { %p167_p1 = scmp.lt.s32.totalorder %s4993_s15, 3 }
   0x4   : > { %p168_p2 = pnand %p4556_p0, %p167_p1 }
   0x5   : > { %vm216_vm0 = vcmask (!%p168_p2), 60416   ;;  %vm6302_vm1 = vcmask (!%p168_p2), 57344   ;;  %v4995_v0 = vmov (!%p168_p2), 0   ;;  %p199_p3 = scmp.lt.s32.totalorder (!%p168_p2), %s4552_s16, 1  ;;  %vm938_vm2 = vsmask.f32 (!%p168_p2), 3328 }
   0x6   : > { %171 = sbr.rel (%p168_p2) target bundleno = 760 (0x2f8), region = 28  ;;  %217 = vst.msk [vmem:[#allocation2] sm:$0xf] (!%p168_p2), %vm216_vm0, %v4995_v0  ;;  %218 = vst.msk [vmem:[#allocation2 + $0x4] sm:$0xf] (!%p168_p2), %vm216_vm0, %v4995_v0  ;;  %vm1534_vm4 = vcmask (!%p168_p2), 1042432  }
   0x7   : > { %220 = vst.msk [vmem:[#allocation2 + $0x8] sm:$0x1] (!%p168_p2), %vm6302_vm1, %v4995_v0  ;;  %223 = vst.msk [vmem:[#allocation2 + $0x14] sm:$0x1] (!%p168_p2), %vm6302_vm1, %v4995_v0  ;;  %vm939_vm3 = vsmask.f32 (!%p168_p2), 7440 }
   0x8   : > { %221 = vst.msk [vmem:[#allocation2 + $0xc] sm:$0xf] (!%p168_p2), %vm216_vm0, %v4995_v0  ;;  %222 = vst.msk [vmem:[#allocation2 + $0x10] sm:$0xf] (!%p168_p2), %vm216_vm0, %v4995_v0  ;;  %vm1535_vm5 = vcmask (!%p168_p2), 1046532   ;;  %s4996_s21 = smov (!%p168_p2), 16  }
   0x9   : > { %224 = vst.msk [vmem:[#allocation2 + $0x18] sm:$0xf] (!%p168_p2), %vm216_vm0, %v4995_v0  ;;  %225 = vst.msk [vmem:[#allocation2 + $0x1c] sm:$0xf] (!%p168_p2), %vm216_vm0, %v4995_v0  ;;  %vm304_vm6 = vsmask.f32 (!%p168_p2), 256 }
   0xa   : > { %226 = vst.msk [vmem:[#allocation2 + $0x20] sm:$0x1] (!%p168_p2), %vm6302_vm1, %v4995_v0  ;;  %229 = vst.msk [vmem:[#allocation2 + $0x2c] sm:$0x1] (!%p168_p2), %vm6302_vm1, %v4995_v0  ;;  %vm305_vm7 = vsmask.f32 (!%p168_p2), 4368 }
   0xb   : > { %227 = vst.msk [vmem:[#allocation2 + $0x24] sm:$0xf] (!%p168_p2), %vm216_vm0, %v4995_v0  ;;  %228 = vst.msk [vmem:[#allocation2 + $0x28] sm:$0xf] (!%p168_p2), %vm216_vm0, %v4995_v0  ;;  %vm629_vm8 = vsmask.f32 (!%p168_p2), 7938 }
   0xc   : > { %230 = vst.msk [vmem:[#allocation2 + $0x30] sm:$0xf] (!%p168_p2), %vm216_vm0, %v4995_v0  ;;  %231 = vst.msk [vmem:[#allocation2 + $0x34] sm:$0xf] (!%p168_p2), %vm216_vm0, %v4995_v0  ;;  %s4997_s22 = smov (!%p168_p2), 8   ;;  %s4998_s23 = smov (!%p168_p2), 24  }
   0xd   : > { %232 = vst.msk [vmem:[#allocation2 + $0x38] sm:$0x1] %vm6302_vm1, %v4995_v0  ;;  %235 = vst.msk [vmem:[#allocation2 + $0x44] sm:$0x1] %vm6302_vm1, %v4995_v0  ;;  %s6325_s16 = smov (!%p199_p3, %s4552_s16), 1  ;;  %s4999_s24 = smov 48  }
   0xe   : > { %233 = vst.msk [vmem:[#allocation2 + $0x3c] sm:$0xf] %vm216_vm0, %v4995_v0  ;;  %234 = vst.msk [vmem:[#allocation2 + $0x40] sm:$0xf] %vm216_vm0, %v4995_v0  ;;  %s4808_s17 = sshll.u32 %s6325_s16, 7  ;;  %s5000_s25 = smov 40  }
   0xf   : > { %236 = vst.msk [vmem:[#allocation2 + $0x48] sm:$0xf] %vm216_vm0, %v4995_v0  ;;  %237 = vst.msk [vmem:[#allocation2 + $0x4c] sm:$0xf] %vm216_vm0, %v4995_v0  ;;  %s5103_s20 = scalar_lea.vmem %s6297_s0, %s4808_s17  ;;  %v890_v2 = vld [vmem:[#allocation2] sm:$0xf]  ;;  %s6132_s18 = scalar_lea.vmem %s6299_s2, %s4808_s17 }
  0x10   : > { %238 = vst.msk [vmem:[#allocation2 + $0x50] sm:$0x1] %vm6302_vm1, %v4995_v0  ;;  %241 = vst.msk [vmem:[#allocation2 + $0x5c] sm:$0x1] %vm6302_vm1, %v4995_v0  ;;  %v272_v1 = vld [vmem:[%s5103_s20] sm:$0xf] }
  0x11   : > { %239 = vst.msk [vmem:[#allocation2 + $0x54] sm:$0xf] %vm216_vm0, %v4995_v0  ;;  %240 = vst.msk [vmem:[#allocation2 + $0x58] sm:$0xf] %vm216_vm0, %v4995_v0  ;;  %v891_v3 = vld [vmem:[#allocation2 + $0x4] sm:$0xf] }
  0x12   : > { %242 = vst.msk [vmem:[#allocation2 + $0x60] sm:$0xf] %vm216_vm0, %v4995_v0  ;;  %243 = vst.msk [vmem:[#allocation2 + $0x64] sm:$0xf] %vm216_vm0, %v4995_v0  ;;  %v892_v4 = vld [vmem:[#allocation2 + $0x8] sm:$0x1] }
  0x13   : > { %244 = vst.msk [vmem:[#allocation2 + $0x68] sm:$0x1] %vm6302_vm1, %v4995_v0  ;;  %247 = vst.msk [vmem:[#allocation2 + $0x74] sm:$0x1] %vm6302_vm1, %v4995_v0  ;;  %v273_v5 = vld [vmem:[%s5103_s20 + $0x4] sm:$0xf] }
  0x14   : > { %245 = vst.msk [vmem:[#allocation2 + $0x6c] sm:$0xf] %vm216_vm0, %v4995_v0  ;;  %246 = vst.msk [vmem:[#allocation2 + $0x70] sm:$0xf] %vm216_vm0, %v4995_v0  ;;  %v942_v6 = vshrl.u32 %v890_v2, 16  ;;  %v945_v7 = vshll.u32 %v890_v2, 16 }
  0x15   : > { %248 = vst.msk [vmem:[#allocation2 + $0x78] sm:$0xf] %vm216_vm0, %v4995_v0  ;;  %249 = vst.msk [vmem:[#allocation2 + $0x7c] sm:$0xf] %vm216_vm0, %v4995_v0  ;;  %v951_v8 = vshll.u32 %v891_v3, 16  ;;  %v955_v9 = vshrl.u32 %v891_v3, 16 }
  0x16   : > { %250 = vst.msk [vmem:[#allocation2 + $0x80] sm:$0x1] %vm6302_vm1, %v4995_v0  ;;  %253 = vst.msk [vmem:[#allocation2 + $0x8c] sm:$0x1] %vm6302_vm1, %v4995_v0  ;;  %v1438_v10 = vld [vmem:[#allocation2] sm:$0xe] }
  0x17   : > { %251 = vst.msk [vmem:[#allocation2 + $0x84] sm:$0xf] %vm216_vm0, %v4995_v0  ;;  %252 = vst.msk [vmem:[#allocation2 + $0x88] sm:$0xf] %vm216_vm0, %v4995_v0  ;;  %v961_v11 = vshll.u32 %v892_v4, 16  ;;  %v4593_v14 = vrot.slane %v1438_v10, 9 }
  0x18   : > { %254 = vst.msk [vmem:[#allocation2 + $0x90] sm:$0xf] %vm216_vm0, %v4995_v0  ;;  %255 = vst.msk [vmem:[#allocation2 + $0x94] sm:$0xf] %vm216_vm0, %v4995_v0  ;;  %v1439_v12 = vld [vmem:[#allocation2 + $0x4] sm:$0xf] }
  0x19   : > { %256 = vst.msk [vmem:[#allocation2 + $0x98] sm:$0x1] %vm6302_vm1, %v4995_v0  ;;  %259 = vst.msk [vmem:[#allocation2 + $0xa4] sm:$0x1] %vm6302_vm1, %v4995_v0  ;;  %v1440_v13 = vld [vmem:[#allocation2 + $0x8] sm:$0x1] }
  0x1a   : > { %257 = vst.msk [vmem:[#allocation2 + $0x9c] sm:$0xf] %vm216_vm0, %v4995_v0  ;;  %258 = vst.msk [vmem:[#allocation2 + $0xa0] sm:$0xf] %vm216_vm0, %v4995_v0  ;;  %v944_v15 = vrot.slane %v942_v6, 4  ;;  %v947_v16 = vrot.slane %v945_v7, 5 }
  0x1b   : > { %260 = vst.msk [vmem:[#allocation2 + $0xa8] sm:$0xf] %vm216_vm0, %v4995_v0  ;;  %261 = vst.msk [vmem:[#allocation2 + $0xac] sm:$0xf] %vm216_vm0, %v4995_v0  ;;  %v953_v17 = vrot.slane %v951_v8, 5  ;;  %v957_v18 = vrot.slane %v955_v9, 4 }
  0x1c   : > { %262 = vst.msk [vmem:[#allocation2 + $0xb0] sm:$0x1] %vm6302_vm1, %v4995_v0  ;;  %265 = vst.msk [vmem:[#allocation2 + $0xbc] sm:$0x1] %vm6302_vm1, %v4995_v0  ;;  %v963_v20 = vrot.slane %v961_v11, 5  ;;  %v1539_v21 = vrot.slane %v1439_v12, 5  ;;  %v948_v25 = vor.u32 %v947_v16, %v944_v15 }
  0x1d   : > { %263 = vst.msk [vmem:[#allocation2 + $0xb4] sm:$0xf] %vm216_vm0, %v4995_v0  ;;  %264 = vst.msk [vmem:[#allocation2 + $0xb8] sm:$0xf] %vm216_vm0, %v4995_v0  ;;  %v1542_v22 = vrot.slane %v1440_v13, 5  ;;  %v308_v23 = vshrl.u32 %v272_v1, 16  ;;  %v958_v26 = vor.u32 %v957_v18, %v953_v17 }
  0x1e   : > { %266 = vst.msk [vmem:[#allocation2 + $0xc0] sm:$0xf] %vm216_vm0, %v4995_v0  ;;  %267 = vst.msk [vmem:[#allocation2 + $0xc4] sm:$0xf] %vm216_vm0, %v4995_v0  ;;  %v274_v24 = vld [vmem:[%s5103_s20 + $0x8] sm:$0xf] }
  0x1f   : > { %268 = vst.msk [vmem:[#allocation2 + $0xc8] sm:$0x1] %vm6302_vm1, %v4995_v0  ;;  %271 = vst.msk [vmem:[#allocation2 + $0xd4] sm:$0x1] %vm6302_vm1, %v4995_v0  ;;  %v311_v27 = vshll.u32 %v272_v1, 16  ;;  %v316_v28 = vshrl.u32 %v273_v5, 16 }
  0x20   : > { %269 = vst.msk [vmem:[#allocation2 + $0xcc] sm:$0xf] %vm216_vm0, %v4995_v0  ;;  %270 = vst.msk [vmem:[#allocation2 + $0xd0] sm:$0xf] %vm216_vm0, %v4995_v0  ;;  %v1541_v31 = vrot.slane %v1539_v21, 4  ;;  %v310_v32 = vrot.slane %v308_v23, 7 }
  0x21   : > { %vm5109_vm9 = vmor %vm1534_vm4, %vm1535_vm5  ;;  %v319_v33 = vshll.u32 %v273_v5, 16  ;;  %v949_v34 = vrot.slane %v948_v25, 4  ;;  %v959_v35 = vrot.slane %v958_v26, 4  ;;  %v318_v36 = vrot.slane %v316_v28, 7  ;;  %v631_v38 = vld [vmem:[#allocation2 + $0xc] sm:$0xf] }
  0x22   : > { %vm5116_vm10 = vmor %vm938_vm2, %vm939_vm3  ;;  %v1540_v30 = vsel %vm5109_vm9, %v4593_v14, %v1539_v21  ;;  %v325_v39 = vshrl.u32 %v274_v24, 16  ;;  %v1543_v40 = vsel %vm5109_vm9, %v1541_v31, %v1542_v22  ;;  %v313_v42 = vor.u32 %v311_v27, %v310_v32  ;;  %v275_v44 = vld [vmem:[%s5103_s20 + $0xc] sm:$0xf]  ;;  %v276_v46 = vld [vmem:[%s5103_s20 + $0x10] sm:$0xf]  ;;  %s5001_s26 = smov 64  }
  0x23   : > { %vm5124_vm11 = vmand %vm216_vm0, %vm629_vm8  ;;  %v314_v43 = vrot.slane %v310_v32, 4  ;;  %v328_v45 = vshll.u32 %v274_v24, 16  ;;  %v954_v47 = vsel %vm5116_vm10, %v949_v34, %v953_v17  ;;  %v964_v48 = vsel %vm5116_vm10, %v959_v35, %v963_v20  ;;  %v277_v51 = vld [vmem:[%s5103_s20 + $0x14] sm:$0xf]  ;;  %v640_v57 = vld [vmem:[#allocation2 + $0x18] sm:$0xf] }
  0x24   : > { %vm5132_vm12 = vmor %vm304_vm6, %vm305_vm7  ;;  %v4609_v49 = vcombine.low %v1540_v30, %v1543_v40  ;;  %v321_v50 = vor.u32 %v319_v33, %v318_v36  ;;  %v4577_v52 = vcombine.low %v954_v47, %v964_v48  ;;  %v323_v53 = vrot.slane %v318_v36, 4  ;;  %v637_v58 = vld [vmem:[#allocation2 + $0x14] sm:$0x1]  ;;  %v278_v63 = vld [vmem:[%s5103_s20 + $0x18] sm:$0xf]  ;;  %s5002_s27 = smov 32  }
  0x25   : > { %v632_v54 = vsel %vm5124_vm11, %v313_v42, %v631_v38  ;;  %vm5147_vm13 = vmand %vm6302_vm1, %vm304_vm6  ;;  %v327_v56 = vrot.slane %v325_v39, 7  ;;  %v333_v60 = vshrl.u32 %v275_v44, 16  ;;  %v336_v61 = vshll.u32 %v275_v44, 16  ;;  %v647_v7 = vld [vmem:[#allocation2 + $0x24] sm:$0xf]  ;;  %s5003_s28 = smov 56  }
  0x26   : > { %1697 = vrot.lane.b32.xlu1 %v4609_v49, %s4996_s21  ;;  %v322_v59 = vsel %vm5132_vm12, %v314_v43, %v321_v50  ;;  %633 = vst [vmem:[#allocation2 + $0xc] sm:$0xf] %v632_v54  ;;  %v342_v62 = vshrl.u32 %v276_v46, 16  ;;  %1373 = vrot.lane.b32.xlu0 %v4577_v52, %s4997_s22  ;;  %v345_v2 = vshll.u32 %v276_v46, 16  ;;  %v350_v3 = vshrl.u32 %v277_v51, 16 }
  0x27   : > { %634 = vst.msk [vmem:[#allocation2 + $0x10] sm:$0xf] %vm216_vm0, %v322_v59  ;;  %v330_v0 = vor.u32 %v328_v45, %v327_v56  ;;  %v331_v1 = vrot.slane %v327_v56, 4  ;;  %v335_v4 = vrot.slane %v333_v60, 7  ;;  %v353_v6 = vshll.u32 %v277_v51, 16 }
  0x28   : > { %v344_v5 = vrot.slane %v342_v62, 7  ;;  %v638_v8 = vsel %vm5147_vm13, %v323_v53, %v637_v58  ;;  %v352_v10 = vrot.slane %v350_v3, 7  ;;  %v644_v11 = vld [vmem:[#allocation2 + $0x20] sm:$0x1]  ;;  %v359_v12 = vshrl.u32 %v278_v63, 16 }
  0x29   : > { %v641_v9 = vsel %vm5124_vm11, %v330_v0, %v640_v57  ;;  %639 = vst [vmem:[#allocation2 + $0x14] sm:$0x1] %v638_v8  ;;  %v362_v13 = vshll.u32 %v278_v63, 16  ;;  %v338_v14 = vor.u32 %v336_v61, %v335_v4  ;;  %v340_v15 = vrot.slane %v335_v4, 4  ;;  %v651_v18 = vld [vmem:[#allocation2 + $0x2c] sm:$0x1] }
  0x2a   : > { %642 = vst [vmem:[#allocation2 + $0x18] sm:$0xf] %v641_v9  ;;  %v347_v16 = vor.u32 %v345_v2, %v344_v5  ;;  %v348_v17 = vrot.slane %v344_v5, 4  ;;  %v355_v20 = vor.u32 %v353_v6, %v352_v10  ;;  %v357_v21 = vrot.slane %v352_v10, 4  ;;  %v5162_v22 = vld [vmem:[%s5103_s20 + $0x1c] sm:$0xf] }
  0x2b   : > { %v5164_v23 = vrot.slane %v359_v12, 7  ;;  %v339_v24 = vsel %vm5132_vm12, %v331_v1, %v338_v14  ;;  %v645_v26 = vsel %vm5147_vm13, %v340_v15, %v644_v11  ;;  %v654_v27 = vld [vmem:[#allocation2 + $0x30] sm:$0xf]  ;;  %v367_v36 = vshrl.u32 %v5162_v22, 16 }
  0x2c   : > { %v648_v25 = vsel %vm5124_vm11, %v347_v16, %v647_v7  ;;  %643 = vst.msk [vmem:[#allocation2 + $0x1c] sm:$0xf] %vm216_vm0, %v339_v24  ;;  %v356_v28 = vsel %vm5132_vm12, %v348_v17, %v355_v20  ;;  %646 = vst [vmem:[#allocation2 + $0x20] sm:$0x1] %v645_v26  ;;  %v652_v32 = vsel %vm5147_vm13, %v357_v21, %v651_v18  ;;  %v370_v42 = vshll.u32 %v5162_v22, 16 }
  0x2d   : > { %649 = vst [vmem:[#allocation2 + $0x24] sm:$0xf] %v648_v25  ;;  %v2484_v30 = vld [vmem:[#allocation2 + $0xc] sm:$0xe]  ;;  %v364_v33 = vor.u32 %v362_v13, %v5164_v23  ;;  %650 = vst.msk [vmem:[#allocation2 + $0x28] sm:$0xf] %vm216_vm0, %v356_v28 }
  0x2e   : > { %v1441_v31 = vld [vmem:[#allocation2 + $0xc] sm:$0xe]  ;;  %v2485_v35 = vld [vmem:[#allocation2 + $0x10] sm:$0xf]  ;;  %653 = vst [vmem:[#allocation2 + $0x2c] sm:$0x1] %v652_v32 }
  0x2f   : > { %v4934_v34 = vld [vmem:[#allocation2 + $0xc] sm:$0xff]   ;;  %v2582_v38 = vrot.slane %v2485_v35, 5  ;;  %v655_v43 = vsel %vm5124_vm11, %v364_v33, %v654_v27  ;;  %v4657_v45 = vrot.slane %v2484_v30, 9  ;;  %v4594_v50 = vrot.slane %v1441_v31, 9 }
  0x30   : > { %v1442_v39 = vld [vmem:[#allocation2 + $0x10] sm:$0xf]  ;;  %v5180_v40 = vld [vmem:[#allocation2 + $0xc] sm:$0xf]  ;;  %1874 = vrot.lane.b32.xlu0 %v4934_v34, %s4998_s23  ;;  %v2486_v44 = vld [vmem:[#allocation2 + $0x14] sm:$0x1] }
  0x31   : > { %v1443_v46 = vld [vmem:[#allocation2 + $0x14] sm:$0x1]  ;;  %v1546_v47 = vrot.slane %v1442_v39, 5  ;;  %656 = vst [vmem:[#allocation2 + $0x30] sm:$0xf] %v655_v43  ;;  %v2584_v48 = vrot.slane %v2582_v38, 4  ;;  %v2583_v61 = vsel %vm5109_vm9, %v4657_v45, %v2582_v38 }
  0x32   : > { %v2585_v49 = vrot.slane %v2486_v44, 5  ;;  %v3528_v51 = vld [vmem:[#allocation2 + $0x18] sm:$0xe]  ;;  %v966_v53 = vshrl.u32 %v5180_v40, 16  ;;  %v1549_v56 = vrot.slane %v1443_v46, 5  ;;  %vm873_vm14 = vcmask 64512  }
  0x33   : > { %v2487_v52 = vld [vmem:[#allocation2 + $0x18] sm:$0xe]  ;;  %v1548_v54 = vrot.slane %v1546_v47, 4  ;;  %v4721_v57 = vrot.slane %v3528_v51, 9  ;;  %v1547_v3 = vsel %vm5109_vm9, %v4594_v50, %v1546_v47  ;;  %v3529_v4 = vld [vmem:[#allocation2 + $0x1c] sm:$0xf] }
  0x34   : > { %v4658_v58 = vrot.slane %v2487_v52, 9  ;;  %v1942_v59 = vld [vmem:[#allocation2 + $0x18] sm:$0xf]  ;;  %v2586_v62 = vsel %vm5109_vm9, %v2584_v48, %v2585_v49  ;;  %v4937_v2 = vld [vmem:[#allocation2 + $0x24] sm:$0xff]   ;;  %v3530_v5 = vld [vmem:[#allocation2 + $0x20] sm:$0x1] }
  0x35   : > { %v4935_v60 = vld [vmem:[#allocation2 + $0x18] sm:$0xff]   ;;  %v2012_v63 = vshrl.u32 %v1942_v59, 16  ;;  %v2015_v1 = vshll.u32 %v1942_v59, 16  ;;  %v4673_v7 = vcombine.low %v2583_v61, %v2586_v62  ;;  %v1550_v8 = vsel %vm5109_vm9, %v1548_v54, %v1549_v56  ;;  %v2489_v12 = vld [vmem:[#allocation2 + $0x20] sm:$0x1] }
  0x36   : > { %v4936_v0 = vld [vmem:[#allocation2 + $0x18] sm:$0xff]   ;;  %1876 = vrot.lane.b32.xlu1 %v4935_v60, %s4998_s23  ;;  %v3626_v9 = vrot.slane %v3529_v4, 5  ;;  %v3629_v10 = vrot.slane %v3530_v5, 5  ;;  %v2592_v14 = vrot.slane %v2489_v12, 5  ;;  %v3531_v15 = vld [vmem:[#allocation2 + $0x24] sm:$0xe]  ;;  %v4610_v25 = vcombine.low %v1547_v3, %v1550_v8 }
  0x37   : > { %v2014_v6 = vrot.slane %v2012_v63, 4  ;;  %2918 = vrot.lane.b32.xlu0 %v4936_v0, %s4999_s24  ;;  %v2488_v11 = vld [vmem:[#allocation2 + $0x1c] sm:$0xf]  ;;  %v3532_v16 = vld [vmem:[#allocation2 + $0x28] sm:$0xf]  ;;  %v4722_v21 = vrot.slane %v3531_v15, 9 }
  0x38   : > { %v2589_v13 = vrot.slane %v2488_v11, 5  ;;  %v3627_v17 = vsel %vm5109_vm9, %v4721_v57, %v3626_v9  ;;  %v3628_v18 = vrot.slane %v3626_v9, 4  ;;  %v3533_v20 = vld [vmem:[#allocation2 + $0x2c] sm:$0x1]  ;;  %v3633_v24 = vrot.slane %v3532_v16, 5 }
  0x39   : > { %v3636_v28 = vrot.slane %v3533_v20, 5  ;;  %v1943_v30 = vld [vmem:[#allocation2 + $0x1c] sm:$0xf]  ;;  %v1944_v31 = vld [vmem:[#allocation2 + $0x20] sm:$0x1]  ;;  %v2017_v35 = vrot.slane %v2015_v1, 5 }
  0x3a   : > { %2920 = vrot.lane.b32.xlu1 %v4937_v2, %s4999_s24  ;;  %v2590_v26 = vsel %vm5109_vm9, %v4658_v58, %v2589_v13  ;;  %v2591_v27 = vrot.slane %v2589_v13, 4  ;;  %v3630_v32 = vsel %vm5109_vm9, %v3628_v18, %v3629_v10  ;;  %v3634_v33 = vsel %vm5109_vm9, %v4722_v21, %v3633_v24  ;;  %v894_v45 = vld [vmem:[#allocation2 + $0x10] sm:$0xf]  ;;  %v895_v50 = vld [vmem:[#allocation2 + $0x14] sm:$0x1] }
  0x3b   : > { %2740 = vrot.lane.b32.xlu0 %v4673_v7, %s5000_s25  ;;  %v3635_v34 = vrot.slane %v3633_v24, 4  ;;  %v4737_v38 = vcombine.low %v3627_v17, %v3630_v32  ;;  %v2021_v43 = vshll.u32 %v1943_v30, 16  ;;  %v2025_v44 = vshrl.u32 %v1943_v30, 16  ;;  %v2986_v51 = vld [vmem:[#allocation2 + $0x24] sm:$0xf] }
  0x3c   : > { %v2593_v39 = vsel %vm5109_vm9, %v2591_v27, %v2592_v14  ;;  %v2018_v48 = vor.u32 %v2017_v35, %v2014_v6  ;;  %v2031_v49 = vshll.u32 %v1944_v31, 16  ;;  %v968_v57 = vrot.slane %v966_v53, 4  ;;  %v2987_v62 = vld [vmem:[#allocation2 + $0x28] sm:$0xf]  ;;  %v2988_v2 = vld [vmem:[#allocation2 + $0x2c] sm:$0x1] }
  0x3d   : > { %v4674_v46 = vcombine.low %v2590_v26, %v2593_v39  ;;  %v3637_v47 = vsel %vm5109_vm9, %v3635_v34, %v3636_v28  ;;  %v2023_v54 = vrot.slane %v2021_v43, 5  ;;  %v2027_v56 = vrot.slane %v2025_v44, 4  ;;  %v1939_v7 = vld [vmem:[#allocation2 + $0xc] sm:$0xf]  ;;  %v1940_v18 = vld [vmem:[#allocation2 + $0x10] sm:$0xf] }
  0x3e   : > { %1699 = vrot.lane.b32.xlu1 %v4610_v25, %s4996_s21  ;;  %v4738_v52 = vcombine.low %v3634_v33, %v3637_v47  ;;  %v2019_v58 = vrot.slane %v2018_v48, 4  ;;  %v2033_v59 = vrot.slane %v2031_v49, 5  ;;  %v969_v60 = vshll.u32 %v5180_v40, 16  ;;  %v1941_v27 = vld [vmem:[#allocation2 + $0x14] sm:$0x1] }
  0x3f   : > { %3784 = vrot.lane.b32.xlu0 %v4737_v38, %s5001_s26  ;;  %v975_v61 = vshll.u32 %v894_v45, 16  ;;  %v2028_v63 = vor.u32 %v2027_v56, %v2023_v54  ;;  %v979_v0 = vshrl.u32 %v894_v45, 16  ;;  %v985_v1 = vshll.u32 %v895_v50, 16  ;;  %v896_v39 = vld [vmem:[#allocation2 + $0x18] sm:$0xf] }
  0x40   : > { %v3056_v3 = vshrl.u32 %v2986_v51, 16  ;;  %v2024_v4 = vsel %vm5116_vm10, %v2019_v58, %v2023_v54  ;;  %v971_v5 = vrot.slane %v969_v60, 5  ;;  %v3059_v53 = vshll.u32 %v2986_v51, 16  ;;  %v897_v47 = vld [vmem:[#allocation2 + $0x1c] sm:$0xf] }
  0x41   : > { %v977_v6 = vrot.slane %v975_v61, 5  ;;  %v2029_v8 = vrot.slane %v2028_v63, 4  ;;  %v981_v9 = vrot.slane %v979_v0, 4  ;;  %v987_v10 = vrot.slane %v985_v1, 5  ;;  %v2983_v54 = vld [vmem:[#allocation2 + $0x18] sm:$0xf] }
  0x42   : > { %2742 = vrot.lane.b32.xlu1 %v4674_v46, %s5000_s25  ;;  %v3058_v40 = vrot.slane %v3056_v3, 4  ;;  %v972_v11 = vor.u32 %v971_v5, %v968_v57  ;;  %v3061_v12 = vrot.slane %v3059_v53, 5  ;;  %v3065_v13 = vshll.u32 %v2987_v62, 16 }
  0x43   : > { %3786 = vrot.lane.b32.xlu0 %v4738_v52, %s5001_s26  ;;  %v3069_v14 = vshrl.u32 %v2987_v62, 16  ;;  %v2034_v15 = vsel %vm5116_vm10, %v2029_v8, %v2033_v59  ;;  %v982_v16 = vor.u32 %v981_v9, %v977_v6  ;;  %v3075_v17 = vshll.u32 %v2988_v2, 16  ;;  %v898_v52 = vld [vmem:[#allocation2 + $0x20] sm:$0x1] }
  0x44   : > { %v1988_v20 = vshrl.u32 %v1939_v7, 16  ;;  %v4642_v21 = vcombine.low %v2024_v4, %v2034_v15  ;;  %v973_v24 = vrot.slane %v972_v11, 4  ;;  %v3062_v25 = vor.u32 %v3061_v12, %v3058_v40  ;;  %v2984_v4 = vld [vmem:[#allocation2 + $0x1c] sm:$0xf] }
  0x45   : > { %v3067_v26 = vrot.slane %v3065_v13, 5  ;;  %v983_v28 = vrot.slane %v982_v16, 4  ;;  %v3071_v30 = vrot.slane %v3069_v14, 4  ;;  %v3077_v31 = vrot.slane %v3075_v17, 5  ;;  %v2985_v13 = vld [vmem:[#allocation2 + $0x20] sm:$0x1] }
  0x46   : > { %v1990_v32 = vrot.slane %v1988_v20, 4  ;;  %2421 = vrot.lane.b32.xlu1 %v4642_v21, %s5002_s27  ;;  %v978_v33 = vsel %vm5116_vm10, %v973_v24, %v977_v6  ;;  %v3063_v34 = vrot.slane %v3062_v25, 4  ;;  %v1991_v35 = vshll.u32 %v1939_v7, 16  ;;  %v899_v16 = vld [vmem:[#allocation2 + $0x24] sm:$0xf] }
  0x47   : > { %v1997_v38 = vshll.u32 %v1940_v18, 16  ;;  %v988_v43 = vsel %vm5116_vm10, %v983_v28, %v987_v10  ;;  %v3072_v44 = vor.u32 %v3071_v30, %v3067_v26  ;;  %v2001_v45 = vshrl.u32 %v1940_v18, 16  ;;  %v900_v24 = vld [vmem:[#allocation2 + $0x28] sm:$0xf] }
  0x48   : > { %v2007_v46 = vshll.u32 %v1941_v27, 16  ;;  %v4578_v48 = vcombine.low %v978_v33, %v988_v43  ;;  %v3068_v49 = vsel %vm5116_vm10, %v3063_v34, %v3067_v26  ;;  %v1993_v50 = vrot.slane %v1991_v35, 5 }
  0x49   : > { %v1999_v51 = vrot.slane %v1997_v38, 5  ;;  %v3073_v56 = vrot.slane %v3072_v44, 4  ;;  %v2003_v57 = vrot.slane %v2001_v45, 4  ;;  %v990_v59 = vshrl.u32 %v896_v39, 16  ;;  %v901_v38 = vld [vmem:[#allocation2 + $0x2c] sm:$0x1] }
  0x4a   : > { %v2009_v58 = vrot.slane %v2007_v46, 5  ;;  %1375 = vrot.lane.b32.xlu0 %v4578_v48, %s4997_s22  ;;  %v1994_v60 = vor.u32 %v1993_v50, %v1990_v32  ;;  %v993_v61 = vshll.u32 %v896_v39, 16  ;;  %v999_v62 = vshll.u32 %v897_v47, 16  ;;  %v1444_v44 = vld [vmem:[#allocation2 + $0x18] sm:$0xe] }
  0x4b   : > { %v1003_v63 = vshrl.u32 %v897_v47, 16  ;;  %v3078_v0 = vsel %vm5116_vm10, %v3073_v56, %v3077_v31  ;;  %v2004_v1 = vor.u32 %v2003_v57, %v1999_v51  ;;  %v992_v2 = vrot.slane %v990_v59, 4  ;;  %v1446_v50 = vld [vmem:[#allocation2 + $0x20] sm:$0x1]  ;;  %v1447_v57 = vld [vmem:[#allocation2 + $0x24] sm:$0xe] }
  0x4c   : > { %v1009_v3 = vshll.u32 %v898_v52, 16  ;;  %v4706_v5 = vcombine.low %v3068_v49, %v3078_v0  ;;  %v1995_v6 = vrot.slane %v1994_v60, 4  ;;  %v995_v53 = vrot.slane %v993_v61, 5  ;;  %v1445_v49 = vld [vmem:[#allocation2 + $0x1c] sm:$0xf] }
  0x4d   : > { %v1001_v7 = vrot.slane %v999_v62, 5  ;;  %v2005_v8 = vrot.slane %v2004_v1, 4  ;;  %v1005_v9 = vrot.slane %v1003_v63, 4  ;;  %v3032_v40 = vshrl.u32 %v2983_v54, 16 }
  0x4e   : > { %v1011_v10 = vrot.slane %v1009_v3, 5  ;;  %3465 = vrot.lane.b32.xlu1 %v4706_v5, %s5003_s28  ;;  %v2000_v11 = vsel %vm5116_vm10, %v1995_v6, %v1999_v51  ;;  %v996_v12 = vor.u32 %v995_v53, %v992_v2  ;;  %v3035_v14 = vshll.u32 %v2983_v54, 16  ;;  %v1448_v2 = vld [vmem:[#allocation2 + $0x28] sm:$0xf]  ;;  %v1449_v3 = vld [vmem:[#allocation2 + $0x2c] sm:$0x1] }
  0x4f   : > { %v3041_v15 = vshll.u32 %v2984_v4, 16  ;;  %v2010_v17 = vsel %vm5116_vm10, %v2005_v8, %v2009_v58  ;;  %v1006_v18 = vor.u32 %v1005_v9, %v1001_v7  ;;  %v3034_v20 = vrot.slane %v3032_v40, 4 }
  0x50   : > { %v3045_v21 = vshrl.u32 %v2984_v4, 16  ;;  %v4641_v25 = vcombine.low %v2000_v11, %v2010_v17  ;;  %v997_v26 = vrot.slane %v996_v12, 4  ;;  %v3037_v27 = vrot.slane %v3035_v14, 5 }
  0x51   : > { %v3043_v28 = vrot.slane %v3041_v15, 5  ;;  %v1007_v30 = vrot.slane %v1006_v18, 4  ;;  %v3051_v32 = vshll.u32 %v2985_v13, 16  ;;  %v1014_v33 = vshrl.u32 %v899_v16, 16  ;;  %v1946_v15 = vld [vmem:[#allocation2 + $0x28] sm:$0xf] }
  0x52   : > { %v3047_v31 = vrot.slane %v3045_v21, 4  ;;  %2419 = vrot.lane.b32.xlu0 %v4641_v25, %s5002_s27  ;;  %v1002_v34 = vsel %vm5116_vm10, %v997_v26, %v1001_v7  ;;  %v3038_v35 = vor.u32 %v3037_v27, %v3034_v20  ;;  %v1017_v39 = vshll.u32 %v899_v16, 16  ;;  %v1945_v7 = vld [vmem:[#allocation2 + $0x24] sm:$0xf]  ;;  %v658_v21 = vld [vmem:[#allocation2 + $0x38] sm:$0x1] }
  0x53   : > { %v1023_v43 = vshll.u32 %v900_v24, 16  ;;  %v1012_v45 = vsel %vm5116_vm10, %v1007_v30, %v1011_v10  ;;  %v3053_v47 = vrot.slane %v3051_v32, 5  ;;  %v1016_v48 = vrot.slane %v1014_v33, 4  ;;  %v1947_v27 = vld [vmem:[#allocation2 + $0x2c] sm:$0x1] }
  0x54   : > { %v3048_v46 = vor.u32 %v3047_v31, %v3043_v28  ;;  %v4579_v51 = vcombine.low %v1002_v34, %v1012_v45  ;;  %v3039_v52 = vrot.slane %v3038_v35, 4  ;;  %v1019_v54 = vrot.slane %v1017_v39, 5  ;;  %v2490_v34 = vld [vmem:[#allocation2 + $0x24] sm:$0xe] }
  0x55   : > { %v1025_v56 = vrot.slane %v1023_v43, 5  ;;  %v1027_v59 = vshrl.u32 %v900_v24, 16  ;;  %v1033_v60 = vshll.u32 %v901_v38, 16  ;;  %v4595_v61 = vrot.slane %v1444_v44, 9  ;;  %v2491_v43 = vld [vmem:[#allocation2 + $0x28] sm:$0xf] }
  0x56   : > { %v3049_v58 = vrot.slane %v3048_v46, 4  ;;  %1377 = vrot.lane.b32.xlu1 %v4579_v51, %s4997_s22  ;;  %v3044_v62 = vsel %vm5116_vm10, %v3039_v52, %v3043_v28  ;;  %v1020_v63 = vor.u32 %v1019_v54, %v1016_v48  ;;  %v1553_v0 = vrot.slane %v1445_v49, 5  ;;  %v1948_v28 = vld [vmem:[#allocation2 + $0x30] sm:$0xf]  ;;  %v2492_v44 = vld [vmem:[#allocation2 + $0x2c] sm:$0x1] }
  0x57   : > { %v1556_v1 = vrot.slane %v1446_v50, 5  ;;  %v1029_v5 = vrot.slane %v1027_v59, 4  ;;  %v1035_v6 = vrot.slane %v1033_v60, 5  ;;  %v4596_v53 = vrot.slane %v1447_v57, 9  ;;  %v2493_v48 = vld [vmem:[#allocation2 + $0x30] sm:$0xe] }
  0x58   : > { %v3054_v4 = vsel %vm5116_vm10, %v3049_v58, %v3053_v47  ;;  %v1021_v9 = vrot.slane %v1020_v63, 4  ;;  %v1554_v10 = vsel %vm5109_vm9, %v4595_v61, %v1553_v0  ;;  %v1555_v40 = vrot.slane %v1553_v0, 4  ;;  %v280_v49 = vld [vmem:[%s5103_s20 + $0x20] sm:$0xf] }
  0x59   : > { %v4705_v8 = vcombine.low %v3044_v62, %v3054_v4  ;;  %v1030_v11 = vor.u32 %v1029_v5, %v1025_v56  ;;  %v1560_v12 = vrot.slane %v1448_v2, 5  ;;  %v1563_v13 = vrot.slane %v1449_v3, 5 }
  0x5a   : > { %v365_v14 = vrot.slane %v5164_v23, 4  ;;  %v1026_v16 = vsel %vm5116_vm10, %v1021_v9, %v1025_v56  ;;  %v1557_v17 = vsel %vm5109_vm9, %v1555_v40, %v1556_v1  ;;  %v369_v18 = vrot.slane %v367_v36, 7  ;;  %v5271_v56 = vld [vmem:[%s5103_s20 + $0x24] sm:$0xf] }
  0x5b   : > { %3463 = vrot.lane.b32.xlu0 %v4705_v8, %s5003_s28  ;;  %v2036_v20 = vshrl.u32 %v1945_v7, 16  ;;  %v1031_v24 = vrot.slane %v1030_v11, 4  ;;  %v4611_v25 = vcombine.low %v1554_v10, %v1557_v17  ;;  %v1561_v26 = vsel %vm5109_vm9, %v4596_v53, %v1560_v12 }
  0x5c   : > { %v1562_v23 = vrot.slane %v1560_v12, 4  ;;  %v372_v30 = vor.u32 %v370_v42, %v369_v18  ;;  %v374_v31 = vrot.slane %v369_v18, 4  ;;  %v2039_v33 = vshll.u32 %v1945_v7, 16  ;;  %v4938_v42 = vld [vmem:[#allocation2 + $0x24] sm:$0xff]  }
  0x5d   : > { %v2038_v32 = vrot.slane %v2036_v20, 4  ;;  %v1036_v36 = vsel %vm5116_vm10, %v1031_v24, %v1035_v6  ;;  %v2045_v38 = vshll.u32 %v1946_v15, 16  ;;  %v2049_v39 = vshrl.u32 %v1946_v15, 16  ;;  %v661_v20 = vld [vmem:[#allocation2 + $0x3c] sm:$0xf] }
  0x5e   : > { %v1564_v35 = vsel %vm5109_vm9, %v1562_v23, %v1563_v13  ;;  %v4580_v45 = vcombine.low %v1026_v16, %v1036_v36  ;;  %v373_v46 = vsel %vm5132_vm12, %v365_v14, %v372_v30  ;;  %v2041_v47 = vrot.slane %v2039_v33, 5 }
  0x5f   : > { %1701 = vrot.lane.b32.xlu0 %v4611_v25, %s4996_s21  ;;  %v4612_v22 = vcombine.low %v1561_v26, %v1564_v35  ;;  %657 = vst.msk [vmem:[#allocation2 + $0x34] sm:$0xf] %vm216_vm0, %v373_v46  ;;  %v2047_v50 = vrot.slane %v2045_v38, 5  ;;  %v2051_v51 = vrot.slane %v2049_v39, 4  ;;  %v2055_v52 = vshll.u32 %v1947_v27, 16  ;;  %v4952_v38 = vld [vmem:[%s6298_s1] sm:$0xff]  }
  0x60   : > { %v659_v54 = vsel %vm5147_vm13, %v374_v31, %v658_v21  ;;  %1379 = vrot.lane.b32.xlu1 %v4580_v45, %s4997_s22  ;;  %v2042_v57 = vor.u32 %v2041_v47, %v2038_v32  ;;  %v2060_v58 = vshrl.u32 %v1948_v28, 16  ;;  %v2063_v59 = vshll.u32 %v1948_v28, 16  ;;  %v2989_v21 = vld [vmem:[#allocation2 + $0x30] sm:$0xf]  ;;  %4863 = vmatprep.subr.bf16.mxu0 %v4952_v38 }
  0x61   : > { %660 = vst [vmem:[#allocation2 + $0x38] sm:$0x1] %v659_v54  ;;  %v4659_v60 = vrot.slane %v2490_v34, 9  ;;  %v2052_v61 = vor.u32 %v2051_v51, %v2047_v50  ;;  %v2057_v62 = vrot.slane %v2055_v52, 5  ;;  %v2596_v63 = vrot.slane %v2491_v43, 5  ;;  %4905 = vmatprep.subr.bf16.mxu1 %v4952_v38  ;;  %4864 = vmatpush3.bf16.msra.mxu0 %v4952_v38 }
  0x62   : > { %v2599_v0 = vrot.slane %v2492_v44, 5  ;;  %v2043_v1 = vrot.slane %v2042_v57, 4  ;;  %v2062_v2 = vrot.slane %v2060_v58, 4  ;;  %v2065_v3 = vrot.slane %v2063_v59, 5  ;;  %v3534_v51 = vld [vmem:[#allocation2 + $0x30] sm:$0xe]  ;;  %4910 = vmatpush3.bf16.msra.mxu1 %v4952_v38 }
  0x63   : > { %1878 = vrot.lane.b32.xlu0 %v4938_v42, %s4998_s23  ;;  %v4660_v4 = vrot.slane %v2493_v48, 9  ;;  %v2053_v5 = vrot.slane %v2052_v61, 4  ;;  %v2597_v6 = vsel %vm5109_vm9, %v4659_v60, %v2596_v63  ;;  %v2598_v53 = vrot.slane %v2596_v63, 4  ;;  %v665_v42 = vld [vmem:[#allocation2 + $0x44] sm:$0x1] }
  0x64   : > { %v376_v7 = vshrl.u32 %v280_v49, 16  ;;  %1703 = vrot.lane.b32.xlu1 %v4612_v22, %s4996_s21  ;;  %v2048_v8 = vsel %vm5116_vm10, %v2043_v1, %v2047_v50  ;;  %v2066_v9 = vor.u32 %v2065_v3, %v2062_v2  ;;  %v379_v10 = vshll.u32 %v280_v49, 16  ;;  %v902_v59 = vld [vmem:[#allocation2 + $0x30] sm:$0xf] }
  0x65   : > { %v384_v40 = vshrl.u32 %v5271_v56, 16  ;;  %v2058_v11 = vsel %vm5116_vm10, %v2053_v5, %v2057_v62  ;;  %v2600_v12 = vsel %vm5109_vm9, %v2598_v53, %v2599_v0  ;;  %v387_v14 = vshll.u32 %v5271_v56, 16 }
  0x66   : > { %v378_v13 = vrot.slane %v376_v7, 7  ;;  %v4939_v15 = vld [vmem:[#allocation2 + $0x30] sm:$0xff]   ;;  %v4643_v16 = vcombine.low %v2048_v8, %v2058_v11  ;;  %v2067_v18 = vrot.slane %v2066_v9, 4  ;;  %v4675_v30 = vcombine.low %v2597_v6, %v2600_v12 }
  0x67   : > { %v1949_v17 = vld [vmem:[#allocation2 + $0x34] sm:$0xf]  ;;  %v386_v45 = vrot.slane %v384_v40, 7  ;;  %v3080_v50 = vshrl.u32 %v2989_v21, 16  ;;  %v3083_v58 = vshll.u32 %v2989_v21, 16  ;;  %v4723_v8 = vrot.slane %v3534_v51, 9 }
  0x68   : > { %v1950_v24 = vld [vmem:[#allocation2 + $0x38] sm:$0x1]  ;;  %v2069_v25 = vshll.u32 %v1949_v17, 16  ;;  %v2073_v26 = vshrl.u32 %v1949_v17, 16  ;;  %v2494_v23 = vld [vmem:[#allocation2 + $0x34] sm:$0xf]  ;;  %v381_v27 = vor.u32 %v379_v10, %v378_v13  ;;  %1880 = vrot.lane.b32.xlu1 %v4939_v15, %s4998_s23  ;;  %2423 = vrot.lane.b32.xlu0 %v4643_v16, %s5002_s27 }
  0x69   : > { %v2079_v28 = vshll.u32 %v1950_v24, 16  ;;  %v2495_v31 = vld [vmem:[#allocation2 + $0x38] sm:$0x1]  ;;  %v2603_v32 = vrot.slane %v2494_v23, 5  ;;  %v382_v35 = vrot.slane %v378_v13, 4  ;;  %v4940_v54 = vld [vmem:[#allocation2 + $0x30] sm:$0xff]   ;;  %v389_v56 = vor.u32 %v387_v14, %v386_v45 }
  0x6a   : > { %v2071_v33 = vrot.slane %v2069_v25, 5  ;;  %v2075_v34 = vrot.slane %v2073_v26, 4  ;;  %v2606_v36 = vrot.slane %v2495_v31, 5  ;;  %v2990_v22 = vld [vmem:[#allocation2 + $0x34] sm:$0xf]  ;;  %v662_v48 = vsel %vm5124_vm11, %v381_v27, %v661_v20  ;;  %v4955_v13 = vld [vmem:[%s6298_s1 + $0x8] sm:$0xff]  }
  0x6b   : > { %v2081_v39 = vrot.slane %v2079_v28, 5  ;;  %v5293_v43 = vsel %vm5109_vm9, %v4660_v4, %v2603_v32  ;;  %v2605_v44 = vrot.slane %v2603_v32, 4  ;;  %v2991_v49 = vld [vmem:[#allocation2 + $0x38] sm:$0x1]  ;;  %v391_v57 = vrot.slane %v386_v45, 4  ;;  %4865 = vmatprep.subr.bf16.mxu0 %v4955_v13  ;;  %4906 = vmatprep.subr.bf16.mxu1 %v4955_v13 }
  0x6c   : > { %v2072_v46 = vsel %vm5116_vm10, %v2067_v18, %v2071_v33  ;;  %v2076_v47 = vor.u32 %v2075_v34, %v2071_v33  ;;  %2744 = vrot.lane.b32.xlu0 %v4675_v30, %s5000_s25  ;;  %663 = vst [vmem:[#allocation2 + $0x3c] sm:$0xf] %v662_v48  ;;  %v3082_v62 = vrot.slane %v3080_v50, 4  ;;  %v3089_v63 = vshll.u32 %v2990_v22, 16  ;;  %v3535_v0 = vld [vmem:[#allocation2 + $0x34] sm:$0xf]  ;;  %4866 = vmatpush3.bf16.msra.mxu0 %v4955_v13 }
  0x6d   : > { %v2607_v52 = vsel %vm5109_vm9, %v2605_v44, %v2606_v36  ;;  %v390_v1 = vsel %vm5132_vm12, %v382_v35, %v389_v56  ;;  %v3085_v2 = vrot.slane %v3083_v58, 5  ;;  %v3093_v3 = vshrl.u32 %v2990_v22, 16  ;;  %v3536_v5 = vld [vmem:[#allocation2 + $0x38] sm:$0x1]  ;;  %v903_v9 = vld [vmem:[#allocation2 + $0x34] sm:$0xf]  ;;  %4911 = vmatpush3.bf16.msra.mxu1 %v4955_v13 }
  0x6e   : > { %v2077_v60 = vrot.slane %v2076_v47, 4  ;;  %v4676_v61 = vcombine.low %v5293_v43, %v2607_v52  ;;  %v3099_v4 = vshll.u32 %v2991_v49, 16  ;;  %664 = vst.msk [vmem:[#allocation2 + $0x40] sm:$0xf] %vm216_vm0, %v390_v1  ;;  %v3091_v53 = vrot.slane %v3089_v63, 5 }
  0x6f   : > { %v666_v7 = vsel %vm5147_vm13, %v391_v57, %v665_v42  ;;  %v3086_v40 = vor.u32 %v3085_v2, %v3082_v62  ;;  %v3095_v11 = vrot.slane %v3093_v3, 4  ;;  %v3640_v14 = vrot.slane %v3535_v0, 5  ;;  %v904_v33 = vld [vmem:[#allocation2 + $0x38] sm:$0x1]  ;;  %v1451_v13 = vld [vmem:[#allocation2 + $0x34] sm:$0xf] }
  0x70   : > { %v2082_v6 = vsel %vm5116_vm10, %v2077_v60, %v2081_v39  ;;  %2922 = vrot.lane.b32.xlu0 %v4940_v54, %s4999_s24  ;;  %v3101_v12 = vrot.slane %v3099_v4, 5  ;;  %667 = vst [vmem:[#allocation2 + $0x44] sm:$0x1] %v666_v7  ;;  %v3643_v15 = vrot.slane %v3536_v5, 5  ;;  %v1038_v16 = vshrl.u32 %v902_v59, 16 }
  0x71   : > { %v4644_v10 = vcombine.low %v2072_v46, %v2082_v6  ;;  %v1041_v17 = vshll.u32 %v902_v59, 16  ;;  %v3087_v18 = vrot.slane %v3086_v40, 4  ;;  %v3096_v20 = vor.u32 %v3095_v11, %v3091_v53  ;;  %v1450_v4 = vld [vmem:[#allocation2 + $0x30] sm:$0xe] }
  0x72   : > { %v1047_v21 = vshll.u32 %v903_v9, 16  ;;  %v1051_v24 = vshrl.u32 %v903_v9, 16  ;;  %v3641_v26 = vsel %vm5109_vm9, %v4723_v8, %v3640_v14  ;;  %v3642_v23 = vrot.slane %v3640_v14, 4 }
  0x73   : > { %2425 = vrot.lane.b32.xlu1 %v4644_v10, %s5002_s27  ;;  %v2992_v25 = vld [vmem:[#allocation2 + $0x3c] sm:$0xf]  ;;  %v1040_v27 = vrot.slane %v1038_v16, 4  ;;  %v3092_v28 = vsel %vm5116_vm10, %v3087_v18, %v3091_v53  ;;  %v3097_v30 = vrot.slane %v3096_v20, 4  ;;  %v1043_v36 = vrot.slane %v1041_v17, 5  ;;  %v4957_v20 = vld [vmem:[%s6298_s1 + $0x10] sm:$0xff]  }
  0x74   : > { %v3104_v31 = vshrl.u32 %v2992_v25, 16  ;;  %v3107_v32 = vshll.u32 %v2992_v25, 16  ;;  %v3644_v34 = vsel %vm5109_vm9, %v3642_v23, %v3643_v15  ;;  %v1049_v35 = vrot.slane %v1047_v21, 5  ;;  %v3537_v39 = vld [vmem:[#allocation2 + $0x3c] sm:$0xe]  ;;  %4867 = vmatprep.subr.bf16.mxu0 %v4957_v20  ;;  %4907 = vmatprep.subr.bf16.mxu1 %v4957_v20 }
  0x75   : > { %v1053_v38 = vrot.slane %v1051_v24, 4  ;;  %v4941_v43 = vld [vmem:[#allocation2 + $0x3c] sm:$0xff]   ;;  %v3102_v44 = vsel %vm5116_vm10, %v3097_v30, %v3101_v12  ;;  %v4739_v42 = vcombine.low %v3641_v26, %v3644_v34  ;;  %v1044_v52 = vor.u32 %v1043_v36, %v1040_v27  ;;  %v1452_v18 = vld [vmem:[#allocation2 + $0x38] sm:$0x1]  ;;  %4868 = vmatpush3.bf16.msra.mxu0 %v4957_v20  ;;  %4912 = vmatpush3.bf16.msra.mxu1 %v4957_v20 }
  0x76   : > { %v2993_v45 = vld [vmem:[#allocation2 + $0x40] sm:$0xf]  ;;  %v3106_v22 = vrot.slane %v3104_v31, 4  ;;  %v4707_v46 = vcombine.low %v3092_v28, %v3102_v44  ;;  %v3109_v48 = vrot.slane %v3107_v32, 5  ;;  %v1057_v56 = vshll.u32 %v904_v33, 16 }
  0x77   : > { %2746 = vrot.lane.b32.xlu1 %v4676_v61, %s5000_s25  ;;  %v2994_v47 = vld [vmem:[#allocation2 + $0x44] sm:$0x1]  ;;  %v3113_v49 = vshll.u32 %v2993_v45, 16  ;;  %v3117_v50 = vshrl.u32 %v2993_v45, 16  ;;  %v1054_v54 = vor.u32 %v1053_v38, %v1049_v35  ;;  %v3538_v57 = vld [vmem:[#allocation2 + $0x40] sm:$0xf] }
  0x78   : > { %v3123_v51 = vshll.u32 %v2994_v47, 16  ;;  %v3539_v58 = vld [vmem:[#allocation2 + $0x44] sm:$0x1]  ;;  %3467 = vrot.lane.b32.xlu0 %v4707_v46, %s5003_s28  ;;  %v3110_v59 = vor.u32 %v3109_v48, %v3106_v22  ;;  %v4724_v62 = vrot.slane %v3537_v39, 9  ;;  %v905_v63 = vld [vmem:[#allocation2 + $0x3c] sm:$0xf] }
  0x79   : > { %v3115_v60 = vrot.slane %v3113_v49, 5  ;;  %v3119_v61 = vrot.slane %v3117_v50, 4  ;;  %v1045_v1 = vrot.slane %v1044_v52, 4  ;;  %v1055_v2 = vrot.slane %v1054_v54, 4  ;;  %v906_v8 = vld [vmem:[#allocation2 + $0x40] sm:$0xf] }
  0x7a   : > { %v3125_v0 = vrot.slane %v3123_v51, 5  ;;  %v1059_v3 = vrot.slane %v1057_v56, 5  ;;  %v3111_v5 = vrot.slane %v3110_v59, 4  ;;  %v3647_v53 = vrot.slane %v3538_v57, 5  ;;  %v907_v40 = vld [vmem:[#allocation2 + $0x44] sm:$0x1] }
  0x7b   : > { %2924 = vrot.lane.b32.xlu1 %v4941_v43, %s4999_s24  ;;  %v3120_v6 = vor.u32 %v3119_v61, %v3115_v60  ;;  %v3650_v7 = vrot.slane %v3539_v58, 5  ;;  %v1050_v9 = vsel %vm5116_vm10, %v1045_v1, %v1049_v35  ;;  %v1062_v11 = vshrl.u32 %v905_v63, 16  ;;  %v1453_v23 = vld [vmem:[#allocation2 + $0x3c] sm:$0xe]  ;;  %v1454_v32 = vld [vmem:[#allocation2 + $0x40] sm:$0xf] }
  0x7c   : > { %v1060_v10 = vsel %vm5116_vm10, %v1055_v2, %v1059_v3  ;;  %v1065_v12 = vshll.u32 %v905_v63, 16  ;;  %v3116_v14 = vsel %vm5116_vm10, %v3111_v5, %v3115_v60  ;;  %3788 = vrot.lane.b32.xlu0 %v4739_v42, %s5001_s26  ;;  %v3648_v17 = vsel %vm5109_vm9, %v4724_v62, %v3647_v53  ;;  %v1455_v38 = vld [vmem:[#allocation2 + $0x44] sm:$0x1]  ;;  %v4960_v39 = vld [vmem:[%s6298_s1 + $0x18] sm:$0xff]   ;;  %v282_v42 = vld [vmem:[%s5103_s20 + $0x28] sm:$0xf] }
  0x7d   : > { %v3121_v15 = vrot.slane %v3120_v6, 4  ;;  %v4581_v16 = vcombine.low %v1050_v9, %v1060_v10  ;;  %v3649_v21 = vrot.slane %v3647_v53, 4  ;;  %v1064_v24 = vrot.slane %v1062_v11, 4  ;;  %v283_v50 = vld [vmem:[%s5103_s20 + $0x2c] sm:$0xf]  ;;  %4869 = vmatprep.subr.bf16.mxu0 %v4960_v39  ;;  %4908 = vmatprep.subr.bf16.mxu1 %v4960_v39 }
  0x7e   : > { %v1067_v25 = vrot.slane %v1065_v12, 5  ;;  %v1071_v26 = vshll.u32 %v906_v8, 16  ;;  %v1075_v28 = vshrl.u32 %v906_v8, 16  ;;  %v1081_v30 = vshll.u32 %v907_v40, 16  ;;  %v1951_v61 = vld [vmem:[#allocation2 + $0x3c] sm:$0xf]  ;;  %4870 = vmatpush3.bf16.msra.mxu0 %v4960_v39  ;;  %4913 = vmatpush3.bf16.msra.mxu1 %v4960_v39 }
  0x7f   : > { %v3126_v27 = vsel %vm5116_vm10, %v3121_v15, %v3125_v0  ;;  %v4597_v31 = vrot.slane %v1450_v4, 9  ;;  %v3651_v34 = vsel %vm5109_vm9, %v3649_v21, %v3650_v7  ;;  %v1567_v22 = vrot.slane %v1451_v13, 5  ;;  %v668_v2 = vld [vmem:[#allocation2 + $0x48] sm:$0xf]  ;;  %v1952_v3 = vld [vmem:[#allocation2 + $0x40] sm:$0xf] }
  0x80   : > { %v4708_v33 = vcombine.low %v3116_v14, %v3126_v27  ;;  %v1068_v36 = vor.u32 %v1067_v25, %v1064_v24  ;;  %v1073_v35 = vrot.slane %v1071_v26, 5  ;;  %v4740_v43 = vcombine.low %v3648_v17, %v3651_v34  ;;  %v672_v7 = vld [vmem:[#allocation2 + $0x50] sm:$0x1]  ;;  %v1953_v40 = vld [vmem:[#allocation2 + $0x44] sm:$0x1]  ;;  %v4942_v13 = vld [vmem:[#allocation2 + $0x3c] sm:$0xff]  }
  0x81   : > { %v1077_v44 = vrot.slane %v1075_v28, 4  ;;  %v1083_v45 = vrot.slane %v1081_v30, 5  ;;  %v1570_v47 = vrot.slane %v1452_v18, 5  ;;  %v4598_v48 = vrot.slane %v1453_v23, 9  ;;  %v2496_v17 = vld [vmem:[#allocation2 + $0x3c] sm:$0xe] }
  0x82   : > { %3469 = vrot.lane.b32.xlu1 %v4708_v33, %s5003_s28  ;;  %v1069_v46 = vrot.slane %v1068_v36, 4  ;;  %v1574_v49 = vrot.slane %v1454_v32, 5  ;;  %3790 = vrot.lane.b32.xlu0 %v4740_v43, %s5001_s26  ;;  %v1568_v52 = vsel %vm5109_vm9, %v4597_v31, %v1567_v22  ;;  %v1569_v54 = vrot.slane %v1567_v22, 4  ;;  %v284_v18 = vld [vmem:[%s5103_s20 + $0x30] sm:$0xf] }
  0x83   : > { %v1078_v51 = vor.u32 %v1077_v44, %v1073_v35  ;;  %v1577_v56 = vrot.slane %v1455_v38, 5  ;;  %v393_v60 = vshrl.u32 %v282_v42, 16  ;;  %v396_v0 = vshll.u32 %v282_v42, 16  ;;  %v2497_v26 = vld [vmem:[#allocation2 + $0x40] sm:$0xf] }
  0x84   : > { %v1074_v57 = vsel %vm5116_vm10, %v1069_v46, %v1073_v35  ;;  %v1575_v58 = vsel %vm5109_vm9, %v4598_v48, %v1574_v49  ;;  %v1576_v59 = vrot.slane %v1574_v49, 4  ;;  %v1571_v63 = vsel %vm5109_vm9, %v1569_v54, %v1570_v47  ;;  %v285_v31 = vld [vmem:[%s5103_s20 + $0x34] sm:$0xf]  ;;  %v2498_v36 = vld [vmem:[#allocation2 + $0x44] sm:$0x1] }
  0x85   : > { %v1079_v62 = vrot.slane %v1078_v51, 4  ;;  %v401_v1 = vshrl.u32 %v283_v50, 16  ;;  %v4613_v4 = vcombine.low %v1568_v52, %v1571_v63  ;;  %v395_v6 = vrot.slane %v393_v60, 7 }
  0x86   : > { %1381 = vrot.lane.b32.xlu1 %v4581_v16, %s4997_s22  ;;  %v1578_v5 = vsel %vm5109_vm9, %v1576_v59, %v1577_v56  ;;  %v404_v53 = vshll.u32 %v283_v50, 16  ;;  %v2084_v11 = vshrl.u32 %v1951_v61, 16  ;;  %v2087_v16 = vshll.u32 %v1951_v61, 16 }
  0x87   : > { %v1084_v8 = vsel %vm5116_vm10, %v1079_v62, %v1083_v45  ;;  %v4614_v9 = vcombine.low %v1575_v58, %v1578_v5  ;;  %v403_v10 = vrot.slane %v401_v1, 7  ;;  %1705 = vrot.lane.b32.xlu0 %v4613_v4, %s4996_s21  ;;  %v398_v14 = vor.u32 %v396_v0, %v395_v6 }
  0x88   : > { %v4582_v12 = vcombine.low %v1074_v57, %v1084_v8  ;;  %v399_v15 = vrot.slane %v395_v6, 4  ;;  %v2086_v24 = vrot.slane %v2084_v11, 4  ;;  %v2093_v25 = vshll.u32 %v1952_v3, 16  ;;  %v675_v57 = vld [vmem:[#allocation2 + $0x54] sm:$0xf] }
  0x89   : > { %v406_v20 = vor.u32 %v404_v53, %v403_v10  ;;  %v408_v21 = vrot.slane %v403_v10, 4  ;;  %v669_v23 = vsel %vm5124_vm11, %v398_v14, %v668_v2  ;;  %v2089_v27 = vrot.slane %v2087_v16, 5  ;;  %v5387_v2 = vld [vmem:[%s5103_s20 + $0x38] sm:$0xf] }
  0x8a   : > { %1383 = vrot.lane.b32.xlu1 %v4582_v12, %s4997_s22  ;;  %v2097_v28 = vshrl.u32 %v1952_v3, 16  ;;  %v2103_v30 = vshll.u32 %v1953_v40, 16  ;;  %670 = vst [vmem:[#allocation2 + $0x48] sm:$0xf] %v669_v23  ;;  %v2095_v33 = vrot.slane %v2093_v25, 5  ;;  %v4661_v39 = vrot.slane %v2496_v17, 9 }
  0x8b   : > { %v407_v32 = vsel %vm5132_vm12, %v399_v15, %v406_v20  ;;  %v673_v34 = vsel %vm5147_vm13, %v408_v21, %v672_v7  ;;  %1882 = vrot.lane.b32.xlu0 %v4942_v13, %s4998_s23  ;;  %v2090_v35 = vor.u32 %v2089_v27, %v2086_v24  ;;  %v2610_v43 = vrot.slane %v2497_v26, 5  ;;  %v679_v24 = vld [vmem:[#allocation2 + $0x5c] sm:$0x1] }
  0x8c   : > { %671 = vst.msk [vmem:[#allocation2 + $0x4c] sm:$0xf] %vm216_vm0, %v407_v32  ;;  %v2099_v38 = vrot.slane %v2097_v28, 4  ;;  %674 = vst [vmem:[#allocation2 + $0x50] sm:$0x1] %v673_v34  ;;  %v2105_v44 = vrot.slane %v2103_v30, 5 }
  0x8d   : > { %v410_v45 = vshrl.u32 %v284_v18, 16  ;;  %v413_v22 = vshll.u32 %v284_v18, 16  ;;  %v418_v42 = vshrl.u32 %v285_v31, 16  ;;  %v2091_v46 = vrot.slane %v2090_v35, 4 }
  0x8e   : > { %1707 = vrot.lane.b32.xlu1 %v4614_v9, %s4996_s21  ;;  %v2100_v47 = vor.u32 %v2099_v38, %v2095_v33  ;;  %v2612_v48 = vrot.slane %v2610_v43, 4  ;;  %v2613_v49 = vrot.slane %v2498_v36, 5  ;;  %v421_v52 = vshll.u32 %v285_v31, 16 }
  0x8f   : > { %v412_v50 = vrot.slane %v410_v45, 7  ;;  %v5375_v51 = vrot.slane %v418_v42, 7  ;;  %v2096_v54 = vsel %vm5116_vm10, %v2091_v46, %v2095_v33  ;;  %v2611_v63 = vsel %vm5109_vm9, %v4661_v39, %v2610_v43 }
  0x90   : > { %v2101_v56 = vrot.slane %v2100_v47, 4  ;;  %v2614_v0 = vsel %vm5109_vm9, %v2612_v48, %v2613_v49  ;;  %v427_v27 = vshrl.u32 %v5387_v2, 16  ;;  %vm1421_vm15 = vcmask 130112  }
  0x91   : > { %v415_v58 = vor.u32 %v413_v22, %v412_v50  ;;  %v416_v59 = vrot.slane %v412_v50, 4  ;;  %v423_v60 = vor.u32 %v421_v52, %v5375_v51  ;;  %v1954_v62 = vld [vmem:[#allocation2 + $0x48] sm:$0xf]  ;;  %v4677_v14 = vcombine.low %v2611_v63, %v2614_v0 }
  0x92   : > { %v2106_v61 = vsel %vm5116_vm10, %v2101_v56, %v2105_v44  ;;  %v2499_v1 = vld [vmem:[#allocation2 + $0x48] sm:$0xe]  ;;  %v2108_v6 = vshrl.u32 %v1954_v62, 16  ;;  %v2111_v9 = vshll.u32 %v1954_v62, 16  ;;  %v425_v23 = vrot.slane %v5375_v51, 4 }
  0x93   : > { %v4943_v3 = vld [vmem:[#allocation2 + $0x48] sm:$0xff]   ;;  %v4645_v4 = vcombine.low %v2096_v54, %v2106_v61  ;;  %v424_v53 = vsel %vm5132_vm12, %v416_v59, %v423_v60  ;;  %v676_v7 = vsel %vm5124_vm11, %v415_v58, %v675_v57  ;;  %v1956_v8 = vld [vmem:[#allocation2 + $0x50] sm:$0x1]  ;;  %v4662_v11 = vrot.slane %v2499_v1, 9 }
  0x94   : > { %v1955_v5 = vld [vmem:[#allocation2 + $0x4c] sm:$0xf]  ;;  %677 = vst [vmem:[#allocation2 + $0x54] sm:$0xf] %v676_v7  ;;  %678 = vst.msk [vmem:[#allocation2 + $0x58] sm:$0xf] %vm216_vm0, %v424_v53  ;;  %1884 = vrot.lane.b32.xlu1 %v4943_v3, %s4998_s23  ;;  %v680_v50 = vsel %vm5147_vm13, %v425_v23, %v679_v24 }
  0x95   : > { %v2117_v10 = vshll.u32 %v1955_v5, 16  ;;  %v2121_v40 = vshrl.u32 %v1955_v5, 16  ;;  %2427 = vrot.lane.b32.xlu0 %v4645_v4, %s5002_s27  ;;  %v2110_v12 = vrot.slane %v2108_v6, 4  ;;  %v2127_v13 = vshll.u32 %v1956_v8, 16  ;;  %v2500_v15 = vld [vmem:[#allocation2 + $0x4c] sm:$0xf] }
  0x96   : > { %v2501_v16 = vld [vmem:[#allocation2 + $0x50] sm:$0x1]  ;;  %v2113_v17 = vrot.slane %v2111_v9, 5  ;;  %v2617_v21 = vrot.slane %v2500_v15, 5  ;;  %v4944_v33 = vld [vmem:[#allocation2 + $0x48] sm:$0xff]   ;;  %v430_v51 = vshll.u32 %v5387_v2, 16 }
  0x97   : > { %v2119_v18 = vrot.slane %v2117_v10, 5  ;;  %v2123_v20 = vrot.slane %v2121_v40, 4  ;;  %v2129_v25 = vrot.slane %v2127_v13, 5  ;;  %v2620_v26 = vrot.slane %v2501_v16, 5  ;;  %v2995_v34 = vld [vmem:[#allocation2 + $0x48] sm:$0xf] }
  0x98   : > { %v2114_v28 = vor.u32 %v2113_v17, %v2110_v12  ;;  %v5400_v31 = vsel %vm5109_vm9, %v4662_v11, %v2617_v21  ;;  %v2619_v32 = vrot.slane %v2617_v21, 4  ;;  %v2996_v36 = vld [vmem:[#allocation2 + $0x4c] sm:$0xf]  ;;  %v2997_v35 = vld [vmem:[#allocation2 + $0x50] sm:$0x1]  ;;  %v3128_v38 = vshrl.u32 %v2995_v34, 16  ;;  %v5413_v60 = vpop.permute.xlu0 %1373  ;;  %v5419_v21 = vpop.permute.xlu1 %1697 }
  0x99   : > { %v2124_v30 = vor.u32 %v2123_v20, %v2119_v18  ;;  %2748 = vrot.lane.b32.xlu0 %v4677_v14, %s5000_s25  ;;  %v3131_v39 = vshll.u32 %v2995_v34, 16  ;;  %v3137_v43 = vshll.u32 %v2996_v36, 16  ;;  %v3141_v44 = vshrl.u32 %v2996_v36, 16  ;;  %v3540_v47 = vld [vmem:[#allocation2 + $0x48] sm:$0xe]  ;;  %v4965_v2 = vld [vmem:[#allocation2 + $0x30] sm:$0xff]  }
  0x9a   : > { %v2115_v45 = vrot.slane %v2114_v28, 4  ;;  %v2621_v42 = vsel %vm5109_vm9, %v2619_v32, %v2620_v26  ;;  %v3147_v46 = vshll.u32 %v2997_v35, 16  ;;  %v3130_v49 = vrot.slane %v3128_v38, 4  ;;  %681 = vst [vmem:[#allocation2 + $0x5c] sm:$0x1] %v680_v50  ;;  %878 = vst.msk [vmem:[#allocation3 + $0x20] sm:$0xff] %vm873_vm14, %v4965_v2 }
  0x9b   : > { %v2125_v22 = vrot.slane %v2124_v30, 4  ;;  %v4678_v48 = vcombine.low %v5400_v31, %v2621_v42  ;;  %v3133_v56 = vrot.slane %v3131_v39, 5  ;;  %v3139_v57 = vrot.slane %v3137_v43, 5  ;;  %v2998_v58 = vld [vmem:[#allocation2 + $0x54] sm:$0xf] }
  0x9c   : > { %v2120_v52 = vsel %vm5116_vm10, %v2115_v45, %v2119_v18  ;;  %v2999_v59 = vld [vmem:[#allocation2 + $0x58] sm:$0xf]  ;;  %v3143_v62 = vrot.slane %v3141_v44, 4  ;;  %v3149_v63 = vrot.slane %v3147_v46, 5  ;;  %v3152_v0 = vshrl.u32 %v2998_v58, 16 }
  0x9d   : > { %v2130_v54 = vsel %vm5116_vm10, %v2125_v22, %v2129_v25  ;;  %2926 = vrot.lane.b32.xlu0 %v4944_v33, %s4999_s24  ;;  %v3541_v1 = vld [vmem:[#allocation2 + $0x4c] sm:$0xf]  ;;  %v3134_v3 = vor.u32 %v3133_v56, %v3130_v49  ;;  %v3155_v4 = vshll.u32 %v2998_v58, 16  ;;  %v3161_v5 = vshll.u32 %v2999_v59, 16  ;;  %v3542_v53 = vld [vmem:[#allocation2 + $0x50] sm:$0x1] }
  0x9e   : > { %v4646_v61 = vcombine.low %v2120_v52, %v2130_v54  ;;  %v3165_v6 = vshrl.u32 %v2999_v59, 16  ;;  %v3144_v7 = vor.u32 %v3143_v62, %v3139_v57  ;;  %v3154_v8 = vrot.slane %v3152_v0, 4  ;;  %v908_v40 = vld [vmem:[#allocation2 + $0x48] sm:$0xf]  ;;  %v909_v15 = vld [vmem:[#allocation2 + $0x4c] sm:$0xf] }
  0x9f   : > { %v4725_v9 = vrot.slane %v3540_v47, 9  ;;  %v3654_v10 = vrot.slane %v3541_v1, 5  ;;  %v3135_v11 = vrot.slane %v3134_v3, 4  ;;  %v3157_v12 = vrot.slane %v3155_v4, 5  ;;  %v4945_v24 = vld [vmem:[#allocation2 + $0x54] sm:$0xff]  }
  0xa0   : > { %2429 = vrot.lane.b32.xlu1 %v4646_v61, %s5002_s27  ;;  %v3163_v13 = vrot.slane %v3161_v5, 5  ;;  %v3167_v14 = vrot.slane %v3165_v6, 4  ;;  %v3145_v16 = vrot.slane %v3144_v7, 4  ;;  %v3657_v20 = vrot.slane %v3542_v53, 5  ;;  %v910_v28 = vld [vmem:[#allocation2 + $0x50] sm:$0x1] }
  0xa1   : > { %v3655_v17 = vsel %vm5109_vm9, %v4725_v9, %v3654_v10  ;;  %v3656_v18 = vrot.slane %v3654_v10, 4  ;;  %v3140_v25 = vsel %vm5116_vm10, %v3135_v11, %v3139_v57  ;;  %v3158_v26 = vor.u32 %v3157_v12, %v3154_v8  ;;  %v3543_v31 = vld [vmem:[#allocation2 + $0x54] sm:$0xe]  ;;  %v3000_v34 = vld [vmem:[#allocation2 + $0x5c] sm:$0x1] }
  0xa2   : > { %v3168_v23 = vor.u32 %v3167_v14, %v3163_v13  ;;  %v1086_v30 = vshrl.u32 %v908_v40, 16  ;;  %v5423_v32 = vpop.permute.xlu0 %1874  ;;  %v3150_v33 = vsel %vm5116_vm10, %v3145_v16, %v3149_v63  ;;  %v1089_v35 = vshll.u32 %v908_v40, 16  ;;  %v3544_v39 = vld [vmem:[#allocation2 + $0x58] sm:$0xf]  ;;  %v3545_v42 = vld [vmem:[#allocation2 + $0x5c] sm:$0x1] }
  0xa3   : > { %v3658_v36 = vsel %vm5109_vm9, %v3656_v18, %v3657_v20  ;;  %v1095_v38 = vshll.u32 %v909_v15, 16  ;;  %v4709_v43 = vcombine.low %v3140_v25, %v3150_v33  ;;  %v3159_v44 = vrot.slane %v3158_v26, 4  ;;  %v912_v58 = vld [vmem:[#allocation2 + $0x58] sm:$0xf]  ;;  %v913_v0 = vld [vmem:[#allocation2 + $0x5c] sm:$0x1] }
  0xa4   : > { %2750 = vrot.lane.b32.xlu1 %v4678_v48, %s5000_s25  ;;  %v3169_v45 = vrot.slane %v3168_v23, 4  ;;  %v3171_v22 = vshll.u32 %v3000_v34, 16  ;;  %v4741_v46 = vcombine.low %v3655_v17, %v3658_v36  ;;  %v1088_v47 = vrot.slane %v1086_v30, 4  ;;  %v911_v48 = vld [vmem:[#allocation2 + $0x54] sm:$0xf] }
  0xa5   : > { %v1091_v49 = vrot.slane %v1089_v35, 5  ;;  %v1097_v50 = vrot.slane %v1095_v38, 5  ;;  %3471 = vrot.lane.b32.xlu0 %v4709_v43, %s5003_s28  ;;  %v3164_v52 = vsel %vm5116_vm10, %v3159_v44, %v3163_v13  ;;  %v1099_v56 = vshrl.u32 %v909_v15, 16  ;;  %v1456_v53 = vld [vmem:[#allocation2 + $0x48] sm:$0xe] }
  0xa6   : > { %v3173_v54 = vrot.slane %v3171_v22, 5  ;;  %v1105_v57 = vshll.u32 %v910_v28, 16  ;;  %v4726_v61 = vrot.slane %v3543_v31, 9  ;;  %v3661_v62 = vrot.slane %v3544_v39, 5  ;;  %v1457_v11 = vld [vmem:[#allocation2 + $0x4c] sm:$0xf] }
  0xa7   : > { %v1092_v59 = vor.u32 %v1091_v49, %v1088_v47  ;;  %v3664_v63 = vrot.slane %v3545_v42, 5  ;;  %v1101_v4 = vrot.slane %v1099_v56, 4  ;;  %v1110_v6 = vshrl.u32 %v911_v48, 16  ;;  %v1458_v12 = vld [vmem:[#allocation2 + $0x50] sm:$0x1] }
  0xa8   : > { %2928 = vrot.lane.b32.xlu1 %v4945_v24, %s4999_s24  ;;  %v5434_v1 = vpop.permute.xlu1 %1876  ;;  %v3174_v3 = vsel %vm5116_vm10, %v3169_v45, %v3173_v54  ;;  %v1107_v5 = vrot.slane %v1105_v57, 5  ;;  %v3662_v10 = vsel %vm5109_vm9, %v4726_v61, %v3661_v62  ;;  %v3663_v40 = vrot.slane %v3661_v62, 4  ;;  %v1459_v17 = vld [vmem:[#allocation2 + $0x54] sm:$0xe]  ;;  %v1460_v26 = vld [vmem:[#allocation2 + $0x58] sm:$0xf] }
  0xa9   : > { %v5438_v7 = vpop.permute.xlu0 %2918  ;;  %v4710_v8 = vcombine.low %v3164_v52, %v3174_v3  ;;  %v1093_v9 = vrot.slane %v1092_v59, 4  ;;  %3792 = vrot.lane.b32.xlu0 %v4741_v46, %s5001_s26  ;;  %v1102_v13 = vor.u32 %v1101_v4, %v1097_v50  ;;  %v1112_v14 = vrot.slane %v1110_v6, 4  ;;  %v1461_v43 = vld [vmem:[#allocation2 + $0x5c] sm:$0x1]  ;;  %v1957_v3 = vld [vmem:[#allocation2 + $0x54] sm:$0xf] }
  0xaa   : > { %v1113_v15 = vshll.u32 %v911_v48, 16  ;;  %v1119_v16 = vshll.u32 %v912_v58, 16  ;;  %v3665_v20 = vsel %vm5109_vm9, %v3663_v40, %v3664_v63  ;;  %v1123_v24 = vshrl.u32 %v912_v58, 16  ;;  %v287_v46 = vld [vmem:[%s5103_s20 + $0x3c] sm:$0xf] }
  0xab   : > { %v1098_v18 = vsel %vm5116_vm10, %v1093_v9, %v1097_v50  ;;  %v1129_v25 = vshll.u32 %v913_v0, 16  ;;  %v1103_v28 = vrot.slane %v1102_v13, 4  ;;  %v4742_v30 = vcombine.low %v3662_v10, %v3665_v20  ;;  %v686_v9 = vld [vmem:[#allocation2 + $0x68] sm:$0x1]  ;;  %v1958_v13 = vld [vmem:[#allocation2 + $0x58] sm:$0xf] }
  0xac   : > { %3473 = vrot.lane.b32.xlu1 %v4710_v8, %s5003_s28  ;;  %v5448_v23 = vpop.permute.xlu1 %2920  ;;  %v1115_v31 = vrot.slane %v1113_v15, 5  ;;  %v1121_v33 = vrot.slane %v1119_v16, 5  ;;  %v1125_v36 = vrot.slane %v1123_v24, 4  ;;  %v4599_v38 = vrot.slane %v1456_v53, 9  ;;  %v4946_v53 = vld [vmem:[#allocation2 + $0x54] sm:$0xff]  }
  0xad   : > { %v5450_v34 = vpop.permute.xlu0 %2740  ;;  %v1131_v35 = vrot.slane %v1129_v25, 5  ;;  %v1581_v39 = vrot.slane %v1457_v11, 5  ;;  %v1108_v44 = vsel %vm5116_vm10, %v1103_v28, %v1107_v5  ;;  %3794 = vrot.lane.b32.xlu0 %v4742_v30, %s5001_s26  ;;  %v1584_v22 = vrot.slane %v1458_v12, 5  ;;  %v682_v8 = vld [vmem:[#allocation2 + $0x60] sm:$0xf]  ;;  %v4956_v28 = vld [vmem:[#allocation2 + $0x18] sm:$0xff]  }
  0xae   : > { %v1116_v45 = vor.u32 %v1115_v31, %v1112_v14  ;;  %v4600_v42 = vrot.slane %v1459_v17, 9  ;;  %v4583_v47 = vcombine.low %v1098_v18, %v1108_v44  ;;  %v1126_v49 = vor.u32 %v1125_v36, %v1121_v33  ;;  %v1959_v14 = vld [vmem:[#allocation2 + $0x5c] sm:$0x1]  ;;  %v2502_v20 = vld [vmem:[#allocation2 + $0x54] sm:$0xe]  ;;  %v4948_v25 = vld [vmem:[#allocation2] sm:$0xff]  }
  0xaf   : > { %v1582_v50 = vsel %vm5109_vm9, %v4599_v38, %v1581_v39  ;;  %v1583_v48 = vrot.slane %v1581_v39, 4  ;;  %v1588_v54 = vrot.slane %v1460_v26, 5  ;;  %v1591_v56 = vrot.slane %v1461_v43, 5  ;;  %v2503_v24 = vld [vmem:[#allocation2 + $0x58] sm:$0xf]  ;;  %v4954_v26 = vld [vmem:[#allocation2 + $0xc] sm:$0xff]  }
  0xb0   : > { %v1117_v52 = vrot.slane %v1116_v45, 4  ;;  %v429_v57 = vrot.slane %v427_v27, 7  ;;  %v5460_v58 = vpop.permute.xlu1 %1699  ;;  %1385 = vrot.lane.b32.xlu1 %v4583_v47, %s4997_s22  ;;  %v1127_v61 = vrot.slane %v1126_v49, 4  ;;  %v435_v63 = vshrl.u32 %v287_v46, 16  ;;  %v4958_v30 = vld [vmem:[#allocation2 + $0x24] sm:$0xff]   ;;  %v4966_v38 = vld [vmem:[#allocation2 + $0x3c] sm:$0xff]  }
  0xb1   : > { %v5462_v59 = vpop.permute.xlu0 %3784  ;;  %v1585_v62 = vsel %vm5109_vm9, %v1583_v48, %v1584_v22  ;;  %v438_v0 = vshll.u32 %v287_v46, 16  ;;  %v1589_v27 = vsel %vm5109_vm9, %v4600_v42, %v1588_v54  ;;  %v1590_v6 = vrot.slane %v1588_v54, 4  ;;  %874 = vst.msk [vmem:[#allocation3] sm:$0xff] %vm873_vm14, %v4948_v25  ;;  %875 = vst.msk [vmem:[#allocation3 + $0x8] sm:$0xff] %vm873_vm14, %v4954_v26  ;;  %v689_v2 = vld [vmem:[#allocation2 + $0x6c] sm:$0xf] }
  0xb2   : > { %v1122_v4 = vsel %vm5116_vm10, %v1117_v52, %v1121_v33  ;;  %v4615_v5 = vcombine.low %v1582_v50, %v1585_v62  ;;  %v1132_v10 = vsel %vm5116_vm10, %v1127_v61, %v1131_v35  ;;  %v432_v40 = vor.u32 %v430_v51, %v429_v57  ;;  %v2504_v35 = vld [vmem:[#allocation2 + $0x5c] sm:$0x1]  ;;  %v5493_v62 = vld [vmem:[%s5103_s20 + $0x44] sm:$0xf]  ;;  %876 = vst.msk [vmem:[#allocation3 + $0x10] sm:$0xff] %vm873_vm14, %v4956_v28 }
  0xb3   : > { %v433_v11 = vrot.slane %v429_v57, 4  ;;  %v437_v12 = vrot.slane %v435_v63, 7  ;;  %v4584_v15 = vcombine.low %v1122_v4, %v1132_v10  ;;  %v1592_v16 = vsel %vm5109_vm9, %v1590_v6, %v1591_v56  ;;  %v288_v56 = vld [vmem:[%s5103_s20 + $0x40] sm:$0xf]  ;;  %877 = vst.msk [vmem:[#allocation3 + $0x18] sm:$0xff] %vm873_vm14, %v4958_v30  ;;  %879 = vst.msk [vmem:[#allocation3 + $0x28] sm:$0xff] %vm873_vm14, %v4966_v38 }
  0xb4   : > { %1709 = vrot.lane.b32.xlu0 %v4615_v5, %s4996_s21  ;;  %v2132_v17 = vshrl.u32 %v1957_v3, 16  ;;  %v2135_v18 = vshll.u32 %v1957_v3, 16  ;;  %v4616_v51 = vcombine.low %v1589_v27, %v1592_v16  ;;  %v683_v36 = vsel %vm5124_vm11, %v432_v40, %v682_v8  ;;  %v5481_v22 = vpop.permute.xlu1 %2742  ;;  %1422 = vst.msk [vmem:[#allocation3] sm:$0xff] %vm1421_vm15, %v5413_v60 }
  0xb5   : > { %v440_v31 = vor.u32 %v438_v0, %v437_v12  ;;  %v442_v33 = vrot.slane %v437_v12, 4  ;;  %1387 = vrot.lane.b32.xlu1 %v4584_v15, %s4997_s22  ;;  %684 = vst [vmem:[#allocation2 + $0x60] sm:$0xf] %v683_v36  ;;  %v2141_v44 = vshll.u32 %v1958_v13, 16  ;;  %v2145_v45 = vshrl.u32 %v1958_v13, 16  ;;  %v5483_v42 = vpop.permute.xlu0 %3786 }
  0xb6   : > { %v2134_v39 = vrot.slane %v2132_v17, 4  ;;  %v2137_v43 = vrot.slane %v2135_v18, 5  ;;  %v2151_v47 = vshll.u32 %v1959_v14, 16  ;;  %v2624_v54 = vrot.slane %v2503_v24, 5 }
  0xb7   : > { %v441_v46 = vsel %vm5132_vm12, %v433_v11, %v440_v31  ;;  %v687_v49 = vsel %vm5147_vm13, %v442_v33, %v686_v9  ;;  %v2143_v48 = vrot.slane %v2141_v44, 5  ;;  %v2147_v52 = vrot.slane %v2145_v45, 4 }
  0xb8   : > { %1886 = vrot.lane.b32.xlu0 %v4946_v53, %s4998_s23  ;;  %685 = vst.msk [vmem:[#allocation2 + $0x64] sm:$0xf] %vm216_vm0, %v441_v46  ;;  %v2138_v50 = vor.u32 %v2137_v43, %v2134_v39  ;;  %688 = vst [vmem:[#allocation2 + $0x68] sm:$0x1] %v687_v49  ;;  %v4663_v57 = vrot.slane %v2502_v20, 9  ;;  %v2627_v61 = vrot.slane %v2504_v35, 5  ;;  %v5509_v9 = vpop.permute.xlu1 %2421 }
  0xb9   : > { %1711 = vrot.lane.b32.xlu1 %v4616_v51, %s4996_s21  ;;  %v2148_v0 = vor.u32 %v2147_v52, %v2143_v48  ;;  %v2153_v3 = vrot.slane %v2151_v47, 5  ;;  %v2626_v4 = vrot.slane %v2624_v54, 4  ;;  %vm1745_vm2 = vcmask 195712  }
  0xba   : > { %v2139_v63 = vrot.slane %v2138_v50, 4  ;;  %v444_v5 = vshrl.u32 %v288_v56, 16  ;;  %1746 = vst.msk [vmem:[#allocation3] sm:$0xff] %vm1745_vm2, %v5419_v21  ;;  %v447_v53 = vshll.u32 %v288_v56, 16  ;;  %v452_v8 = vshrl.u32 %v5493_v62, 16 }
  0xbb   : > { %v2149_v6 = vrot.slane %v2148_v0, 4  ;;  %v2625_v11 = vsel %vm5109_vm9, %v4663_v57, %v2624_v54  ;;  %v2628_v60 = vsel %vm5109_vm9, %v2626_v4, %v2627_v61  ;;  %vm1922_vm3 = vcmask 261312  }
  0xbc   : > { %v2144_v27 = vsel %vm5116_vm10, %v2139_v63, %v2143_v48  ;;  %v1376_v10 = vpop.permute.xlu0 %1375  ;;  %v1960_v40 = vld [vmem:[#allocation2 + $0x60] sm:$0xf]  ;;  %v446_v20 = vrot.slane %v444_v5, 7  ;;  %v4679_v31 = vcombine.low %v2625_v11, %v2628_v60  ;;  %v454_v50 = vrot.slane %v452_v8, 7  ;;  %1923 = vst.msk [vmem:[#allocation3] sm:$0xff] %vm1922_vm3, %v5423_v32 }
  0xbd   : > { %v2505_v12 = vld [vmem:[#allocation2 + $0x60] sm:$0xe]  ;;  %1423 = vst.msk [vmem:[#allocation3 + $0x8] sm:$0xff] %vm1421_vm15, %v1376_v10  ;;  %v2154_v13 = vsel %vm5116_vm10, %v2149_v6, %v2153_v3  ;;  %v2156_v21 = vshrl.u32 %v1960_v40, 16  ;;  %v2159_v14 = vshll.u32 %v1960_v40, 16  ;;  %vm2467_vm4 = vcmask 326912  }
  0xbe   : > { %v4664_v15 = vrot.slane %v2505_v12, 9  ;;  %1747 = vst.msk [vmem:[#allocation3 + $0x8] sm:$0xff] %vm1745_vm2, %v5460_v58  ;;  %v4647_v17 = vcombine.low %v2144_v27, %v2154_v13  ;;  %v449_v35 = vor.u32 %v447_v53, %v446_v20  ;;  %v455_v58 = vshll.u32 %v5493_v62, 16  ;;  %v3001_v48 = vld [vmem:[#allocation2 + $0x60] sm:$0xf] }
  0xbf   : > { %v4947_v16 = vld [vmem:[#allocation2 + $0x60] sm:$0xff]   ;;  %v1962_v24 = vld [vmem:[#allocation2 + $0x68] sm:$0x1]  ;;  %v2158_v25 = vrot.slane %v2156_v21, 4  ;;  %v2161_v26 = vrot.slane %v2159_v14, 5  ;;  %v450_v49 = vrot.slane %v446_v20, 4 }
  0xc0   : > { %v1961_v18 = vld [vmem:[#allocation2 + $0x64] sm:$0xf]  ;;  %1888 = vrot.lane.b32.xlu1 %v4947_v16, %s4998_s23  ;;  %2431 = vrot.lane.b32.xlu0 %v4647_v17, %s5002_s27  ;;  %v2175_v51 = vshll.u32 %v1962_v24, 16  ;;  %v2507_v36 = vld [vmem:[#allocation2 + $0x68] sm:$0x1]  ;;  %v5523_v45 = vpop.permute.xlu1 %3465  ;;  %v457_v63 = vor.u32 %v455_v58, %v454_v50  ;;  %v459_v0 = vrot.slane %v454_v50, 4  ;;  %v690_v3 = vsel %vm5124_vm11, %v449_v35, %v689_v2 }
  0xc1   : > { %v2165_v28 = vshll.u32 %v1961_v18, 16  ;;  %v2169_v30 = vshrl.u32 %v1961_v18, 16  ;;  %v2506_v33 = vld [vmem:[#allocation2 + $0x64] sm:$0xf]  ;;  %v2162_v38 = vor.u32 %v2161_v26, %v2158_v25  ;;  %v2634_v47 = vrot.slane %v2507_v36, 5  ;;  %1924 = vst.msk [vmem:[#allocation3 + $0x8] sm:$0xff] %vm1922_vm3, %v5434_v1 }
  0xc2   : > { %v2631_v44 = vrot.slane %v2506_v33, 5  ;;  %v2177_v46 = vrot.slane %v2175_v51, 5  ;;  %v3002_v61 = vld [vmem:[#allocation2 + $0x64] sm:$0xf]  ;;  %v3003_v4 = vld [vmem:[#allocation2 + $0x68] sm:$0x1]  ;;  %v458_v60 = vsel %vm5132_vm12, %v450_v49, %v457_v63 }
  0xc3   : > { %v2167_v39 = vrot.slane %v2165_v28, 5  ;;  %v2171_v43 = vrot.slane %v2169_v30, 4  ;;  %v2163_v52 = vrot.slane %v2162_v38, 4  ;;  %v4949_v62 = vld [vmem:[#allocation2 + $0x60] sm:$0xff]   ;;  %691 = vst [vmem:[#allocation2 + $0x6c] sm:$0xf] %v690_v3 }
  0xc4   : > { %v5527_v56 = vsel %vm5109_vm9, %v4664_v15, %v2631_v44  ;;  %v2633_v57 = vrot.slane %v2631_v44, 4  ;;  %2752 = vrot.lane.b32.xlu0 %v4679_v31, %s5000_s25  ;;  %v3176_v53 = vshrl.u32 %v3001_v48, 16  ;;  %v693_v8 = vld [vmem:[#allocation2 + $0x74] sm:$0x1]  ;;  %v3546_v10 = vld [vmem:[#allocation2 + $0x60] sm:$0xe]  ;;  %v5540_v40 = vpop.permute.xlu0 %2419 }
  0xc5   : > { %v2172_v54 = vor.u32 %v2171_v43, %v2167_v39  ;;  %v2168_v5 = vsel %vm5116_vm10, %v2163_v52, %v2167_v39  ;;  %v3179_v12 = vshll.u32 %v3001_v48, 16  ;;  %v3185_v13 = vshll.u32 %v3002_v61, 16  ;;  %v3547_v21 = vld [vmem:[#allocation2 + $0x64] sm:$0xf]  ;;  %v3548_v14 = vld [vmem:[#allocation2 + $0x68] sm:$0x1] }
  0xc6   : > { %v2635_v6 = vsel %vm5109_vm9, %v2633_v57, %v2634_v47  ;;  %692 = vst.msk [vmem:[#allocation2 + $0x70] sm:$0xf] %vm216_vm0, %v458_v60  ;;  %v3178_v15 = vrot.slane %v3176_v53, 4  ;;  %v3189_v16 = vshrl.u32 %v3002_v61, 16  ;;  %v3195_v17 = vshll.u32 %v3003_v4, 16 }
  0xc7   : > { %v2173_v27 = vrot.slane %v2172_v54, 4  ;;  %v4680_v11 = vcombine.low %v5527_v56, %v2635_v6  ;;  %v914_v1 = vld [vmem:[#allocation2 + $0x60] sm:$0xf]  ;;  %v3181_v24 = vrot.slane %v3179_v12, 5  ;;  %v3187_v25 = vrot.slane %v3185_v13, 5  ;;  %2469 = vst.msk [vmem:[#allocation3 + $0x8] sm:$0xff] %vm2467_vm4, %v5509_v9 }
  0xc8   : > { %v1378_v18 = vpop.permute.xlu1 %1377  ;;  %2930 = vrot.lane.b32.xlu0 %v4949_v62, %s4999_s24  ;;  %v694_v26 = vsel %vm5147_vm13, %v459_v0, %v693_v8  ;;  %v915_v28 = vld [vmem:[#allocation2 + $0x64] sm:$0xf]  ;;  %v3191_v30 = vrot.slane %v3189_v16, 4  ;;  %v3197_v2 = vrot.slane %v3195_v17, 5  ;;  %v4727_v51 = vrot.slane %v3546_v10, 9  ;;  %2468 = vst.msk [vmem:[#allocation3] sm:$0xff] %vm2467_vm4, %v5540_v40 }
  0xc9   : > { %v2178_v32 = vsel %vm5116_vm10, %v2173_v27, %v2177_v46  ;;  %1424 = vst.msk [vmem:[#allocation3 + $0x10] sm:$0xff] %vm1421_vm15, %v1378_v18  ;;  %695 = vst [vmem:[#allocation2 + $0x74] sm:$0x1] %v694_v26  ;;  %v3668_v31 = vrot.slane %v3547_v21, 5  ;;  %v3182_v33 = vor.u32 %v3181_v24, %v3178_v15  ;;  %v3671_v36 = vrot.slane %v3548_v14, 5 }
  0xca   : > { %v4648_v20 = vcombine.low %v2168_v5, %v2178_v32  ;;  %v1134_v35 = vshrl.u32 %v914_v1, 16  ;;  %v1137_v58 = vshll.u32 %v914_v1, 16  ;;  %v3192_v38 = vor.u32 %v3191_v30, %v3187_v25  ;;  %v3004_v49 = vld [vmem:[#allocation2 + $0x6c] sm:$0xf]  ;;  %v916_v57 = vld [vmem:[#allocation2 + $0x68] sm:$0x1] }
  0xcb   : > { %v5555_v39 = vsel %vm5109_vm9, %v4727_v51, %v3668_v31  ;;  %v3670_v43 = vrot.slane %v3668_v31, 4  ;;  %v1143_v44 = vshll.u32 %v915_v28, 16  ;;  %v3183_v47 = vrot.slane %v3182_v33, 4  ;;  %v3549_v53 = vld [vmem:[#allocation2 + $0x6c] sm:$0xe] }
  0xcc   : > { %2433 = vrot.lane.b32.xlu1 %v4648_v20, %s5002_s27  ;;  %v1136_v50 = vrot.slane %v1134_v35, 4  ;;  %v3193_v48 = vrot.slane %v3192_v38, 4  ;;  %v3200_v52 = vshrl.u32 %v3004_v49, 16  ;;  %v3203_v54 = vshll.u32 %v3004_v49, 16  ;;  %v917_v26 = vld [vmem:[#allocation2 + $0x6c] sm:$0xf] }
  0xcd   : > { %v5557_v46 = vpop.permute.xlu0 %3463  ;;  %v3672_v56 = vsel %vm5109_vm9, %v3670_v43, %v3671_v36  ;;  %v4950_v61 = vld [vmem:[#allocation2 + $0x6c] sm:$0xff]   ;;  %v3188_v62 = vsel %vm5116_vm10, %v3183_v47, %v3187_v25  ;;  %v1139_v3 = vrot.slane %v1137_v58, 5  ;;  %v5567_v13 = vrot.slane %v1143_v44, 5 }
  0xce   : > { %v3005_v63 = vld [vmem:[#allocation2 + $0x70] sm:$0xf]  ;;  %v4743_v0 = vcombine.low %v5555_v39, %v3672_v56  ;;  %v3198_v4 = vsel %vm5116_vm10, %v3193_v48, %v3197_v2  ;;  %v3202_v5 = vrot.slane %v3200_v52, 4  ;;  %v3205_v27 = vrot.slane %v3203_v54, 5  ;;  %v4971_v52 = vld [vmem:[#allocation2 + $0x48] sm:$0xff]  }
  0xcf   : > { %v3209_v6 = vshll.u32 %v3005_v63, 16  ;;  %v4711_v10 = vcombine.low %v3188_v62, %v3198_v4  ;;  %v3213_v12 = vshrl.u32 %v3005_v63, 16  ;;  %v3550_v21 = vld [vmem:[#allocation2 + $0x70] sm:$0xf]  ;;  %v1147_v16 = vshrl.u32 %v915_v28, 16  ;;  %880 = vst.msk [vmem:[#allocation3 + $0x30] sm:$0xff] %vm873_vm14, %v4971_v52 }
  0xd0   : > { %2754 = vrot.lane.b32.xlu1 %v4680_v11, %s5000_s25  ;;  %v3006_v60 = vld [vmem:[#allocation2 + $0x74] sm:$0x1]  ;;  %v1140_v11 = vor.u32 %v1139_v3, %v1136_v50  ;;  %v3206_v14 = vor.u32 %v3205_v27, %v3202_v5  ;;  %v1153_v24 = vshll.u32 %v916_v57, 16  ;;  %v4728_v25 = vrot.slane %v3549_v53, 9  ;;  %v918_v33 = vld [vmem:[#allocation2 + $0x70] sm:$0xf] }
  0xd1   : > { %v1702_v8 = vpop.permute.xlu0 %1701  ;;  %v3211_v32 = vrot.slane %v3209_v6, 5  ;;  %v3219_v15 = vshll.u32 %v3006_v60, 16  ;;  %v3551_v17 = vld [vmem:[#allocation2 + $0x74] sm:$0x1]  ;;  %3475 = vrot.lane.b32.xlu0 %v4711_v10, %s5003_s28  ;;  %v3215_v18 = vrot.slane %v3213_v12, 4  ;;  %v1149_v51 = vrot.slane %v1147_v16, 4 }
  0xd2   : > { %1748 = vst.msk [vmem:[#allocation3 + $0x10] sm:$0xff] %vm1745_vm2, %v1702_v8  ;;  %v1380_v1 = vpop.permute.xlu1 %1379  ;;  %v1141_v20 = vrot.slane %v1140_v11, 4  ;;  %v3207_v30 = vrot.slane %v3206_v14, 4  ;;  %v3675_v31 = vrot.slane %v3550_v21, 5  ;;  %v1155_v58 = vrot.slane %v1153_v24, 5  ;;  %v4972_v6 = vld [vmem:[#allocation2 + $0x54] sm:$0xff]  }
  0xd3   : > { %1425 = vst.msk [vmem:[#allocation3 + $0x18] sm:$0xff] %vm1421_vm15, %v1380_v1  ;;  %v3221_v2 = vrot.slane %v3219_v15, 5  ;;  %v3216_v28 = vor.u32 %v3215_v18, %v3211_v32  ;;  %v3678_v38 = vrot.slane %v3551_v17, 5  ;;  %v919_v39 = vld [vmem:[#allocation2 + $0x74] sm:$0x1]  ;;  %v1150_v44 = vor.u32 %v1149_v51, %v5567_v13 }
  0xd4   : > { %2932 = vrot.lane.b32.xlu1 %v4950_v61, %s4999_s24  ;;  %v1146_v35 = vsel %vm5116_vm10, %v1141_v20, %v5567_v13  ;;  %v3212_v43 = vsel %vm5116_vm10, %v3207_v30, %v3211_v32  ;;  %v3676_v47 = vsel %vm5109_vm9, %v4728_v25, %v3675_v31  ;;  %v3677_v49 = vrot.slane %v3675_v31, 4  ;;  %v1462_v50 = vld [vmem:[#allocation2 + $0x60] sm:$0xe]  ;;  %v1463_v5 = vld [vmem:[#allocation2 + $0x64] sm:$0xf]  ;;  %881 = vst.msk [vmem:[#allocation3 + $0x38] sm:$0xff] %vm873_vm14, %v4972_v6 }
  0xd5   : > { %v1879_v36 = vpop.permute.xlu0 %1878  ;;  %v3217_v54 = vrot.slane %v3216_v28, 4  ;;  %3796 = vrot.lane.b32.xlu0 %v4743_v0, %s5001_s26  ;;  %v1158_v56 = vshrl.u32 %v917_v26, 16  ;;  %v1161_v57 = vshll.u32 %v917_v26, 16  ;;  %v1167_v61 = vshll.u32 %v918_v33, 16  ;;  %v290_v27 = vld [vmem:[%s5103_s20 + $0x48] sm:$0xf] }
  0xd6   : > { %1925 = vst.msk [vmem:[#allocation3 + $0x10] sm:$0xff] %vm1922_vm3, %v1879_v36  ;;  %v1704_v48 = vpop.permute.xlu1 %1703  ;;  %v1151_v62 = vrot.slane %v1150_v44, 4  ;;  %v3679_v63 = vsel %vm5109_vm9, %v3677_v49, %v3678_v38  ;;  %v1171_v3 = vshrl.u32 %v918_v33, 16  ;;  %v1177_v4 = vshll.u32 %v919_v39, 16  ;;  %v1464_v60 = vld [vmem:[#allocation2 + $0x68] sm:$0x1] }
  0xd7   : > { %1749 = vst.msk [vmem:[#allocation3 + $0x18] sm:$0xff] %vm1745_vm2, %v1704_v48  ;;  %v3222_v53 = vsel %vm5116_vm10, %v3217_v54, %v3221_v2  ;;  %v4744_v0 = vcombine.low %v3676_v47, %v3679_v63  ;;  %v1160_v8 = vrot.slane %v1158_v56, 4  ;;  %v1163_v10 = vrot.slane %v1161_v57, 5  ;;  %v1465_v12 = vld [vmem:[#allocation2 + $0x6c] sm:$0xe] }
  0xd8   : > { %v4712_v11 = vcombine.low %v3212_v43, %v3222_v53  ;;  %v1156_v13 = vsel %vm5116_vm10, %v1151_v62, %v1155_v58  ;;  %v1169_v21 = vrot.slane %v1167_v61, 5  ;;  %v1173_v14 = vrot.slane %v1171_v3, 4  ;;  %v1466_v32 = vld [vmem:[#allocation2 + $0x70] sm:$0xf]  ;;  %v1467_v15 = vld [vmem:[#allocation2 + $0x74] sm:$0x1] }
  0xd9   : > { %v4585_v1 = vcombine.low %v1146_v35, %v1156_v13  ;;  %3798 = vrot.lane.b32.xlu0 %v4744_v0, %s5001_s26  ;;  %v1164_v18 = vor.u32 %v1163_v10, %v1160_v8  ;;  %v1179_v20 = vrot.slane %v1177_v4, 5  ;;  %v4601_v24 = vrot.slane %v1462_v50, 9  ;;  %v291_v36 = vld [vmem:[%s5103_s20 + $0x4c] sm:$0xf]  ;;  %v696_v43 = vld [vmem:[#allocation2 + $0x78] sm:$0xf] }
  0xda   : > { %v1881_v16 = vpop.permute.xlu1 %1880  ;;  %v2424_v17 = vpop.permute.xlu0 %2423  ;;  %3477 = vrot.lane.b32.xlu1 %v4712_v11, %s5003_s28  ;;  %v1174_v25 = vor.u32 %v1173_v14, %v1169_v21  ;;  %v1595_v26 = vrot.slane %v1463_v5, 5  ;;  %v1598_v30 = vrot.slane %v1464_v60, 5  ;;  %v4602_v2 = vrot.slane %v1465_v12, 9  ;;  %v1963_v4 = vld [vmem:[#allocation2 + $0x6c] sm:$0xf] }
  0xdb   : > { %1926 = vst.msk [vmem:[#allocation3 + $0x18] sm:$0xff] %vm1922_vm3, %v1881_v16  ;;  %v1165_v51 = vrot.slane %v1164_v18, 4  ;;  %v1602_v31 = vrot.slane %v1466_v32, 5  ;;  %v1605_v33 = vrot.slane %v1467_v15, 5  ;;  %v461_v28 = vshrl.u32 %v290_v27, 16  ;;  %v4951_v60 = vld [vmem:[#allocation2 + $0x6c] sm:$0xff]  }
  0xdc   : > { %v1175_v58 = vrot.slane %v1174_v25, 4  ;;  %v1596_v35 = vsel %vm5109_vm9, %v4601_v24, %v1595_v26  ;;  %v1597_v38 = vrot.slane %v1595_v26, 4  ;;  %v464_v39 = vshll.u32 %v290_v27, 16  ;;  %v1964_v5 = vld [vmem:[#allocation2 + $0x70] sm:$0xf]  ;;  %2470 = vst.msk [vmem:[#allocation3 + $0x10] sm:$0xff] %vm2467_vm4, %v2424_v17 }
  0xdd   : > { %v1170_v47 = vsel %vm5116_vm10, %v1165_v51, %v1169_v21  ;;  %v5603_v49 = vsel %vm5109_vm9, %v4602_v2, %v1602_v31  ;;  %v1604_v50 = vrot.slane %v1602_v31, 4  ;;  %v463_v48 = vrot.slane %v461_v28, 7  ;;  %v700_v27 = vld [vmem:[#allocation2 + $0x80] sm:$0x1]  ;;  %v1965_v8 = vld [vmem:[#allocation2 + $0x74] sm:$0x1] }
  0xde   : > { %v2745_v44 = vpop.permute.xlu0 %2744  ;;  %1389 = vrot.lane.b32.xlu1 %v4585_v1, %s4997_s22  ;;  %v1180_v52 = vsel %vm5116_vm10, %v1175_v58, %v1179_v20  ;;  %v1599_v54 = vsel %vm5109_vm9, %v1597_v38, %v1598_v30  ;;  %v469_v56 = vshrl.u32 %v291_v36, 16  ;;  %v472_v57 = vshll.u32 %v291_v36, 16  ;;  %v5621_v11 = vld [vmem:[%s5103_s20 + $0x50] sm:$0xf]  ;;  %v2508_v9 = vld [vmem:[#allocation2 + $0x6c] sm:$0xe] }
  0xdf   : > { %v4586_v61 = vcombine.low %v1170_v47, %v1180_v52  ;;  %v4617_v62 = vcombine.low %v1596_v35, %v1599_v54  ;;  %v1606_v63 = vsel %vm5109_vm9, %v1604_v50, %v1605_v33  ;;  %v466_v3 = vor.u32 %v464_v39, %v463_v48  ;;  %v2510_v18 = vld [vmem:[#allocation2 + $0x74] sm:$0x1]  ;;  %v703_v38 = vld [vmem:[#allocation2 + $0x84] sm:$0xf] }
  0xe0   : > { %v4618_v6 = vcombine.low %v5603_v49, %v1606_v63  ;;  %v467_v53 = vrot.slane %v463_v48, 4  ;;  %v471_v0 = vrot.slane %v469_v56, 7  ;;  %vm2788_vm5 = vcmask 392512  }
  0xe1   : > { %1713 = vrot.lane.b32.xlu0 %v4617_v62, %s4996_s21  ;;  %v697_v12 = vsel %vm5124_vm11, %v466_v3, %v696_v43  ;;  %vm2966_vm6 = vcmask 458112   ;;  %vm3511_vm7 = vcmask 523712   ;;  %vm6303_vm8 = vcmask 589312   ;;  %2790 = vst.msk [vmem:[#allocation3 + $0x8] sm:$0xff] %vm2788_vm5, %v5481_v22  ;;  %2789 = vst.msk [vmem:[#allocation3] sm:$0xff] %vm2788_vm5, %v5450_v34 }
  0xe2   : > { %v2923_v10 = vpop.permute.xlu0 %2922  ;;  %1391 = vrot.lane.b32.xlu1 %v4586_v61, %s4997_s22  ;;  %v474_v13 = vor.u32 %v472_v57, %v471_v0  ;;  %v476_v21 = vrot.slane %v471_v0, 4  ;;  %698 = vst [vmem:[#allocation2 + $0x78] sm:$0xf] %v697_v12  ;;  %v2180_v14 = vshrl.u32 %v1963_v4, 16  ;;  %2791 = vst.msk [vmem:[#allocation3 + $0x10] sm:$0xff] %vm2788_vm5, %v2745_v44  ;;  %v2183_v40 = vshll.u32 %v1963_v4, 16 }
  0xe3   : > { %2968 = vst.msk [vmem:[#allocation3 + $0x8] sm:$0xff] %vm2966_vm6, %v5448_v23  ;;  %v2189_v15 = vshll.u32 %v1964_v5, 16  ;;  %v2193_v16 = vshrl.u32 %v1964_v5, 16  ;;  %v2199_v17 = vshll.u32 %v1965_v8, 16  ;;  %2967 = vst.msk [vmem:[#allocation3] sm:$0xff] %vm2966_vm6, %v5438_v7  ;;  %v4665_v25 = vrot.slane %v2508_v9, 9 }
  0xe4   : > { %v2509_v22 = vld [vmem:[#allocation2 + $0x70] sm:$0xf]  ;;  %2969 = vst.msk [vmem:[#allocation3 + $0x10] sm:$0xff] %vm2966_vm6, %v2923_v10  ;;  %v475_v34 = vsel %vm5132_vm12, %v467_v53, %v474_v13  ;;  %v2182_v1 = vrot.slane %v2180_v14, 4  ;;  %v701_v23 = vsel %vm5147_vm13, %v476_v21, %v700_v27  ;;  %v5645_v7 = vld [vmem:[%s5103_s20 + $0x54] sm:$0xf] }
  0xe5   : > { %v2426_v32 = vpop.permute.xlu1 %2425  ;;  %3513 = vst.msk [vmem:[#allocation3 + $0x8] sm:$0xff] %vm3511_vm7, %v5523_v45  ;;  %3512 = vst.msk [vmem:[#allocation3] sm:$0xff] %vm3511_vm7, %v5557_v46  ;;  %1890 = vrot.lane.b32.xlu0 %v4951_v60, %s4998_s23  ;;  %v2185_v20 = vrot.slane %v2183_v40, 5  ;;  %v2191_v24 = vrot.slane %v2189_v15, 5  ;;  %v2195_v45 = vrot.slane %v2193_v16, 4  ;;  %v2201_v26 = vrot.slane %v2199_v17, 5 }
  0xe6   : > { %2471 = vst.msk [vmem:[#allocation3 + $0x18] sm:$0xff] %vm2467_vm4, %v2426_v32  ;;  %702 = vst [vmem:[#allocation2 + $0x80] sm:$0x1] %v701_v23  ;;  %v5656_v46 = vld [vmem:[%s6298_s1 + $0x20] ss:$0 sps:$4 sm:$0xff]   ;;  %1715 = vrot.lane.b32.xlu1 %v4618_v6, %s4996_s21  ;;  %v2638_v30 = vrot.slane %v2509_v22, 5 }
  0xe7   : > { %699 = vst.msk [vmem:[#allocation2 + $0x7c] sm:$0xf] %vm216_vm0, %v475_v34  ;;  %v478_v2 = vshrl.u32 %v5621_v11, 16  ;;  %v2186_v31 = vor.u32 %v2185_v20, %v2182_v1  ;;  %v2196_v33 = vor.u32 %v2195_v45, %v2191_v24  ;;  %v2641_v36 = vrot.slane %v2510_v18, 5  ;;  %v707_v45 = vld [vmem:[#allocation2 + $0x8c] sm:$0x1] }
  0xe8   : > { %3834 = vst.msk [vmem:[#allocation3 + $0x8] sm:$0xff] %vm6303_vm8, %v5483_v42  ;;  %3833 = vst.msk [vmem:[#allocation3] sm:$0xff] %vm6303_vm8, %v5462_v59  ;;  %v481_v42 = vshll.u32 %v5621_v11, 16  ;;  %v486_v28 = vshrl.u32 %v5645_v7, 16  ;;  %v2640_v59 = vrot.slane %v2638_v30, 4  ;;  %v489_v35 = vshll.u32 %v5645_v7, 16 }
  0xe9   : > { %v2747_v51 = vpop.permute.xlu1 %2746  ;;  %v5663_v58 = vrot.slane %v478_v2, 7  ;;  %vm3950_vm1 = vcmask 1043456   ;;  %v2187_v39 = vrot.slane %v2186_v31, 4  ;;  %v2197_v43 = vrot.slane %v2196_v33, 4  ;;  %v1966_v44 = vld [vmem:[#allocation2 + $0x78] sm:$0xf] }
  0xea   : > { %2792 = vst.msk [vmem:[#allocation3 + $0x18] sm:$0xff] %vm2788_vm5, %v2747_v51  ;;  %4915 = vmatprep.subr.msk.bf16.mxu0 %vm3950_vm1, %v5656_v46  ;;  %v3468_v47 = vpop.permute.xlu0 %3467  ;;  %4916 = vmatprep.subr.msk.bf16.mxu1 %vm3950_vm1, %v5656_v46  ;;  %v2204_v49 = vshrl.u32 %v1966_v44, 16  ;;  %v2207_v50 = vshll.u32 %v1966_v44, 16  ;;  %v2511_v48 = vld [vmem:[#allocation2 + $0x78] sm:$0xe]  ;;  %v2639_v61 = vsel %vm5109_vm9, %v4665_v25, %v2638_v30  ;;  %v2642_v62 = vsel %vm5109_vm9, %v2640_v59, %v2641_v36 }
  0xeb   : > { %v483_v52 = vor.u32 %v481_v42, %v5663_v58  ;;  %3514 = vst.msk [vmem:[#allocation3 + $0x10] sm:$0xff] %vm3511_vm7, %v3468_v47  ;;  %v2192_v56 = vsel %vm5116_vm10, %v2187_v39, %v2191_v24  ;;  %v2202_v57 = vsel %vm5116_vm10, %v2197_v43, %v2201_v26  ;;  %v3007_v63 = vld [vmem:[#allocation2 + $0x78] sm:$0xf]  ;;  %v4666_v60 = vrot.slane %v2511_v48, 9 }
  0xec   : > { %v4649_v4 = vcombine.low %v2192_v56, %v2202_v57  ;;  %v2206_v27 = vrot.slane %v2204_v49, 4  ;;  %v2209_v0 = vrot.slane %v2207_v50, 5  ;;  %v4681_v13 = vcombine.low %v2639_v61, %v2642_v62 }
  0xed   : > { %v2925_v54 = vpop.permute.xlu1 %2924  ;;  %v704_v6 = vsel %vm5124_vm11, %v483_v52, %v703_v38  ;;  %v1968_v53 = vld [vmem:[#allocation2 + $0x80] sm:$0x1]  ;;  %v484_v9 = vrot.slane %v5663_v58, 4  ;;  %v488_v34 = vrot.slane %v486_v28, 7  ;;  %v3224_v23 = vshrl.u32 %v3007_v63, 16 }
  0xee   : > { %2970 = vst.msk [vmem:[#allocation3 + $0x18] sm:$0xff] %vm2966_vm6, %v2925_v54  ;;  %v4953_v3 = vld [vmem:[#allocation2 + $0x78] sm:$0xff]   ;;  %705 = vst [vmem:[#allocation2 + $0x84] sm:$0xf] %v704_v6  ;;  %v3789_v12 = vpop.permute.xlu0 %3788  ;;  %2435 = vrot.lane.b32.xlu0 %v4649_v4, %s5002_s27  ;;  %v2223_v11 = vshll.u32 %v1968_v53, 16  ;;  %v2210_v32 = vor.u32 %v2209_v0, %v2206_v27  ;;  %v3227_v51 = vshll.u32 %v3007_v63, 16 }
  0xef   : > { %v1967_v5 = vld [vmem:[#allocation2 + $0x7c] sm:$0xf]  ;;  %1892 = vrot.lane.b32.xlu1 %v4953_v3, %s4998_s23  ;;  %v2513_v14 = vld [vmem:[#allocation2 + $0x80] sm:$0x1]  ;;  %3835 = vst.msk [vmem:[#allocation3 + $0x10] sm:$0xff] %vm6303_vm8, %v3789_v12  ;;  %v491_v26 = vor.u32 %v489_v35, %v488_v34  ;;  %v493_v30 = vrot.slane %v488_v34, 4 }
  0xf0   : > { %v2213_v8 = vshll.u32 %v1967_v5, 16  ;;  %v2217_v10 = vshrl.u32 %v1967_v5, 16  ;;  %v2512_v21 = vld [vmem:[#allocation2 + $0x7c] sm:$0xf]  ;;  %v2225_v17 = vrot.slane %v2223_v11, 5  ;;  %v2648_v22 = vrot.slane %v2513_v14, 5 }
  0xf1   : > { %v2645_v16 = vrot.slane %v2512_v21, 5  ;;  %v3008_v1 = vld [vmem:[#allocation2 + $0x7c] sm:$0xf]  ;;  %v2211_v18 = vrot.slane %v2210_v32, 4  ;;  %v3009_v2 = vld [vmem:[#allocation2 + $0x80] sm:$0x1]  ;;  %v492_v35 = vsel %vm5132_vm12, %v484_v9, %v491_v26  ;;  %v708_v52 = vsel %vm5147_vm13, %v493_v30, %v707_v45 }
  0xf2   : > { %v2215_v40 = vrot.slane %v2213_v8, 5  ;;  %v2219_v15 = vrot.slane %v2217_v10, 4  ;;  %2756 = vrot.lane.b32.xlu0 %v4681_v13, %s5000_s25  ;;  %v4959_v25 = vld [vmem:[#allocation2 + $0x78] sm:$0xff]   ;;  %v3226_v42 = vrot.slane %v3224_v23, 4  ;;  %v3233_v59 = vshll.u32 %v3008_v1, 16  ;;  %v3850_v32 = vld [vmem:[#allocation3 + $0x8] sm:$0xff] }
  0xf3   : > { %v5689_v20 = vsel %vm5109_vm9, %v4666_v60, %v2645_v16  ;;  %v2647_v24 = vrot.slane %v2645_v16, 4  ;;  %v3552_v58 = vld [vmem:[#allocation2 + $0x78] sm:$0xe]  ;;  %v3229_v43 = vrot.slane %v3227_v51, 5  ;;  %v3237_v44 = vshrl.u32 %v3008_v1, 16 }
  0xf4   : > { %v2220_v7 = vor.u32 %v2219_v15, %v2215_v40  ;;  %v3470_v31 = vpop.permute.xlu1 %3469  ;;  %v2216_v33 = vsel %vm5116_vm10, %v2211_v18, %v2215_v40  ;;  %v3791_v38 = vpop.permute.xlu0 %3790  ;;  %706 = vst.msk [vmem:[#allocation2 + $0x88] sm:$0xf] %vm216_vm0, %v492_v35  ;;  %v3235_v50 = vrot.slane %v3233_v59, 5  ;;  %v3243_v48 = vshll.u32 %v3009_v2, 16  ;;  %v3553_v54 = vld [vmem:[#allocation2 + $0x7c] sm:$0xf] }
  0xf5   : > { %v2649_v28 = vsel %vm5109_vm9, %v2647_v24, %v2648_v22  ;;  %3515 = vst.msk [vmem:[#allocation3 + $0x18] sm:$0xff] %vm3511_vm7, %v3470_v31  ;;  %v3010_v47 = vld [vmem:[#allocation2 + $0x84] sm:$0xf]  ;;  %v3230_v57 = vor.u32 %v3229_v43, %v3226_v42  ;;  %v3239_v61 = vrot.slane %v3237_v44, 4  ;;  %709 = vst [vmem:[#allocation2 + $0x8c] sm:$0x1] %v708_v52 }
  0xf6   : > { %v2221_v36 = vrot.slane %v2220_v7, 4  ;;  %v4682_v39 = vcombine.low %v5689_v20, %v2649_v28  ;;  %3836 = vst.msk [vmem:[#allocation3 + $0x18] sm:$0xff] %vm6303_vm8, %v3791_v38  ;;  %2934 = vrot.lane.b32.xlu0 %v4959_v25, %s4999_s24  ;;  %v3248_v62 = vshrl.u32 %v3010_v47, 16  ;;  %v3554_v63 = vld [vmem:[#allocation2 + $0x80] sm:$0x1]  ;;  %v3245_v5 = vrot.slane %v3243_v48, 5 }
  0xf7   : > { %v920_v3 = vld [vmem:[#allocation2 + $0x78] sm:$0xf]  ;;  %v3251_v27 = vshll.u32 %v3010_v47, 16  ;;  %v3952_v6 = vsel %vm3950_vm1, %v5656_v46, 0  ;;  %v4729_v53 = vrot.slane %v3552_v58, 9  ;;  %v3231_v8 = vrot.slane %v3230_v57, 4 }
  0xf8   : > { %v2226_v49 = vsel %vm5116_vm10, %v2221_v36, %v2225_v17  ;;  %v1382_v4 = vpop.permute.xlu1 %1381  ;;  %v3849_v0 = vld [vmem:[#allocation3] sm:$0xff]  ;;  %v3240_v10 = vor.u32 %v3239_v61, %v3235_v50  ;;  %v3250_v60 = vrot.slane %v3248_v62, 4  ;;  %4872 = vmatpush3.bf16.msra.mxu0 %v3952_v6  ;;  %v3682_v12 = vrot.slane %v3553_v54, 5  ;;  %v3851_v46 = vld [vmem:[#allocation3 + $0x10] sm:$0xff]  ;;  %4914 = vmatpush3.bf16.msra.mxu1 %v3952_v6  ;;  %v922_v22 = vld [vmem:[#allocation2 + $0x80] sm:$0x1] }
  0xf9   : > { %v4650_v56 = vcombine.low %v2216_v33, %v2226_v49  ;;  %1426 = vst.msk [vmem:[#allocation3 + $0x20] sm:$0xff] %vm1421_vm15, %v1382_v4  ;;  %v921_v11 = vld [vmem:[#allocation2 + $0x7c] sm:$0xf]  ;;  %v1706_v13 = vpop.permute.xlu0 %1705  ;;  %v3253_v21 = vrot.slane %v3251_v27, 5  ;;  %v3685_v14 = vrot.slane %v3554_v63, 5  ;;  %vm3901_vm8 = vcmask 588800  }
  0xfa   : > { %v1182_v9 = vshrl.u32 %v920_v3, 16  ;;  %1750 = vst.msk [vmem:[#allocation3 + $0x20] sm:$0xff] %vm1745_vm2, %v1706_v13  ;;  %v3236_v40 = vsel %vm5116_vm10, %v3231_v8, %v3235_v50  ;;  %v3241_v15 = vrot.slane %v3240_v10, 4  ;;  %v3683_v16 = vsel %vm5109_vm9, %v4729_v53, %v3682_v12  ;;  %4873 = vmatprep.mubr.msk.bf16.mxu0 %vm3901_vm8, %v3849_v0  ;;  %v3555_v20 = vld [vmem:[#allocation2 + $0x84] sm:$0xe] }
  0xfb   : > { %2437 = vrot.lane.b32.xlu1 %v4650_v56, %s5002_s27  ;;  %v3684_v17 = vrot.slane %v3682_v12, 4  ;;  %v3254_v1 = vor.u32 %v3253_v21, %v3250_v60  ;;  %v1185_v18 = vshll.u32 %v920_v3, 16  ;;  %v1191_v7 = vshll.u32 %v921_v11, 16  ;;  %4874 = vmatmul.mubr.msk.bf16.vlgmr.msra.gmra.mrb[0].mxu0 %vm3901_vm8, %v3850_v32  ;;  %v4961_v24 = vld [vmem:[#allocation2 + $0x84] sm:$0xff]   ;;  %v1468_v10 = vld [vmem:[#allocation2 + $0x78] sm:$0xe] }
  0xfc   : > { %v1384_v34 = vpop.permute.xlu1 %1383  ;;  %v1184_v23 = vrot.slane %v1182_v9, 4  ;;  %v3246_v45 = vsel %vm5116_vm10, %v3241_v15, %v3245_v5  ;;  %v3011_v25 = vld [vmem:[#allocation2 + $0x88] sm:$0xf]  ;;  %v1195_v30 = vshrl.u32 %v921_v11, 16  ;;  %4877 = vmatprep.mubr.msk.bf16.mxu0 %vm3901_vm8, %v3851_v46  ;;  %v3012_v51 = vld [vmem:[#allocation2 + $0x8c] sm:$0x1] }
  0xfd   : > { %1427 = vst.msk [vmem:[#allocation3 + $0x28] sm:$0xff] %vm1421_vm15, %v1384_v34  ;;  %v3686_v26 = vsel %vm5109_vm9, %v3684_v17, %v3685_v14  ;;  %v1883_v2 = vpop.permute.xlu0 %1882  ;;  %v4713_v42 = vcombine.low %v3236_v40, %v3246_v45  ;;  %v3255_v31 = vrot.slane %v3254_v1, 4  ;;  %v3257_v33 = vshll.u32 %v3011_v25, 16  ;;  %v4977_v43 = vld [vmem:[#allocation2 + $0x60] sm:$0xff]   ;;  %v3557_v48 = vld [vmem:[#allocation2 + $0x8c] sm:$0x1] }
  0xfe   : > { %v3261_v36 = vshrl.u32 %v3011_v25, 16  ;;  %1927 = vst.msk [vmem:[#allocation3 + $0x20] sm:$0xff] %vm1922_vm3, %v1883_v2  ;;  %v3267_v28 = vshll.u32 %v3012_v51, 16  ;;  %v4745_v59 = vcombine.low %v3683_v16, %v3686_v26  ;;  %v1187_v58 = vrot.slane %v1185_v18, 5  ;;  %v923_v61 = vld [vmem:[#allocation2 + $0x84] sm:$0xf] }
  0xff   : > { %2758 = vrot.lane.b32.xlu1 %v4682_v39, %s5000_s25  ;;  %v1193_v38 = vrot.slane %v1191_v7, 5  ;;  %v3556_v39 = vld [vmem:[#allocation2 + $0x88] sm:$0xf]  ;;  %3479 = vrot.lane.b32.xlu0 %v4713_v42, %s5003_s28  ;;  %v3259_v44 = vrot.slane %v3257_v33, 5  ;;  %v1197_v49 = vrot.slane %v1195_v30, 4  ;;  %v1201_v50 = vshll.u32 %v922_v22, 16 }
 0x100   : > { %v1708_v35 = vpop.permute.xlu1 %1707  ;;  %v3263_v47 = vrot.slane %v3261_v36, 4  ;;  %v3269_v52 = vrot.slane %v3267_v28, 5  ;;  %v1188_v54 = vor.u32 %v1187_v58, %v1184_v23  ;;  %v4730_v56 = vrot.slane %v3555_v20, 9  ;;  %v3852_v62 = vld [vmem:[#allocation3 + $0x18] sm:$0xff]  ;;  %882 = vst.msk [vmem:[#allocation3 + $0x40] sm:$0xff] %vm873_vm14, %v4977_v43 }
 0x101   : > { %1751 = vst.msk [vmem:[#allocation3 + $0x28] sm:$0xff] %vm1745_vm2, %v1708_v35  ;;  %v3689_v57 = vrot.slane %v3556_v39, 5  ;;  %v3260_v63 = vsel %vm5116_vm10, %v3255_v31, %v3259_v44  ;;  %v1198_v4 = vor.u32 %v1197_v49, %v1193_v38  ;;  %v1203_v5 = vrot.slane %v1201_v50, 5  ;;  %v924_v27 = vld [vmem:[#allocation2 + $0x88] sm:$0xf]  ;;  %v4978_v12 = vld [vmem:[#allocation2 + $0x6c] sm:$0xff]  }
 0x102   : > { %v3264_v3 = vor.u32 %v3263_v47, %v3259_v44  ;;  %v1189_v6 = vrot.slane %v1188_v54, 4  ;;  %v3692_v8 = vrot.slane %v3557_v48, 5  ;;  %v1469_v60 = vld [vmem:[#allocation2 + $0x7c] sm:$0xf]  ;;  %v1206_v21 = vshrl.u32 %v923_v61, 16  ;;  %883 = vst.msk [vmem:[#allocation3 + $0x48] sm:$0xff] %vm873_vm14, %v4978_v12 }
 0x103   : > { %2936 = vrot.lane.b32.xlu1 %v4961_v24, %s4999_s24  ;;  %v3690_v53 = vsel %vm5109_vm9, %v4730_v56, %v3689_v57  ;;  %v3691_v0 = vrot.slane %v3689_v57, 4  ;;  %3800 = vrot.lane.b32.xlu0 %v4745_v59, %s5001_s26  ;;  %v1199_v13 = vrot.slane %v1198_v4, 4  ;;  %v1209_v14 = vshll.u32 %v923_v61, 16  ;;  %v925_v46 = vld [vmem:[#allocation2 + $0x8c] sm:$0x1] }
 0x104   : > { %v3265_v11 = vrot.slane %v3264_v3, 4  ;;  %4878 = vmatmul.mubr.msk.bf16.gmra.mrb[4].mxu0 %vm3901_vm8, %v3852_v62  ;;  %v1194_v9 = vsel %vm5116_vm10, %v1189_v6, %v1193_v38  ;;  %v1215_v40 = vshll.u32 %v924_v27, 16  ;;  %v1219_v15 = vshrl.u32 %v924_v27, 16  ;;  %v1470_v16 = vld [vmem:[#allocation2 + $0x80] sm:$0x1] }
 0x105   : > { %v3693_v32 = vsel %vm5109_vm9, %v3691_v0, %v3692_v8  ;;  %v1204_v22 = vsel %vm5116_vm10, %v1199_v13, %v1203_v5  ;;  %v1208_v1 = vrot.slane %v1206_v21, 4  ;;  %v1471_v23 = vld [vmem:[#allocation2 + $0x84] sm:$0xe]  ;;  %v1472_v18 = vld [vmem:[#allocation2 + $0x88] sm:$0xf]  ;;  %v1211_v25 = vrot.slane %v1209_v14, 5 }
 0x106   : > { %v3270_v17 = vsel %vm5116_vm10, %v3265_v11, %v3269_v52  ;;  %v4746_v34 = vcombine.low %v3690_v53, %v3693_v32  ;;  %v1885_v7 = vpop.permute.xlu1 %1884  ;;  %v4587_v45 = vcombine.low %v1194_v9, %v1204_v22  ;;  %v1217_v26 = vrot.slane %v1215_v40, 5  ;;  %v1473_v31 = vld [vmem:[#allocation2 + $0x8c] sm:$0x1]  ;;  %v294_v58 = vld [vmem:[%s5103_s20 + $0x58] sm:$0xf]  ;;  %v4963_v14 = vld [vmem:[#allocation2 + $0x84] sm:$0xff]  }
 0x107   : > { %v2428_v20 = vpop.permute.xlu0 %2427  ;;  %v4714_v24 = vcombine.low %v3260_v63, %v3270_v17  ;;  %1928 = vst.msk [vmem:[#allocation3 + $0x28] sm:$0xff] %vm1922_vm3, %v1885_v7  ;;  %v1221_v30 = vrot.slane %v1219_v15, 4  ;;  %v1225_v2 = vshll.u32 %v925_v46, 16  ;;  %v4603_v42 = vrot.slane %v1468_v10, 9  ;;  %v295_v44 = vld [vmem:[%s5103_s20 + $0x5c] sm:$0xf] }
 0x108   : > { %2472 = vst.msk [vmem:[#allocation3 + $0x20] sm:$0xff] %vm2467_vm4, %v2428_v20  ;;  %3802 = vrot.lane.b32.xlu0 %v4746_v34, %s5001_s26  ;;  %v1609_v51 = vrot.slane %v1469_v60, 5  ;;  %v1212_v33 = vor.u32 %v1211_v25, %v1208_v1  ;;  %v1612_v36 = vrot.slane %v1470_v16, 5  ;;  %v4604_v28 = vrot.slane %v1471_v23, 9  ;;  %v1969_v54 = vld [vmem:[#allocation2 + $0x84] sm:$0xf] }
 0x109   : > { %3481 = vrot.lane.b32.xlu1 %v4714_v24, %s5003_s28  ;;  %v1616_v59 = vrot.slane %v1472_v18, 5  ;;  %v1222_v38 = vor.u32 %v1221_v30, %v1217_v26  ;;  %v1227_v39 = vrot.slane %v1225_v2, 5  ;;  %v1619_v52 = vrot.slane %v1473_v31, 5  ;;  %v1970_v63 = vld [vmem:[#allocation2 + $0x88] sm:$0xf]  ;;  %v4981_v40 = vld [vmem:[#allocation2 + $0x78] sm:$0xff]  }
 0x10a   : > { %v1610_v35 = vsel %vm5109_vm9, %v4603_v42, %v1609_v51  ;;  %v1611_v43 = vrot.slane %v1609_v51, 4  ;;  %v1213_v49 = vrot.slane %v1212_v33, 4  ;;  %v495_v61 = vshrl.u32 %v294_v58, 16  ;;  %v710_v6 = vld [vmem:[#allocation2 + $0x90] sm:$0xf]  ;;  %v4982_v15 = vld [vmem:[#allocation2 + $0x84] sm:$0xff]  }
 0x10b   : > { %v2749_v47 = vpop.permute.xlu0 %2748  ;;  %v5755_v50 = vsel %vm5109_vm9, %v4604_v28, %v1616_v59  ;;  %v1618_v48 = vrot.slane %v1616_v59, 4  ;;  %v1223_v56 = vrot.slane %v1222_v38, 4  ;;  %v498_v62 = vshll.u32 %v294_v58, 16  ;;  %v1971_v53 = vld [vmem:[#allocation2 + $0x8c] sm:$0x1]  ;;  %884 = vst.msk [vmem:[#allocation3 + $0x50] sm:$0xff] %vm873_vm14, %v4981_v40 }
 0x10c   : > { %2793 = vst.msk [vmem:[#allocation3 + $0x20] sm:$0xff] %vm2788_vm5, %v2749_v47  ;;  %v1613_v57 = vsel %vm5109_vm9, %v1611_v43, %v1612_v36  ;;  %v1218_v3 = vsel %vm5116_vm10, %v1213_v49, %v1217_v26  ;;  %v503_v27 = vshrl.u32 %v295_v44, 16  ;;  %v497_v10 = vrot.slane %v495_v61, 7  ;;  %v714_v12 = vld [vmem:[#allocation2 + $0x98] sm:$0x1] }
 0x10d   : > { %1393 = vrot.lane.b32.xlu1 %v4587_v45, %s4997_s22  ;;  %v4619_v4 = vcombine.low %v1610_v35, %v1613_v57  ;;  %v1620_v5 = vsel %vm5109_vm9, %v1618_v48, %v1619_v52  ;;  %v1228_v0 = vsel %vm5116_vm10, %v1223_v56, %v1227_v39  ;;  %v506_v60 = vshll.u32 %v295_v44, 16  ;;  %v2514_v11 = vld [vmem:[#allocation2 + $0x84] sm:$0xe]  ;;  %v2515_v1 = vld [vmem:[#allocation2 + $0x88] sm:$0xf]  ;;  %885 = vst.msk [vmem:[#allocation3 + $0x58] sm:$0xff] %vm873_vm14, %v4982_v15 }
 0x10e   : > { %v4620_v8 = vcombine.low %v5755_v50, %v1620_v5  ;;  %v4588_v21 = vcombine.low %v1218_v3, %v1228_v0  ;;  %v505_v9 = vrot.slane %v503_v27, 7  ;;  %v2228_v32 = vshrl.u32 %v1969_v54, 16  ;;  %v296_v23 = vld [vmem:[%s5103_s20 + $0x60] sm:$0xf]  ;;  %v2516_v25 = vld [vmem:[#allocation2 + $0x8c] sm:$0x1] }
 0x10f   : > { %v2927_v13 = vpop.permute.xlu0 %2926  ;;  %1717 = vrot.lane.b32.xlu0 %v4619_v4, %s4996_s21  ;;  %v2231_v46 = vshll.u32 %v1969_v54, 16  ;;  %v500_v16 = vor.u32 %v498_v62, %v497_v10  ;;  %v501_v17 = vrot.slane %v497_v10, 4  ;;  %v2237_v22 = vshll.u32 %v1970_v63, 16  ;;  %v297_v51 = vld [vmem:[%s5103_s20 + $0x64] sm:$0xf] }
 0x110   : > { %2971 = vst.msk [vmem:[#allocation3 + $0x20] sm:$0xff] %vm2966_vm6, %v2927_v13  ;;  %v2241_v34 = vshrl.u32 %v1970_v63, 16  ;;  %v508_v7 = vor.u32 %v506_v60, %v505_v9  ;;  %v510_v20 = vrot.slane %v505_v9, 4  ;;  %v2230_v24 = vrot.slane %v2228_v32, 4  ;;  %v5787_v50 = vld [vmem:[%s5103_s20 + $0x68] sm:$0xf] }
 0x111   : > { %1395 = vrot.lane.b32.xlu1 %v4588_v21, %s4997_s22  ;;  %v2233_v45 = vrot.slane %v2231_v46, 5  ;;  %v711_v26 = vsel %vm5124_vm11, %v500_v16, %v710_v6  ;;  %v2239_v30 = vrot.slane %v2237_v22, 5  ;;  %v2247_v42 = vshll.u32 %v1971_v53, 16  ;;  %v5790_v56 = vld [vmem:[%s5103_s20 + $0x6c] sm:$0xf] }
 0x112   : > { %v2430_v18 = vpop.permute.xlu1 %2429  ;;  %v2243_v2 = vrot.slane %v2241_v34, 4  ;;  %v509_v31 = vsel %vm5132_vm12, %v501_v17, %v508_v7  ;;  %712 = vst [vmem:[#allocation2 + $0x90] sm:$0xf] %v711_v26  ;;  %v715_v36 = vsel %vm5147_vm13, %v510_v20, %v714_v12  ;;  %v4667_v28 = vrot.slane %v2514_v11, 9  ;;  %v717_v27 = vld [vmem:[#allocation2 + $0x9c] sm:$0xf] }
 0x113   : > { %2473 = vst.msk [vmem:[#allocation3 + $0x28] sm:$0xff] %vm2467_vm4, %v2430_v18  ;;  %1894 = vrot.lane.b32.xlu0 %v4963_v14, %s4998_s23  ;;  %v2234_v33 = vor.u32 %v2233_v45, %v2230_v24  ;;  %v2249_v58 = vrot.slane %v2247_v42, 5  ;;  %716 = vst [vmem:[#allocation2 + $0x98] sm:$0x1] %v715_v36  ;;  %v2652_v38 = vrot.slane %v2515_v1, 5  ;;  %v2655_v39 = vrot.slane %v2516_v25, 5 }
 0x114   : > { %713 = vst.msk [vmem:[#allocation2 + $0x94] sm:$0xf] %vm216_vm0, %v509_v31  ;;  %v2244_v59 = vor.u32 %v2243_v2, %v2239_v30  ;;  %v512_v44 = vshrl.u32 %v296_v23, 16  ;;  %v515_v47 = vshll.u32 %v296_v23, 16  ;;  %v520_v49 = vshrl.u32 %v297_v51, 16 }
 0x115   : > { %1719 = vrot.lane.b32.xlu1 %v4620_v8, %s4996_s21  ;;  %v2235_v43 = vrot.slane %v2234_v33, 4  ;;  %v2654_v52 = vrot.slane %v2652_v38, 4  ;;  %v523_v54 = vshll.u32 %v297_v51, 16  ;;  %v2653_v61 = vsel %vm5109_vm9, %v4667_v28, %v2652_v38 }
 0x116   : > { %v2751_v35 = vpop.permute.xlu1 %2750  ;;  %v2245_v48 = vrot.slane %v2244_v59, 4  ;;  %v514_v62 = vrot.slane %v512_v44, 7  ;;  %v5796_v63 = vrot.slane %v520_v49, 7  ;;  %v529_v53 = vshrl.u32 %v5787_v50, 16 }
 0x117   : > { %2794 = vst.msk [vmem:[#allocation3 + $0x28] sm:$0xff] %vm2788_vm5, %v2751_v35  ;;  %v2240_v57 = vsel %vm5116_vm10, %v2235_v43, %v2239_v30  ;;  %v3472_v3 = vpop.permute.xlu0 %3471  ;;  %v2656_v5 = vsel %vm5109_vm9, %v2654_v52, %v2655_v39  ;;  %v532_v0 = vshll.u32 %v5787_v50, 16  ;;  %v537_v12 = vshrl.u32 %v5790_v56, 16  ;;  %v721_v43 = vld [vmem:[#allocation2 + $0xa4] sm:$0x1] }
 0x118   : > { %v2250_v4 = vsel %vm5116_vm10, %v2245_v48, %v2249_v58  ;;  %3516 = vst.msk [vmem:[#allocation3 + $0x20] sm:$0xff] %vm3511_vm7, %v3472_v3  ;;  %v517_v10 = vor.u32 %v515_v47, %v514_v62  ;;  %v518_v60 = vrot.slane %v514_v62, 4  ;;  %v525_v21 = vor.u32 %v523_v54, %v5796_v63 }
 0x119   : > { %v4651_v8 = vcombine.low %v2240_v57, %v2250_v4  ;;  %v1972_v11 = vld [vmem:[#allocation2 + $0x90] sm:$0xf]  ;;  %v4683_v46 = vcombine.low %v2653_v61, %v2656_v5  ;;  %vm6314_vm1 = vcmask 589312   ;;  %v527_v33 = vrot.slane %v5796_v63, 4 }
 0x11a   : > { %v2929_v6 = vpop.permute.xlu1 %2928  ;;  %v2517_v13 = vld [vmem:[#allocation2 + $0x90] sm:$0xe]  ;;  %v2252_v32 = vshrl.u32 %v1972_v11, 16  ;;  %v718_v40 = vsel %vm5124_vm11, %v517_v10, %v717_v27  ;;  %v1974_v16 = vld [vmem:[#allocation2 + $0x98] sm:$0x1]  ;;  %v2255_v17 = vshll.u32 %v1972_v11, 16  ;;  %v526_v45 = vsel %vm5132_vm12, %v518_v60, %v525_v21 }
 0x11b   : > { %2972 = vst.msk [vmem:[#allocation3 + $0x28] sm:$0xff] %vm2966_vm6, %v2929_v6  ;;  %v4964_v14 = vld [vmem:[#allocation2 + $0x90] sm:$0xff]   ;;  %2439 = vrot.lane.b32.xlu0 %v4651_v8, %s5002_s27  ;;  %v3793_v15 = vpop.permute.xlu0 %3792  ;;  %v4668_v1 = vrot.slane %v2517_v13, 9  ;;  %719 = vst [vmem:[#allocation2 + $0x9c] sm:$0xf] %v718_v40  ;;  %v2271_v7 = vshll.u32 %v1974_v16, 16 }
 0x11c   : > { %v1973_v9 = vld [vmem:[#allocation2 + $0x94] sm:$0xf]  ;;  %3837 = vst.msk [vmem:[#allocation3 + $0x20] sm:$0xff] %vm6314_vm1, %v3793_v15  ;;  %1896 = vrot.lane.b32.xlu1 %v4964_v14, %s4998_s23  ;;  %v2254_v18 = vrot.slane %v2252_v32, 4  ;;  %v2519_v24 = vld [vmem:[#allocation2 + $0x98] sm:$0x1] }
 0x11d   : > { %v2261_v22 = vshll.u32 %v1973_v9, 16  ;;  %v2265_v34 = vshrl.u32 %v1973_v9, 16  ;;  %v2518_v20 = vld [vmem:[#allocation2 + $0x94] sm:$0xf]  ;;  %v2257_v25 = vrot.slane %v2255_v17, 5  ;;  %v2273_v42 = vrot.slane %v2271_v7, 5 }
 0x11e   : > { %v3474_v23 = vpop.permute.xlu1 %3473  ;;  %v2659_v2 = vrot.slane %v2518_v20, 5  ;;  %720 = vst.msk [vmem:[#allocation2 + $0xa0] sm:$0xf] %vm216_vm0, %v526_v45  ;;  %v2662_v51 = vrot.slane %v2519_v24, 5  ;;  %v4967_v31 = vld [vmem:[#allocation2 + $0x90] sm:$0xff]  }
 0x11f   : > { %3517 = vst.msk [vmem:[#allocation3 + $0x28] sm:$0xff] %vm3511_vm7, %v3474_v23  ;;  %v2263_v26 = vrot.slane %v2261_v22, 5  ;;  %v2267_v30 = vrot.slane %v2265_v34, 4  ;;  %2760 = vrot.lane.b32.xlu0 %v4683_v46, %s5000_s25  ;;  %v3795_v36 = vpop.permute.xlu0 %3794  ;;  %v2258_v28 = vor.u32 %v2257_v25, %v2254_v18  ;;  %v3013_v39 = vld [vmem:[#allocation2 + $0x90] sm:$0xf]  ;;  %v722_v46 = vsel %vm5147_vm13, %v527_v33, %v721_v43 }
 0x120   : > { %v5821_v58 = vsel %vm5109_vm9, %v4668_v1, %v2659_v2  ;;  %v2661_v38 = vrot.slane %v2659_v2, 4  ;;  %v3014_v35 = vld [vmem:[#allocation2 + $0x94] sm:$0xf]  ;;  %3838 = vst.msk [vmem:[#allocation3 + $0x28] sm:$0xff] %vm6314_vm1, %v3795_v36  ;;  %v3015_v44 = vld [vmem:[#allocation2 + $0x98] sm:$0x1] }
 0x121   : > { %v2268_v59 = vor.u32 %v2267_v30, %v2263_v26  ;;  %v3272_v47 = vshrl.u32 %v3013_v39, 16  ;;  %v3275_v49 = vshll.u32 %v3013_v39, 16  ;;  %v3281_v48 = vshll.u32 %v3014_v35, 16  ;;  %v3558_v63 = vld [vmem:[#allocation2 + $0x90] sm:$0xe] }
 0x122   : > { %v3285_v52 = vshrl.u32 %v3014_v35, 16  ;;  %v2259_v54 = vrot.slane %v2258_v28, 4  ;;  %v2663_v61 = vsel %vm5109_vm9, %v2661_v38, %v2662_v51  ;;  %v3291_v62 = vshll.u32 %v3015_v44, 16  ;;  %v1386_v3 = vpop.permute.xlu1 %1385  ;;  %v3016_v21 = vld [vmem:[#allocation2 + $0x9c] sm:$0xf] }
 0x123   : > { %v2269_v57 = vrot.slane %v2268_v59, 4  ;;  %v4684_v4 = vcombine.low %v5821_v58, %v2663_v61  ;;  %2938 = vrot.lane.b32.xlu0 %v4967_v31, %s4999_s24  ;;  %v3274_v5 = vrot.slane %v3272_v47, 4  ;;  %v3277_v27 = vrot.slane %v3275_v49, 5  ;;  %1428 = vst.msk [vmem:[#allocation3 + $0x30] sm:$0xff] %vm1421_vm15, %v1386_v3  ;;  %v3853_v8 = vld [vmem:[#allocation3 + $0x20] sm:$0xff] }
 0x124   : > { %v3283_v6 = vrot.slane %v3281_v48, 5  ;;  %v2264_v10 = vsel %vm5116_vm10, %v2259_v54, %v2263_v26  ;;  %v3287_v11 = vrot.slane %v3285_v52, 4  ;;  %v3293_v13 = vrot.slane %v3291_v62, 5  ;;  %v3559_v14 = vld [vmem:[#allocation2 + $0x94] sm:$0xf]  ;;  %4881 = vmatprep.mubr.msk.bf16.mxu0 %vm3901_vm8, %v3853_v8 }
 0x125   : > { %v2274_v60 = vsel %vm5116_vm10, %v2269_v57, %v2273_v42  ;;  %v3278_v32 = vor.u32 %v3277_v27, %v3274_v5  ;;  %v3017_v40 = vld [vmem:[#allocation2 + $0xa0] sm:$0xf]  ;;  %v3296_v15 = vshrl.u32 %v3016_v21, 16  ;;  %723 = vst [vmem:[#allocation2 + $0xa4] sm:$0x1] %v722_v46  ;;  %v3299_v22 = vshll.u32 %v3016_v21, 16 }
 0x126   : > { %v4652_v9 = vcombine.low %v2264_v10, %v2274_v60  ;;  %v1710_v16 = vpop.permute.xlu0 %1709  ;;  %v3288_v17 = vor.u32 %v3287_v11, %v3283_v6  ;;  %v3305_v34 = vshll.u32 %v3017_v40, 16  ;;  %v3309_v1 = vshrl.u32 %v3017_v40, 16  ;;  %v3560_v23 = vld [vmem:[#allocation2 + $0x98] sm:$0x1]  ;;  %v926_v45 = vld [vmem:[#allocation2 + $0x90] sm:$0xf] }
 0x127   : > { %1752 = vst.msk [vmem:[#allocation3 + $0x30] sm:$0xff] %vm1745_vm2, %v1710_v16  ;;  %v3279_v18 = vrot.slane %v3278_v32, 4  ;;  %v3298_v7 = vrot.slane %v3296_v15, 4  ;;  %v4731_v20 = vrot.slane %v3558_v63, 9  ;;  %v3696_v24 = vrot.slane %v3559_v14, 5  ;;  %v1388_v25 = vpop.permute.xlu1 %1387  ;;  %v4968_v31 = vld [vmem:[#allocation2 + $0x9c] sm:$0xff]  }
 0x128   : > { %2441 = vrot.lane.b32.xlu1 %v4652_v9, %s5002_s27  ;;  %v3289_v26 = vrot.slane %v3288_v17, 4  ;;  %v3301_v30 = vrot.slane %v3299_v22, 5  ;;  %v5838_v2 = vrot.slane %v3305_v34, 5  ;;  %v3311_v42 = vrot.slane %v3309_v1, 4  ;;  %v927_v51 = vld [vmem:[#allocation2 + $0x94] sm:$0xf] }
 0x129   : > { %1429 = vst.msk [vmem:[#allocation3 + $0x38] sm:$0xff] %vm1421_vm15, %v1388_v25  ;;  %v3284_v33 = vsel %vm5116_vm10, %v3279_v18, %v3283_v6  ;;  %v3697_v36 = vsel %vm5109_vm9, %v4731_v20, %v3696_v24  ;;  %v3698_v28 = vrot.slane %v3696_v24, 4  ;;  %v3699_v59 = vrot.slane %v3560_v23, 5  ;;  %v928_v43 = vld [vmem:[#allocation2 + $0x98] sm:$0x1]  ;;  %v3854_v49 = vld [vmem:[#allocation3 + $0x28] sm:$0xff] }
 0x12a   : > { %v1887_v58 = vpop.permute.xlu0 %1886  ;;  %v3294_v38 = vsel %vm5116_vm10, %v3289_v26, %v3293_v13  ;;  %v3302_v39 = vor.u32 %v3301_v30, %v3298_v7  ;;  %v3312_v35 = vor.u32 %v3311_v42, %v5838_v2  ;;  %v1230_v44 = vshrl.u32 %v926_v45, 16  ;;  %v3561_v47 = vld [vmem:[#allocation2 + $0x9c] sm:$0xe]  ;;  %v3562_v61 = vld [vmem:[#allocation2 + $0xa0] sm:$0xf]  ;;  %4882 = vmatmul.mubr.msk.bf16.gmra.mrb[8].mxu0 %vm3901_vm8, %v3854_v49  ;;  %v4983_v10 = vld [vmem:[#allocation2 + $0x90] sm:$0xff]  }
 0x12b   : > { %1929 = vst.msk [vmem:[#allocation3 + $0x30] sm:$0xff] %vm1922_vm3, %v1887_v58  ;;  %v4715_v48 = vcombine.low %v3284_v33, %v3294_v38  ;;  %v3700_v52 = vsel %vm5109_vm9, %v3698_v28, %v3699_v59  ;;  %v1233_v54 = vshll.u32 %v926_v45, 16  ;;  %v1239_v57 = vshll.u32 %v927_v51, 16  ;;  %v929_v62 = vld [vmem:[#allocation2 + $0x9c] sm:$0xf]  ;;  %v1712_v63 = vpop.permute.xlu1 %1711 }
 0x12c   : > { %2762 = vrot.lane.b32.xlu1 %v4684_v4, %s5000_s25  ;;  %v3303_v3 = vrot.slane %v3302_v39, 4  ;;  %v3313_v5 = vrot.slane %v3312_v35, 4  ;;  %v4747_v27 = vcombine.low %v3697_v36, %v3700_v52  ;;  %v1232_v6 = vrot.slane %v1230_v44, 4  ;;  %v930_v8 = vld [vmem:[#allocation2 + $0xa0] sm:$0xf]  ;;  %1753 = vst.msk [vmem:[#allocation3 + $0x38] sm:$0xff] %vm1745_vm2, %v1712_v63 }
 0x12d   : > { %3483 = vrot.lane.b32.xlu0 %v4715_v48, %s5003_s28  ;;  %v3018_v4 = vld [vmem:[#allocation2 + $0xa4] sm:$0x1]  ;;  %v1235_v60 = vrot.slane %v1233_v54, 5  ;;  %v1241_v11 = vrot.slane %v1239_v57, 5  ;;  %v1243_v13 = vshrl.u32 %v927_v51, 16  ;;  %v1249_v21 = vshll.u32 %v928_v43, 16 }
 0x12e   : > { %v3308_v14 = vsel %vm5116_vm10, %v3303_v3, %v5838_v2  ;;  %v3315_v9 = vshll.u32 %v3018_v4, 16  ;;  %v3563_v32 = vld [vmem:[#allocation2 + $0xa4] sm:$0x1]  ;;  %v4732_v46 = vrot.slane %v3561_v47, 9  ;;  %v3703_v40 = vrot.slane %v3562_v61, 5  ;;  %886 = vst.msk [vmem:[#allocation3 + $0x60] sm:$0xff] %vm873_vm14, %v4983_v10 }
 0x12f   : > { %v4984_v15 = vld [vmem:[#allocation2 + $0x9c] sm:$0xff]   ;;  %v1236_v16 = vor.u32 %v1235_v60, %v1232_v6  ;;  %v1245_v17 = vrot.slane %v1243_v13, 4  ;;  %v1251_v22 = vrot.slane %v1249_v21, 5  ;;  %v3706_v34 = vrot.slane %v3563_v32, 5  ;;  %v1474_v20 = vld [vmem:[#allocation2 + $0x90] sm:$0xe] }
 0x130   : > { %2940 = vrot.lane.b32.xlu1 %v4968_v31, %s4999_s24  ;;  %v3317_v1 = vrot.slane %v3315_v9, 5  ;;  %v3704_v23 = vsel %vm5109_vm9, %v4732_v46, %v3703_v40  ;;  %v3705_v18 = vrot.slane %v3703_v40, 4  ;;  %v1254_v7 = vshrl.u32 %v929_v62, 16  ;;  %v1475_v24 = vld [vmem:[#allocation2 + $0x94] sm:$0xf]  ;;  %887 = vst.msk [vmem:[#allocation3 + $0x68] sm:$0xff] %vm873_vm14, %v4984_v15 }
 0x131   : > { %3804 = vrot.lane.b32.xlu0 %v4747_v27, %s5001_s26  ;;  %v1237_v45 = vrot.slane %v1236_v16, 4  ;;  %v1246_v25 = vor.u32 %v1245_v17, %v1241_v11  ;;  %v931_v26 = vld [vmem:[#allocation2 + $0xa4] sm:$0x1]  ;;  %v1257_v30 = vshll.u32 %v929_v62, 16  ;;  %v1263_v2 = vshll.u32 %v930_v8, 16 }
 0x132   : > { %v3318_v42 = vsel %vm5116_vm10, %v3313_v5, %v3317_v1  ;;  %v3707_v51 = vsel %vm5109_vm9, %v3705_v18, %v3706_v34  ;;  %v1256_v31 = vrot.slane %v1254_v7, 4  ;;  %v1267_v33 = vshrl.u32 %v930_v8, 16  ;;  %v1476_v36 = vld [vmem:[#allocation2 + $0x98] sm:$0x1]  ;;  %v1477_v28 = vld [vmem:[#allocation2 + $0x9c] sm:$0xe]  ;;  %v1889_v59 = vpop.permute.xlu1 %1888  ;;  %v2432_v58 = vpop.permute.xlu0 %2431 }
 0x133   : > { %v4716_v38 = vcombine.low %v3308_v14, %v3318_v42  ;;  %v1242_v39 = vsel %vm5116_vm10, %v1237_v45, %v1241_v11  ;;  %v1247_v35 = vrot.slane %v1246_v25, 4  ;;  %v4748_v43 = vcombine.low %v3704_v23, %v3707_v51  ;;  %1930 = vst.msk [vmem:[#allocation3 + $0x38] sm:$0xff] %vm1922_vm3, %v1889_v59  ;;  %v1478_v52 = vld [vmem:[#allocation2 + $0xa0] sm:$0xf]  ;;  %v1479_v63 = vld [vmem:[#allocation2 + $0xa4] sm:$0x1] }
 0x134   : > { %2474 = vst.msk [vmem:[#allocation3 + $0x30] sm:$0xff] %vm2467_vm4, %v2432_v58  ;;  %v1259_v44 = vrot.slane %v1257_v30, 5  ;;  %v1265_v47 = vrot.slane %v1263_v2, 5  ;;  %v1269_v49 = vrot.slane %v1267_v33, 4  ;;  %v1273_v48 = vshll.u32 %v931_v26, 16  ;;  %v4969_v42 = vld [vmem:[#allocation2 + $0x9c] sm:$0xff]  }
 0x135   : > { %3485 = vrot.lane.b32.xlu1 %v4716_v38, %s5003_s28  ;;  %v1252_v54 = vsel %vm5116_vm10, %v1247_v35, %v1251_v22  ;;  %3806 = vrot.lane.b32.xlu0 %v4748_v43, %s5001_s26  ;;  %v4605_v57 = vrot.slane %v1474_v20, 9  ;;  %v1623_v61 = vrot.slane %v1475_v24, 5  ;;  %v1626_v62 = vrot.slane %v1476_v36, 5  ;;  %v724_v13 = vld [vmem:[#allocation2 + $0xa8] sm:$0xf] }
 0x136   : > { %v4589_v3 = vcombine.low %v1242_v39, %v1252_v54  ;;  %v1260_v5 = vor.u32 %v1259_v44, %v1256_v31  ;;  %v1270_v27 = vor.u32 %v1269_v49, %v1265_v47  ;;  %v1275_v6 = vrot.slane %v1273_v48, 5  ;;  %v2753_v8 = vpop.permute.xlu0 %2752  ;;  %v1975_v46 = vld [vmem:[#allocation2 + $0x9c] sm:$0xf]  ;;  %v728_v22 = vld [vmem:[#allocation2 + $0xb0] sm:$0x1] }
 0x137   : > { %v1624_v10 = vsel %vm5109_vm9, %v4605_v57, %v1623_v61  ;;  %v1625_v4 = vrot.slane %v1623_v61, 4  ;;  %v4606_v60 = vrot.slane %v1477_v28, 9  ;;  %v1630_v11 = vrot.slane %v1478_v52, 5  ;;  %2795 = vst.msk [vmem:[#allocation3 + $0x30] sm:$0xff] %vm2788_vm5, %v2753_v8  ;;  %v1976_v18 = vld [vmem:[#allocation2 + $0xa0] sm:$0xf] }
 0x138   : > { %v1261_v21 = vrot.slane %v1260_v5, 4  ;;  %v1271_v14 = vrot.slane %v1270_v27, 4  ;;  %v1633_v9 = vrot.slane %v1479_v63, 5  ;;  %v531_v32 = vrot.slane %v529_v53, 7  ;;  %v1977_v25 = vld [vmem:[#allocation2 + $0xa4] sm:$0x1] }
 0x139   : > { %1397 = vrot.lane.b32.xlu1 %v4589_v3, %s4997_s22  ;;  %v1627_v40 = vsel %vm5109_vm9, %v1625_v4, %v1626_v62  ;;  %v1631_v15 = vsel %vm5109_vm9, %v4606_v60, %v1630_v11  ;;  %v1632_v16 = vrot.slane %v1630_v11, 4  ;;  %v539_v17 = vrot.slane %v537_v12, 7  ;;  %v2520_v26 = vld [vmem:[#allocation2 + $0x9c] sm:$0xe]  ;;  %v300_v30 = vld [vmem:[%s5103_s20 + $0x70] sm:$0xf] }
 0x13a   : > { %v1266_v34 = vsel %vm5116_vm10, %v1261_v21, %v1265_v47  ;;  %v1276_v53 = vsel %vm5116_vm10, %v1271_v14, %v1275_v6  ;;  %v4621_v1 = vcombine.low %v1624_v10, %v1627_v40  ;;  %v534_v23 = vor.u32 %v532_v0, %v531_v32  ;;  %v2931_v7 = vpop.permute.xlu0 %2930  ;;  %v2521_v31 = vld [vmem:[#allocation2 + $0xa0] sm:$0xf]  ;;  %v2522_v58 = vld [vmem:[#allocation2 + $0xa4] sm:$0x1]  ;;  %v301_v44 = vld [vmem:[%s5103_s20 + $0x74] sm:$0xf] }
 0x13b   : > { %v4590_v20 = vcombine.low %v1266_v34, %v1276_v53  ;;  %v1634_v24 = vsel %vm5109_vm9, %v1632_v16, %v1633_v9  ;;  %v535_v45 = vrot.slane %v531_v32, 4  ;;  %v540_v12 = vshll.u32 %v5790_v56, 16  ;;  %2973 = vst.msk [vmem:[#allocation3 + $0x30] sm:$0xff] %vm2966_vm6, %v2931_v7  ;;  %v5912_v3 = vld [vmem:[%s5103_s20 + $0x78] sm:$0xf] }
 0x13c   : > { %1721 = vrot.lane.b32.xlu0 %v4621_v1, %s4996_s21  ;;  %v4622_v2 = vcombine.low %v1631_v15, %v1634_v24  ;;  %v544_v50 = vrot.slane %v539_v17, 4  ;;  %v725_v0 = vsel %vm5124_vm11, %v534_v23, %v724_v13  ;;  %v2276_v51 = vshrl.u32 %v1975_v46, 16  ;;  %v731_v14 = vld [vmem:[#allocation2 + $0xb4] sm:$0xf] }
 0x13d   : > { %1399 = vrot.lane.b32.xlu1 %v4590_v20, %s4997_s22  ;;  %v542_v56 = vor.u32 %v540_v12, %v539_v17  ;;  %726 = vst [vmem:[#allocation2 + $0xa8] sm:$0xf] %v725_v0  ;;  %v2279_v36 = vshll.u32 %v1975_v46, 16  ;;  %v2285_v28 = vshll.u32 %v1976_v18, 16  ;;  %v2289_v59 = vshrl.u32 %v1976_v18, 16 }
 0x13e   : > { %v2434_v33 = vpop.permute.xlu1 %2433  ;;  %v2278_v38 = vrot.slane %v2276_v51, 4  ;;  %v2295_v39 = vshll.u32 %v1977_v25, 16  ;;  %v729_v35 = vsel %vm5147_vm13, %v544_v50, %v728_v22  ;;  %v4669_v43 = vrot.slane %v2520_v26, 9 }
 0x13f   : > { %2475 = vst.msk [vmem:[#allocation3 + $0x38] sm:$0xff] %vm2467_vm4, %v2434_v33  ;;  %v543_v47 = vsel %vm5132_vm12, %v535_v45, %v542_v56  ;;  %v2281_v49 = vrot.slane %v2279_v36, 5  ;;  %v2287_v48 = vrot.slane %v2285_v28, 5  ;;  %v2291_v52 = vrot.slane %v2289_v59, 4  ;;  %730 = vst [vmem:[#allocation2 + $0xb0] sm:$0x1] %v729_v35 }
 0x140   : > { %1898 = vrot.lane.b32.xlu0 %v4969_v42, %s4998_s23  ;;  %727 = vst.msk [vmem:[#allocation2 + $0xac] sm:$0xf] %vm216_vm0, %v543_v47  ;;  %v2297_v54 = vrot.slane %v2295_v39, 5  ;;  %v2666_v57 = vrot.slane %v2521_v31, 5  ;;  %v2669_v61 = vrot.slane %v2522_v58, 5  ;;  %v546_v62 = vshrl.u32 %v300_v30, 16 }
 0x141   : > { %1723 = vrot.lane.b32.xlu1 %v4622_v2, %s4996_s21  ;;  %v2282_v5 = vor.u32 %v2281_v49, %v2278_v38  ;;  %v2292_v27 = vor.u32 %v2291_v52, %v2287_v48  ;;  %v549_v6 = vshll.u32 %v300_v30, 16  ;;  %v554_v8 = vshrl.u32 %v301_v44, 16 }
 0x142   : > { %v2755_v63 = vpop.permute.xlu1 %2754  ;;  %v2668_v10 = vrot.slane %v2666_v57, 4  ;;  %v548_v4 = vrot.slane %v546_v62, 7  ;;  %v557_v60 = vshll.u32 %v301_v44, 16  ;;  %v563_v9 = vshrl.u32 %v5912_v3, 16 }
 0x143   : > { %2796 = vst.msk [vmem:[#allocation3 + $0x38] sm:$0xff] %vm2788_vm5, %v2755_v63  ;;  %v2283_v11 = vrot.slane %v2282_v5, 4  ;;  %v2293_v13 = vrot.slane %v2292_v27, 4  ;;  %v5916_v21 = vrot.slane %v554_v8, 7  ;;  %v2667_v46 = vsel %vm5109_vm9, %v4669_v43, %v2666_v57  ;;  %v3476_v22 = vpop.permute.xlu0 %3475 }
 0x144   : > { %v1978_v32 = vld [vmem:[#allocation2 + $0xa8] sm:$0xf]  ;;  %v2670_v40 = vsel %vm5109_vm9, %v2668_v10, %v2669_v61  ;;  %v551_v16 = vor.u32 %v549_v6, %v548_v4  ;;  %3518 = vst.msk [vmem:[#allocation3 + $0x30] sm:$0xff] %vm3511_vm7, %v3476_v22  ;;  %v552_v45 = vrot.slane %v548_v4, 4  ;;  %v735_v6 = vld [vmem:[#allocation2 + $0xbc] sm:$0x1] }
 0x145   : > { %v2523_v15 = vld [vmem:[#allocation2 + $0xa8] sm:$0xe]  ;;  %v2288_v34 = vsel %vm5116_vm10, %v2283_v11, %v2287_v48  ;;  %v2298_v53 = vsel %vm5116_vm10, %v2293_v13, %v2297_v54  ;;  %v2300_v1 = vshrl.u32 %v1978_v32, 16  ;;  %v2303_v23 = vshll.u32 %v1978_v32, 16 }
 0x146   : > { %v2933_v17 = vpop.permute.xlu1 %2932  ;;  %v4653_v18 = vcombine.low %v2288_v34, %v2298_v53  ;;  %v1980_v7 = vld [vmem:[#allocation2 + $0xb0] sm:$0x1]  ;;  %v4670_v24 = vrot.slane %v2523_v15, 9  ;;  %v3019_v12 = vld [vmem:[#allocation2 + $0xa8] sm:$0xf]  ;;  %v4685_v2 = vcombine.low %v2667_v46, %v2670_v40  ;;  %v559_v42 = vor.u32 %v557_v60, %v5916_v21 }
 0x147   : > { %2974 = vst.msk [vmem:[#allocation3 + $0x38] sm:$0xff] %vm2966_vm6, %v2933_v17  ;;  %v2525_v20 = vld [vmem:[#allocation2 + $0xb0] sm:$0x1]  ;;  %v4970_v25 = vld [vmem:[#allocation2 + $0xa8] sm:$0xff]   ;;  %v2302_v30 = vrot.slane %v2300_v1, 4  ;;  %v732_v50 = vsel %vm5124_vm11, %v551_v16, %v731_v14  ;;  %v2305_v0 = vrot.slane %v2303_v23, 5  ;;  %v3797_v36 = vpop.permute.xlu0 %3796 }
 0x148   : > { %v1979_v26 = vld [vmem:[#allocation2 + $0xac] sm:$0xf]  ;;  %2443 = vrot.lane.b32.xlu0 %v4653_v18, %s5002_s27  ;;  %v2319_v33 = vshll.u32 %v1980_v7, 16  ;;  %733 = vst [vmem:[#allocation2 + $0xb4] sm:$0xf] %v732_v50  ;;  %1900 = vrot.lane.b32.xlu1 %v4970_v25, %s4998_s23  ;;  %v2676_v59 = vrot.slane %v2525_v20, 5  ;;  %v560_v58 = vsel %vm5132_vm12, %v552_v45, %v559_v42 }
 0x149   : > { %v2309_v51 = vshll.u32 %v1979_v26, 16  ;;  %v2313_v31 = vshrl.u32 %v1979_v26, 16  ;;  %v2524_v56 = vld [vmem:[#allocation2 + $0xac] sm:$0xf]  ;;  %v561_v38 = vrot.slane %v5916_v21, 4  ;;  %3839 = vst.msk [vmem:[#allocation3 + $0x30] sm:$0xff] %vm6314_vm1, %v3797_v36  ;;  %v2306_v39 = vor.u32 %v2305_v0, %v2302_v30 }
 0x14a   : > { %v2673_v28 = vrot.slane %v2524_v56, 5  ;;  %v2321_v44 = vrot.slane %v2319_v33, 5  ;;  %734 = vst.msk [vmem:[#allocation2 + $0xb8] sm:$0xf] %vm216_vm0, %v560_v58  ;;  %v3020_v47 = vld [vmem:[#allocation2 + $0xac] sm:$0xf] }
 0x14b   : > { %v2311_v35 = vrot.slane %v2309_v51, 5  ;;  %v2315_v43 = vrot.slane %v2313_v31, 4  ;;  %v3021_v52 = vld [vmem:[#allocation2 + $0xb0] sm:$0x1]  ;;  %v3320_v54 = vshrl.u32 %v3019_v12, 16  ;;  %v3323_v57 = vshll.u32 %v3019_v12, 16  ;;  %v3799_v8 = vpop.permute.xlu0 %3798 }
 0x14c   : > { %v5941_v49 = vsel %vm5109_vm9, %v4670_v24, %v2673_v28  ;;  %v2675_v48 = vrot.slane %v2673_v28, 4  ;;  %v2307_v61 = vrot.slane %v2306_v39, 4  ;;  %2764 = vrot.lane.b32.xlu0 %v4685_v2, %s5000_s25  ;;  %v4973_v63 = vld [vmem:[#allocation2 + $0xa8] sm:$0xff]   ;;  %v3329_v5 = vshll.u32 %v3020_v47, 16  ;;  %v3478_v21 = vpop.permute.xlu1 %3477  ;;  %v3566_v15 = vld [vmem:[#allocation2 + $0xb0] sm:$0x1] }
 0x14d   : > { %v2316_v62 = vor.u32 %v2315_v43, %v2311_v35  ;;  %v3333_v27 = vshrl.u32 %v3020_v47, 16  ;;  %v3322_v4 = vrot.slane %v3320_v54, 4  ;;  %v3325_v60 = vrot.slane %v3323_v57, 5  ;;  %v3564_v13 = vld [vmem:[#allocation2 + $0xa8] sm:$0xe]  ;;  %3519 = vst.msk [vmem:[#allocation3 + $0x38] sm:$0xff] %vm3511_vm7, %v3478_v21 }
 0x14e   : > { %v5946_v10 = vsel %vm5109_vm9, %v2675_v48, %v2676_v59  ;;  %v3339_v11 = vshll.u32 %v3021_v52, 16  ;;  %v2312_v14 = vsel %vm5116_vm10, %v2307_v61, %v2311_v35  ;;  %v3331_v46 = vrot.slane %v3329_v5, 5  ;;  %v3565_v40 = vld [vmem:[#allocation2 + $0xac] sm:$0xf]  ;;  %3840 = vst.msk [vmem:[#allocation3 + $0x38] sm:$0xff] %vm6314_vm1, %v3799_v8 }
 0x14f   : > { %v2317_v32 = vrot.slane %v2316_v62, 4  ;;  %v4686_v16 = vcombine.low %v5941_v49, %v5946_v10  ;;  %v3326_v17 = vor.u32 %v3325_v60, %v3322_v4  ;;  %v3335_v22 = vrot.slane %v3333_v27, 4  ;;  %v3022_v53 = vld [vmem:[#allocation2 + $0xb4] sm:$0xf]  ;;  %v932_v20 = vld [vmem:[#allocation2 + $0xa8] sm:$0xf] }
 0x150   : > { %v736_v34 = vsel %vm5147_vm13, %v561_v38, %v735_v6  ;;  %2942 = vrot.lane.b32.xlu0 %v4973_v63, %s4999_s24  ;;  %v3341_v23 = vrot.slane %v3339_v11, 5  ;;  %v3344_v18 = vshrl.u32 %v3022_v53, 16  ;;  %v3347_v7 = vshll.u32 %v3022_v53, 16  ;;  %v3855_v24 = vld [vmem:[#allocation3 + $0x30] sm:$0xff]  ;;  %v1390_v2 = vpop.permute.xlu1 %1389  ;;  %v934_v52 = vld [vmem:[#allocation2 + $0xb0] sm:$0x1] }
 0x151   : > { %v2322_v1 = vsel %vm5116_vm10, %v2317_v32, %v2321_v44  ;;  %737 = vst [vmem:[#allocation2 + $0xbc] sm:$0x1] %v736_v34  ;;  %v3327_v12 = vrot.slane %v3326_v17, 4  ;;  %v3336_v25 = vor.u32 %v3335_v22, %v3331_v46  ;;  %v3023_v26 = vld [vmem:[#allocation2 + $0xb8] sm:$0xf]  ;;  %v4733_v30 = vrot.slane %v3564_v13, 9  ;;  %4885 = vmatprep.mubr.msk.bf16.mxu0 %vm3901_vm8, %v3855_v24 }
 0x152   : > { %v4654_v45 = vcombine.low %v2312_v14, %v2322_v1  ;;  %v3346_v42 = vrot.slane %v3344_v18, 4  ;;  %v3349_v50 = vrot.slane %v3347_v7, 5  ;;  %v3353_v0 = vshll.u32 %v3023_v26, 16  ;;  %1430 = vst.msk [vmem:[#allocation3 + $0x40] sm:$0xff] %vm1421_vm15, %v1390_v2  ;;  %v933_v38 = vld [vmem:[#allocation2 + $0xac] sm:$0xf] }
 0x153   : > { %v3357_v51 = vshrl.u32 %v3023_v26, 16  ;;  %v3332_v31 = vsel %vm5116_vm10, %v3327_v12, %v3331_v46  ;;  %v3337_v33 = vrot.slane %v3336_v25, 4  ;;  %v3710_v56 = vrot.slane %v3565_v40, 5  ;;  %v1714_v35 = vpop.permute.xlu0 %1713  ;;  %v4985_v43 = vld [vmem:[#allocation2 + $0xa8] sm:$0xff]   ;;  %v4974_v44 = vld [vmem:[#allocation2 + $0xb4] sm:$0xff]  }
 0x154   : > { %2445 = vrot.lane.b32.xlu1 %v4654_v45, %s5002_s27  ;;  %v3713_v36 = vrot.slane %v3566_v15, 5  ;;  %v3350_v28 = vor.u32 %v3349_v50, %v3346_v42  ;;  %v5964_v59 = vrot.slane %v3353_v0, 5  ;;  %v1278_v39 = vshrl.u32 %v932_v20, 16  ;;  %v1392_v57 = vpop.permute.xlu1 %1391  ;;  %1754 = vst.msk [vmem:[#allocation3 + $0x40] sm:$0xff] %vm1745_vm2, %v1714_v35  ;;  %v3567_v27 = vld [vmem:[#allocation2 + $0xb4] sm:$0xe] }
 0x155   : > { %v3359_v58 = vrot.slane %v3357_v51, 4  ;;  %v3342_v47 = vsel %vm5116_vm10, %v3337_v33, %v3341_v23  ;;  %v3711_v49 = vsel %vm5109_vm9, %v4733_v30, %v3710_v56  ;;  %v3712_v48 = vrot.slane %v3710_v56, 4  ;;  %v3568_v6 = vld [vmem:[#allocation2 + $0xb8] sm:$0xf]  ;;  %1431 = vst.msk [vmem:[#allocation3 + $0x48] sm:$0xff] %vm1421_vm15, %v1392_v57  ;;  %v3856_v13 = vld [vmem:[#allocation3 + $0x38] sm:$0xff] }
 0x156   : > { %v1281_v54 = vshll.u32 %v932_v20, 16  ;;  %v4717_v61 = vcombine.low %v3332_v31, %v3342_v47  ;;  %v3351_v62 = vrot.slane %v3350_v28, 4  ;;  %v1280_v5 = vrot.slane %v1278_v39, 4  ;;  %888 = vst.msk [vmem:[#allocation3 + $0x70] sm:$0xff] %vm873_vm14, %v4985_v43  ;;  %v935_v15 = vld [vmem:[#allocation2 + $0xb4] sm:$0xf]  ;;  %4886 = vmatmul.mubr.msk.bf16.gmra.mrb[12].mxu0 %vm3901_vm8, %v3856_v13 }
 0x157   : > { %v3360_v63 = vor.u32 %v3359_v58, %v5964_v59  ;;  %v3714_v10 = vsel %vm5109_vm9, %v3712_v48, %v3713_v36  ;;  %v1287_v60 = vshll.u32 %v933_v38, 16  ;;  %v1291_v11 = vshrl.u32 %v933_v38, 16  ;;  %v4986_v23 = vld [vmem:[#allocation2 + $0xb4] sm:$0xff]   ;;  %v1480_v2 = vld [vmem:[#allocation2 + $0xa8] sm:$0xe] }
 0x158   : > { %2766 = vrot.lane.b32.xlu1 %v4686_v16, %s5000_s25  ;;  %v3024_v8 = vld [vmem:[#allocation2 + $0xbc] sm:$0x1]  ;;  %v1283_v4 = vrot.slane %v1281_v54, 5  ;;  %3487 = vrot.lane.b32.xlu0 %v4717_v61, %s5003_s28  ;;  %v3356_v21 = vsel %vm5116_vm10, %v3351_v62, %v5964_v59  ;;  %v4749_v46 = vcombine.low %v3711_v49, %v3714_v10  ;;  %v1891_v16 = vpop.permute.xlu0 %1890  ;;  %v1297_v53 = vshll.u32 %v934_v52, 16  ;;  %v1716_v1 = vpop.permute.xlu1 %1715  ;;  %v936_v45 = vld [vmem:[#allocation2 + $0xb8] sm:$0xf] }
 0x159   : > { %v3361_v14 = vrot.slane %v3360_v63, 4  ;;  %v3363_v32 = vshll.u32 %v3024_v8, 16  ;;  %v3569_v40 = vld [vmem:[#allocation2 + $0xbc] sm:$0x1]  ;;  %v1289_v22 = vrot.slane %v1287_v60, 5  ;;  %v1293_v34 = vrot.slane %v1291_v11, 4 }
 0x15a   : > { %v1284_v17 = vor.u32 %v1283_v4, %v1280_v5  ;;  %1931 = vst.msk [vmem:[#allocation3 + $0x40] sm:$0xff] %vm1922_vm3, %v1891_v16  ;;  %v4734_v7 = vrot.slane %v3567_v27, 9  ;;  %v3717_v20 = vrot.slane %v3568_v6, 5  ;;  %v3720_v24 = vrot.slane %v3569_v40, 5  ;;  %v937_v51 = vld [vmem:[#allocation2 + $0xbc] sm:$0x1] }
 0x15b   : > { %v3365_v18 = vrot.slane %v3363_v32, 5  ;;  %1755 = vst.msk [vmem:[#allocation3 + $0x48] sm:$0xff] %vm1745_vm2, %v1716_v1  ;;  %v1294_v25 = vor.u32 %v1293_v34, %v1289_v22  ;;  %v1299_v26 = vrot.slane %v1297_v53, 5  ;;  %v1302_v30 = vshrl.u32 %v935_v15, 16  ;;  %v1481_v33 = vld [vmem:[#allocation2 + $0xac] sm:$0xf] }
 0x15c   : > { %2944 = vrot.lane.b32.xlu1 %v4974_v44, %s4999_s24  ;;  %v1285_v12 = vrot.slane %v1284_v17, 4  ;;  %889 = vst.msk [vmem:[#allocation3 + $0x78] sm:$0xff] %vm873_vm14, %v4986_v23  ;;  %3808 = vrot.lane.b32.xlu0 %v4749_v46, %s5001_s26  ;;  %v3718_v50 = vsel %vm5109_vm9, %v4734_v7, %v3717_v20  ;;  %v3719_v0 = vrot.slane %v3717_v20, 4  ;;  %v1305_v31 = vshll.u32 %v935_v15, 16  ;;  %v1482_v58 = vld [vmem:[#allocation2 + $0xb0] sm:$0x1] }
 0x15d   : > { %v3366_v42 = vsel %vm5116_vm10, %v3361_v14, %v3365_v18  ;;  %v1295_v28 = vrot.slane %v1294_v25, 4  ;;  %v1304_v59 = vrot.slane %v1302_v30, 4  ;;  %v1311_v35 = vshll.u32 %v936_v45, 16  ;;  %v1483_v44 = vld [vmem:[#allocation2 + $0xb4] sm:$0xe] }
 0x15e   : > { %v4718_v56 = vcombine.low %v3356_v21, %v3366_v42  ;;  %v1290_v36 = vsel %vm5116_vm10, %v1285_v12, %v1289_v22  ;;  %v3721_v38 = vsel %vm5109_vm9, %v3719_v0, %v3720_v24  ;;  %v1307_v39 = vrot.slane %v1305_v31, 5  ;;  %v1484_v54 = vld [vmem:[#allocation2 + $0xb8] sm:$0xf]  ;;  %v1485_v57 = vld [vmem:[#allocation2 + $0xbc] sm:$0x1] }
 0x15f   : > { %v1315_v43 = vshrl.u32 %v936_v45, 16  ;;  %v1300_v47 = vsel %vm5116_vm10, %v1295_v28, %v1299_v26  ;;  %v4750_v49 = vcombine.low %v3718_v50, %v3721_v38  ;;  %v1321_v48 = vshll.u32 %v937_v51, 16  ;;  %v303_v27 = vld [vmem:[%s5103_s20 + $0x7c] sm:$0xf]  ;;  %v738_v1 = vld [vmem:[#allocation2 + $0xc0] sm:$0xf]  ;;  %s211_s20 = scalar_lea.vmem %s6300_s3, %s6325_s16 }
 0x160   : > { %3489 = vrot.lane.b32.xlu1 %v4718_v56, %s5003_s28  ;;  %v4607_v52 = vrot.slane %v1480_v2, 9  ;;  %v4591_v61 = vcombine.low %v1290_v36, %v1300_v47  ;;  %v1308_v62 = vor.u32 %v1307_v39, %v1304_v59  ;;  %v1313_v63 = vrot.slane %v1311_v35, 5  ;;  %v2436_v11 = vpop.permute.xlu0 %2435  ;;  %v1981_v24 = vld [vmem:[#allocation2 + $0xb4] sm:$0xf]  ;;  %v1982_v45 = vld [vmem:[#allocation2 + $0xb8] sm:$0xf] }
 0x161   : > { %v1317_v5 = vrot.slane %v1315_v43, 4  ;;  %3810 = vrot.lane.b32.xlu0 %v4750_v49, %s5001_s26  ;;  %v1323_v6 = vrot.slane %v1321_v48, 5  ;;  %v1637_v8 = vrot.slane %v1481_v33, 5  ;;  %v1640_v10 = vrot.slane %v1482_v58, 5  ;;  %v1893_v60 = vpop.permute.xlu1 %1892  ;;  %2476 = vst.msk [vmem:[#allocation3 + $0x40] sm:$0xff] %vm2467_vm4, %v2436_v11  ;;  %v4975_v0 = vld [vmem:[#allocation2 + $0xb4] sm:$0xff]  }
 0x162   : > { %v4608_v4 = vrot.slane %v1483_v44, 9  ;;  %v1309_v13 = vrot.slane %v1308_v62, 4  ;;  %v1644_v14 = vrot.slane %v1484_v54, 5  ;;  %v1647_v32 = vrot.slane %v1485_v57, 5  ;;  %1932 = vst.msk [vmem:[#allocation3 + $0x48] sm:$0xff] %vm1922_vm3, %v1893_v60 }
 0x163   : > { %v1318_v21 = vor.u32 %v1317_v5, %v1313_v63  ;;  %v1638_v46 = vsel %vm5109_vm9, %v4607_v52, %v1637_v8  ;;  %v1639_v40 = vrot.slane %v1637_v8, 4  ;;  %v565_v15 = vrot.slane %v563_v9, 7  ;;  %v1983_v30 = vld [vmem:[#allocation2 + $0xbc] sm:$0x1]  ;;  %v2526_v2 = vld [vmem:[#allocation2 + $0xb4] sm:$0xe] }
 0x164   : > { %1401 = vrot.lane.b32.xlu1 %v4591_v61, %s4997_s22  ;;  %v566_v16 = vshll.u32 %v5912_v3, 16  ;;  %v1314_v17 = vsel %vm5116_vm10, %v1309_v13, %v1313_v63  ;;  %v1645_v34 = vsel %vm5109_vm9, %v4608_v4, %v1644_v14  ;;  %v1646_v53 = vrot.slane %v1644_v14, 4  ;;  %v2757_v9 = vpop.permute.xlu0 %2756  ;;  %v742_v33 = vld [vmem:[#allocation2 + $0xc8] sm:$0x1]  ;;  %v3028_v56 = vld [vmem:[#allocation2 + $0xcc] sm:$0xf] }
 0x165   : > { %v1319_v22 = vrot.slane %v1318_v21, 4  ;;  %v1641_v23 = vsel %vm5109_vm9, %v1639_v40, %v1640_v10  ;;  %v569_v7 = vrot.slane %v565_v15, 4  ;;  %v571_v20 = vshrl.u32 %v303_v27, 16  ;;  %2797 = vst.msk [vmem:[#allocation3 + $0x40] sm:$0xff] %vm2788_vm5, %v2757_v9  ;;  %v2527_v38 = vld [vmem:[#allocation2 + $0xb8] sm:$0xf] }
 0x166   : > { %v568_v18 = vor.u32 %v566_v16, %v565_v15  ;;  %v4623_v12 = vcombine.low %v1638_v46, %v1641_v23  ;;  %v1648_v25 = vsel %vm5109_vm9, %v1646_v53, %v1647_v32  ;;  %v574_v26 = vshll.u32 %v303_v27, 16  ;;  %v2528_v44 = vld [vmem:[#allocation2 + $0xbc] sm:$0x1]  ;;  %v6028_v5 = vld [vmem:[#allocation2 + $0xd0] sm:$0xf] }
 0x167   : > { %v1324_v3 = vsel %vm5116_vm10, %v1319_v22, %v1323_v6  ;;  %v4624_v50 = vcombine.low %v1645_v34, %v1648_v25  ;;  %v573_v51 = vrot.slane %v571_v20, 7  ;;  %v2324_v36 = vshrl.u32 %v1981_v24, 16 }
 0x168   : > { %v4592_v42 = vcombine.low %v1314_v17, %v1324_v3  ;;  %v739_v31 = vsel %vm5124_vm11, %v568_v18, %v738_v1  ;;  %1725 = vrot.lane.b32.xlu0 %v4623_v12, %s4996_s21  ;;  %v2327_v28 = vshll.u32 %v1981_v24, 16  ;;  %v2333_v59 = vshll.u32 %v1982_v45, 16  ;;  %v2935_v49 = vpop.permute.xlu0 %2934  ;;  %vm6315_vm11 = vmmov %vm6314_vm1 }
 0x169   : > { %740 = vst [vmem:[#allocation2 + $0xc0] sm:$0xf] %v739_v31  ;;  %v2337_v58 = vshrl.u32 %v1982_v45, 16  ;;  %v576_v39 = vor.u32 %v574_v26, %v573_v51  ;;  %v578_v35 = vrot.slane %v573_v51, 4  ;;  %v2343_v43 = vshll.u32 %v1983_v30, 16  ;;  %2975 = vst.msk [vmem:[#allocation3 + $0x40] sm:$0xff] %vm2966_vm6, %v2935_v49 }
 0x16a   : > { %1403 = vrot.lane.b32.xlu1 %v4592_v42, %s4997_s22  ;;  %v4671_v47 = vrot.slane %v2526_v2, 9  ;;  %v2326_v37 = vrot.slane %v2324_v36, 4  ;;  %v2329_v48 = vrot.slane %v2327_v28, 5  ;;  %v2335_v52 = vrot.slane %v2333_v59, 5 }
 0x16b   : > { %v2339_v54 = vrot.slane %v2337_v58, 4  ;;  %v577_v57 = vsel %vm5132_vm12, %v569_v7, %v576_v39  ;;  %v2345_v61 = vrot.slane %v2343_v43, 5  ;;  %v743_v62 = vsel %vm5147_vm13, %v578_v35, %v742_v33  ;;  %vm6316_vm12 = vmmov %vm6314_vm1 }
 0x16c   : > { %v2680_v63 = vrot.slane %v2527_v38, 5  ;;  %1902 = vrot.lane.b32.xlu0 %v4975_v0, %s4998_s23  ;;  %741 = vst.msk [vmem:[#allocation2 + $0xc4] sm:$0xf] %vm216_vm0, %v577_v57  ;;  %v2330_v6 = vor.u32 %v2329_v48, %v2326_v37  ;;  %744 = vst [vmem:[#allocation2 + $0xc8] sm:$0x1] %v743_v62  ;;  %v2683_v10 = vrot.slane %v2528_v44, 5 }
 0x16d   : > { %v2438_v27 = vpop.permute.xlu1 %2437  ;;  %v2340_v8 = vor.u32 %v2339_v54, %v2335_v52  ;;  %v3392_v4 = vshrl.u32 %v3028_v56, 16  ;;  %v3395_v55 = vshll.u32 %v3028_v56, 16  ;;  %v3401_v21 = vshll.u32 %v6028_v5, 16  ;;  %v3030_v62 = vld [vmem:[#allocation2 + $0xd4] sm:$0x1]  ;;  %vm6319_vm13 = vmmov %vm6314_vm1 }
 0x16e   : > { %2477 = vst.msk [vmem:[#allocation3 + $0x48] sm:$0xff] %vm2467_vm4, %v2438_v27  ;;  %1727 = vrot.lane.b32.xlu1 %v4624_v50, %s4996_s21  ;;  %v2682_v41 = vrot.slane %v2680_v63, 4  ;;  %v2331_v60 = vrot.slane %v2330_v6, 4  ;;  %v2681_v32 = vsel %vm5109_vm9, %v4671_v47, %v2680_v63  ;;  %v3405_v7 = vshrl.u32 %v6028_v5, 16 }
 0x16f   : > { %v2341_v11 = vrot.slane %v2340_v8, 4  ;;  %v6034_v13 = vrot.slane %v3392_v4, 4  ;;  %v6047_v9 = vrot.slane %v3395_v55, 5 }
 0x170   : > { %v1984_v14 = vld [vmem:[#allocation2 + $0xc0] sm:$0xf]  ;;  %v2684_v46 = vsel %vm5109_vm9, %v2682_v41, %v2683_v10  ;;  %v2336_v16 = vsel %vm5116_vm10, %v2331_v60, %v2335_v52 }
 0x171   : > { %v2529_v40 = vld [vmem:[#allocation2 + $0xc0] sm:$0xe]  ;;  %v2759_v15 = vpop.permute.xlu1 %2758  ;;  %v2346_v17 = vsel %vm5116_vm10, %v2341_v11, %v2345_v61  ;;  %v2348_v22 = vshrl.u32 %v1984_v14, 16  ;;  %v2351_v34 = vshll.u32 %v1984_v14, 16  ;;  %v3480_v3 = vpop.permute.xlu0 %3479  ;;  %v4687_v26 = vcombine.low %v2681_v32, %v2684_v46 }
 0x172   : > { %v3025_v53 = vld [vmem:[#allocation2 + $0xc0] sm:$0xf]  ;;  %2798 = vst.msk [vmem:[#allocation3 + $0x48] sm:$0xff] %vm2788_vm5, %v2759_v15  ;;  %v4655_v1 = vcombine.low %v2336_v16, %v2346_v17  ;;  %v4672_v23 = vrot.slane %v2529_v40, 9  ;;  %v3398_v63 = vor.u32 %v6047_v9, %v6034_v13  ;;  %v3403_v14 = vrot.slane %v3401_v21, 5 }
 0x173   : > { %v3368_v18 = vshrl.u32 %v3025_v53, 16  ;;  %v2350_v20 = vrot.slane %v2348_v22, 4  ;;  %v2353_v24 = vrot.slane %v2351_v34, 5  ;;  %v3371_v45 = vshll.u32 %v3025_v53, 16  ;;  %v4976_v12 = vld [vmem:[#allocation2 + $0xc0] sm:$0xff]   ;;  %3520 = vst.msk [vmem:[#allocation3 + $0x40] sm:$0xff] %vm3511_vm7, %v3480_v3 }
 0x174   : > { %2447 = vrot.lane.b32.xlu0 %v4655_v1, %s5002_s27  ;;  %v1985_v25 = vld [vmem:[#allocation2 + $0xc4] sm:$0xf]  ;;  %v1986_v42 = vld [vmem:[#allocation2 + $0xc8] sm:$0x1]  ;;  %1904 = vrot.lane.b32.xlu1 %v4976_v12, %s4998_s23  ;;  %v3570_v4 = vld [vmem:[#allocation2 + $0xc0] sm:$0xe]  ;;  %s214_s23 = scalar_lea.vmem %s6301_s4, %s6325_s16 }
 0x175   : > { %v3370_v30 = vrot.slane %v3368_v18, 4  ;;  %v2937_v2 = vpop.permute.xlu1 %2936  ;;  %v2354_v50 = vor.u32 %v2353_v24, %v2350_v20  ;;  %v2357_v0 = vshll.u32 %v1985_v25, 16  ;;  %v2361_v51 = vshrl.u32 %v1985_v25, 16  ;;  %v2530_v31 = vld [vmem:[#allocation2 + $0xc4] sm:$0xf]  ;;  %v3801_v39 = vpop.permute.xlu0 %3800 }
 0x176   : > { %2976 = vst.msk [vmem:[#allocation3 + $0x48] sm:$0xff] %vm2966_vm6, %v2937_v2  ;;  %v2367_v33 = vshll.u32 %v1986_v42, 16  ;;  %v2531_v56 = vld [vmem:[#allocation2 + $0xc8] sm:$0x1]  ;;  %v2687_v36 = vrot.slane %v2530_v31, 5  ;;  %v4979_v43 = vld [vmem:[#allocation2 + $0xc0] sm:$0xff]  }
 0x177   : > { %v2355_v28 = vrot.slane %v2354_v50, 4  ;;  %v2359_v59 = vrot.slane %v2357_v0, 5  ;;  %v2363_v58 = vrot.slane %v2361_v51, 4  ;;  %v2690_v38 = vrot.slane %v2531_v56, 5  ;;  %v3026_v44 = vld [vmem:[#allocation2 + $0xc4] sm:$0xf] }
 0x178   : > { %2768 = vrot.lane.b32.xlu0 %v4687_v26, %s5000_s25  ;;  %v2689_v35 = vrot.slane %v2687_v36, 4  ;;  %v3027_v47 = vld [vmem:[#allocation2 + $0xc8] sm:$0x1]  ;;  %3841 = vst.msk [vmem:[#allocation3 + $0x40] sm:$0xff] %vm6315_vm11, %v3801_v39  ;;  %v2369_v37 = vrot.slane %v2367_v33, 5  ;;  %v3373_v48 = vrot.slane %v3371_v45, 5  ;;  %v2688_v54 = vsel %vm5109_vm9, %v4672_v23, %v2687_v36 }
 0x179   : > { %v2364_v49 = vor.u32 %v2363_v58, %v2359_v59  ;;  %v3377_v52 = vshll.u32 %v3026_v44, 16  ;;  %v3381_v57 = vshrl.u32 %v3026_v44, 16  ;;  %v3387_v61 = vshll.u32 %v3027_v47, 16  ;;  %v3571_v41 = vld [vmem:[#allocation2 + $0xc4] sm:$0xf]  ;;  %v4980_v33 = vld [vmem:[#allocation2 + $0xcc] sm:$0xff]  }
 0x17a   : > { %v2360_v27 = vsel %vm5116_vm10, %v2355_v28, %v2359_v59  ;;  %v3374_v8 = vor.u32 %v3373_v48, %v3370_v30  ;;  %v3803_v55 = vpop.permute.xlu0 %3802  ;;  %v2691_v60 = vsel %vm5109_vm9, %v2689_v35, %v2690_v38  ;;  %v3407_v32 = vrot.slane %v3405_v7, 4  ;;  %v3572_v13 = vld [vmem:[#allocation2 + $0xc8] sm:$0x1]  ;;  %v3574_v23 = vld [vmem:[#allocation2 + $0xd0] sm:$0xf] }
 0x17b   : > { %v2365_v6 = vrot.slane %v2364_v49, 4  ;;  %v3379_v10 = vrot.slane %v3377_v52, 5  ;;  %v3383_v11 = vrot.slane %v3381_v57, 4  ;;  %v3482_v46 = vpop.permute.xlu1 %3481  ;;  %v3389_v16 = vrot.slane %v3387_v61, 5  ;;  %v3573_v26 = vld [vmem:[#allocation2 + $0xcc] sm:$0xe] }
 0x17c   : > { %2946 = vrot.lane.b32.xlu0 %v4979_v43, %s4999_s24  ;;  %v3375_v15 = vrot.slane %v3374_v8, 4  ;;  %v3411_v17 = vshll.u32 %v3030_v62, 16  ;;  %3521 = vst.msk [vmem:[#allocation3 + $0x48] sm:$0xff] %vm3511_vm7, %v3482_v46  ;;  %v3408_v53 = vor.u32 %v3407_v32, %v3403_v14  ;;  %v4735_v1 = vrot.slane %v3570_v4, 9  ;;  %v3575_v50 = vld [vmem:[#allocation2 + $0xd4] sm:$0x1] }
 0x17d   : > { %v2370_v40 = vsel %vm5116_vm10, %v2365_v6, %v2369_v37  ;;  %v3384_v34 = vor.u32 %v3383_v11, %v3379_v10  ;;  %3842 = vst.msk [vmem:[#allocation3 + $0x48] sm:$0xff] %vm6316_vm12, %v3803_v55  ;;  %v3724_v5 = vrot.slane %v3571_v41, 5  ;;  %v3727_v21 = vrot.slane %v3572_v13, 5 }
 0x17e   : > { %v4656_v22 = vcombine.low %v2360_v27, %v2370_v40  ;;  %v4688_v7 = vcombine.low %v2688_v54, %v2691_v60  ;;  %v3380_v20 = vsel %vm5116_vm10, %v3375_v15, %v3379_v10  ;;  %v3399_v45 = vrot.slane %v3398_v63, 4 }
 0x17f   : > { %v3857_v18 = vld [vmem:[#allocation3 + $0x40] sm:$0xff]  ;;  %v3385_v24 = vrot.slane %v3384_v34, 4  ;;  %v1394_v9 = vpop.permute.xlu1 %1393  ;;  %v3409_v3 = vrot.slane %v3408_v53, 4  ;;  %v3413_v12 = vrot.slane %v3411_v17, 5  ;;  %v3726_v25 = vrot.slane %v3724_v5, 4 }
 0x180   : > { %2449 = vrot.lane.b32.xlu1 %v4656_v22, %s5002_s27  ;;  %4889 = vmatprep.mubr.msk.bf16.mxu1 %vm3901_vm8, %v3857_v18  ;;  %v3731_v30 = vrot.slane %v3574_v23, 5  ;;  %1432 = vst.msk [vmem:[#allocation3 + $0x50] sm:$0xff] %vm1421_vm15, %v1394_v9  ;;  %v3725_v42 = vsel %vm5109_vm9, %v4735_v1, %v3724_v5  ;;  %v3404_v56 = vsel %vm5116_vm10, %v3399_v45, %v3403_v14  ;;  %v4736_v36 = vrot.slane %v3573_v26, 9 }
 0x181   : > { %v3390_v2 = vsel %vm5116_vm10, %v3385_v24, %v3389_v16  ;;  %v1718_v0 = vpop.permute.xlu0 %1717  ;;  %v3728_v31 = vsel %vm5109_vm9, %v3726_v25, %v3727_v21  ;;  %v3414_v59 = vsel %vm5116_vm10, %v3409_v3, %v3413_v12  ;;  %v3734_v39 = vrot.slane %v3575_v50, 5  ;;  %vm6318_vm10 = vmmov %vm6314_vm1 }
 0x182   : > { %v4719_v51 = vcombine.low %v3380_v20, %v3390_v2  ;;  %1756 = vst.msk [vmem:[#allocation3 + $0x50] sm:$0xff] %vm1745_vm2, %v1718_v0  ;;  %v4751_v58 = vcombine.low %v3725_v42, %v3728_v31  ;;  %v3733_v38 = vrot.slane %v3731_v30, 4  ;;  %v4720_v44 = vcombine.low %v3404_v56, %v3414_v59 }
 0x183   : > { %v1396_v28 = vpop.permute.xlu1 %1395  ;;  %v3732_v29 = vsel %vm5109_vm9, %v4736_v36, %v3731_v30 }
 0x184   : > { %2770 = vrot.lane.b32.xlu1 %v4688_v7, %s5000_s25  ;;  %3491 = vrot.lane.b32.xlu0 %v4719_v51, %s5003_s28  ;;  %1433 = vst.msk [vmem:[#allocation3 + $0x58] sm:$0xff] %vm1421_vm15, %v1396_v28  ;;  %v3858_v35 = vld [vmem:[#allocation3 + $0x48] sm:$0xff]  ;;  %v3735_v49 = vsel %vm5109_vm9, %v3733_v38, %v3734_v39  ;;  %vm6317_vm9 = vmmov %vm6314_vm1 }
 0x185   : > { %v1895_v43 = vpop.permute.xlu0 %1894  ;;  %4890 = vmatmul.mubr.msk.bf16.vlgmr.msra.gmra.mrb[0].mxu1 %vm3901_vm8, %v3858_v35  ;;  %v4752_v37 = vcombine.low %v3732_v29, %v3735_v49 }
 0x186   : > { %1933 = vst.msk [vmem:[#allocation3 + $0x50] sm:$0xff] %vm1922_vm3, %v1895_v43 }
 0x187   : > { %v1720_v47 = vpop.permute.xlu1 %1719 }
 0x188   : > { %2948 = vrot.lane.b32.xlu1 %v4980_v33, %s4999_s24  ;;  %3812 = vrot.lane.b32.xlu0 %v4751_v58, %s5001_s26  ;;  %1757 = vst.msk [vmem:[#allocation3 + $0x58] sm:$0xff] %vm1745_vm2, %v1720_v47 }
 0x18c   : > { %3493 = vrot.lane.b32.xlu1 %v4720_v44, %s5003_s28 }
 0x18d   : > { %v2440_v48 = vpop.permute.xlu0 %2439 }
 0x18e   : > { %2478 = vst.msk [vmem:[#allocation3 + $0x50] sm:$0xff] %vm2467_vm4, %v2440_v48  ;;  %v1897_v52 = vpop.permute.xlu1 %1896 }
 0x18f   : > { %1934 = vst.msk [vmem:[#allocation3 + $0x58] sm:$0xff] %vm1922_vm3, %v1897_v52 }
 0x190   : > { %3814 = vrot.lane.b32.xlu1 %v4752_v37, %s5001_s26 }
 0x191   : > { %v2761_v54 = vpop.permute.xlu0 %2760 }
 0x192   : > { %2799 = vst.msk [vmem:[#allocation3 + $0x50] sm:$0xff] %vm2788_vm5, %v2761_v54 }
 0x195   : > { %v2939_v57 = vpop.permute.xlu0 %2938 }
 0x196   : > { %2977 = vst.msk [vmem:[#allocation3 + $0x50] sm:$0xff] %vm2966_vm6, %v2939_v57 }
 0x19a   : > { %v2442_v19 = vpop.permute.xlu1 %2441 }
 0x19b   : > { %2479 = vst.msk [vmem:[#allocation3 + $0x58] sm:$0xff] %vm2467_vm4, %v2442_v19 }
 0x19e   : > { %v2763_v61 = vpop.permute.xlu1 %2762 }
 0x19f   : > { %2800 = vst.msk [vmem:[#allocation3 + $0x58] sm:$0xff] %vm2788_vm5, %v2763_v61  ;;  %v3484_v62 = vpop.permute.xlu0 %3483 }
 0x1a0   : > { %3522 = vst.msk [vmem:[#allocation3 + $0x50] sm:$0xff] %vm3511_vm7, %v3484_v62 }
 0x1a2   : > { %v2941_v63 = vpop.permute.xlu1 %2940 }
 0x1a3   : > { %2978 = vst.msk [vmem:[#allocation3 + $0x58] sm:$0xff] %vm2966_vm6, %v2941_v63  ;;  %v3805_v27 = vpop.permute.xlu0 %3804 }
 0x1a4   : > { %3843 = vst.msk [vmem:[#allocation3 + $0x50] sm:$0xff] %vm6317_vm9, %v3805_v27 }
 0x1a7   : > { %v3486_v6 = vpop.permute.xlu1 %3485  ;;  %v3807_v8 = vpop.permute.xlu0 %3806 }
 0x1a8   : > { %3523 = vst.msk [vmem:[#allocation3 + $0x58] sm:$0xff] %vm3511_vm7, %v3486_v6 }
 0x1a9   : > { %3844 = vst.msk [vmem:[#allocation3 + $0x58] sm:$0xff] %vm6318_vm10, %v3807_v8 }
 0x1ab   : > { %v1398_v10 = vpop.permute.xlu1 %1397  ;;  %v3859_v4 = vld [vmem:[#allocation3 + $0x50] sm:$0xff] }
 0x1ac   : > { %1434 = vst.msk [vmem:[#allocation3 + $0x60] sm:$0xff] %vm1421_vm15, %v1398_v10  ;;  %4893 = vmatprep.mubr.msk.bf16.mxu1 %vm3901_vm8, %v3859_v4 }
 0x1ae   : > { %v1722_v41 = vpop.permute.xlu0 %1721 }
 0x1af   : > { %v1400_v55 = vpop.permute.xlu1 %1399  ;;  %1758 = vst.msk [vmem:[#allocation3 + $0x60] sm:$0xff] %vm1745_vm2, %v1722_v41 }
 0x1b0   : > { %1435 = vst.msk [vmem:[#allocation3 + $0x68] sm:$0xff] %vm1421_vm15, %v1400_v55  ;;  %v3860_v60 = vld [vmem:[#allocation3 + $0x58] sm:$0xff] }
 0x1b1   : > { %4894 = vmatmul.mubr.msk.bf16.gmra.mrb[4].mxu1 %vm3901_vm8, %v3860_v60 }
 0x1b2   : > { %v1899_v11 = vpop.permute.xlu0 %1898 }
 0x1b3   : > { %v1724_v14 = vpop.permute.xlu1 %1723  ;;  %1935 = vst.msk [vmem:[#allocation3 + $0x60] sm:$0xff] %vm1922_vm3, %v1899_v11 }
 0x1b4   : > { %1759 = vst.msk [vmem:[#allocation3 + $0x68] sm:$0xff] %vm1745_vm2, %v1724_v14 }
 0x1ba   : > { %v2444_v32 = vpop.permute.xlu0 %2443  ;;  %v1901_v13 = vpop.permute.xlu1 %1900 }
 0x1bb   : > { %2480 = vst.msk [vmem:[#allocation3 + $0x60] sm:$0xff] %vm2467_vm4, %v2444_v32 }
 0x1bc   : > { %1936 = vst.msk [vmem:[#allocation3 + $0x68] sm:$0xff] %vm1922_vm3, %v1901_v13 }
 0x1be   : > { %v2765_v46 = vpop.permute.xlu0 %2764 }
 0x1bf   : > { %2801 = vst.msk [vmem:[#allocation3 + $0x60] sm:$0xff] %vm2788_vm5, %v2765_v46 }
 0x1c2   : > { %v2943_v40 = vpop.permute.xlu0 %2942 }
 0x1c3   : > { %2979 = vst.msk [vmem:[#allocation3 + $0x60] sm:$0xff] %vm2966_vm6, %v2943_v40 }
 0x1c6   : > { %v2446_v15 = vpop.permute.xlu1 %2445 }
 0x1c7   : > { %2481 = vst.msk [vmem:[#allocation3 + $0x68] sm:$0xff] %vm2467_vm4, %v2446_v15 }
 0x1ca   : > { %v2767_v16 = vpop.permute.xlu1 %2766  ;;  %v3488_v17 = vpop.permute.xlu0 %3487 }
 0x1cb   : > { %2802 = vst.msk [vmem:[#allocation3 + $0x68] sm:$0xff] %vm2788_vm5, %v2767_v16 }
 0x1cc   : > { %3524 = vst.msk [vmem:[#allocation3 + $0x60] sm:$0xff] %vm3511_vm7, %v3488_v17 }
 0x1ce   : > { %v2945_v22 = vpop.permute.xlu1 %2944  ;;  %v3809_v34 = vpop.permute.xlu0 %3808 }
 0x1cf   : > { %2980 = vst.msk [vmem:[#allocation3 + $0x68] sm:$0xff] %vm2966_vm6, %v2945_v22  ;;  %v4875_v53 = vpop.f32.mrb[0].mxu0 }
 0x1d0   : > { %3845 = vst.msk [vmem:[#allocation3 + $0x60] sm:$0xff] %vm6319_vm13, %v3809_v34  ;;  %v4812_v1 = vpack.c.bf16 %v4875_v53, %v4875_v53  ;;  %v3988_v23 = vpop.f32.mrb[1].mxu0  ;;  %v4347_v20 = vmul.f32 %v4875_v53, %v4875_v53  ;;  %v4278_v50 = vsel %vm873_vm14, %v4875_v53, 0.0 }
 0x1d1   : > { %v4810_v21 = vpack.c.bf16 %v3988_v23, %v3988_v23  ;;  %v4345_v18 = vmul.f32 %v3988_v23, %v3988_v23  ;;  %v4876_v7 = vpop.f32.mrb[2].mxu0  ;;  %v4275_v3 = vsel %vm873_vm14, %v3988_v23, 0.0 }
 0x1d2   : > { %v3490_v5 = vpop.permute.xlu1 %3489  ;;  %4245 = vst.msk [vmem:[%s6132_s18 + $0x8] sm:$0xf] %vm216_vm0, %v4812_v1  ;;  %v4813_v24 = vpack.c.bf16 %v4876_v7, %v4876_v7  ;;  %v3991_v45 = vpop.f32.mrb[3].mxu0  ;;  %v4348_v30 = vmul.f32 %v4876_v7, %v4876_v7  ;;  %v4380_v36 = vsel %vm873_vm14, %v4347_v20, 0.0  ;;  %v4280_v59 = vsel %vm873_vm14, %v4876_v7, 0.0 }
 0x1d3   : > { %3525 = vst.msk [vmem:[#allocation3 + $0x68] sm:$0xff] %vm3511_vm7, %v3490_v5  ;;  %v3811_v9 = vpop.permute.xlu0 %3810  ;;  %v4811_v12 = vpack.c.bf16 %v3991_v45, %v3991_v45  ;;  %v4276_v25 = vsel %vm873_vm14, %v3991_v45, 0.0  ;;  %v4346_v26 = vmul.f32 %v3991_v45, %v3991_v45  ;;  %v4377_v0 = vsel %vm873_vm14, %v4345_v18, 0.0 }
 0x1d4   : > { %4243 = vst.msk [vmem:[%s6132_s18] sm:$0xf] %vm216_vm0, %v4810_v21  ;;  %4246 = vst.msk [vmem:[%s6132_s18 + $0xc] sm:$0xf] %vm216_vm0, %v4813_v24  ;;  %v4277_v2 = vadd.f32 %v4276_v25, %v4275_v3  ;;  %v4382_v58 = vsel %vm873_vm14, %v4348_v30, 0.0 }
 0x1d5   : > { %3846 = vst.msk [vmem:[#allocation3 + $0x68] sm:$0xff] %vm6314_vm1, %v3811_v9  ;;  %v4378_v51 = vsel %vm873_vm14, %v4346_v26, 0.0 }
 0x1d6   : > { %v1402_v42 = vpop.permute.xlu1 %1401  ;;  %4244 = vst.msk [vmem:[%s6132_s18 + $0x4] sm:$0xf] %vm216_vm0, %v4811_v12  ;;  %v4279_v33 = vadd.f32 %v4278_v50, %v4277_v2  ;;  %v4379_v56 = vadd.f32 %v4378_v51, %v4377_v0 }
 0x1d7   : > { %1436 = vst.msk [vmem:[#allocation3 + $0x70] sm:$0xff] %vm1421_vm15, %v1402_v42  ;;  %v3861_v31 = vld [vmem:[#allocation3 + $0x60] sm:$0xff]  ;;  %v4879_v28 = vpop.f32.mrb[4].mxu0 }
 0x1d8   : > { %4897 = vmatprep.mubr.msk.bf16.mxu1 %vm3901_vm8, %v3861_v31  ;;  %v4381_v38 = vadd.f32 %v4380_v36, %v4379_v56  ;;  %v4816_v39 = vpack.c.bf16 %v4879_v28, %v4879_v28  ;;  %v4004_v35 = vpop.f32.mrb[5].mxu0  ;;  %v4281_v44 = vadd.f32 %v4280_v59, %v4279_v33  ;;  %v4351_v27 = vmul.f32 %v4879_v28, %v4879_v28 }
 0x1d9   : > { %v4814_v43 = vpack.c.bf16 %v4004_v35, %v4004_v35  ;;  %v4282_v47 = vsel %vm873_vm14, %v4004_v35, 0.0  ;;  %v4349_v29 = vmul.f32 %v4004_v35, %v4004_v35  ;;  %v4880_v49 = vpop.f32.mrb[6].mxu0  ;;  %v4286_v55 = vsel %vm873_vm14, %v4879_v28, 0.0 }
 0x1da   : > { %v1726_v37 = vpop.permute.xlu0 %1725  ;;  %4249 = vst.msk [vmem:[%s6132_s18 + $0x18] sm:$0xf] %vm216_vm0, %v4816_v39  ;;  %v4383_v48 = vadd.f32 %v4382_v58, %v4381_v38  ;;  %v4817_v52 = vpack.c.bf16 %v4880_v49, %v4880_v49  ;;  %v4007_v54 = vpop.f32.mrb[7].mxu0  ;;  %v4283_v61 = vadd.f32 %v4282_v47, %v4281_v44  ;;  %v4352_v60 = vmul.f32 %v4880_v49, %v4880_v49 }
 0x1db   : > { %1760 = vst.msk [vmem:[#allocation3 + $0x70] sm:$0xff] %vm1745_vm2, %v1726_v37  ;;  %v4384_v62 = vsel %vm873_vm14, %v4349_v29, 0.0  ;;  %v4815_v63 = vpack.c.bf16 %v4007_v54, %v4007_v54  ;;  %v4284_v8 = vsel %vm873_vm14, %v4007_v54, 0.0  ;;  %v4350_v10 = vmul.f32 %v4007_v54, %v4007_v54 }
 0x1dc   : > { %v1404_v57 = vpop.permute.xlu1 %1403  ;;  %v3862_v19 = vld [vmem:[#allocation3 + $0x68] sm:$0xff]  ;;  %4247 = vst.msk [vmem:[%s6132_s18 + $0x10] sm:$0xf] %vm216_vm0, %v4814_v43  ;;  %v4385_v6 = vadd.f32 %v4384_v62, %v4383_v48  ;;  %4250 = vst.msk [vmem:[%s6132_s18 + $0x1c] sm:$0xf] %vm216_vm0, %v4817_v52  ;;  %v4285_v4 = vadd.f32 %v4284_v8, %v4283_v61  ;;  %v4388_v46 = vsel %vm873_vm14, %v4351_v27, 0.0 }
 0x1dd   : > { %1437 = vst.msk [vmem:[#allocation3 + $0x78] sm:$0xff] %vm1421_vm15, %v1404_v57  ;;  %4898 = vmatmul.mubr.msk.bf16.gmra.mrb[8].mxu1 %vm3901_vm8, %v3862_v19  ;;  %v4386_v11 = vsel %vm873_vm14, %v4350_v10, 0.0  ;;  %v4288_v40 = vsel %vm873_vm14, %v4880_v49, 0.0  ;;  %v4390_v17 = vsel %vm873_vm14, %v4352_v60, 0.0  ;;  %vm6320_vm15 = vmmov %vm6314_vm1 }
 0x1de   : > { %4248 = vst.msk [vmem:[%s6132_s18 + $0x14] sm:$0xf] %vm216_vm0, %v4815_v63  ;;  %v1903_v41 = vpop.permute.xlu0 %1902  ;;  %v4287_v32 = vadd.f32 %v4286_v55, %v4285_v4  ;;  %v4387_v13 = vadd.f32 %v4386_v11, %v4385_v6 }
 0x1df   : > { %1937 = vst.msk [vmem:[#allocation3 + $0x70] sm:$0xff] %vm1922_vm3, %v1903_v41 }
 0x1e0   : > { %v1728_v14 = vpop.permute.xlu1 %1727  ;;  %v4389_v15 = vadd.f32 %v4388_v46, %v4387_v13  ;;  %v4289_v16 = vadd.f32 %v4288_v40, %v4287_v32 }
 0x1e1   : > { %1761 = vst.msk [vmem:[#allocation3 + $0x78] sm:$0xff] %vm1745_vm2, %v1728_v14  ;;  %vm6321_vm2 = vmmov %vm6314_vm1 }
 0x1e2   : > { %v4391_v22 = vadd.f32 %v4390_v17, %v4389_v15 }
 0x1e6   : > { %v2448_v34 = vpop.permute.xlu0 %2447  ;;  %v1905_v53 = vpop.permute.xlu1 %1904 }
 0x1e7   : > { %2482 = vst.msk [vmem:[#allocation3 + $0x70] sm:$0xff] %vm2467_vm4, %v2448_v34 }
 0x1e8   : > { %1938 = vst.msk [vmem:[#allocation3 + $0x78] sm:$0xff] %vm1922_vm3, %v1905_v53 }
 0x1ea   : > { %v2769_v1 = vpop.permute.xlu0 %2768 }
 0x1eb   : > { %2803 = vst.msk [vmem:[#allocation3 + $0x70] sm:$0xff] %vm2788_vm5, %v2769_v1 }
 0x1ee   : > { %v2947_v23 = vpop.permute.xlu0 %2946 }
 0x1ef   : > { %2981 = vst.msk [vmem:[#allocation3 + $0x70] sm:$0xff] %vm2966_vm6, %v2947_v23 }
 0x1f2   : > { %v2450_v5 = vpop.permute.xlu1 %2449 }
 0x1f3   : > { %2483 = vst.msk [vmem:[#allocation3 + $0x78] sm:$0xff] %vm2467_vm4, %v2450_v5 }
 0x1f6   : > { %v2771_v21 = vpop.permute.xlu1 %2770  ;;  %v3492_v18 = vpop.permute.xlu0 %3491 }
 0x1f7   : > { %2804 = vst.msk [vmem:[#allocation3 + $0x78] sm:$0xff] %vm2788_vm5, %v2771_v21 }
 0x1f8   : > { %3526 = vst.msk [vmem:[#allocation3 + $0x70] sm:$0xff] %vm3511_vm7, %v3492_v18 }
 0x1fa   : > { %v2949_v7 = vpop.permute.xlu1 %2948  ;;  %v3813_v20 = vpop.permute.xlu0 %3812 }
 0x1fb   : > { %2982 = vst.msk [vmem:[#allocation3 + $0x78] sm:$0xff] %vm2966_vm6, %v2949_v7 }
 0x1fc   : > { %3847 = vst.msk [vmem:[#allocation3 + $0x70] sm:$0xff] %vm6320_vm15, %v3813_v20 }
 0x1fd   : > { %v4883_v45 = vpop.f32.mrb[8].mxu0 }
 0x1fe   : > { %v3494_v24 = vpop.permute.xlu1 %3493  ;;  %v4820_v9 = vpack.c.bf16 %v4883_v45, %v4883_v45  ;;  %v4020_v3 = vpop.f32.mrb[9].mxu0  ;;  %v4355_v36 = vmul.f32 %v4883_v45, %v4883_v45  ;;  %v4294_v38 = vsel %vm873_vm14, %v4883_v45, 0.0 }
 0x1ff   : > { %3527 = vst.msk [vmem:[#allocation3 + $0x78] sm:$0xff] %vm3511_vm7, %v3494_v24  ;;  %v4818_v12 = vpack.c.bf16 %v4020_v3, %v4020_v3  ;;  %v4290_v25 = vsel %vm873_vm14, %v4020_v3, 0.0  ;;  %v4353_v26 = vmul.f32 %v4020_v3, %v4020_v3  ;;  %v4884_v30 = vpop.f32.mrb[10].mxu0 }
 0x200   : > { %4253 = vst.msk [vmem:[%s6132_s18 + $0x28] sm:$0xf] %vm216_vm0, %v4820_v9  ;;  %v4291_v42 = vadd.f32 %v4290_v25, %v4289_v16  ;;  %v4821_v50 = vpack.c.bf16 %v4884_v30, %v4884_v30  ;;  %v4023_v0 = vpop.f32.mrb[11].mxu0  ;;  %v4356_v39 = vmul.f32 %v4884_v30, %v4884_v30  ;;  %v4296_v44 = vsel %vm873_vm14, %v4884_v30, 0.0 }
 0x201   : > { %4251 = vst.msk [vmem:[%s6132_s18 + $0x20] sm:$0xf] %vm216_vm0, %v4818_v12  ;;  %v4392_v31 = vsel %vm873_vm14, %v4353_v26, 0.0  ;;  %v4819_v33 = vpack.c.bf16 %v4023_v0, %v4023_v0  ;;  %v4292_v56 = vsel %vm873_vm14, %v4023_v0, 0.0  ;;  %v4354_v58 = vmul.f32 %v4023_v0, %v4023_v0 }
 0x202   : > { %v3815_v2 = vpop.permute.xlu1 %3814  ;;  %v4393_v28 = vadd.f32 %v4392_v31, %v4391_v22  ;;  %4254 = vst.msk [vmem:[%s6132_s18 + $0x2c] sm:$0xf] %vm216_vm0, %v4821_v50  ;;  %v4293_v59 = vadd.f32 %v4292_v56, %v4291_v42  ;;  %v4396_v29 = vsel %vm873_vm14, %v4355_v36, 0.0  ;;  %v4398_v52 = vsel %vm873_vm14, %v4356_v39, 0.0 }
 0x203   : > { %3848 = vst.msk [vmem:[#allocation3 + $0x78] sm:$0xff] %vm6321_vm2, %v3815_v2  ;;  %v3863_v51 = vld [vmem:[#allocation3 + $0x70] sm:$0xff]  ;;  %v4394_v43 = vsel %vm873_vm14, %v4354_v58, 0.0 }
 0x204   : > { %4901 = vmatprep.mubr.msk.bf16.mxu1 %vm3901_vm8, %v3863_v51  ;;  %4252 = vst.msk [vmem:[%s6132_s18 + $0x24] sm:$0xf] %vm216_vm0, %v4819_v33  ;;  %v4295_v35 = vadd.f32 %v4294_v38, %v4293_v59  ;;  %v4395_v47 = vadd.f32 %v4394_v43, %v4393_v28 }
 0x206   : > { %v4297_v49 = vadd.f32 %v4296_v44, %v4295_v35  ;;  %v4397_v37 = vadd.f32 %v4396_v29, %v4395_v47 }
 0x208   : > { %v4399_v54 = vadd.f32 %v4398_v52, %v4397_v37 }
 0x20a   : > { %v3864_v48 = vld [vmem:[#allocation3 + $0x78] sm:$0xff] }
 0x20b   : > { %4902 = vmatmul.mubr.msk.bf16.gmra.mrb[12].mxu1 %vm3901_vm8, %v3864_v48 }
 0x229   : > { %v4887_v57 = vpop.f32.mrb[12].mxu0 }
 0x22a   : > { %v4824_v19 = vpack.c.bf16 %v4887_v57, %v4887_v57  ;;  %v4036_v61 = vpop.f32.mrb[13].mxu0  ;;  %v4359_v11 = vmul.f32 %v4887_v57, %v4887_v57  ;;  %v4302_v46 = vsel %vm873_vm14, %v4887_v57, 0.0 }
 0x22b   : > { %v4822_v62 = vpack.c.bf16 %v4036_v61, %v4036_v61  ;;  %v4298_v63 = vsel %vm873_vm14, %v4036_v61, 0.0  ;;  %v4357_v27 = vmul.f32 %v4036_v61, %v4036_v61  ;;  %v4888_v6 = vpop.f32.mrb[14].mxu0 }
 0x22c   : > { %4257 = vst.msk [vmem:[%s6132_s18 + $0x38] sm:$0xf] %vm216_vm0, %v4824_v19  ;;  %v4299_v8 = vadd.f32 %v4298_v63, %v4297_v49  ;;  %v4825_v10 = vpack.c.bf16 %v4888_v6, %v4888_v6  ;;  %v4039_v4 = vpop.f32.mrb[15].mxu0  ;;  %v4360_v40 = vmul.f32 %v4888_v6, %v4888_v6  ;;  %v4304_v17 = vsel %vm873_vm14, %v4888_v6, 0.0 }
 0x22d   : > { %4255 = vst.msk [vmem:[%s6132_s18 + $0x30] sm:$0xf] %vm216_vm0, %v4822_v62  ;;  %v4400_v41 = vsel %vm873_vm14, %v4357_v27, 0.0  ;;  %v4823_v55 = vpack.c.bf16 %v4039_v4, %v4039_v4  ;;  %v4300_v60 = vsel %vm873_vm14, %v4039_v4, 0.0  ;;  %v4358_v13 = vmul.f32 %v4039_v4, %v4039_v4 }
 0x22e   : > { %v4401_v14 = vadd.f32 %v4400_v41, %v4399_v54  ;;  %4258 = vst.msk [vmem:[%s6132_s18 + $0x3c] sm:$0xf] %vm216_vm0, %v4825_v10  ;;  %v4301_v32 = vadd.f32 %v4300_v60, %v4299_v8  ;;  %v4404_v34 = vsel %vm873_vm14, %v4359_v11, 0.0  ;;  %v4406_v23 = vsel %vm873_vm14, %v4360_v40, 0.0 }
 0x22f   : > { %4256 = vst.msk [vmem:[%s6132_s18 + $0x34] sm:$0xf] %vm216_vm0, %v4823_v55  ;;  %v4402_v16 = vsel %vm873_vm14, %v4358_v13, 0.0 }
 0x230   : > { %v4303_v15 = vadd.f32 %v4302_v46, %v4301_v32  ;;  %v4403_v22 = vadd.f32 %v4402_v16, %v4401_v14 }
 0x232   : > { %v4305_v53 = vadd.f32 %v4304_v17, %v4303_v15  ;;  %v4405_v1 = vadd.f32 %v4404_v34, %v4403_v22 }
 0x234   : > { %v4407_v5 = vadd.f32 %v4406_v23, %v4405_v1 }
 0x258   : > { %v4891_v21 = vpop.f32.mrb[0].mxu1 }
 0x259   : > { %v4828_v18 = vpack.c.bf16 %v4891_v21, %v4891_v21  ;;  %v4052_v7 = vpop.f32.mrb[1].mxu1  ;;  %v4363_v42 = vmul.f32 %v4891_v21, %v4891_v21  ;;  %v4310_v31 = vsel %vm873_vm14, %v4891_v21, 0.0 }
 0x25a   : > { %v4826_v20 = vpack.c.bf16 %v4052_v7, %v4052_v7  ;;  %v4306_v24 = vsel %vm873_vm14, %v4052_v7, 0.0  ;;  %v4361_v45 = vmul.f32 %v4052_v7, %v4052_v7  ;;  %v4892_v9 = vpop.f32.mrb[2].mxu1 }
 0x25b   : > { %4261 = vst.msk [vmem:[%s6132_s18 + $0x48] sm:$0xf] %vm216_vm0, %v4828_v18  ;;  %v4307_v3 = vadd.f32 %v4306_v24, %v4305_v53  ;;  %v4829_v12 = vpack.c.bf16 %v4892_v9, %v4892_v9  ;;  %v4055_v25 = vpop.f32.mrb[3].mxu1  ;;  %v4364_v33 = vmul.f32 %v4892_v9, %v4892_v9  ;;  %v4312_v28 = vsel %vm873_vm14, %v4892_v9, 0.0 }
 0x25c   : > { %4259 = vst.msk [vmem:[%s6132_s18 + $0x40] sm:$0xf] %vm216_vm0, %v4826_v20  ;;  %v4408_v26 = vsel %vm873_vm14, %v4361_v45, 0.0  ;;  %v4827_v30 = vpack.c.bf16 %v4055_v25, %v4055_v25  ;;  %v4308_v2 = vsel %vm873_vm14, %v4055_v25, 0.0  ;;  %v4362_v51 = vmul.f32 %v4055_v25, %v4055_v25 }
 0x25d   : > { %v4409_v50 = vadd.f32 %v4408_v26, %v4407_v5  ;;  %4262 = vst.msk [vmem:[%s6132_s18 + $0x4c] sm:$0xf] %vm216_vm0, %v4829_v12  ;;  %v4309_v0 = vadd.f32 %v4308_v2, %v4307_v3  ;;  %v4412_v58 = vsel %vm873_vm14, %v4363_v42, 0.0  ;;  %v4414_v35 = vsel %vm873_vm14, %v4364_v33, 0.0 }
 0x25e   : > { %4260 = vst.msk [vmem:[%s6132_s18 + $0x44] sm:$0xf] %vm216_vm0, %v4827_v30  ;;  %v4410_v36 = vsel %vm873_vm14, %v4362_v51, 0.0 }
 0x25f   : > { %v4311_v56 = vadd.f32 %v4310_v31, %v4309_v0  ;;  %v4411_v59 = vadd.f32 %v4410_v36, %v4409_v50 }
 0x261   : > { %v4313_v38 = vadd.f32 %v4312_v28, %v4311_v56  ;;  %v4413_v39 = vadd.f32 %v4412_v58, %v4411_v59 }
 0x263   : > { %v4415_v43 = vadd.f32 %v4414_v35, %v4413_v39 }
 0x284   : > { %v4895_v44 = vpop.f32.mrb[4].mxu1 }
 0x285   : > { %v4832_v47 = vpack.c.bf16 %v4895_v44, %v4895_v44  ;;  %v4068_v29 = vpop.f32.mrb[5].mxu1  ;;  %v4367_v27 = vmul.f32 %v4895_v44, %v4895_v44  ;;  %v4318_v4 = vsel %vm873_vm14, %v4895_v44, 0.0 }
 0x286   : > { %v4830_v49 = vpack.c.bf16 %v4068_v29, %v4068_v29  ;;  %v4314_v37 = vsel %vm873_vm14, %v4068_v29, 0.0  ;;  %v4365_v48 = vmul.f32 %v4068_v29, %v4068_v29  ;;  %v4896_v52 = vpop.f32.mrb[6].mxu1 }
 0x287   : > { %4265 = vst.msk [vmem:[%s6132_s18 + $0x58] sm:$0xf] %vm216_vm0, %v4832_v47  ;;  %v4315_v54 = vadd.f32 %v4314_v37, %v4313_v38  ;;  %v4833_v57 = vpack.c.bf16 %v4896_v52, %v4896_v52  ;;  %v4071_v19 = vpop.f32.mrb[7].mxu1  ;;  %v4368_v41 = vmul.f32 %v4896_v52, %v4896_v52  ;;  %v4320_v11 = vsel %vm873_vm14, %v4896_v52, 0.0 }
 0x288   : > { %4263 = vst.msk [vmem:[%s6132_s18 + $0x50] sm:$0xf] %vm216_vm0, %v4830_v49  ;;  %v4416_v61 = vsel %vm873_vm14, %v4365_v48, 0.0  ;;  %v4831_v62 = vpack.c.bf16 %v4071_v19, %v4071_v19  ;;  %v4316_v63 = vsel %vm873_vm14, %v4071_v19, 0.0  ;;  %v4366_v10 = vmul.f32 %v4071_v19, %v4071_v19 }
 0x289   : > { %v4417_v6 = vadd.f32 %v4416_v61, %v4415_v43  ;;  %4266 = vst.msk [vmem:[%s6132_s18 + $0x5c] sm:$0xf] %vm216_vm0, %v4833_v57  ;;  %v4317_v8 = vadd.f32 %v4316_v63, %v4315_v54  ;;  %v4420_v32 = vsel %vm873_vm14, %v4367_v27, 0.0  ;;  %v4422_v40 = vsel %vm873_vm14, %v4368_v41, 0.0 }
 0x28a   : > { %4264 = vst.msk [vmem:[%s6132_s18 + $0x54] sm:$0xf] %vm216_vm0, %v4831_v62  ;;  %v4418_v60 = vsel %vm873_vm14, %v4366_v10, 0.0 }
 0x28b   : > { %v4319_v55 = vadd.f32 %v4318_v4, %v4317_v8  ;;  %v4419_v14 = vadd.f32 %v4418_v60, %v4417_v6 }
 0x28d   : > { %v4321_v13 = vadd.f32 %v4320_v11, %v4319_v55  ;;  %v4421_v46 = vadd.f32 %v4420_v32, %v4419_v14 }
 0x28f   : > { %v4423_v15 = vadd.f32 %v4422_v40, %v4421_v46 }
 0x2b0   : > { %v4899_v16 = vpop.f32.mrb[8].mxu1 }
 0x2b1   : > { %v4836_v17 = vpack.c.bf16 %v4899_v16, %v4899_v16  ;;  %v4084_v22 = vpop.f32.mrb[9].mxu1  ;;  %v4371_v45 = vmul.f32 %v4899_v16, %v4899_v16  ;;  %v4326_v25 = vsel %vm873_vm14, %v4899_v16, 0.0 }
 0x2b2   : > { %v4834_v34 = vpack.c.bf16 %v4084_v22, %v4084_v22  ;;  %v4322_v53 = vsel %vm873_vm14, %v4084_v22, 0.0  ;;  %v4369_v1 = vmul.f32 %v4084_v22, %v4084_v22  ;;  %v4900_v23 = vpop.f32.mrb[10].mxu1 }
 0x2b3   : > { %4269 = vst.msk [vmem:[%s6132_s18 + $0x68] sm:$0xf] %vm216_vm0, %v4836_v17  ;;  %v4323_v5 = vadd.f32 %v4322_v53, %v4321_v13  ;;  %v4837_v21 = vpack.c.bf16 %v4900_v23, %v4900_v23  ;;  %v4087_v18 = vpop.f32.mrb[11].mxu1  ;;  %v4372_v26 = vmul.f32 %v4900_v23, %v4900_v23  ;;  %v4328_v42 = vsel %vm873_vm14, %v4900_v23, 0.0 }
 0x2b4   : > { %4267 = vst.msk [vmem:[%s6132_s18 + $0x60] sm:$0xf] %vm216_vm0, %v4834_v34  ;;  %v4424_v7 = vsel %vm873_vm14, %v4369_v1, 0.0  ;;  %v4835_v20 = vpack.c.bf16 %v4087_v18, %v4087_v18  ;;  %v4324_v24 = vsel %vm873_vm14, %v4087_v18, 0.0  ;;  %v4370_v12 = vmul.f32 %v4087_v18, %v4087_v18 }
 0x2b5   : > { %v4425_v9 = vadd.f32 %v4424_v7, %v4423_v15  ;;  %4270 = vst.msk [vmem:[%s6132_s18 + $0x6c] sm:$0xf] %vm216_vm0, %v4837_v21  ;;  %v4325_v3 = vadd.f32 %v4324_v24, %v4323_v5  ;;  %v4428_v0 = vsel %vm873_vm14, %v4371_v45, 0.0  ;;  %v4430_v33 = vsel %vm873_vm14, %v4372_v26, 0.0 }
 0x2b6   : > { %4268 = vst.msk [vmem:[%s6132_s18 + $0x64] sm:$0xf] %vm216_vm0, %v4835_v20  ;;  %v4426_v2 = vsel %vm873_vm14, %v4370_v12, 0.0 }
 0x2b7   : > { %v4327_v30 = vadd.f32 %v4326_v25, %v4325_v3  ;;  %v4427_v50 = vadd.f32 %v4426_v2, %v4425_v9 }
 0x2b9   : > { %v4329_v51 = vadd.f32 %v4328_v42, %v4327_v30  ;;  %v4429_v31 = vadd.f32 %v4428_v0, %v4427_v50 }
 0x2bb   : > { %v4431_v56 = vadd.f32 %v4430_v33, %v4429_v31 }
 0x2de   : > { %v4903_v36 = vpop.f32.mrb[12].mxu1 }
 0x2df   : > { %v4840_v28 = vpack.c.bf16 %v4903_v36, %v4903_v36  ;;  %v4100_v59 = vpop.f32.mrb[13].mxu1  ;;  %v4375_v48 = vmul.f32 %v4903_v36, %v4903_v36  ;;  %v4334_v19 = vsel %vm873_vm14, %v4903_v36, 0.0 }
 0x2e0   : > { %v4838_v58 = vpack.c.bf16 %v4100_v59, %v4100_v59  ;;  %v4330_v38 = vsel %vm873_vm14, %v4100_v59, 0.0  ;;  %v4373_v39 = vmul.f32 %v4100_v59, %v4100_v59  ;;  %v4904_v35 = vpop.f32.mrb[14].mxu1 }
 0x2e1   : > { %4273 = vst.msk [vmem:[%s6132_s18 + $0x78] sm:$0xf] %vm216_vm0, %v4840_v28  ;;  %v4331_v43 = vadd.f32 %v4330_v38, %v4329_v51  ;;  %v4841_v44 = vpack.c.bf16 %v4904_v35, %v4904_v35  ;;  %v4103_v47 = vpop.f32.mrb[15].mxu1  ;;  %v4376_v61 = vmul.f32 %v4904_v35, %v4904_v35  ;;  %v4336_v27 = vsel %vm873_vm14, %v4904_v35, 0.0 }
 0x2e2   : > { %4271 = vst.msk [vmem:[%s6132_s18 + $0x70] sm:$0xf] %vm216_vm0, %v4838_v58  ;;  %v4432_v29 = vsel %vm873_vm14, %v4373_v39, 0.0  ;;  %v4839_v49 = vpack.c.bf16 %v4103_v47, %v4103_v47  ;;  %v4332_v37 = vsel %vm873_vm14, %v4103_v47, 0.0  ;;  %v4374_v57 = vmul.f32 %v4103_v47, %v4103_v47 }
 0x2e3   : > { %v4433_v52 = vadd.f32 %v4432_v29, %v4431_v56  ;;  %4274 = vst.msk [vmem:[%s6132_s18 + $0x7c] sm:$0xf] %vm216_vm0, %v4841_v44  ;;  %v4333_v54 = vadd.f32 %v4332_v37, %v4331_v43  ;;  %v4436_v8 = vsel %vm873_vm14, %v4375_v48, 0.0  ;;  %v4438_v41 = vsel %vm873_vm14, %v4376_v61, 0.0 }
 0x2e4   : > { %4272 = vst.msk [vmem:[%s6132_s18 + $0x74] sm:$0xf] %vm216_vm0, %v4839_v49  ;;  %v4434_v63 = vsel %vm873_vm14, %v4374_v57, 0.0  ;;  %vm6322_vm0 = vcmask 57344  }
 0x2e5   : > { %v4335_v62 = vadd.f32 %v4334_v19, %v4333_v54  ;;  %v4435_v6 = vadd.f32 %v4434_v63, %v4433_v52  ;;  %vm6323_vm14 = vmmov %vm6322_vm0 }
 0x2e7   : > { %v4337_v10 = vadd.f32 %v4336_v27, %v4335_v62  ;;  %v4437_v4 = vadd.f32 %v4436_v8, %v4435_v6 }
 0x2e9   : > { %v4338_v55 = vrot.slane %v4337_v10, 4  ;;  %v4439_v60 = vadd.f32 %v4438_v41, %v4437_v4 }
 0x2eb   : > { %v4339_v11 = vadd.f32 %v4338_v55, %v4337_v10  ;;  %v4440_v14 = vrot.slane %v4439_v60, 4 }
 0x2ed   : > { %v4340_v32 = vrot.slane %v4339_v11, 2  ;;  %v4441_v13 = vadd.f32 %v4440_v14, %v4439_v60 }
 0x2ef   : > { %v4341_v46 = vadd.f32 %v4340_v32, %v4339_v11  ;;  %v4442_v40 = vrot.slane %v4441_v13, 2 }
 0x2f1   : > { %v4342_v15 = vrot.slane %v4341_v46, 1  ;;  %v4443_v16 = vadd.f32 %v4442_v40, %v4441_v13 }
 0x2f3   : > { %v4343_v17 = vadd.f32 %v4342_v15, %v4341_v46  ;;  %v4444_v22 = vrot.slane %v4443_v16, 1 }
 0x2f5   : > { %4344 = vst.msk [vmem:[%s211_s20] sm:$0x1] %vm6322_vm0, %v4343_v17  ;;  %v4445_v34 = vadd.f32 %v4444_v22, %v4443_v16 }
 0x2f7   : > { %4446 = vst.msk [vmem:[%s214_s23] sm:$0x1] %vm6323_vm14, %v4445_v34 }
 0x2f8 PF: > { %s15_s15 = sadd.s32 1, %s4993_s15  }
 0x2f9   : > { %p12_p4 = scmp.ge.s32.totalorder %s15_s15, 4  }
 0x2fb   :  { %14 = sbr.rel (!%p12_p4) target bundleno = 1 (0x1), region = 84 }

</bundles_post_ra>
